<compile_context>
chip_gen: v7x
topology: tpu7x:2x2x1
jax: 0.10.0
libtpu: 0.0.40
codegen_flags: <defaults>
</compile_context>

<pallas_src>
import functools

import jax
import jax.numpy as jnp
import numpy as np
from jax.experimental import pallas as pl
from jax.experimental.pallas import tpu as pltpu


def _rnn_kernel(x_ref, gnw_ref, gnb_ref, wih_ref, bf_ref, bb_ref,
                whhf_ref, whhb_ref, fcwf_ref, fcwb_ref, fcb_ref,
                o_ref,
                gxf_scr, gxb_scr, hf_scr, hb_scr,
                *, hidden: int):
    H = hidden
    x = x_ref[...]                        # (T, BKt, N) f32, time-major
    T, BKt, N = x.shape

    # ---- GroupNorm(N, N): stats over time (axis 0) per (sequence, feature) ----
    mean = jnp.mean(x, axis=0, keepdims=True)
    var = jnp.mean((x - mean) ** 2, axis=0, keepdims=True)
    xn = (x - mean) * jax.lax.rsqrt(var + 1e-5)
    xn = xn * gnw_ref[...] + gnb_ref[...]                         # (1, N) broadcast

    # ---- hoisted input projection: both directions in ONE MXU matmul ----
    # wih is (N, 8H): columns [0, 4H) = forward gates, [4H, 8H) = backward gates.
    gates_x = jnp.dot(xn, wih_ref[...],
                      preferred_element_type=jnp.float32)          # (T, BKt, 8H)
    gxf_scr[...] = gates_x[:, :, :4 * H] + bf_ref[...]
    gxb_scr[...] = gates_x[:, :, 4 * H:] + bb_ref[...]

    whh_f = whhf_ref[...]
    whh_b = whhb_ref[...]

    def gate_update(gates, c):
        # PyTorch LSTM gate order: i, f, g, o.  With H a multiple of 128 every
        # slice below starts on a lane-tile boundary (cheap slicing).
        i = jax.nn.sigmoid(gates[:, 0 * H:1 * H])
        f = jax.nn.sigmoid(gates[:, 1 * H:2 * H])
        g = jnp.tanh(gates[:, 2 * H:3 * H])
        o = jax.nn.sigmoid(gates[:, 3 * H:4 * H])
        c = f * c + i * g
        h = o * jnp.tanh(c)
        return h, c

    def step(s, carry):
        # Fused fwd (time s) + bwd (time T-1-s): the two chains are independent,
        # so interleaving hides the MXU/EUP latency of one under the other.
        h_f, c_f, h_b, c_b = carry
        tb = T - 1 - s
        gates_f = gxf_scr[s] + jnp.dot(h_f, whh_f,
                                       preferred_element_type=jnp.float32)
        gates_b = gxb_scr[tb] + jnp.dot(h_b, whh_b,
                                        preferred_element_type=jnp.float32)
        h_f, c_f = gate_update(gates_f, c_f)
        h_b, c_b = gate_update(gates_b, c_b)
        hf_scr[s] = h_f
        hb_scr[tb] = h_b
        return h_f, c_f, h_b, c_b

    zeros = jnp.zeros((BKt, H), jnp.float32)
    carry = (zeros, zeros, zeros, zeros)
    if T <= 32:
        # Small static T: fully unroll for scheduler visibility across both directions.
        for s in range(T):
            carry = step(s, carry)
    else:
        carry = jax.lax.fori_loop(0, T, step, carry)

    # ---- Linear(2H -> N) without concatenate: split weight halves; + residual ----
    out = (jnp.dot(hf_scr[...], fcwf_ref[...], preferred_element_type=jnp.float32)
           + jnp.dot(hb_scr[...], fcwb_ref[...], preferred_element_type=jnp.float32)
           + fcb_ref[...])
    o_ref[...] = out + x


def _full_spec(shape):
    nd = len(shape)
    return pl.BlockSpec(shape, lambda i: (0,) * nd)


def _vmem_limit_bytes(T, bkt, N, H):
    f32 = 4
    io_blocks = 2 * (T * bkt * N) * f32 * 2                       # x/out, double-buffered
    weights = (2 * N + N * 8 * H + 2 * 4 * H + 2 * H * 4 * H
               + 2 * H * N + N) * f32
    scratch = (2 * T * bkt * 4 * H + 2 * T * bkt * H) * f32
    est = io_blocks + 2 * weights + scratch
    # Demo sizes land on the 32 MiB default; larger problems scale up (capped for v7x).
    return int(min(max(32 * 1024 * 1024, 2 * est), 64 * 1024 * 1024))


def rnn_module_forward(x, params, hidden, *, bk_tile=None):
    """x: (B, K, T, N) float32 -> (B, T, K, N) float32."""
    B, K, T, N = x.shape
    H = hidden
    BK = B * K
    if bk_tile is None:
        # Tune for real workloads; must divide BK and keep the block in VMEM.
        bk_tile = BK if (BK <= 8 or BK % 8 != 0) else 8
    assert BK % bk_tile == 0, (BK, bk_tile)
    n_blocks = BK // bk_tile

    # Time-major layout for the whole kernel (transpose handled by XLA outside).
    x_tm = jnp.transpose(x.reshape(BK, T, N), (1, 0, 2))          # (T, BK, N)

    kernel = functools.partial(_rnn_kernel, hidden=H)

    in_specs = [
        pl.BlockSpec((T, bk_tile, N), lambda i: (0, i, 0)),       # x (time-major)
        _full_spec((1, N)), _full_spec((1, N)),                   # groupnorm w / b
        _full_spec((N, 8 * H)),                                   # wih fwd|bwd combined
        _full_spec((1, 4 * H)), _full_spec((1, 4 * H)),           # biases fwd / bwd
        _full_spec((H, 4 * H)), _full_spec((H, 4 * H)),           # whh fwd / bwd
        _full_spec((H, N)), _full_spec((H, N)),                   # fc weight halves
        _full_spec((1, N)),                                       # fc bias
    ]
    out_specs = pl.BlockSpec((T, bk_tile, N), lambda i: (0, i, 0))

    scratch_shapes = [
        pltpu.VMEM((T, bk_tile, 4 * H), jnp.float32),             # fwd input-proj gates
        pltpu.VMEM((T, bk_tile, 4 * H), jnp.float32),             # bwd input-proj gates
        pltpu.VMEM((T, bk_tile, H), jnp.float32),                 # fwd hidden states
        pltpu.VMEM((T, bk_tile, H), jnp.float32),                 # bwd hidden states
    ]

    out_tm = pl.pallas_call(
        kernel,
        out_shape=jax.ShapeDtypeStruct((T, BK, N), jnp.float32),
        grid_spec=pltpu.PrefetchScalarGridSpec(
            num_scalar_prefetch=0,
            grid=(n_blocks,),
            in_specs=in_specs,
            out_specs=out_specs,
            scratch_shapes=scratch_shapes),
        compiler_params=pltpu.CompilerParams(
            dimension_semantics=("parallel",),
            vmem_limit_bytes=_vmem_limit_bytes(T, bk_tile, N, H)),
    )(x_tm,
      params['gnw'], params['gnb'],
      params['wih'], params['bf'], params['bb'],
      params['whhf'], params['whhb'],
      params['fcwf'], params['fcwb'], params['fcb'])

    # (T, BK, N) -> (B, T, K, N): fold the module's final permute into the wrapper.
    return jnp.transpose(out_tm.reshape(T, B, K, N), (1, 0, 2, 3))


def reference_forward(x, params, hidden):
    """Pure-JAX reference matching the PyTorch RNNModule."""
    B, K, T, N = x.shape
    H = hidden
    xf = x.reshape(B * K, T, N)
    mean = xf.mean(axis=1, keepdims=True)
    var = ((xf - mean) ** 2).mean(axis=1, keepdims=True)
    xn = (xf - mean) / jnp.sqrt(var + 1e-5) * params['gnw'] + params['gnb']

    wih_f = params['wih'][:, :4 * H]
    wih_b = params['wih'][:, 4 * H:]

    def run_dir(wih, whh, b, reverse):
        seq = xn[:, ::-1, :] if reverse else xn
        seq_t = jnp.swapaxes(seq, 0, 1)                 # (T, BK, N)

        def step(carry, xt):
            h, c = carry
            g = xt @ wih + h @ whh + b
            i, f, gg, o = jnp.split(g, 4, axis=-1)
            c = jax.nn.sigmoid(f) * c + jax.nn.sigmoid(i) * jnp.tanh(gg)
            h = jax.nn.sigmoid(o) * jnp.tanh(c)
            return (h, c), h

        h0 = jnp.zeros((B * K, H), jnp.float32)
        c0 = jnp.zeros((B * K, H), jnp.float32)
        _, hs = jax.lax.scan(step, (h0, c0), seq_t)
        hs = jnp.swapaxes(hs, 0, 1)                     # (BK, T, H)
        return hs[:, ::-1, :] if reverse else hs

    hf = run_dir(wih_f, params['whhf'], params['bf'][0], reverse=False)
    hb = run_dir(wih_b, params['whhb'], params['bb'][0], reverse=True)
    out = hf @ params['fcwf'] + hb @ params['fcwb'] + params['fcb'] + xf
    return jnp.transpose(out.reshape(B, K, T, N), (0, 2, 1, 3))


def make_params(key, n_feat, hidden):
    ks = jax.random.split(key, 10)
    H = hidden
    s_rnn = 1.0 / np.sqrt(H)
    s_fc = 1.0 / np.sqrt(2 * H)
    u = lambda k, shape, s: jax.random.uniform(k, shape, jnp.float32, -s, s)
    return {
        # GroupNorm affine (perturbed from default 1/0 so the test is non-trivial)
        'gnw': 1.0 + 0.1 * jax.random.normal(ks[0], (1, n_feat), jnp.float32),
        'gnb': 0.1 * jax.random.normal(ks[1], (1, n_feat), jnp.float32),
        # input projection, stored transposed and concatenated: (N, 8H) = [fwd | bwd]
        'wih': u(ks[2], (n_feat, 8 * H), s_rnn),
        # combined (bias_ih + bias_hh) per direction: (1, 4H)
        'bf': u(ks[3], (1, 4 * H), s_rnn),
        'bb': u(ks[4], (1, 4 * H), s_rnn),
        # recurrent weights per direction, stored transposed: (H, 4H)
        'whhf': u(ks[5], (H, 4 * H), s_rnn),
        'whhb': u(ks[6], (H, 4 * H), s_rnn),
        # Linear(2H -> N) split into the forward / backward halves: (H, N) each
        'fcwf': u(ks[7], (H, n_feat), s_fc),
        'fcwb': u(ks[8], (H, n_feat), s_fc),
        'fcb': u(ks[9], (1, n_feat), s_fc),
    }


if __name__ == "__main__":
    # B*K = 16 with bk_tile = 8 -> grid of 2 "parallel" blocks; H = 128 keeps all
    # gate slices lane-aligned.
    B, K, T, N, H = 2, 8, 16, 16, 128

    key = jax.random.PRNGKey(0)
    kx, kp = jax.random.split(key)
    x = jax.random.normal(kx, (B, K, T, N), jnp.float32)
    params = make_params(kp, N, H)

    out = jax.block_until_ready(rnn_module_forward(x, params, H, bk_tile=8))
    ref = jax.block_until_ready(reference_forward(x, params, H))

    assert out.shape == (B, T, K, N), out.shape
    np.testing.assert_allclose(np.asarray(out), np.asarray(ref), rtol=1e-4, atol=2e-4)
    print("KERNEL_OK")
</pallas_src>

<mosaic_0001>
module attributes {stable_mosaic.version = 11 : i64} {
  func.func @_rnn_kernel(%arg0: i32, %arg1: memref<16x8x16xf32, #tpu.memory_space<vmem>>, %arg2: memref<1x16xf32, #tpu.memory_space<vmem>>, %arg3: memref<1x16xf32, #tpu.memory_space<vmem>>, %arg4: memref<16x1024xf32, #tpu.memory_space<vmem>>, %arg5: memref<1x512xf32, #tpu.memory_space<vmem>>, %arg6: memref<1x512xf32, #tpu.memory_space<vmem>>, %arg7: memref<128x512xf32, #tpu.memory_space<vmem>>, %arg8: memref<128x512xf32, #tpu.memory_space<vmem>>, %arg9: memref<128x16xf32, #tpu.memory_space<vmem>>, %arg10: memref<128x16xf32, #tpu.memory_space<vmem>>, %arg11: memref<1x16xf32, #tpu.memory_space<vmem>>, %arg12: memref<16x8x16xf32, #tpu.memory_space<vmem>>, %arg13: memref<16x8x512xf32, #tpu.memory_space<vmem>>, %arg14: memref<16x8x512xf32, #tpu.memory_space<vmem>>, %arg15: memref<16x8x128xf32, #tpu.memory_space<vmem>>, %arg16: memref<16x8x128xf32, #tpu.memory_space<vmem>>) attributes {dimension_semantics = [#tpu.dimension_semantics<parallel>], iteration_bounds = array<i64: 2>, scalar_prefetch = 0 : i64, scratch_operands = 4 : i64, tpu.core_type = #tpu.core_type<tc>, window_params = [{transform_indices = @transform_0, window_bounds = array<i64: 16, 8, 16>}, {pipeline_mode = #tpu.pipeline_mode<synchronous>, transform_indices = @transform_1, window_bounds = array<i64: 1, 16>}, {pipeline_mode = #tpu.pipeline_mode<synchronous>, transform_indices = @transform_2, window_bounds = array<i64: 1, 16>}, {pipeline_mode = #tpu.pipeline_mode<synchronous>, transform_indices = @transform_3, window_bounds = array<i64: 16, 1024>}, {pipeline_mode = #tpu.pipeline_mode<synchronous>, transform_indices = @transform_4, window_bounds = array<i64: 1, 512>}, {pipeline_mode = #tpu.pipeline_mode<synchronous>, transform_indices = @transform_5, window_bounds = array<i64: 1, 512>}, {pipeline_mode = #tpu.pipeline_mode<synchronous>, transform_indices = @transform_6, window_bounds = array<i64: 128, 512>}, {pipeline_mode = #tpu.pipeline_mode<synchronous>, transform_indices = @transform_7, window_bounds = array<i64: 128, 512>}, {pipeline_mode = #tpu.pipeline_mode<synchronous>, transform_indices = @transform_8, window_bounds = array<i64: 128, 16>}, {pipeline_mode = #tpu.pipeline_mode<synchronous>, transform_indices = @transform_9, window_bounds = array<i64: 128, 16>}, {pipeline_mode = #tpu.pipeline_mode<synchronous>, transform_indices = @transform_10, window_bounds = array<i64: 1, 16>}, {transform_indices = @transform_11, window_bounds = array<i64: 16, 8, 16>}]} {
    %c0 = arith.constant 0 : index
    %c0_0 = arith.constant 0 : index
    %c0_1 = arith.constant 0 : index
    %0 = vector.load %arg1[%c0, %c0_0, %c0_1] : memref<16x8x16xf32, #tpu.memory_space<vmem>>, vector<16x8x16xf32>
    %cst = arith.constant dense<0.000000e+00> : vector<8x16xf32>
    %1 = vector.multi_reduction <add>, %0, %cst [0] : vector<16x8x16xf32> to vector<8x16xf32>
    %2 = vector.shape_cast %1 : vector<8x16xf32> to vector<1x8x16xf32>
    %cst_2 = arith.constant 1.600000e+01 : f32
    %3 = vector.broadcast %cst_2 : f32 to vector<1x8x16xf32>
    %4 = arith.divf %2, %3 : vector<1x8x16xf32>
    %5 = vector.broadcast %4 : vector<1x8x16xf32> to vector<16x8x16xf32>
    %6 = arith.subf %0, %5 : vector<16x8x16xf32>
    %7 = arith.mulf %6, %6 : vector<16x8x16xf32>
    %cst_3 = arith.constant dense<0.000000e+00> : vector<8x16xf32>
    %8 = vector.multi_reduction <add>, %7, %cst_3 [0] : vector<16x8x16xf32> to vector<8x16xf32>
    %9 = vector.shape_cast %8 : vector<8x16xf32> to vector<1x8x16xf32>
    %cst_4 = arith.constant 1.600000e+01 : f32
    %10 = vector.broadcast %cst_4 : f32 to vector<1x8x16xf32>
    %11 = arith.divf %9, %10 : vector<1x8x16xf32>
    %12 = vector.broadcast %4 : vector<1x8x16xf32> to vector<16x8x16xf32>
    %13 = arith.subf %0, %12 : vector<16x8x16xf32>
    %cst_5 = arith.constant 9.99999974E-6 : f32
    %14 = vector.broadcast %cst_5 : f32 to vector<1x8x16xf32>
    %15 = arith.addf %11, %14 : vector<1x8x16xf32>
    %16 = math.rsqrt %15 : vector<1x8x16xf32>
    %17 = vector.broadcast %16 : vector<1x8x16xf32> to vector<16x8x16xf32>
    %18 = arith.mulf %13, %17 : vector<16x8x16xf32>
    %c0_6 = arith.constant 0 : index
    %c0_7 = arith.constant 0 : index
    %19 = vector.load %arg2[%c0_6, %c0_7] : memref<1x16xf32, #tpu.memory_space<vmem>>, vector<1x16xf32>
    %20 = vector.shape_cast %19 : vector<1x16xf32> to vector<1x1x16xf32>
    %21 = vector.broadcast %20 : vector<1x1x16xf32> to vector<16x8x16xf32>
    %22 = arith.mulf %18, %21 : vector<16x8x16xf32>
    %c0_8 = arith.constant 0 : index
    %c0_9 = arith.constant 0 : index
    %23 = vector.load %arg3[%c0_8, %c0_9] : memref<1x16xf32, #tpu.memory_space<vmem>>, vector<1x16xf32>
    %24 = vector.shape_cast %23 : vector<1x16xf32> to vector<1x1x16xf32>
    %25 = vector.broadcast %24 : vector<1x1x16xf32> to vector<16x8x16xf32>
    %26 = arith.addf %22, %25 : vector<16x8x16xf32>
    %c0_10 = arith.constant 0 : index
    %c0_11 = arith.constant 0 : index
    %27 = vector.load %arg4[%c0_10, %c0_11] : memref<16x1024xf32, #tpu.memory_space<vmem>>, vector<16x1024xf32>
    %cst_12 = arith.constant dense<0.000000e+00> : vector<16x8x1024xf32>
    %28 = tpu.matmul %26, %27, %cst_12 {dimension_numbers = #tpu.dot_dimension_numbers<[2], [0], [0, 1], [1], [0, 0, 0, 1, 1, 1], [], []>} : vector<16x8x16xf32>, vector<16x1024xf32>, vector<16x8x1024xf32> -> vector<16x8x1024xf32>
    %29 = vector.extract_strided_slice %28 {offsets = [0, 0, 0], sizes = [16, 8, 512], strides = [1, 1, 1]} : vector<16x8x1024xf32> to vector<16x8x512xf32>
    %c0_13 = arith.constant 0 : index
    %c0_14 = arith.constant 0 : index
    %30 = vector.load %arg5[%c0_13, %c0_14] : memref<1x512xf32, #tpu.memory_space<vmem>>, vector<1x512xf32>
    %31 = vector.shape_cast %30 : vector<1x512xf32> to vector<1x1x512xf32>
    %32 = vector.broadcast %31 : vector<1x1x512xf32> to vector<16x8x512xf32>
    %33 = arith.addf %29, %32 : vector<16x8x512xf32>
    %c0_15 = arith.constant 0 : index
    %c0_16 = arith.constant 0 : index
    %c0_17 = arith.constant 0 : index
    %34 = vector.load %arg13[%c0_15, %c0_16, %c0_17] : memref<16x8x512xf32, #tpu.memory_space<vmem>>, vector<16x8x512xf32>
    tpu.vector_store %arg13[%c0_15, %c0_16, %c0_17], %33 {strides = array<i32>} : memref<16x8x512xf32, #tpu.memory_space<vmem>>, vector<16x8x512xf32>,
    %35 = vector.extract_strided_slice %28 {offsets = [0, 0, 512], sizes = [16, 8, 512], strides = [1, 1, 1]} : vector<16x8x1024xf32> to vector<16x8x512xf32>
    %c0_18 = arith.constant 0 : index
    %c0_19 = arith.constant 0 : index
    %36 = vector.load %arg6[%c0_18, %c0_19] : memref<1x512xf32, #tpu.memory_space<vmem>>, vector<1x512xf32>
    %37 = vector.shape_cast %36 : vector<1x512xf32> to vector<1x1x512xf32>
    %38 = vector.broadcast %37 : vector<1x1x512xf32> to vector<16x8x512xf32>
    %39 = arith.addf %35, %38 : vector<16x8x512xf32>
    %c0_20 = arith.constant 0 : index
    %c0_21 = arith.constant 0 : index
    %c0_22 = arith.constant 0 : index
    %40 = vector.load %arg14[%c0_20, %c0_21, %c0_22] : memref<16x8x512xf32, #tpu.memory_space<vmem>>, vector<16x8x512xf32>
    tpu.vector_store %arg14[%c0_20, %c0_21, %c0_22], %39 {strides = array<i32>} : memref<16x8x512xf32, #tpu.memory_space<vmem>>, vector<16x8x512xf32>,
    %c0_23 = arith.constant 0 : index
    %c0_24 = arith.constant 0 : index
    %41 = vector.load %arg7[%c0_23, %c0_24] : memref<128x512xf32, #tpu.memory_space<vmem>>, vector<128x512xf32>
    %c0_25 = arith.constant 0 : index
    %c0_26 = arith.constant 0 : index
    %42 = vector.load %arg8[%c0_25, %c0_26] : memref<128x512xf32, #tpu.memory_space<vmem>>, vector<128x512xf32>
    %cst_27 = arith.constant 0.000000e+00 : f32
    %43 = vector.broadcast %cst_27 : f32 to vector<8x128xf32>
    %c0_28 = arith.constant 0 : index
    %c0_29 = arith.constant 0 : index
    %c0_30 = arith.constant 0 : index
    %44 = vector.load %arg13[%c0_28, %c0_29, %c0_30] : memref<16x8x512xf32, #tpu.memory_space<vmem>>, vector<1x8x512xf32>
    %45 = vector.shape_cast %44 : vector<1x8x512xf32> to vector<8x512xf32>
    %cst_31 = arith.constant dense<0.000000e+00> : vector<8x512xf32>
    %46 = tpu.matmul %43, %41, %cst_31 {dimension_numbers = #tpu.dot_dimension_numbers<[1], [0], [0], [1], [0, 0, 1, 1], [], []>} : vector<8x128xf32>, vector<128x512xf32>, vector<8x512xf32> -> vector<8x512xf32>
    %47 = arith.addf %45, %46 : vector<8x512xf32>
    %c15 = arith.constant 15 : index
    %c0_32 = arith.constant 0 : index
    %c0_33 = arith.constant 0 : index
    %48 = vector.load %arg14[%c15, %c0_32, %c0_33] : memref<16x8x512xf32, #tpu.memory_space<vmem>>, vector<1x8x512xf32>
    %49 = vector.shape_cast %48 : vector<1x8x512xf32> to vector<8x512xf32>
    %cst_34 = arith.constant dense<0.000000e+00> : vector<8x512xf32>
    %50 = tpu.matmul %43, %42, %cst_34 {dimension_numbers = #tpu.dot_dimension_numbers<[1], [0], [0], [1], [0, 0, 1, 1], [], []>} : vector<8x128xf32>, vector<128x512xf32>, vector<8x512xf32> -> vector<8x512xf32>
    %51 = arith.addf %49, %50 : vector<8x512xf32>
    %52 = vector.extract_strided_slice %47 {offsets = [0, 0], sizes = [8, 128], strides = [1, 1]} : vector<8x512xf32> to vector<8x128xf32>
    %53 = arith.negf %52 : vector<8x128xf32>
    %54 = math.exp %53 : vector<8x128xf32>
    %cst_35 = arith.constant 1.000000e+00 : f32
    %55 = vector.broadcast %cst_35 : f32 to vector<8x128xf32>
    %56 = arith.addf %55, %54 : vector<8x128xf32>
    %57 = arith.divf %55, %56 : vector<8x128xf32>
    %58 = vector.extract_strided_slice %47 {offsets = [0, 128], sizes = [8, 128], strides = [1, 1]} : vector<8x512xf32> to vector<8x128xf32>
    %59 = arith.negf %58 : vector<8x128xf32>
    %60 = math.exp %59 : vector<8x128xf32>
    %cst_36 = arith.constant 1.000000e+00 : f32
    %61 = vector.broadcast %cst_36 : f32 to vector<8x128xf32>
    %62 = arith.addf %61, %60 : vector<8x128xf32>
    %63 = arith.divf %61, %62 : vector<8x128xf32>
    %64 = vector.extract_strided_slice %47 {offsets = [0, 256], sizes = [8, 128], strides = [1, 1]} : vector<8x512xf32> to vector<8x128xf32>
    %65 = math.tanh %64 : vector<8x128xf32>
    %66 = vector.extract_strided_slice %47 {offsets = [0, 384], sizes = [8, 128], strides = [1, 1]} : vector<8x512xf32> to vector<8x128xf32>
    %67 = arith.negf %66 : vector<8x128xf32>
    %68 = math.exp %67 : vector<8x128xf32>
    %cst_37 = arith.constant 1.000000e+00 : f32
    %69 = vector.broadcast %cst_37 : f32 to vector<8x128xf32>
    %70 = arith.addf %69, %68 : vector<8x128xf32>
    %71 = arith.divf %69, %70 : vector<8x128xf32>
    %72 = arith.mulf %63, %43 : vector<8x128xf32>
    %73 = arith.mulf %57, %65 : vector<8x128xf32>
    %74 = arith.addf %72, %73 : vector<8x128xf32>
    %75 = math.tanh %74 : vector<8x128xf32>
    %76 = arith.mulf %71, %75 : vector<8x128xf32>
    %77 = vector.extract_strided_slice %51 {offsets = [0, 0], sizes = [8, 128], strides = [1, 1]} : vector<8x512xf32> to vector<8x128xf32>
    %78 = arith.negf %77 : vector<8x128xf32>
    %79 = math.exp %78 : vector<8x128xf32>
    %cst_38 = arith.constant 1.000000e+00 : f32
    %80 = vector.broadcast %cst_38 : f32 to vector<8x128xf32>
    %81 = arith.addf %80, %79 : vector<8x128xf32>
    %82 = arith.divf %80, %81 : vector<8x128xf32>
    %83 = vector.extract_strided_slice %51 {offsets = [0, 128], sizes = [8, 128], strides = [1, 1]} : vector<8x512xf32> to vector<8x128xf32>
    %84 = arith.negf %83 : vector<8x128xf32>
    %85 = math.exp %84 : vector<8x128xf32>
    %cst_39 = arith.constant 1.000000e+00 : f32
    %86 = vector.broadcast %cst_39 : f32 to vector<8x128xf32>
    %87 = arith.addf %86, %85 : vector<8x128xf32>
    %88 = arith.divf %86, %87 : vector<8x128xf32>
    %89 = vector.extract_strided_slice %51 {offsets = [0, 256], sizes = [8, 128], strides = [1, 1]} : vector<8x512xf32> to vector<8x128xf32>
    %90 = math.tanh %89 : vector<8x128xf32>
    %91 = vector.extract_strided_slice %51 {offsets = [0, 384], sizes = [8, 128], strides = [1, 1]} : vector<8x512xf32> to vector<8x128xf32>
    %92 = arith.negf %91 : vector<8x128xf32>
    %93 = math.exp %92 : vector<8x128xf32>
    %cst_40 = arith.constant 1.000000e+00 : f32
    %94 = vector.broadcast %cst_40 : f32 to vector<8x128xf32>
    %95 = arith.addf %94, %93 : vector<8x128xf32>
    %96 = arith.divf %94, %95 : vector<8x128xf32>
    %97 = arith.mulf %88, %43 : vector<8x128xf32>
    %98 = arith.mulf %82, %90 : vector<8x128xf32>
    %99 = arith.addf %97, %98 : vector<8x128xf32>
    %100 = math.tanh %99 : vector<8x128xf32>
    %101 = arith.mulf %96, %100 : vector<8x128xf32>
    %c0_41 = arith.constant 0 : index
    %c0_42 = arith.constant 0 : index
    %c0_43 = arith.constant 0 : index
    %102 = vector.load %arg15[%c0_41, %c0_42, %c0_43] : memref<16x8x128xf32, #tpu.memory_space<vmem>>, vector<1x8x128xf32>
    %103 = vector.shape_cast %102 : vector<1x8x128xf32> to vector<8x128xf32>
    %104 = vector.shape_cast %76 : vector<8x128xf32> to vector<1x8x128xf32>
    tpu.vector_store %arg15[%c0_41, %c0_42, %c0_43], %104 {strides = array<i32>} : memref<16x8x128xf32, #tpu.memory_space<vmem>>, vector<1x8x128xf32>,
    %c15_44 = arith.constant 15 : index
    %c0_45 = arith.constant 0 : index
    %c0_46 = arith.constant 0 : index
    %105 = vector.load %arg16[%c15_44, %c0_45, %c0_46] : memref<16x8x128xf32, #tpu.memory_space<vmem>>, vector<1x8x128xf32>
    %106 = vector.shape_cast %105 : vector<1x8x128xf32> to vector<8x128xf32>
    %107 = vector.shape_cast %101 : vector<8x128xf32> to vector<1x8x128xf32>
    tpu.vector_store %arg16[%c15_44, %c0_45, %c0_46], %107 {strides = array<i32>} : memref<16x8x128xf32, #tpu.memory_space<vmem>>, vector<1x8x128xf32>,
    %c1 = arith.constant 1 : index
    %c0_47 = arith.constant 0 : index
    %c0_48 = arith.constant 0 : index
    %108 = vector.load %arg13[%c1, %c0_47, %c0_48] : memref<16x8x512xf32, #tpu.memory_space<vmem>>, vector<1x8x512xf32>
    %109 = vector.shape_cast %108 : vector<1x8x512xf32> to vector<8x512xf32>
    %cst_49 = arith.constant dense<0.000000e+00> : vector<8x512xf32>
    %110 = tpu.matmul %76, %41, %cst_49 {dimension_numbers = #tpu.dot_dimension_numbers<[1], [0], [0], [1], [0, 0, 1, 1], [], []>} : vector<8x128xf32>, vector<128x512xf32>, vector<8x512xf32> -> vector<8x512xf32>
    %111 = arith.addf %109, %110 : vector<8x512xf32>
    %c14 = arith.constant 14 : index
    %c0_50 = arith.constant 0 : index
    %c0_51 = arith.constant 0 : index
    %112 = vector.load %arg14[%c14, %c0_50, %c0_51] : memref<16x8x512xf32, #tpu.memory_space<vmem>>, vector<1x8x512xf32>
    %113 = vector.shape_cast %112 : vector<1x8x512xf32> to vector<8x512xf32>
    %cst_52 = arith.constant dense<0.000000e+00> : vector<8x512xf32>
    %114 = tpu.matmul %101, %42, %cst_52 {dimension_numbers = #tpu.dot_dimension_numbers<[1], [0], [0], [1], [0, 0, 1, 1], [], []>} : vector<8x128xf32>, vector<128x512xf32>, vector<8x512xf32> -> vector<8x512xf32>
    %115 = arith.addf %113, %114 : vector<8x512xf32>
    %116 = vector.extract_strided_slice %111 {offsets = [0, 0], sizes = [8, 128], strides = [1, 1]} : vector<8x512xf32> to vector<8x128xf32>
    %117 = arith.negf %116 : vector<8x128xf32>
    %118 = math.exp %117 : vector<8x128xf32>
    %cst_53 = arith.constant 1.000000e+00 : f32
    %119 = vector.broadcast %cst_53 : f32 to vector<8x128xf32>
    %120 = arith.addf %119, %118 : vector<8x128xf32>
    %121 = arith.divf %119, %120 : vector<8x128xf32>
    %122 = vector.extract_strided_slice %111 {offsets = [0, 128], sizes = [8, 128], strides = [1, 1]} : vector<8x512xf32> to vector<8x128xf32>
    %123 = arith.negf %122 : vector<8x128xf32>
    %124 = math.exp %123 : vector<8x128xf32>
    %cst_54 = arith.constant 1.000000e+00 : f32
    %125 = vector.broadcast %cst_54 : f32 to vector<8x128xf32>
    %126 = arith.addf %125, %124 : vector<8x128xf32>
    %127 = arith.divf %125, %126 : vector<8x128xf32>
    %128 = vector.extract_strided_slice %111 {offsets = [0, 256], sizes = [8, 128], strides = [1, 1]} : vector<8x512xf32> to vector<8x128xf32>
    %129 = math.tanh %128 : vector<8x128xf32>
    %130 = vector.extract_strided_slice %111 {offsets = [0, 384], sizes = [8, 128], strides = [1, 1]} : vector<8x512xf32> to vector<8x128xf32>
    %131 = arith.negf %130 : vector<8x128xf32>
    %132 = math.exp %131 : vector<8x128xf32>
    %cst_55 = arith.constant 1.000000e+00 : f32
    %133 = vector.broadcast %cst_55 : f32 to vector<8x128xf32>
    %134 = arith.addf %133, %132 : vector<8x128xf32>
    %135 = arith.divf %133, %134 : vector<8x128xf32>
    %136 = arith.mulf %127, %74 : vector<8x128xf32>
    %137 = arith.mulf %121, %129 : vector<8x128xf32>
    %138 = arith.addf %136, %137 : vector<8x128xf32>
    %139 = math.tanh %138 : vector<8x128xf32>
    %140 = arith.mulf %135, %139 : vector<8x128xf32>
    %141 = vector.extract_strided_slice %115 {offsets = [0, 0], sizes = [8, 128], strides = [1, 1]} : vector<8x512xf32> to vector<8x128xf32>
    %142 = arith.negf %141 : vector<8x128xf32>
    %143 = math.exp %142 : vector<8x128xf32>
    %cst_56 = arith.constant 1.000000e+00 : f32
    %144 = vector.broadcast %cst_56 : f32 to vector<8x128xf32>
    %145 = arith.addf %144, %143 : vector<8x128xf32>
    %146 = arith.divf %144, %145 : vector<8x128xf32>
    %147 = vector.extract_strided_slice %115 {offsets = [0, 128], sizes = [8, 128], strides = [1, 1]} : vector<8x512xf32> to vector<8x128xf32>
    %148 = arith.negf %147 : vector<8x128xf32>
    %149 = math.exp %148 : vector<8x128xf32>
    %cst_57 = arith.constant 1.000000e+00 : f32
    %150 = vector.broadcast %cst_57 : f32 to vector<8x128xf32>
    %151 = arith.addf %150, %149 : vector<8x128xf32>
    %152 = arith.divf %150, %151 : vector<8x128xf32>
    %153 = vector.extract_strided_slice %115 {offsets = [0, 256], sizes = [8, 128], strides = [1, 1]} : vector<8x512xf32> to vector<8x128xf32>
    %154 = math.tanh %153 : vector<8x128xf32>
    %155 = vector.extract_strided_slice %115 {offsets = [0, 384], sizes = [8, 128], strides = [1, 1]} : vector<8x512xf32> to vector<8x128xf32>
    %156 = arith.negf %155 : vector<8x128xf32>
    %157 = math.exp %156 : vector<8x128xf32>
    %cst_58 = arith.constant 1.000000e+00 : f32
    %158 = vector.broadcast %cst_58 : f32 to vector<8x128xf32>
    %159 = arith.addf %158, %157 : vector<8x128xf32>
    %160 = arith.divf %158, %159 : vector<8x128xf32>
    %161 = arith.mulf %152, %99 : vector<8x128xf32>
    %162 = arith.mulf %146, %154 : vector<8x128xf32>
    %163 = arith.addf %161, %162 : vector<8x128xf32>
    %164 = math.tanh %163 : vector<8x128xf32>
    %165 = arith.mulf %160, %164 : vector<8x128xf32>
    %c1_59 = arith.constant 1 : index
    %c0_60 = arith.constant 0 : index
    %c0_61 = arith.constant 0 : index
    %166 = vector.load %arg15[%c1_59, %c0_60, %c0_61] : memref<16x8x128xf32, #tpu.memory_space<vmem>>, vector<1x8x128xf32>
    %167 = vector.shape_cast %166 : vector<1x8x128xf32> to vector<8x128xf32>
    %168 = vector.shape_cast %140 : vector<8x128xf32> to vector<1x8x128xf32>
    tpu.vector_store %arg15[%c1_59, %c0_60, %c0_61], %168 {strides = array<i32>} : memref<16x8x128xf32, #tpu.memory_space<vmem>>, vector<1x8x128xf32>,
    %c14_62 = arith.constant 14 : index
    %c0_63 = arith.constant 0 : index
    %c0_64 = arith.constant 0 : index
    %169 = vector.load %arg16[%c14_62, %c0_63, %c0_64] : memref<16x8x128xf32, #tpu.memory_space<vmem>>, vector<1x8x128xf32>
    %170 = vector.shape_cast %169 : vector<1x8x128xf32> to vector<8x128xf32>
    %171 = vector.shape_cast %165 : vector<8x128xf32> to vector<1x8x128xf32>
    tpu.vector_store %arg16[%c14_62, %c0_63, %c0_64], %171 {strides = array<i32>} : memref<16x8x128xf32, #tpu.memory_space<vmem>>, vector<1x8x128xf32>,
    %c2 = arith.constant 2 : index
    %c0_65 = arith.constant 0 : index
    %c0_66 = arith.constant 0 : index
    %172 = vector.load %arg13[%c2, %c0_65, %c0_66] : memref<16x8x512xf32, #tpu.memory_space<vmem>>, vector<1x8x512xf32>
    %173 = vector.shape_cast %172 : vector<1x8x512xf32> to vector<8x512xf32>
    %cst_67 = arith.constant dense<0.000000e+00> : vector<8x512xf32>
    %174 = tpu.matmul %140, %41, %cst_67 {dimension_numbers = #tpu.dot_dimension_numbers<[1], [0], [0], [1], [0, 0, 1, 1], [], []>} : vector<8x128xf32>, vector<128x512xf32>, vector<8x512xf32> -> vector<8x512xf32>
    %175 = arith.addf %173, %174 : vector<8x512xf32>
    %c13 = arith.constant 13 : index
    %c0_68 = arith.constant 0 : index
    %c0_69 = arith.constant 0 : index
    %176 = vector.load %arg14[%c13, %c0_68, %c0_69] : memref<16x8x512xf32, #tpu.memory_space<vmem>>, vector<1x8x512xf32>
    %177 = vector.shape_cast %176 : vector<1x8x512xf32> to vector<8x512xf32>
    %cst_70 = arith.constant dense<0.000000e+00> : vector<8x512xf32>
    %178 = tpu.matmul %165, %42, %cst_70 {dimension_numbers = #tpu.dot_dimension_numbers<[1], [0], [0], [1], [0, 0, 1, 1], [], []>} : vector<8x128xf32>, vector<128x512xf32>, vector<8x512xf32> -> vector<8x512xf32>
    %179 = arith.addf %177, %178 : vector<8x512xf32>
    %180 = vector.extract_strided_slice %175 {offsets = [0, 0], sizes = [8, 128], strides = [1, 1]} : vector<8x512xf32> to vector<8x128xf32>
    %181 = arith.negf %180 : vector<8x128xf32>
    %182 = math.exp %181 : vector<8x128xf32>
    %cst_71 = arith.constant 1.000000e+00 : f32
    %183 = vector.broadcast %cst_71 : f32 to vector<8x128xf32>
    %184 = arith.addf %183, %182 : vector<8x128xf32>
    %185 = arith.divf %183, %184 : vector<8x128xf32>
    %186 = vector.extract_strided_slice %175 {offsets = [0, 128], sizes = [8, 128], strides = [1, 1]} : vector<8x512xf32> to vector<8x128xf32>
    %187 = arith.negf %186 : vector<8x128xf32>
    %188 = math.exp %187 : vector<8x128xf32>
    %cst_72 = arith.constant 1.000000e+00 : f32
    %189 = vector.broadcast %cst_72 : f32 to vector<8x128xf32>
    %190 = arith.addf %189, %188 : vector<8x128xf32>
    %191 = arith.divf %189, %190 : vector<8x128xf32>
    %192 = vector.extract_strided_slice %175 {offsets = [0, 256], sizes = [8, 128], strides = [1, 1]} : vector<8x512xf32> to vector<8x128xf32>
    %193 = math.tanh %192 : vector<8x128xf32>
    %194 = vector.extract_strided_slice %175 {offsets = [0, 384], sizes = [8, 128], strides = [1, 1]} : vector<8x512xf32> to vector<8x128xf32>
    %195 = arith.negf %194 : vector<8x128xf32>
    %196 = math.exp %195 : vector<8x128xf32>
    %cst_73 = arith.constant 1.000000e+00 : f32
    %197 = vector.broadcast %cst_73 : f32 to vector<8x128xf32>
    %198 = arith.addf %197, %196 : vector<8x128xf32>
    %199 = arith.divf %197, %198 : vector<8x128xf32>
    %200 = arith.mulf %191, %138 : vector<8x128xf32>
    %201 = arith.mulf %185, %193 : vector<8x128xf32>
    %202 = arith.addf %200, %201 : vector<8x128xf32>
    %203 = math.tanh %202 : vector<8x128xf32>
    %204 = arith.mulf %199, %203 : vector<8x128xf32>
    %205 = vector.extract_strided_slice %179 {offsets = [0, 0], sizes = [8, 128], strides = [1, 1]} : vector<8x512xf32> to vector<8x128xf32>
    %206 = arith.negf %205 : vector<8x128xf32>
    %207 = math.exp %206 : vector<8x128xf32>
    %cst_74 = arith.constant 1.000000e+00 : f32
    %208 = vector.broadcast %cst_74 : f32 to vector<8x128xf32>
    %209 = arith.addf %208, %207 : vector<8x128xf32>
    %210 = arith.divf %208, %209 : vector<8x128xf32>
    %211 = vector.extract_strided_slice %179 {offsets = [0, 128], sizes = [8, 128], strides = [1, 1]} : vector<8x512xf32> to vector<8x128xf32>
    %212 = arith.negf %211 : vector<8x128xf32>
    %213 = math.exp %212 : vector<8x128xf32>
    %cst_75 = arith.constant 1.000000e+00 : f32
    %214 = vector.broadcast %cst_75 : f32 to vector<8x128xf32>
    %215 = arith.addf %214, %213 : vector<8x128xf32>
    %216 = arith.divf %214, %215 : vector<8x128xf32>
    %217 = vector.extract_strided_slice %179 {offsets = [0, 256], sizes = [8, 128], strides = [1, 1]} : vector<8x512xf32> to vector<8x128xf32>
    %218 = math.tanh %217 : vector<8x128xf32>
    %219 = vector.extract_strided_slice %179 {offsets = [0, 384], sizes = [8, 128], strides = [1, 1]} : vector<8x512xf32> to vector<8x128xf32>
    %220 = arith.negf %219 : vector<8x128xf32>
    %221 = math.exp %220 : vector<8x128xf32>
    %cst_76 = arith.constant 1.000000e+00 : f32
    %222 = vector.broadcast %cst_76 : f32 to vector<8x128xf32>
    %223 = arith.addf %222, %221 : vector<8x128xf32>
    %224 = arith.divf %222, %223 : vector<8x128xf32>
    %225 = arith.mulf %216, %163 : vector<8x128xf32>
    %226 = arith.mulf %210, %218 : vector<8x128xf32>
    %227 = arith.addf %225, %226 : vector<8x128xf32>
    %228 = math.tanh %227 : vector<8x128xf32>
    %229 = arith.mulf %224, %228 : vector<8x128xf32>
    %c2_77 = arith.constant 2 : index
    %c0_78 = arith.constant 0 : index
    %c0_79 = arith.constant 0 : index
    %230 = vector.load %arg15[%c2_77, %c0_78, %c0_79] : memref<16x8x128xf32, #tpu.memory_space<vmem>>, vector<1x8x128xf32>
    %231 = vector.shape_cast %230 : vector<1x8x128xf32> to vector<8x128xf32>
    %232 = vector.shape_cast %204 : vector<8x128xf32> to vector<1x8x128xf32>
    tpu.vector_store %arg15[%c2_77, %c0_78, %c0_79], %232 {strides = array<i32>} : memref<16x8x128xf32, #tpu.memory_space<vmem>>, vector<1x8x128xf32>,
    %c13_80 = arith.constant 13 : index
    %c0_81 = arith.constant 0 : index
    %c0_82 = arith.constant 0 : index
    %233 = vector.load %arg16[%c13_80, %c0_81, %c0_82] : memref<16x8x128xf32, #tpu.memory_space<vmem>>, vector<1x8x128xf32>
    %234 = vector.shape_cast %233 : vector<1x8x128xf32> to vector<8x128xf32>
    %235 = vector.shape_cast %229 : vector<8x128xf32> to vector<1x8x128xf32>
    tpu.vector_store %arg16[%c13_80, %c0_81, %c0_82], %235 {strides = array<i32>} : memref<16x8x128xf32, #tpu.memory_space<vmem>>, vector<1x8x128xf32>,
    %c3 = arith.constant 3 : index
    %c0_83 = arith.constant 0 : index
    %c0_84 = arith.constant 0 : index
    %236 = vector.load %arg13[%c3, %c0_83, %c0_84] : memref<16x8x512xf32, #tpu.memory_space<vmem>>, vector<1x8x512xf32>
    %237 = vector.shape_cast %236 : vector<1x8x512xf32> to vector<8x512xf32>
    %cst_85 = arith.constant dense<0.000000e+00> : vector<8x512xf32>
    %238 = tpu.matmul %204, %41, %cst_85 {dimension_numbers = #tpu.dot_dimension_numbers<[1], [0], [0], [1], [0, 0, 1, 1], [], []>} : vector<8x128xf32>, vector<128x512xf32>, vector<8x512xf32> -> vector<8x512xf32>
    %239 = arith.addf %237, %238 : vector<8x512xf32>
    %c12 = arith.constant 12 : index
    %c0_86 = arith.constant 0 : index
    %c0_87 = arith.constant 0 : index
    %240 = vector.load %arg14[%c12, %c0_86, %c0_87] : memref<16x8x512xf32, #tpu.memory_space<vmem>>, vector<1x8x512xf32>
    %241 = vector.shape_cast %240 : vector<1x8x512xf32> to vector<8x512xf32>
    %cst_88 = arith.constant dense<0.000000e+00> : vector<8x512xf32>
    %242 = tpu.matmul %229, %42, %cst_88 {dimension_numbers = #tpu.dot_dimension_numbers<[1], [0], [0], [1], [0, 0, 1, 1], [], []>} : vector<8x128xf32>, vector<128x512xf32>, vector<8x512xf32> -> vector<8x512xf32>
    %243 = arith.addf %241, %242 : vector<8x512xf32>
    %244 = vector.extract_strided_slice %239 {offsets = [0, 0], sizes = [8, 128], strides = [1, 1]} : vector<8x512xf32> to vector<8x128xf32>
    %245 = arith.negf %244 : vector<8x128xf32>
    %246 = math.exp %245 : vector<8x128xf32>
    %cst_89 = arith.constant 1.000000e+00 : f32
    %247 = vector.broadcast %cst_89 : f32 to vector<8x128xf32>
    %248 = arith.addf %247, %246 : vector<8x128xf32>
    %249 = arith.divf %247, %248 : vector<8x128xf32>
    %250 = vector.extract_strided_slice %239 {offsets = [0, 128], sizes = [8, 128], strides = [1, 1]} : vector<8x512xf32> to vector<8x128xf32>
    %251 = arith.negf %250 : vector<8x128xf32>
    %252 = math.exp %251 : vector<8x128xf32>
    %cst_90 = arith.constant 1.000000e+00 : f32
    %253 = vector.broadcast %cst_90 : f32 to vector<8x128xf32>
    %254 = arith.addf %253, %252 : vector<8x128xf32>
    %255 = arith.divf %253, %254 : vector<8x128xf32>
    %256 = vector.extract_strided_slice %239 {offsets = [0, 256], sizes = [8, 128], strides = [1, 1]} : vector<8x512xf32> to vector<8x128xf32>
    %257 = math.tanh %256 : vector<8x128xf32>
    %258 = vector.extract_strided_slice %239 {offsets = [0, 384], sizes = [8, 128], strides = [1, 1]} : vector<8x512xf32> to vector<8x128xf32>
    %259 = arith.negf %258 : vector<8x128xf32>
    %260 = math.exp %259 : vector<8x128xf32>
    %cst_91 = arith.constant 1.000000e+00 : f32
    %261 = vector.broadcast %cst_91 : f32 to vector<8x128xf32>
    %262 = arith.addf %261, %260 : vector<8x128xf32>
    %263 = arith.divf %261, %262 : vector<8x128xf32>
    %264 = arith.mulf %255, %202 : vector<8x128xf32>
    %265 = arith.mulf %249, %257 : vector<8x128xf32>
    %266 = arith.addf %264, %265 : vector<8x128xf32>
    %267 = math.tanh %266 : vector<8x128xf32>
    %268 = arith.mulf %263, %267 : vector<8x128xf32>
    %269 = vector.extract_strided_slice %243 {offsets = [0, 0], sizes = [8, 128], strides = [1, 1]} : vector<8x512xf32> to vector<8x128xf32>
    %270 = arith.negf %269 : vector<8x128xf32>
    %271 = math.exp %270 : vector<8x128xf32>
    %cst_92 = arith.constant 1.000000e+00 : f32
    %272 = vector.broadcast %cst_92 : f32 to vector<8x128xf32>
    %273 = arith.addf %272, %271 : vector<8x128xf32>
    %274 = arith.divf %272, %273 : vector<8x128xf32>
    %275 = vector.extract_strided_slice %243 {offsets = [0, 128], sizes = [8, 128], strides = [1, 1]} : vector<8x512xf32> to vector<8x128xf32>
    %276 = arith.negf %275 : vector<8x128xf32>
    %277 = math.exp %276 : vector<8x128xf32>
    %cst_93 = arith.constant 1.000000e+00 : f32
    %278 = vector.broadcast %cst_93 : f32 to vector<8x128xf32>
    %279 = arith.addf %278, %277 : vector<8x128xf32>
    %280 = arith.divf %278, %279 : vector<8x128xf32>
    %281 = vector.extract_strided_slice %243 {offsets = [0, 256], sizes = [8, 128], strides = [1, 1]} : vector<8x512xf32> to vector<8x128xf32>
    %282 = math.tanh %281 : vector<8x128xf32>
    %283 = vector.extract_strided_slice %243 {offsets = [0, 384], sizes = [8, 128], strides = [1, 1]} : vector<8x512xf32> to vector<8x128xf32>
    %284 = arith.negf %283 : vector<8x128xf32>
    %285 = math.exp %284 : vector<8x128xf32>
    %cst_94 = arith.constant 1.000000e+00 : f32
    %286 = vector.broadcast %cst_94 : f32 to vector<8x128xf32>
    %287 = arith.addf %286, %285 : vector<8x128xf32>
    %288 = arith.divf %286, %287 : vector<8x128xf32>
    %289 = arith.mulf %280, %227 : vector<8x128xf32>
    %290 = arith.mulf %274, %282 : vector<8x128xf32>
    %291 = arith.addf %289, %290 : vector<8x128xf32>
    %292 = math.tanh %291 : vector<8x128xf32>
    %293 = arith.mulf %288, %292 : vector<8x128xf32>
    %c3_95 = arith.constant 3 : index
    %c0_96 = arith.constant 0 : index
    %c0_97 = arith.constant 0 : index
    %294 = vector.load %arg15[%c3_95, %c0_96, %c0_97] : memref<16x8x128xf32, #tpu.memory_space<vmem>>, vector<1x8x128xf32>
    %295 = vector.shape_cast %294 : vector<1x8x128xf32> to vector<8x128xf32>
    %296 = vector.shape_cast %268 : vector<8x128xf32> to vector<1x8x128xf32>
    tpu.vector_store %arg15[%c3_95, %c0_96, %c0_97], %296 {strides = array<i32>} : memref<16x8x128xf32, #tpu.memory_space<vmem>>, vector<1x8x128xf32>,
    %c12_98 = arith.constant 12 : index
    %c0_99 = arith.constant 0 : index
    %c0_100 = arith.constant 0 : index
    %297 = vector.load %arg16[%c12_98, %c0_99, %c0_100] : memref<16x8x128xf32, #tpu.memory_space<vmem>>, vector<1x8x128xf32>
    %298 = vector.shape_cast %297 : vector<1x8x128xf32> to vector<8x128xf32>
    %299 = vector.shape_cast %293 : vector<8x128xf32> to vector<1x8x128xf32>
    tpu.vector_store %arg16[%c12_98, %c0_99, %c0_100], %299 {strides = array<i32>} : memref<16x8x128xf32, #tpu.memory_space<vmem>>, vector<1x8x128xf32>,
    %c4 = arith.constant 4 : index
    %c0_101 = arith.constant 0 : index
    %c0_102 = arith.constant 0 : index
    %300 = vector.load %arg13[%c4, %c0_101, %c0_102] : memref<16x8x512xf32, #tpu.memory_space<vmem>>, vector<1x8x512xf32>
    %301 = vector.shape_cast %300 : vector<1x8x512xf32> to vector<8x512xf32>
    %cst_103 = arith.constant dense<0.000000e+00> : vector<8x512xf32>
    %302 = tpu.matmul %268, %41, %cst_103 {dimension_numbers = #tpu.dot_dimension_numbers<[1], [0], [0], [1], [0, 0, 1, 1], [], []>} : vector<8x128xf32>, vector<128x512xf32>, vector<8x512xf32> -> vector<8x512xf32>
    %303 = arith.addf %301, %302 : vector<8x512xf32>
    %c11 = arith.constant 11 : index
    %c0_104 = arith.constant 0 : index
    %c0_105 = arith.constant 0 : index
    %304 = vector.load %arg14[%c11, %c0_104, %c0_105] : memref<16x8x512xf32, #tpu.memory_space<vmem>>, vector<1x8x512xf32>
    %305 = vector.shape_cast %304 : vector<1x8x512xf32> to vector<8x512xf32>
    %cst_106 = arith.constant dense<0.000000e+00> : vector<8x512xf32>
    %306 = tpu.matmul %293, %42, %cst_106 {dimension_numbers = #tpu.dot_dimension_numbers<[1], [0], [0], [1], [0, 0, 1, 1], [], []>} : vector<8x128xf32>, vector<128x512xf32>, vector<8x512xf32> -> vector<8x512xf32>
    %307 = arith.addf %305, %306 : vector<8x512xf32>
    %308 = vector.extract_strided_slice %303 {offsets = [0, 0], sizes = [8, 128], strides = [1, 1]} : vector<8x512xf32> to vector<8x128xf32>
    %309 = arith.negf %308 : vector<8x128xf32>
    %310 = math.exp %309 : vector<8x128xf32>
    %cst_107 = arith.constant 1.000000e+00 : f32
    %311 = vector.broadcast %cst_107 : f32 to vector<8x128xf32>
    %312 = arith.addf %311, %310 : vector<8x128xf32>
    %313 = arith.divf %311, %312 : vector<8x128xf32>
    %314 = vector.extract_strided_slice %303 {offsets = [0, 128], sizes = [8, 128], strides = [1, 1]} : vector<8x512xf32> to vector<8x128xf32>
    %315 = arith.negf %314 : vector<8x128xf32>
    %316 = math.exp %315 : vector<8x128xf32>
    %cst_108 = arith.constant 1.000000e+00 : f32
    %317 = vector.broadcast %cst_108 : f32 to vector<8x128xf32>
    %318 = arith.addf %317, %316 : vector<8x128xf32>
    %319 = arith.divf %317, %318 : vector<8x128xf32>
    %320 = vector.extract_strided_slice %303 {offsets = [0, 256], sizes = [8, 128], strides = [1, 1]} : vector<8x512xf32> to vector<8x128xf32>
    %321 = math.tanh %320 : vector<8x128xf32>
    %322 = vector.extract_strided_slice %303 {offsets = [0, 384], sizes = [8, 128], strides = [1, 1]} : vector<8x512xf32> to vector<8x128xf32>
    %323 = arith.negf %322 : vector<8x128xf32>
    %324 = math.exp %323 : vector<8x128xf32>
    %cst_109 = arith.constant 1.000000e+00 : f32
    %325 = vector.broadcast %cst_109 : f32 to vector<8x128xf32>
    %326 = arith.addf %325, %324 : vector<8x128xf32>
    %327 = arith.divf %325, %326 : vector<8x128xf32>
    %328 = arith.mulf %319, %266 : vector<8x128xf32>
    %329 = arith.mulf %313, %321 : vector<8x128xf32>
    %330 = arith.addf %328, %329 : vector<8x128xf32>
    %331 = math.tanh %330 : vector<8x128xf32>
    %332 = arith.mulf %327, %331 : vector<8x128xf32>
    %333 = vector.extract_strided_slice %307 {offsets = [0, 0], sizes = [8, 128], strides = [1, 1]} : vector<8x512xf32> to vector<8x128xf32>
    %334 = arith.negf %333 : vector<8x128xf32>
    %335 = math.exp %334 : vector<8x128xf32>
    %cst_110 = arith.constant 1.000000e+00 : f32
    %336 = vector.broadcast %cst_110 : f32 to vector<8x128xf32>
    %337 = arith.addf %336, %335 : vector<8x128xf32>
    %338 = arith.divf %336, %337 : vector<8x128xf32>
    %339 = vector.extract_strided_slice %307 {offsets = [0, 128], sizes = [8, 128], strides = [1, 1]} : vector<8x512xf32> to vector<8x128xf32>
    %340 = arith.negf %339 : vector<8x128xf32>
    %341 = math.exp %340 : vector<8x128xf32>
    %cst_111 = arith.constant 1.000000e+00 : f32
    %342 = vector.broadcast %cst_111 : f32 to vector<8x128xf32>
    %343 = arith.addf %342, %341 : vector<8x128xf32>
    %344 = arith.divf %342, %343 : vector<8x128xf32>
    %345 = vector.extract_strided_slice %307 {offsets = [0, 256], sizes = [8, 128], strides = [1, 1]} : vector<8x512xf32> to vector<8x128xf32>
    %346 = math.tanh %345 : vector<8x128xf32>
    %347 = vector.extract_strided_slice %307 {offsets = [0, 384], sizes = [8, 128], strides = [1, 1]} : vector<8x512xf32> to vector<8x128xf32>
    %348 = arith.negf %347 : vector<8x128xf32>
    %349 = math.exp %348 : vector<8x128xf32>
    %cst_112 = arith.constant 1.000000e+00 : f32
    %350 = vector.broadcast %cst_112 : f32 to vector<8x128xf32>
    %351 = arith.addf %350, %349 : vector<8x128xf32>
    %352 = arith.divf %350, %351 : vector<8x128xf32>
    %353 = arith.mulf %344, %291 : vector<8x128xf32>
    %354 = arith.mulf %338, %346 : vector<8x128xf32>
    %355 = arith.addf %353, %354 : vector<8x128xf32>
    %356 = math.tanh %355 : vector<8x128xf32>
    %357 = arith.mulf %352, %356 : vector<8x128xf32>
    %c4_113 = arith.constant 4 : index
    %c0_114 = arith.constant 0 : index
    %c0_115 = arith.constant 0 : index
    %358 = vector.load %arg15[%c4_113, %c0_114, %c0_115] : memref<16x8x128xf32, #tpu.memory_space<vmem>>, vector<1x8x128xf32>
    %359 = vector.shape_cast %358 : vector<1x8x128xf32> to vector<8x128xf32>
    %360 = vector.shape_cast %332 : vector<8x128xf32> to vector<1x8x128xf32>
    tpu.vector_store %arg15[%c4_113, %c0_114, %c0_115], %360 {strides = array<i32>} : memref<16x8x128xf32, #tpu.memory_space<vmem>>, vector<1x8x128xf32>,
    %c11_116 = arith.constant 11 : index
    %c0_117 = arith.constant 0 : index
    %c0_118 = arith.constant 0 : index
    %361 = vector.load %arg16[%c11_116, %c0_117, %c0_118] : memref<16x8x128xf32, #tpu.memory_space<vmem>>, vector<1x8x128xf32>
    %362 = vector.shape_cast %361 : vector<1x8x128xf32> to vector<8x128xf32>
    %363 = vector.shape_cast %357 : vector<8x128xf32> to vector<1x8x128xf32>
    tpu.vector_store %arg16[%c11_116, %c0_117, %c0_118], %363 {strides = array<i32>} : memref<16x8x128xf32, #tpu.memory_space<vmem>>, vector<1x8x128xf32>,
    %c5 = arith.constant 5 : index
    %c0_119 = arith.constant 0 : index
    %c0_120 = arith.constant 0 : index
    %364 = vector.load %arg13[%c5, %c0_119, %c0_120] : memref<16x8x512xf32, #tpu.memory_space<vmem>>, vector<1x8x512xf32>
    %365 = vector.shape_cast %364 : vector<1x8x512xf32> to vector<8x512xf32>
    %cst_121 = arith.constant dense<0.000000e+00> : vector<8x512xf32>
    %366 = tpu.matmul %332, %41, %cst_121 {dimension_numbers = #tpu.dot_dimension_numbers<[1], [0], [0], [1], [0, 0, 1, 1], [], []>} : vector<8x128xf32>, vector<128x512xf32>, vector<8x512xf32> -> vector<8x512xf32>
    %367 = arith.addf %365, %366 : vector<8x512xf32>
    %c10 = arith.constant 10 : index
    %c0_122 = arith.constant 0 : index
    %c0_123 = arith.constant 0 : index
    %368 = vector.load %arg14[%c10, %c0_122, %c0_123] : memref<16x8x512xf32, #tpu.memory_space<vmem>>, vector<1x8x512xf32>
    %369 = vector.shape_cast %368 : vector<1x8x512xf32> to vector<8x512xf32>
    %cst_124 = arith.constant dense<0.000000e+00> : vector<8x512xf32>
    %370 = tpu.matmul %357, %42, %cst_124 {dimension_numbers = #tpu.dot_dimension_numbers<[1], [0], [0], [1], [0, 0, 1, 1], [], []>} : vector<8x128xf32>, vector<128x512xf32>, vector<8x512xf32> -> vector<8x512xf32>
    %371 = arith.addf %369, %370 : vector<8x512xf32>
    %372 = vector.extract_strided_slice %367 {offsets = [0, 0], sizes = [8, 128], strides = [1, 1]} : vector<8x512xf32> to vector<8x128xf32>
    %373 = arith.negf %372 : vector<8x128xf32>
    %374 = math.exp %373 : vector<8x128xf32>
    %cst_125 = arith.constant 1.000000e+00 : f32
    %375 = vector.broadcast %cst_125 : f32 to vector<8x128xf32>
    %376 = arith.addf %375, %374 : vector<8x128xf32>
    %377 = arith.divf %375, %376 : vector<8x128xf32>
    %378 = vector.extract_strided_slice %367 {offsets = [0, 128], sizes = [8, 128], strides = [1, 1]} : vector<8x512xf32> to vector<8x128xf32>
    %379 = arith.negf %378 : vector<8x128xf32>
    %380 = math.exp %379 : vector<8x128xf32>
    %cst_126 = arith.constant 1.000000e+00 : f32
    %381 = vector.broadcast %cst_126 : f32 to vector<8x128xf32>
    %382 = arith.addf %381, %380 : vector<8x128xf32>
    %383 = arith.divf %381, %382 : vector<8x128xf32>
    %384 = vector.extract_strided_slice %367 {offsets = [0, 256], sizes = [8, 128], strides = [1, 1]} : vector<8x512xf32> to vector<8x128xf32>
    %385 = math.tanh %384 : vector<8x128xf32>
    %386 = vector.extract_strided_slice %367 {offsets = [0, 384], sizes = [8, 128], strides = [1, 1]} : vector<8x512xf32> to vector<8x128xf32>
    %387 = arith.negf %386 : vector<8x128xf32>
    %388 = math.exp %387 : vector<8x128xf32>
    %cst_127 = arith.constant 1.000000e+00 : f32
    %389 = vector.broadcast %cst_127 : f32 to vector<8x128xf32>
    %390 = arith.addf %389, %388 : vector<8x128xf32>
    %391 = arith.divf %389, %390 : vector<8x128xf32>
    %392 = arith.mulf %383, %330 : vector<8x128xf32>
    %393 = arith.mulf %377, %385 : vector<8x128xf32>
    %394 = arith.addf %392, %393 : vector<8x128xf32>
    %395 = math.tanh %394 : vector<8x128xf32>
    %396 = arith.mulf %391, %395 : vector<8x128xf32>
    %397 = vector.extract_strided_slice %371 {offsets = [0, 0], sizes = [8, 128], strides = [1, 1]} : vector<8x512xf32> to vector<8x128xf32>
    %398 = arith.negf %397 : vector<8x128xf32>
    %399 = math.exp %398 : vector<8x128xf32>
    %cst_128 = arith.constant 1.000000e+00 : f32
    %400 = vector.broadcast %cst_128 : f32 to vector<8x128xf32>
    %401 = arith.addf %400, %399 : vector<8x128xf32>
    %402 = arith.divf %400, %401 : vector<8x128xf32>
    %403 = vector.extract_strided_slice %371 {offsets = [0, 128], sizes = [8, 128], strides = [1, 1]} : vector<8x512xf32> to vector<8x128xf32>
    %404 = arith.negf %403 : vector<8x128xf32>
    %405 = math.exp %404 : vector<8x128xf32>
    %cst_129 = arith.constant 1.000000e+00 : f32
    %406 = vector.broadcast %cst_129 : f32 to vector<8x128xf32>
    %407 = arith.addf %406, %405 : vector<8x128xf32>
    %408 = arith.divf %406, %407 : vector<8x128xf32>
    %409 = vector.extract_strided_slice %371 {offsets = [0, 256], sizes = [8, 128], strides = [1, 1]} : vector<8x512xf32> to vector<8x128xf32>
    %410 = math.tanh %409 : vector<8x128xf32>
    %411 = vector.extract_strided_slice %371 {offsets = [0, 384], sizes = [8, 128], strides = [1, 1]} : vector<8x512xf32> to vector<8x128xf32>
    %412 = arith.negf %411 : vector<8x128xf32>
    %413 = math.exp %412 : vector<8x128xf32>
    %cst_130 = arith.constant 1.000000e+00 : f32
    %414 = vector.broadcast %cst_130 : f32 to vector<8x128xf32>
    %415 = arith.addf %414, %413 : vector<8x128xf32>
    %416 = arith.divf %414, %415 : vector<8x128xf32>
    %417 = arith.mulf %408, %355 : vector<8x128xf32>
    %418 = arith.mulf %402, %410 : vector<8x128xf32>
    %419 = arith.addf %417, %418 : vector<8x128xf32>
    %420 = math.tanh %419 : vector<8x128xf32>
    %421 = arith.mulf %416, %420 : vector<8x128xf32>
    %c5_131 = arith.constant 5 : index
    %c0_132 = arith.constant 0 : index
    %c0_133 = arith.constant 0 : index
    %422 = vector.load %arg15[%c5_131, %c0_132, %c0_133] : memref<16x8x128xf32, #tpu.memory_space<vmem>>, vector<1x8x128xf32>
    %423 = vector.shape_cast %422 : vector<1x8x128xf32> to vector<8x128xf32>
    %424 = vector.shape_cast %396 : vector<8x128xf32> to vector<1x8x128xf32>
    tpu.vector_store %arg15[%c5_131, %c0_132, %c0_133], %424 {strides = array<i32>} : memref<16x8x128xf32, #tpu.memory_space<vmem>>, vector<1x8x128xf32>,
    %c10_134 = arith.constant 10 : index
    %c0_135 = arith.constant 0 : index
    %c0_136 = arith.constant 0 : index
    %425 = vector.load %arg16[%c10_134, %c0_135, %c0_136] : memref<16x8x128xf32, #tpu.memory_space<vmem>>, vector<1x8x128xf32>
    %426 = vector.shape_cast %425 : vector<1x8x128xf32> to vector<8x128xf32>
    %427 = vector.shape_cast %421 : vector<8x128xf32> to vector<1x8x128xf32>
    tpu.vector_store %arg16[%c10_134, %c0_135, %c0_136], %427 {strides = array<i32>} : memref<16x8x128xf32, #tpu.memory_space<vmem>>, vector<1x8x128xf32>,
    %c6 = arith.constant 6 : index
    %c0_137 = arith.constant 0 : index
    %c0_138 = arith.constant 0 : index
    %428 = vector.load %arg13[%c6, %c0_137, %c0_138] : memref<16x8x512xf32, #tpu.memory_space<vmem>>, vector<1x8x512xf32>
    %429 = vector.shape_cast %428 : vector<1x8x512xf32> to vector<8x512xf32>
    %cst_139 = arith.constant dense<0.000000e+00> : vector<8x512xf32>
    %430 = tpu.matmul %396, %41, %cst_139 {dimension_numbers = #tpu.dot_dimension_numbers<[1], [0], [0], [1], [0, 0, 1, 1], [], []>} : vector<8x128xf32>, vector<128x512xf32>, vector<8x512xf32> -> vector<8x512xf32>
    %431 = arith.addf %429, %430 : vector<8x512xf32>
    %c9 = arith.constant 9 : index
    %c0_140 = arith.constant 0 : index
    %c0_141 = arith.constant 0 : index
    %432 = vector.load %arg14[%c9, %c0_140, %c0_141] : memref<16x8x512xf32, #tpu.memory_space<vmem>>, vector<1x8x512xf32>
    %433 = vector.shape_cast %432 : vector<1x8x512xf32> to vector<8x512xf32>
    %cst_142 = arith.constant dense<0.000000e+00> : vector<8x512xf32>
    %434 = tpu.matmul %421, %42, %cst_142 {dimension_numbers = #tpu.dot_dimension_numbers<[1], [0], [0], [1], [0, 0, 1, 1], [], []>} : vector<8x128xf32>, vector<128x512xf32>, vector<8x512xf32> -> vector<8x512xf32>
    %435 = arith.addf %433, %434 : vector<8x512xf32>
    %436 = vector.extract_strided_slice %431 {offsets = [0, 0], sizes = [8, 128], strides = [1, 1]} : vector<8x512xf32> to vector<8x128xf32>
    %437 = arith.negf %436 : vector<8x128xf32>
    %438 = math.exp %437 : vector<8x128xf32>
    %cst_143 = arith.constant 1.000000e+00 : f32
    %439 = vector.broadcast %cst_143 : f32 to vector<8x128xf32>
    %440 = arith.addf %439, %438 : vector<8x128xf32>
    %441 = arith.divf %439, %440 : vector<8x128xf32>
    %442 = vector.extract_strided_slice %431 {offsets = [0, 128], sizes = [8, 128], strides = [1, 1]} : vector<8x512xf32> to vector<8x128xf32>
    %443 = arith.negf %442 : vector<8x128xf32>
    %444 = math.exp %443 : vector<8x128xf32>
    %cst_144 = arith.constant 1.000000e+00 : f32
    %445 = vector.broadcast %cst_144 : f32 to vector<8x128xf32>
    %446 = arith.addf %445, %444 : vector<8x128xf32>
    %447 = arith.divf %445, %446 : vector<8x128xf32>
    %448 = vector.extract_strided_slice %431 {offsets = [0, 256], sizes = [8, 128], strides = [1, 1]} : vector<8x512xf32> to vector<8x128xf32>
    %449 = math.tanh %448 : vector<8x128xf32>
    %450 = vector.extract_strided_slice %431 {offsets = [0, 384], sizes = [8, 128], strides = [1, 1]} : vector<8x512xf32> to vector<8x128xf32>
    %451 = arith.negf %450 : vector<8x128xf32>
    %452 = math.exp %451 : vector<8x128xf32>
    %cst_145 = arith.constant 1.000000e+00 : f32
    %453 = vector.broadcast %cst_145 : f32 to vector<8x128xf32>
    %454 = arith.addf %453, %452 : vector<8x128xf32>
    %455 = arith.divf %453, %454 : vector<8x128xf32>
    %456 = arith.mulf %447, %394 : vector<8x128xf32>
    %457 = arith.mulf %441, %449 : vector<8x128xf32>
    %458 = arith.addf %456, %457 : vector<8x128xf32>
    %459 = math.tanh %458 : vector<8x128xf32>
    %460 = arith.mulf %455, %459 : vector<8x128xf32>
    %461 = vector.extract_strided_slice %435 {offsets = [0, 0], sizes = [8, 128], strides = [1, 1]} : vector<8x512xf32> to vector<8x128xf32>
    %462 = arith.negf %461 : vector<8x128xf32>
    %463 = math.exp %462 : vector<8x128xf32>
    %cst_146 = arith.constant 1.000000e+00 : f32
    %464 = vector.broadcast %cst_146 : f32 to vector<8x128xf32>
    %465 = arith.addf %464, %463 : vector<8x128xf32>
    %466 = arith.divf %464, %465 : vector<8x128xf32>
    %467 = vector.extract_strided_slice %435 {offsets = [0, 128], sizes = [8, 128], strides = [1, 1]} : vector<8x512xf32> to vector<8x128xf32>
    %468 = arith.negf %467 : vector<8x128xf32>
    %469 = math.exp %468 : vector<8x128xf32>
    %cst_147 = arith.constant 1.000000e+00 : f32
    %470 = vector.broadcast %cst_147 : f32 to vector<8x128xf32>
    %471 = arith.addf %470, %469 : vector<8x128xf32>
    %472 = arith.divf %470, %471 : vector<8x128xf32>
    %473 = vector.extract_strided_slice %435 {offsets = [0, 256], sizes = [8, 128], strides = [1, 1]} : vector<8x512xf32> to vector<8x128xf32>
    %474 = math.tanh %473 : vector<8x128xf32>
    %475 = vector.extract_strided_slice %435 {offsets = [0, 384], sizes = [8, 128], strides = [1, 1]} : vector<8x512xf32> to vector<8x128xf32>
    %476 = arith.negf %475 : vector<8x128xf32>
    %477 = math.exp %476 : vector<8x128xf32>
    %cst_148 = arith.constant 1.000000e+00 : f32
    %478 = vector.broadcast %cst_148 : f32 to vector<8x128xf32>
    %479 = arith.addf %478, %477 : vector<8x128xf32>
    %480 = arith.divf %478, %479 : vector<8x128xf32>
    %481 = arith.mulf %472, %419 : vector<8x128xf32>
    %482 = arith.mulf %466, %474 : vector<8x128xf32>
    %483 = arith.addf %481, %482 : vector<8x128xf32>
    %484 = math.tanh %483 : vector<8x128xf32>
    %485 = arith.mulf %480, %484 : vector<8x128xf32>
    %c6_149 = arith.constant 6 : index
    %c0_150 = arith.constant 0 : index
    %c0_151 = arith.constant 0 : index
    %486 = vector.load %arg15[%c6_149, %c0_150, %c0_151] : memref<16x8x128xf32, #tpu.memory_space<vmem>>, vector<1x8x128xf32>
    %487 = vector.shape_cast %486 : vector<1x8x128xf32> to vector<8x128xf32>
    %488 = vector.shape_cast %460 : vector<8x128xf32> to vector<1x8x128xf32>
    tpu.vector_store %arg15[%c6_149, %c0_150, %c0_151], %488 {strides = array<i32>} : memref<16x8x128xf32, #tpu.memory_space<vmem>>, vector<1x8x128xf32>,
    %c9_152 = arith.constant 9 : index
    %c0_153 = arith.constant 0 : index
    %c0_154 = arith.constant 0 : index
    %489 = vector.load %arg16[%c9_152, %c0_153, %c0_154] : memref<16x8x128xf32, #tpu.memory_space<vmem>>, vector<1x8x128xf32>
    %490 = vector.shape_cast %489 : vector<1x8x128xf32> to vector<8x128xf32>
    %491 = vector.shape_cast %485 : vector<8x128xf32> to vector<1x8x128xf32>
    tpu.vector_store %arg16[%c9_152, %c0_153, %c0_154], %491 {strides = array<i32>} : memref<16x8x128xf32, #tpu.memory_space<vmem>>, vector<1x8x128xf32>,
    %c7 = arith.constant 7 : index
    %c0_155 = arith.constant 0 : index
    %c0_156 = arith.constant 0 : index
    %492 = vector.load %arg13[%c7, %c0_155, %c0_156] : memref<16x8x512xf32, #tpu.memory_space<vmem>>, vector<1x8x512xf32>
    %493 = vector.shape_cast %492 : vector<1x8x512xf32> to vector<8x512xf32>
    %cst_157 = arith.constant dense<0.000000e+00> : vector<8x512xf32>
    %494 = tpu.matmul %460, %41, %cst_157 {dimension_numbers = #tpu.dot_dimension_numbers<[1], [0], [0], [1], [0, 0, 1, 1], [], []>} : vector<8x128xf32>, vector<128x512xf32>, vector<8x512xf32> -> vector<8x512xf32>
    %495 = arith.addf %493, %494 : vector<8x512xf32>
    %c8 = arith.constant 8 : index
    %c0_158 = arith.constant 0 : index
    %c0_159 = arith.constant 0 : index
    %496 = vector.load %arg14[%c8, %c0_158, %c0_159] : memref<16x8x512xf32, #tpu.memory_space<vmem>>, vector<1x8x512xf32>
    %497 = vector.shape_cast %496 : vector<1x8x512xf32> to vector<8x512xf32>
    %cst_160 = arith.constant dense<0.000000e+00> : vector<8x512xf32>
    %498 = tpu.matmul %485, %42, %cst_160 {dimension_numbers = #tpu.dot_dimension_numbers<[1], [0], [0], [1], [0, 0, 1, 1], [], []>} : vector<8x128xf32>, vector<128x512xf32>, vector<8x512xf32> -> vector<8x512xf32>
    %499 = arith.addf %497, %498 : vector<8x512xf32>
    %500 = vector.extract_strided_slice %495 {offsets = [0, 0], sizes = [8, 128], strides = [1, 1]} : vector<8x512xf32> to vector<8x128xf32>
    %501 = arith.negf %500 : vector<8x128xf32>
    %502 = math.exp %501 : vector<8x128xf32>
    %cst_161 = arith.constant 1.000000e+00 : f32
    %503 = vector.broadcast %cst_161 : f32 to vector<8x128xf32>
    %504 = arith.addf %503, %502 : vector<8x128xf32>
    %505 = arith.divf %503, %504 : vector<8x128xf32>
    %506 = vector.extract_strided_slice %495 {offsets = [0, 128], sizes = [8, 128], strides = [1, 1]} : vector<8x512xf32> to vector<8x128xf32>
    %507 = arith.negf %506 : vector<8x128xf32>
    %508 = math.exp %507 : vector<8x128xf32>
    %cst_162 = arith.constant 1.000000e+00 : f32
    %509 = vector.broadcast %cst_162 : f32 to vector<8x128xf32>
    %510 = arith.addf %509, %508 : vector<8x128xf32>
    %511 = arith.divf %509, %510 : vector<8x128xf32>
    %512 = vector.extract_strided_slice %495 {offsets = [0, 256], sizes = [8, 128], strides = [1, 1]} : vector<8x512xf32> to vector<8x128xf32>
    %513 = math.tanh %512 : vector<8x128xf32>
    %514 = vector.extract_strided_slice %495 {offsets = [0, 384], sizes = [8, 128], strides = [1, 1]} : vector<8x512xf32> to vector<8x128xf32>
    %515 = arith.negf %514 : vector<8x128xf32>
    %516 = math.exp %515 : vector<8x128xf32>
    %cst_163 = arith.constant 1.000000e+00 : f32
    %517 = vector.broadcast %cst_163 : f32 to vector<8x128xf32>
    %518 = arith.addf %517, %516 : vector<8x128xf32>
    %519 = arith.divf %517, %518 : vector<8x128xf32>
    %520 = arith.mulf %511, %458 : vector<8x128xf32>
    %521 = arith.mulf %505, %513 : vector<8x128xf32>
    %522 = arith.addf %520, %521 : vector<8x128xf32>
    %523 = math.tanh %522 : vector<8x128xf32>
    %524 = arith.mulf %519, %523 : vector<8x128xf32>
    %525 = vector.extract_strided_slice %499 {offsets = [0, 0], sizes = [8, 128], strides = [1, 1]} : vector<8x512xf32> to vector<8x128xf32>
    %526 = arith.negf %525 : vector<8x128xf32>
    %527 = math.exp %526 : vector<8x128xf32>
    %cst_164 = arith.constant 1.000000e+00 : f32
    %528 = vector.broadcast %cst_164 : f32 to vector<8x128xf32>
    %529 = arith.addf %528, %527 : vector<8x128xf32>
    %530 = arith.divf %528, %529 : vector<8x128xf32>
    %531 = vector.extract_strided_slice %499 {offsets = [0, 128], sizes = [8, 128], strides = [1, 1]} : vector<8x512xf32> to vector<8x128xf32>
    %532 = arith.negf %531 : vector<8x128xf32>
    %533 = math.exp %532 : vector<8x128xf32>
    %cst_165 = arith.constant 1.000000e+00 : f32
    %534 = vector.broadcast %cst_165 : f32 to vector<8x128xf32>
    %535 = arith.addf %534, %533 : vector<8x128xf32>
    %536 = arith.divf %534, %535 : vector<8x128xf32>
    %537 = vector.extract_strided_slice %499 {offsets = [0, 256], sizes = [8, 128], strides = [1, 1]} : vector<8x512xf32> to vector<8x128xf32>
    %538 = math.tanh %537 : vector<8x128xf32>
    %539 = vector.extract_strided_slice %499 {offsets = [0, 384], sizes = [8, 128], strides = [1, 1]} : vector<8x512xf32> to vector<8x128xf32>
    %540 = arith.negf %539 : vector<8x128xf32>
    %541 = math.exp %540 : vector<8x128xf32>
    %cst_166 = arith.constant 1.000000e+00 : f32
    %542 = vector.broadcast %cst_166 : f32 to vector<8x128xf32>
    %543 = arith.addf %542, %541 : vector<8x128xf32>
    %544 = arith.divf %542, %543 : vector<8x128xf32>
    %545 = arith.mulf %536, %483 : vector<8x128xf32>
    %546 = arith.mulf %530, %538 : vector<8x128xf32>
    %547 = arith.addf %545, %546 : vector<8x128xf32>
    %548 = math.tanh %547 : vector<8x128xf32>
    %549 = arith.mulf %544, %548 : vector<8x128xf32>
    %c7_167 = arith.constant 7 : index
    %c0_168 = arith.constant 0 : index
    %c0_169 = arith.constant 0 : index
    %550 = vector.load %arg15[%c7_167, %c0_168, %c0_169] : memref<16x8x128xf32, #tpu.memory_space<vmem>>, vector<1x8x128xf32>
    %551 = vector.shape_cast %550 : vector<1x8x128xf32> to vector<8x128xf32>
    %552 = vector.shape_cast %524 : vector<8x128xf32> to vector<1x8x128xf32>
    tpu.vector_store %arg15[%c7_167, %c0_168, %c0_169], %552 {strides = array<i32>} : memref<16x8x128xf32, #tpu.memory_space<vmem>>, vector<1x8x128xf32>,
    %c8_170 = arith.constant 8 : index
    %c0_171 = arith.constant 0 : index
    %c0_172 = arith.constant 0 : index
    %553 = vector.load %arg16[%c8_170, %c0_171, %c0_172] : memref<16x8x128xf32, #tpu.memory_space<vmem>>, vector<1x8x128xf32>
    %554 = vector.shape_cast %553 : vector<1x8x128xf32> to vector<8x128xf32>
    %555 = vector.shape_cast %549 : vector<8x128xf32> to vector<1x8x128xf32>
    tpu.vector_store %arg16[%c8_170, %c0_171, %c0_172], %555 {strides = array<i32>} : memref<16x8x128xf32, #tpu.memory_space<vmem>>, vector<1x8x128xf32>,
    %c8_173 = arith.constant 8 : index
    %c0_174 = arith.constant 0 : index
    %c0_175 = arith.constant 0 : index
    %556 = vector.load %arg13[%c8_173, %c0_174, %c0_175] : memref<16x8x512xf32, #tpu.memory_space<vmem>>, vector<1x8x512xf32>
    %557 = vector.shape_cast %556 : vector<1x8x512xf32> to vector<8x512xf32>
    %cst_176 = arith.constant dense<0.000000e+00> : vector<8x512xf32>
    %558 = tpu.matmul %524, %41, %cst_176 {dimension_numbers = #tpu.dot_dimension_numbers<[1], [0], [0], [1], [0, 0, 1, 1], [], []>} : vector<8x128xf32>, vector<128x512xf32>, vector<8x512xf32> -> vector<8x512xf32>
    %559 = arith.addf %557, %558 : vector<8x512xf32>
    %c7_177 = arith.constant 7 : index
    %c0_178 = arith.constant 0 : index
    %c0_179 = arith.constant 0 : index
    %560 = vector.load %arg14[%c7_177, %c0_178, %c0_179] : memref<16x8x512xf32, #tpu.memory_space<vmem>>, vector<1x8x512xf32>
    %561 = vector.shape_cast %560 : vector<1x8x512xf32> to vector<8x512xf32>
    %cst_180 = arith.constant dense<0.000000e+00> : vector<8x512xf32>
    %562 = tpu.matmul %549, %42, %cst_180 {dimension_numbers = #tpu.dot_dimension_numbers<[1], [0], [0], [1], [0, 0, 1, 1], [], []>} : vector<8x128xf32>, vector<128x512xf32>, vector<8x512xf32> -> vector<8x512xf32>
    %563 = arith.addf %561, %562 : vector<8x512xf32>
    %564 = vector.extract_strided_slice %559 {offsets = [0, 0], sizes = [8, 128], strides = [1, 1]} : vector<8x512xf32> to vector<8x128xf32>
    %565 = arith.negf %564 : vector<8x128xf32>
    %566 = math.exp %565 : vector<8x128xf32>
    %cst_181 = arith.constant 1.000000e+00 : f32
    %567 = vector.broadcast %cst_181 : f32 to vector<8x128xf32>
    %568 = arith.addf %567, %566 : vector<8x128xf32>
    %569 = arith.divf %567, %568 : vector<8x128xf32>
    %570 = vector.extract_strided_slice %559 {offsets = [0, 128], sizes = [8, 128], strides = [1, 1]} : vector<8x512xf32> to vector<8x128xf32>
    %571 = arith.negf %570 : vector<8x128xf32>
    %572 = math.exp %571 : vector<8x128xf32>
    %cst_182 = arith.constant 1.000000e+00 : f32
    %573 = vector.broadcast %cst_182 : f32 to vector<8x128xf32>
    %574 = arith.addf %573, %572 : vector<8x128xf32>
    %575 = arith.divf %573, %574 : vector<8x128xf32>
    %576 = vector.extract_strided_slice %559 {offsets = [0, 256], sizes = [8, 128], strides = [1, 1]} : vector<8x512xf32> to vector<8x128xf32>
    %577 = math.tanh %576 : vector<8x128xf32>
    %578 = vector.extract_strided_slice %559 {offsets = [0, 384], sizes = [8, 128], strides = [1, 1]} : vector<8x512xf32> to vector<8x128xf32>
    %579 = arith.negf %578 : vector<8x128xf32>
    %580 = math.exp %579 : vector<8x128xf32>
    %cst_183 = arith.constant 1.000000e+00 : f32
    %581 = vector.broadcast %cst_183 : f32 to vector<8x128xf32>
    %582 = arith.addf %581, %580 : vector<8x128xf32>
    %583 = arith.divf %581, %582 : vector<8x128xf32>
    %584 = arith.mulf %575, %522 : vector<8x128xf32>
    %585 = arith.mulf %569, %577 : vector<8x128xf32>
    %586 = arith.addf %584, %585 : vector<8x128xf32>
    %587 = math.tanh %586 : vector<8x128xf32>
    %588 = arith.mulf %583, %587 : vector<8x128xf32>
    %589 = vector.extract_strided_slice %563 {offsets = [0, 0], sizes = [8, 128], strides = [1, 1]} : vector<8x512xf32> to vector<8x128xf32>
    %590 = arith.negf %589 : vector<8x128xf32>
    %591 = math.exp %590 : vector<8x128xf32>
    %cst_184 = arith.constant 1.000000e+00 : f32
    %592 = vector.broadcast %cst_184 : f32 to vector<8x128xf32>
    %593 = arith.addf %592, %591 : vector<8x128xf32>
    %594 = arith.divf %592, %593 : vector<8x128xf32>
    %595 = vector.extract_strided_slice %563 {offsets = [0, 128], sizes = [8, 128], strides = [1, 1]} : vector<8x512xf32> to vector<8x128xf32>
    %596 = arith.negf %595 : vector<8x128xf32>
    %597 = math.exp %596 : vector<8x128xf32>
    %cst_185 = arith.constant 1.000000e+00 : f32
    %598 = vector.broadcast %cst_185 : f32 to vector<8x128xf32>
    %599 = arith.addf %598, %597 : vector<8x128xf32>
    %600 = arith.divf %598, %599 : vector<8x128xf32>
    %601 = vector.extract_strided_slice %563 {offsets = [0, 256], sizes = [8, 128], strides = [1, 1]} : vector<8x512xf32> to vector<8x128xf32>
    %602 = math.tanh %601 : vector<8x128xf32>
    %603 = vector.extract_strided_slice %563 {offsets = [0, 384], sizes = [8, 128], strides = [1, 1]} : vector<8x512xf32> to vector<8x128xf32>
    %604 = arith.negf %603 : vector<8x128xf32>
    %605 = math.exp %604 : vector<8x128xf32>
    %cst_186 = arith.constant 1.000000e+00 : f32
    %606 = vector.broadcast %cst_186 : f32 to vector<8x128xf32>
    %607 = arith.addf %606, %605 : vector<8x128xf32>
    %608 = arith.divf %606, %607 : vector<8x128xf32>
    %609 = arith.mulf %600, %547 : vector<8x128xf32>
    %610 = arith.mulf %594, %602 : vector<8x128xf32>
    %611 = arith.addf %609, %610 : vector<8x128xf32>
    %612 = math.tanh %611 : vector<8x128xf32>
    %613 = arith.mulf %608, %612 : vector<8x128xf32>
    %c8_187 = arith.constant 8 : index
    %c0_188 = arith.constant 0 : index
    %c0_189 = arith.constant 0 : index
    %614 = vector.load %arg15[%c8_187, %c0_188, %c0_189] : memref<16x8x128xf32, #tpu.memory_space<vmem>>, vector<1x8x128xf32>
    %615 = vector.shape_cast %614 : vector<1x8x128xf32> to vector<8x128xf32>
    %616 = vector.shape_cast %588 : vector<8x128xf32> to vector<1x8x128xf32>
    tpu.vector_store %arg15[%c8_187, %c0_188, %c0_189], %616 {strides = array<i32>} : memref<16x8x128xf32, #tpu.memory_space<vmem>>, vector<1x8x128xf32>,
    %c7_190 = arith.constant 7 : index
    %c0_191 = arith.constant 0 : index
    %c0_192 = arith.constant 0 : index
    %617 = vector.load %arg16[%c7_190, %c0_191, %c0_192] : memref<16x8x128xf32, #tpu.memory_space<vmem>>, vector<1x8x128xf32>
    %618 = vector.shape_cast %617 : vector<1x8x128xf32> to vector<8x128xf32>
    %619 = vector.shape_cast %613 : vector<8x128xf32> to vector<1x8x128xf32>
    tpu.vector_store %arg16[%c7_190, %c0_191, %c0_192], %619 {strides = array<i32>} : memref<16x8x128xf32, #tpu.memory_space<vmem>>, vector<1x8x128xf32>,
    %c9_193 = arith.constant 9 : index
    %c0_194 = arith.constant 0 : index
    %c0_195 = arith.constant 0 : index
    %620 = vector.load %arg13[%c9_193, %c0_194, %c0_195] : memref<16x8x512xf32, #tpu.memory_space<vmem>>, vector<1x8x512xf32>
    %621 = vector.shape_cast %620 : vector<1x8x512xf32> to vector<8x512xf32>
    %cst_196 = arith.constant dense<0.000000e+00> : vector<8x512xf32>
    %622 = tpu.matmul %588, %41, %cst_196 {dimension_numbers = #tpu.dot_dimension_numbers<[1], [0], [0], [1], [0, 0, 1, 1], [], []>} : vector<8x128xf32>, vector<128x512xf32>, vector<8x512xf32> -> vector<8x512xf32>
    %623 = arith.addf %621, %622 : vector<8x512xf32>
    %c6_197 = arith.constant 6 : index
    %c0_198 = arith.constant 0 : index
    %c0_199 = arith.constant 0 : index
    %624 = vector.load %arg14[%c6_197, %c0_198, %c0_199] : memref<16x8x512xf32, #tpu.memory_space<vmem>>, vector<1x8x512xf32>
    %625 = vector.shape_cast %624 : vector<1x8x512xf32> to vector<8x512xf32>
    %cst_200 = arith.constant dense<0.000000e+00> : vector<8x512xf32>
    %626 = tpu.matmul %613, %42, %cst_200 {dimension_numbers = #tpu.dot_dimension_numbers<[1], [0], [0], [1], [0, 0, 1, 1], [], []>} : vector<8x128xf32>, vector<128x512xf32>, vector<8x512xf32> -> vector<8x512xf32>
    %627 = arith.addf %625, %626 : vector<8x512xf32>
    %628 = vector.extract_strided_slice %623 {offsets = [0, 0], sizes = [8, 128], strides = [1, 1]} : vector<8x512xf32> to vector<8x128xf32>
    %629 = arith.negf %628 : vector<8x128xf32>
    %630 = math.exp %629 : vector<8x128xf32>
    %cst_201 = arith.constant 1.000000e+00 : f32
    %631 = vector.broadcast %cst_201 : f32 to vector<8x128xf32>
    %632 = arith.addf %631, %630 : vector<8x128xf32>
    %633 = arith.divf %631, %632 : vector<8x128xf32>
    %634 = vector.extract_strided_slice %623 {offsets = [0, 128], sizes = [8, 128], strides = [1, 1]} : vector<8x512xf32> to vector<8x128xf32>
    %635 = arith.negf %634 : vector<8x128xf32>
    %636 = math.exp %635 : vector<8x128xf32>
    %cst_202 = arith.constant 1.000000e+00 : f32
    %637 = vector.broadcast %cst_202 : f32 to vector<8x128xf32>
    %638 = arith.addf %637, %636 : vector<8x128xf32>
    %639 = arith.divf %637, %638 : vector<8x128xf32>
    %640 = vector.extract_strided_slice %623 {offsets = [0, 256], sizes = [8, 128], strides = [1, 1]} : vector<8x512xf32> to vector<8x128xf32>
    %641 = math.tanh %640 : vector<8x128xf32>
    %642 = vector.extract_strided_slice %623 {offsets = [0, 384], sizes = [8, 128], strides = [1, 1]} : vector<8x512xf32> to vector<8x128xf32>
    %643 = arith.negf %642 : vector<8x128xf32>
    %644 = math.exp %643 : vector<8x128xf32>
    %cst_203 = arith.constant 1.000000e+00 : f32
    %645 = vector.broadcast %cst_203 : f32 to vector<8x128xf32>
    %646 = arith.addf %645, %644 : vector<8x128xf32>
    %647 = arith.divf %645, %646 : vector<8x128xf32>
    %648 = arith.mulf %639, %586 : vector<8x128xf32>
    %649 = arith.mulf %633, %641 : vector<8x128xf32>
    %650 = arith.addf %648, %649 : vector<8x128xf32>
    %651 = math.tanh %650 : vector<8x128xf32>
    %652 = arith.mulf %647, %651 : vector<8x128xf32>
    %653 = vector.extract_strided_slice %627 {offsets = [0, 0], sizes = [8, 128], strides = [1, 1]} : vector<8x512xf32> to vector<8x128xf32>
    %654 = arith.negf %653 : vector<8x128xf32>
    %655 = math.exp %654 : vector<8x128xf32>
    %cst_204 = arith.constant 1.000000e+00 : f32
    %656 = vector.broadcast %cst_204 : f32 to vector<8x128xf32>
    %657 = arith.addf %656, %655 : vector<8x128xf32>
    %658 = arith.divf %656, %657 : vector<8x128xf32>
    %659 = vector.extract_strided_slice %627 {offsets = [0, 128], sizes = [8, 128], strides = [1, 1]} : vector<8x512xf32> to vector<8x128xf32>
    %660 = arith.negf %659 : vector<8x128xf32>
    %661 = math.exp %660 : vector<8x128xf32>
    %cst_205 = arith.constant 1.000000e+00 : f32
    %662 = vector.broadcast %cst_205 : f32 to vector<8x128xf32>
    %663 = arith.addf %662, %661 : vector<8x128xf32>
    %664 = arith.divf %662, %663 : vector<8x128xf32>
    %665 = vector.extract_strided_slice %627 {offsets = [0, 256], sizes = [8, 128], strides = [1, 1]} : vector<8x512xf32> to vector<8x128xf32>
    %666 = math.tanh %665 : vector<8x128xf32>
    %667 = vector.extract_strided_slice %627 {offsets = [0, 384], sizes = [8, 128], strides = [1, 1]} : vector<8x512xf32> to vector<8x128xf32>
    %668 = arith.negf %667 : vector<8x128xf32>
    %669 = math.exp %668 : vector<8x128xf32>
    %cst_206 = arith.constant 1.000000e+00 : f32
    %670 = vector.broadcast %cst_206 : f32 to vector<8x128xf32>
    %671 = arith.addf %670, %669 : vector<8x128xf32>
    %672 = arith.divf %670, %671 : vector<8x128xf32>
    %673 = arith.mulf %664, %611 : vector<8x128xf32>
    %674 = arith.mulf %658, %666 : vector<8x128xf32>
    %675 = arith.addf %673, %674 : vector<8x128xf32>
    %676 = math.tanh %675 : vector<8x128xf32>
    %677 = arith.mulf %672, %676 : vector<8x128xf32>
    %c9_207 = arith.constant 9 : index
    %c0_208 = arith.constant 0 : index
    %c0_209 = arith.constant 0 : index
    %678 = vector.load %arg15[%c9_207, %c0_208, %c0_209] : memref<16x8x128xf32, #tpu.memory_space<vmem>>, vector<1x8x128xf32>
    %679 = vector.shape_cast %678 : vector<1x8x128xf32> to vector<8x128xf32>
    %680 = vector.shape_cast %652 : vector<8x128xf32> to vector<1x8x128xf32>
    tpu.vector_store %arg15[%c9_207, %c0_208, %c0_209], %680 {strides = array<i32>} : memref<16x8x128xf32, #tpu.memory_space<vmem>>, vector<1x8x128xf32>,
    %c6_210 = arith.constant 6 : index
    %c0_211 = arith.constant 0 : index
    %c0_212 = arith.constant 0 : index
    %681 = vector.load %arg16[%c6_210, %c0_211, %c0_212] : memref<16x8x128xf32, #tpu.memory_space<vmem>>, vector<1x8x128xf32>
    %682 = vector.shape_cast %681 : vector<1x8x128xf32> to vector<8x128xf32>
    %683 = vector.shape_cast %677 : vector<8x128xf32> to vector<1x8x128xf32>
    tpu.vector_store %arg16[%c6_210, %c0_211, %c0_212], %683 {strides = array<i32>} : memref<16x8x128xf32, #tpu.memory_space<vmem>>, vector<1x8x128xf32>,
    %c10_213 = arith.constant 10 : index
    %c0_214 = arith.constant 0 : index
    %c0_215 = arith.constant 0 : index
    %684 = vector.load %arg13[%c10_213, %c0_214, %c0_215] : memref<16x8x512xf32, #tpu.memory_space<vmem>>, vector<1x8x512xf32>
    %685 = vector.shape_cast %684 : vector<1x8x512xf32> to vector<8x512xf32>
    %cst_216 = arith.constant dense<0.000000e+00> : vector<8x512xf32>
    %686 = tpu.matmul %652, %41, %cst_216 {dimension_numbers = #tpu.dot_dimension_numbers<[1], [0], [0], [1], [0, 0, 1, 1], [], []>} : vector<8x128xf32>, vector<128x512xf32>, vector<8x512xf32> -> vector<8x512xf32>
    %687 = arith.addf %685, %686 : vector<8x512xf32>
    %c5_217 = arith.constant 5 : index
    %c0_218 = arith.constant 0 : index
    %c0_219 = arith.constant 0 : index
    %688 = vector.load %arg14[%c5_217, %c0_218, %c0_219] : memref<16x8x512xf32, #tpu.memory_space<vmem>>, vector<1x8x512xf32>
    %689 = vector.shape_cast %688 : vector<1x8x512xf32> to vector<8x512xf32>
    %cst_220 = arith.constant dense<0.000000e+00> : vector<8x512xf32>
    %690 = tpu.matmul %677, %42, %cst_220 {dimension_numbers = #tpu.dot_dimension_numbers<[1], [0], [0], [1], [0, 0, 1, 1], [], []>} : vector<8x128xf32>, vector<128x512xf32>, vector<8x512xf32> -> vector<8x512xf32>
    %691 = arith.addf %689, %690 : vector<8x512xf32>
    %692 = vector.extract_strided_slice %687 {offsets = [0, 0], sizes = [8, 128], strides = [1, 1]} : vector<8x512xf32> to vector<8x128xf32>
    %693 = arith.negf %692 : vector<8x128xf32>
    %694 = math.exp %693 : vector<8x128xf32>
    %cst_221 = arith.constant 1.000000e+00 : f32
    %695 = vector.broadcast %cst_221 : f32 to vector<8x128xf32>
    %696 = arith.addf %695, %694 : vector<8x128xf32>
    %697 = arith.divf %695, %696 : vector<8x128xf32>
    %698 = vector.extract_strided_slice %687 {offsets = [0, 128], sizes = [8, 128], strides = [1, 1]} : vector<8x512xf32> to vector<8x128xf32>
    %699 = arith.negf %698 : vector<8x128xf32>
    %700 = math.exp %699 : vector<8x128xf32>
    %cst_222 = arith.constant 1.000000e+00 : f32
    %701 = vector.broadcast %cst_222 : f32 to vector<8x128xf32>
    %702 = arith.addf %701, %700 : vector<8x128xf32>
    %703 = arith.divf %701, %702 : vector<8x128xf32>
    %704 = vector.extract_strided_slice %687 {offsets = [0, 256], sizes = [8, 128], strides = [1, 1]} : vector<8x512xf32> to vector<8x128xf32>
    %705 = math.tanh %704 : vector<8x128xf32>
    %706 = vector.extract_strided_slice %687 {offsets = [0, 384], sizes = [8, 128], strides = [1, 1]} : vector<8x512xf32> to vector<8x128xf32>
    %707 = arith.negf %706 : vector<8x128xf32>
    %708 = math.exp %707 : vector<8x128xf32>
    %cst_223 = arith.constant 1.000000e+00 : f32
    %709 = vector.broadcast %cst_223 : f32 to vector<8x128xf32>
    %710 = arith.addf %709, %708 : vector<8x128xf32>
    %711 = arith.divf %709, %710 : vector<8x128xf32>
    %712 = arith.mulf %703, %650 : vector<8x128xf32>
    %713 = arith.mulf %697, %705 : vector<8x128xf32>
    %714 = arith.addf %712, %713 : vector<8x128xf32>
    %715 = math.tanh %714 : vector<8x128xf32>
    %716 = arith.mulf %711, %715 : vector<8x128xf32>
    %717 = vector.extract_strided_slice %691 {offsets = [0, 0], sizes = [8, 128], strides = [1, 1]} : vector<8x512xf32> to vector<8x128xf32>
    %718 = arith.negf %717 : vector<8x128xf32>
    %719 = math.exp %718 : vector<8x128xf32>
    %cst_224 = arith.constant 1.000000e+00 : f32
    %720 = vector.broadcast %cst_224 : f32 to vector<8x128xf32>
    %721 = arith.addf %720, %719 : vector<8x128xf32>
    %722 = arith.divf %720, %721 : vector<8x128xf32>
    %723 = vector.extract_strided_slice %691 {offsets = [0, 128], sizes = [8, 128], strides = [1, 1]} : vector<8x512xf32> to vector<8x128xf32>
    %724 = arith.negf %723 : vector<8x128xf32>
    %725 = math.exp %724 : vector<8x128xf32>
    %cst_225 = arith.constant 1.000000e+00 : f32
    %726 = vector.broadcast %cst_225 : f32 to vector<8x128xf32>
    %727 = arith.addf %726, %725 : vector<8x128xf32>
    %728 = arith.divf %726, %727 : vector<8x128xf32>
    %729 = vector.extract_strided_slice %691 {offsets = [0, 256], sizes = [8, 128], strides = [1, 1]} : vector<8x512xf32> to vector<8x128xf32>
    %730 = math.tanh %729 : vector<8x128xf32>
    %731 = vector.extract_strided_slice %691 {offsets = [0, 384], sizes = [8, 128], strides = [1, 1]} : vector<8x512xf32> to vector<8x128xf32>
    %732 = arith.negf %731 : vector<8x128xf32>
    %733 = math.exp %732 : vector<8x128xf32>
    %cst_226 = arith.constant 1.000000e+00 : f32
    %734 = vector.broadcast %cst_226 : f32 to vector<8x128xf32>
    %735 = arith.addf %734, %733 : vector<8x128xf32>
    %736 = arith.divf %734, %735 : vector<8x128xf32>
    %737 = arith.mulf %728, %675 : vector<8x128xf32>
    %738 = arith.mulf %722, %730 : vector<8x128xf32>
    %739 = arith.addf %737, %738 : vector<8x128xf32>
    %740 = math.tanh %739 : vector<8x128xf32>
    %741 = arith.mulf %736, %740 : vector<8x128xf32>
    %c10_227 = arith.constant 10 : index
    %c0_228 = arith.constant 0 : index
    %c0_229 = arith.constant 0 : index
    %742 = vector.load %arg15[%c10_227, %c0_228, %c0_229] : memref<16x8x128xf32, #tpu.memory_space<vmem>>, vector<1x8x128xf32>
    %743 = vector.shape_cast %742 : vector<1x8x128xf32> to vector<8x128xf32>
    %744 = vector.shape_cast %716 : vector<8x128xf32> to vector<1x8x128xf32>
    tpu.vector_store %arg15[%c10_227, %c0_228, %c0_229], %744 {strides = array<i32>} : memref<16x8x128xf32, #tpu.memory_space<vmem>>, vector<1x8x128xf32>,
    %c5_230 = arith.constant 5 : index
    %c0_231 = arith.constant 0 : index
    %c0_232 = arith.constant 0 : index
    %745 = vector.load %arg16[%c5_230, %c0_231, %c0_232] : memref<16x8x128xf32, #tpu.memory_space<vmem>>, vector<1x8x128xf32>
    %746 = vector.shape_cast %745 : vector<1x8x128xf32> to vector<8x128xf32>
    %747 = vector.shape_cast %741 : vector<8x128xf32> to vector<1x8x128xf32>
    tpu.vector_store %arg16[%c5_230, %c0_231, %c0_232], %747 {strides = array<i32>} : memref<16x8x128xf32, #tpu.memory_space<vmem>>, vector<1x8x128xf32>,
    %c11_233 = arith.constant 11 : index
    %c0_234 = arith.constant 0 : index
    %c0_235 = arith.constant 0 : index
    %748 = vector.load %arg13[%c11_233, %c0_234, %c0_235] : memref<16x8x512xf32, #tpu.memory_space<vmem>>, vector<1x8x512xf32>
    %749 = vector.shape_cast %748 : vector<1x8x512xf32> to vector<8x512xf32>
    %cst_236 = arith.constant dense<0.000000e+00> : vector<8x512xf32>
    %750 = tpu.matmul %716, %41, %cst_236 {dimension_numbers = #tpu.dot_dimension_numbers<[1], [0], [0], [1], [0, 0, 1, 1], [], []>} : vector<8x128xf32>, vector<128x512xf32>, vector<8x512xf32> -> vector<8x512xf32>
    %751 = arith.addf %749, %750 : vector<8x512xf32>
    %c4_237 = arith.constant 4 : index
    %c0_238 = arith.constant 0 : index
    %c0_239 = arith.constant 0 : index
    %752 = vector.load %arg14[%c4_237, %c0_238, %c0_239] : memref<16x8x512xf32, #tpu.memory_space<vmem>>, vector<1x8x512xf32>
    %753 = vector.shape_cast %752 : vector<1x8x512xf32> to vector<8x512xf32>
    %cst_240 = arith.constant dense<0.000000e+00> : vector<8x512xf32>
    %754 = tpu.matmul %741, %42, %cst_240 {dimension_numbers = #tpu.dot_dimension_numbers<[1], [0], [0], [1], [0, 0, 1, 1], [], []>} : vector<8x128xf32>, vector<128x512xf32>, vector<8x512xf32> -> vector<8x512xf32>
    %755 = arith.addf %753, %754 : vector<8x512xf32>
    %756 = vector.extract_strided_slice %751 {offsets = [0, 0], sizes = [8, 128], strides = [1, 1]} : vector<8x512xf32> to vector<8x128xf32>
    %757 = arith.negf %756 : vector<8x128xf32>
    %758 = math.exp %757 : vector<8x128xf32>
    %cst_241 = arith.constant 1.000000e+00 : f32
    %759 = vector.broadcast %cst_241 : f32 to vector<8x128xf32>
    %760 = arith.addf %759, %758 : vector<8x128xf32>
    %761 = arith.divf %759, %760 : vector<8x128xf32>
    %762 = vector.extract_strided_slice %751 {offsets = [0, 128], sizes = [8, 128], strides = [1, 1]} : vector<8x512xf32> to vector<8x128xf32>
    %763 = arith.negf %762 : vector<8x128xf32>
    %764 = math.exp %763 : vector<8x128xf32>
    %cst_242 = arith.constant 1.000000e+00 : f32
    %765 = vector.broadcast %cst_242 : f32 to vector<8x128xf32>
    %766 = arith.addf %765, %764 : vector<8x128xf32>
    %767 = arith.divf %765, %766 : vector<8x128xf32>
    %768 = vector.extract_strided_slice %751 {offsets = [0, 256], sizes = [8, 128], strides = [1, 1]} : vector<8x512xf32> to vector<8x128xf32>
    %769 = math.tanh %768 : vector<8x128xf32>
    %770 = vector.extract_strided_slice %751 {offsets = [0, 384], sizes = [8, 128], strides = [1, 1]} : vector<8x512xf32> to vector<8x128xf32>
    %771 = arith.negf %770 : vector<8x128xf32>
    %772 = math.exp %771 : vector<8x128xf32>
    %cst_243 = arith.constant 1.000000e+00 : f32
    %773 = vector.broadcast %cst_243 : f32 to vector<8x128xf32>
    %774 = arith.addf %773, %772 : vector<8x128xf32>
    %775 = arith.divf %773, %774 : vector<8x128xf32>
    %776 = arith.mulf %767, %714 : vector<8x128xf32>
    %777 = arith.mulf %761, %769 : vector<8x128xf32>
    %778 = arith.addf %776, %777 : vector<8x128xf32>
    %779 = math.tanh %778 : vector<8x128xf32>
    %780 = arith.mulf %775, %779 : vector<8x128xf32>
    %781 = vector.extract_strided_slice %755 {offsets = [0, 0], sizes = [8, 128], strides = [1, 1]} : vector<8x512xf32> to vector<8x128xf32>
    %782 = arith.negf %781 : vector<8x128xf32>
    %783 = math.exp %782 : vector<8x128xf32>
    %cst_244 = arith.constant 1.000000e+00 : f32
    %784 = vector.broadcast %cst_244 : f32 to vector<8x128xf32>
    %785 = arith.addf %784, %783 : vector<8x128xf32>
    %786 = arith.divf %784, %785 : vector<8x128xf32>
    %787 = vector.extract_strided_slice %755 {offsets = [0, 128], sizes = [8, 128], strides = [1, 1]} : vector<8x512xf32> to vector<8x128xf32>
    %788 = arith.negf %787 : vector<8x128xf32>
    %789 = math.exp %788 : vector<8x128xf32>
    %cst_245 = arith.constant 1.000000e+00 : f32
    %790 = vector.broadcast %cst_245 : f32 to vector<8x128xf32>
    %791 = arith.addf %790, %789 : vector<8x128xf32>
    %792 = arith.divf %790, %791 : vector<8x128xf32>
    %793 = vector.extract_strided_slice %755 {offsets = [0, 256], sizes = [8, 128], strides = [1, 1]} : vector<8x512xf32> to vector<8x128xf32>
    %794 = math.tanh %793 : vector<8x128xf32>
    %795 = vector.extract_strided_slice %755 {offsets = [0, 384], sizes = [8, 128], strides = [1, 1]} : vector<8x512xf32> to vector<8x128xf32>
    %796 = arith.negf %795 : vector<8x128xf32>
    %797 = math.exp %796 : vector<8x128xf32>
    %cst_246 = arith.constant 1.000000e+00 : f32
    %798 = vector.broadcast %cst_246 : f32 to vector<8x128xf32>
    %799 = arith.addf %798, %797 : vector<8x128xf32>
    %800 = arith.divf %798, %799 : vector<8x128xf32>
    %801 = arith.mulf %792, %739 : vector<8x128xf32>
    %802 = arith.mulf %786, %794 : vector<8x128xf32>
    %803 = arith.addf %801, %802 : vector<8x128xf32>
    %804 = math.tanh %803 : vector<8x128xf32>
    %805 = arith.mulf %800, %804 : vector<8x128xf32>
    %c11_247 = arith.constant 11 : index
    %c0_248 = arith.constant 0 : index
    %c0_249 = arith.constant 0 : index
    %806 = vector.load %arg15[%c11_247, %c0_248, %c0_249] : memref<16x8x128xf32, #tpu.memory_space<vmem>>, vector<1x8x128xf32>
    %807 = vector.shape_cast %806 : vector<1x8x128xf32> to vector<8x128xf32>
    %808 = vector.shape_cast %780 : vector<8x128xf32> to vector<1x8x128xf32>
    tpu.vector_store %arg15[%c11_247, %c0_248, %c0_249], %808 {strides = array<i32>} : memref<16x8x128xf32, #tpu.memory_space<vmem>>, vector<1x8x128xf32>,
    %c4_250 = arith.constant 4 : index
    %c0_251 = arith.constant 0 : index
    %c0_252 = arith.constant 0 : index
    %809 = vector.load %arg16[%c4_250, %c0_251, %c0_252] : memref<16x8x128xf32, #tpu.memory_space<vmem>>, vector<1x8x128xf32>
    %810 = vector.shape_cast %809 : vector<1x8x128xf32> to vector<8x128xf32>
    %811 = vector.shape_cast %805 : vector<8x128xf32> to vector<1x8x128xf32>
    tpu.vector_store %arg16[%c4_250, %c0_251, %c0_252], %811 {strides = array<i32>} : memref<16x8x128xf32, #tpu.memory_space<vmem>>, vector<1x8x128xf32>,
    %c12_253 = arith.constant 12 : index
    %c0_254 = arith.constant 0 : index
    %c0_255 = arith.constant 0 : index
    %812 = vector.load %arg13[%c12_253, %c0_254, %c0_255] : memref<16x8x512xf32, #tpu.memory_space<vmem>>, vector<1x8x512xf32>
    %813 = vector.shape_cast %812 : vector<1x8x512xf32> to vector<8x512xf32>
    %cst_256 = arith.constant dense<0.000000e+00> : vector<8x512xf32>
    %814 = tpu.matmul %780, %41, %cst_256 {dimension_numbers = #tpu.dot_dimension_numbers<[1], [0], [0], [1], [0, 0, 1, 1], [], []>} : vector<8x128xf32>, vector<128x512xf32>, vector<8x512xf32> -> vector<8x512xf32>
    %815 = arith.addf %813, %814 : vector<8x512xf32>
    %c3_257 = arith.constant 3 : index
    %c0_258 = arith.constant 0 : index
    %c0_259 = arith.constant 0 : index
    %816 = vector.load %arg14[%c3_257, %c0_258, %c0_259] : memref<16x8x512xf32, #tpu.memory_space<vmem>>, vector<1x8x512xf32>
    %817 = vector.shape_cast %816 : vector<1x8x512xf32> to vector<8x512xf32>
    %cst_260 = arith.constant dense<0.000000e+00> : vector<8x512xf32>
    %818 = tpu.matmul %805, %42, %cst_260 {dimension_numbers = #tpu.dot_dimension_numbers<[1], [0], [0], [1], [0, 0, 1, 1], [], []>} : vector<8x128xf32>, vector<128x512xf32>, vector<8x512xf32> -> vector<8x512xf32>
    %819 = arith.addf %817, %818 : vector<8x512xf32>
    %820 = vector.extract_strided_slice %815 {offsets = [0, 0], sizes = [8, 128], strides = [1, 1]} : vector<8x512xf32> to vector<8x128xf32>
    %821 = arith.negf %820 : vector<8x128xf32>
    %822 = math.exp %821 : vector<8x128xf32>
    %cst_261 = arith.constant 1.000000e+00 : f32
    %823 = vector.broadcast %cst_261 : f32 to vector<8x128xf32>
    %824 = arith.addf %823, %822 : vector<8x128xf32>
    %825 = arith.divf %823, %824 : vector<8x128xf32>
    %826 = vector.extract_strided_slice %815 {offsets = [0, 128], sizes = [8, 128], strides = [1, 1]} : vector<8x512xf32> to vector<8x128xf32>
    %827 = arith.negf %826 : vector<8x128xf32>
    %828 = math.exp %827 : vector<8x128xf32>
    %cst_262 = arith.constant 1.000000e+00 : f32
    %829 = vector.broadcast %cst_262 : f32 to vector<8x128xf32>
    %830 = arith.addf %829, %828 : vector<8x128xf32>
    %831 = arith.divf %829, %830 : vector<8x128xf32>
    %832 = vector.extract_strided_slice %815 {offsets = [0, 256], sizes = [8, 128], strides = [1, 1]} : vector<8x512xf32> to vector<8x128xf32>
    %833 = math.tanh %832 : vector<8x128xf32>
    %834 = vector.extract_strided_slice %815 {offsets = [0, 384], sizes = [8, 128], strides = [1, 1]} : vector<8x512xf32> to vector<8x128xf32>
    %835 = arith.negf %834 : vector<8x128xf32>
    %836 = math.exp %835 : vector<8x128xf32>
    %cst_263 = arith.constant 1.000000e+00 : f32
    %837 = vector.broadcast %cst_263 : f32 to vector<8x128xf32>
    %838 = arith.addf %837, %836 : vector<8x128xf32>
    %839 = arith.divf %837, %838 : vector<8x128xf32>
    %840 = arith.mulf %831, %778 : vector<8x128xf32>
    %841 = arith.mulf %825, %833 : vector<8x128xf32>
    %842 = arith.addf %840, %841 : vector<8x128xf32>
    %843 = math.tanh %842 : vector<8x128xf32>
    %844 = arith.mulf %839, %843 : vector<8x128xf32>
    %845 = vector.extract_strided_slice %819 {offsets = [0, 0], sizes = [8, 128], strides = [1, 1]} : vector<8x512xf32> to vector<8x128xf32>
    %846 = arith.negf %845 : vector<8x128xf32>
    %847 = math.exp %846 : vector<8x128xf32>
    %cst_264 = arith.constant 1.000000e+00 : f32
    %848 = vector.broadcast %cst_264 : f32 to vector<8x128xf32>
    %849 = arith.addf %848, %847 : vector<8x128xf32>
    %850 = arith.divf %848, %849 : vector<8x128xf32>
    %851 = vector.extract_strided_slice %819 {offsets = [0, 128], sizes = [8, 128], strides = [1, 1]} : vector<8x512xf32> to vector<8x128xf32>
    %852 = arith.negf %851 : vector<8x128xf32>
    %853 = math.exp %852 : vector<8x128xf32>
    %cst_265 = arith.constant 1.000000e+00 : f32
    %854 = vector.broadcast %cst_265 : f32 to vector<8x128xf32>
    %855 = arith.addf %854, %853 : vector<8x128xf32>
    %856 = arith.divf %854, %855 : vector<8x128xf32>
    %857 = vector.extract_strided_slice %819 {offsets = [0, 256], sizes = [8, 128], strides = [1, 1]} : vector<8x512xf32> to vector<8x128xf32>
    %858 = math.tanh %857 : vector<8x128xf32>
    %859 = vector.extract_strided_slice %819 {offsets = [0, 384], sizes = [8, 128], strides = [1, 1]} : vector<8x512xf32> to vector<8x128xf32>
    %860 = arith.negf %859 : vector<8x128xf32>
    %861 = math.exp %860 : vector<8x128xf32>
    %cst_266 = arith.constant 1.000000e+00 : f32
    %862 = vector.broadcast %cst_266 : f32 to vector<8x128xf32>
    %863 = arith.addf %862, %861 : vector<8x128xf32>
    %864 = arith.divf %862, %863 : vector<8x128xf32>
    %865 = arith.mulf %856, %803 : vector<8x128xf32>
    %866 = arith.mulf %850, %858 : vector<8x128xf32>
    %867 = arith.addf %865, %866 : vector<8x128xf32>
    %868 = math.tanh %867 : vector<8x128xf32>
    %869 = arith.mulf %864, %868 : vector<8x128xf32>
    %c12_267 = arith.constant 12 : index
    %c0_268 = arith.constant 0 : index
    %c0_269 = arith.constant 0 : index
    %870 = vector.load %arg15[%c12_267, %c0_268, %c0_269] : memref<16x8x128xf32, #tpu.memory_space<vmem>>, vector<1x8x128xf32>
    %871 = vector.shape_cast %870 : vector<1x8x128xf32> to vector<8x128xf32>
    %872 = vector.shape_cast %844 : vector<8x128xf32> to vector<1x8x128xf32>
    tpu.vector_store %arg15[%c12_267, %c0_268, %c0_269], %872 {strides = array<i32>} : memref<16x8x128xf32, #tpu.memory_space<vmem>>, vector<1x8x128xf32>,
    %c3_270 = arith.constant 3 : index
    %c0_271 = arith.constant 0 : index
    %c0_272 = arith.constant 0 : index
    %873 = vector.load %arg16[%c3_270, %c0_271, %c0_272] : memref<16x8x128xf32, #tpu.memory_space<vmem>>, vector<1x8x128xf32>
    %874 = vector.shape_cast %873 : vector<1x8x128xf32> to vector<8x128xf32>
    %875 = vector.shape_cast %869 : vector<8x128xf32> to vector<1x8x128xf32>
    tpu.vector_store %arg16[%c3_270, %c0_271, %c0_272], %875 {strides = array<i32>} : memref<16x8x128xf32, #tpu.memory_space<vmem>>, vector<1x8x128xf32>,
    %c13_273 = arith.constant 13 : index
    %c0_274 = arith.constant 0 : index
    %c0_275 = arith.constant 0 : index
    %876 = vector.load %arg13[%c13_273, %c0_274, %c0_275] : memref<16x8x512xf32, #tpu.memory_space<vmem>>, vector<1x8x512xf32>
    %877 = vector.shape_cast %876 : vector<1x8x512xf32> to vector<8x512xf32>
    %cst_276 = arith.constant dense<0.000000e+00> : vector<8x512xf32>
    %878 = tpu.matmul %844, %41, %cst_276 {dimension_numbers = #tpu.dot_dimension_numbers<[1], [0], [0], [1], [0, 0, 1, 1], [], []>} : vector<8x128xf32>, vector<128x512xf32>, vector<8x512xf32> -> vector<8x512xf32>
    %879 = arith.addf %877, %878 : vector<8x512xf32>
    %c2_277 = arith.constant 2 : index
    %c0_278 = arith.constant 0 : index
    %c0_279 = arith.constant 0 : index
    %880 = vector.load %arg14[%c2_277, %c0_278, %c0_279] : memref<16x8x512xf32, #tpu.memory_space<vmem>>, vector<1x8x512xf32>
    %881 = vector.shape_cast %880 : vector<1x8x512xf32> to vector<8x512xf32>
    %cst_280 = arith.constant dense<0.000000e+00> : vector<8x512xf32>
    %882 = tpu.matmul %869, %42, %cst_280 {dimension_numbers = #tpu.dot_dimension_numbers<[1], [0], [0], [1], [0, 0, 1, 1], [], []>} : vector<8x128xf32>, vector<128x512xf32>, vector<8x512xf32> -> vector<8x512xf32>
    %883 = arith.addf %881, %882 : vector<8x512xf32>
    %884 = vector.extract_strided_slice %879 {offsets = [0, 0], sizes = [8, 128], strides = [1, 1]} : vector<8x512xf32> to vector<8x128xf32>
    %885 = arith.negf %884 : vector<8x128xf32>
    %886 = math.exp %885 : vector<8x128xf32>
    %cst_281 = arith.constant 1.000000e+00 : f32
    %887 = vector.broadcast %cst_281 : f32 to vector<8x128xf32>
    %888 = arith.addf %887, %886 : vector<8x128xf32>
    %889 = arith.divf %887, %888 : vector<8x128xf32>
    %890 = vector.extract_strided_slice %879 {offsets = [0, 128], sizes = [8, 128], strides = [1, 1]} : vector<8x512xf32> to vector<8x128xf32>
    %891 = arith.negf %890 : vector<8x128xf32>
    %892 = math.exp %891 : vector<8x128xf32>
    %cst_282 = arith.constant 1.000000e+00 : f32
    %893 = vector.broadcast %cst_282 : f32 to vector<8x128xf32>
    %894 = arith.addf %893, %892 : vector<8x128xf32>
    %895 = arith.divf %893, %894 : vector<8x128xf32>
    %896 = vector.extract_strided_slice %879 {offsets = [0, 256], sizes = [8, 128], strides = [1, 1]} : vector<8x512xf32> to vector<8x128xf32>
    %897 = math.tanh %896 : vector<8x128xf32>
    %898 = vector.extract_strided_slice %879 {offsets = [0, 384], sizes = [8, 128], strides = [1, 1]} : vector<8x512xf32> to vector<8x128xf32>
    %899 = arith.negf %898 : vector<8x128xf32>
    %900 = math.exp %899 : vector<8x128xf32>
    %cst_283 = arith.constant 1.000000e+00 : f32
    %901 = vector.broadcast %cst_283 : f32 to vector<8x128xf32>
    %902 = arith.addf %901, %900 : vector<8x128xf32>
    %903 = arith.divf %901, %902 : vector<8x128xf32>
    %904 = arith.mulf %895, %842 : vector<8x128xf32>
    %905 = arith.mulf %889, %897 : vector<8x128xf32>
    %906 = arith.addf %904, %905 : vector<8x128xf32>
    %907 = math.tanh %906 : vector<8x128xf32>
    %908 = arith.mulf %903, %907 : vector<8x128xf32>
    %909 = vector.extract_strided_slice %883 {offsets = [0, 0], sizes = [8, 128], strides = [1, 1]} : vector<8x512xf32> to vector<8x128xf32>
    %910 = arith.negf %909 : vector<8x128xf32>
    %911 = math.exp %910 : vector<8x128xf32>
    %cst_284 = arith.constant 1.000000e+00 : f32
    %912 = vector.broadcast %cst_284 : f32 to vector<8x128xf32>
    %913 = arith.addf %912, %911 : vector<8x128xf32>
    %914 = arith.divf %912, %913 : vector<8x128xf32>
    %915 = vector.extract_strided_slice %883 {offsets = [0, 128], sizes = [8, 128], strides = [1, 1]} : vector<8x512xf32> to vector<8x128xf32>
    %916 = arith.negf %915 : vector<8x128xf32>
    %917 = math.exp %916 : vector<8x128xf32>
    %cst_285 = arith.constant 1.000000e+00 : f32
    %918 = vector.broadcast %cst_285 : f32 to vector<8x128xf32>
    %919 = arith.addf %918, %917 : vector<8x128xf32>
    %920 = arith.divf %918, %919 : vector<8x128xf32>
    %921 = vector.extract_strided_slice %883 {offsets = [0, 256], sizes = [8, 128], strides = [1, 1]} : vector<8x512xf32> to vector<8x128xf32>
    %922 = math.tanh %921 : vector<8x128xf32>
    %923 = vector.extract_strided_slice %883 {offsets = [0, 384], sizes = [8, 128], strides = [1, 1]} : vector<8x512xf32> to vector<8x128xf32>
    %924 = arith.negf %923 : vector<8x128xf32>
    %925 = math.exp %924 : vector<8x128xf32>
    %cst_286 = arith.constant 1.000000e+00 : f32
    %926 = vector.broadcast %cst_286 : f32 to vector<8x128xf32>
    %927 = arith.addf %926, %925 : vector<8x128xf32>
    %928 = arith.divf %926, %927 : vector<8x128xf32>
    %929 = arith.mulf %920, %867 : vector<8x128xf32>
    %930 = arith.mulf %914, %922 : vector<8x128xf32>
    %931 = arith.addf %929, %930 : vector<8x128xf32>
    %932 = math.tanh %931 : vector<8x128xf32>
    %933 = arith.mulf %928, %932 : vector<8x128xf32>
    %c13_287 = arith.constant 13 : index
    %c0_288 = arith.constant 0 : index
    %c0_289 = arith.constant 0 : index
    %934 = vector.load %arg15[%c13_287, %c0_288, %c0_289] : memref<16x8x128xf32, #tpu.memory_space<vmem>>, vector<1x8x128xf32>
    %935 = vector.shape_cast %934 : vector<1x8x128xf32> to vector<8x128xf32>
    %936 = vector.shape_cast %908 : vector<8x128xf32> to vector<1x8x128xf32>
    tpu.vector_store %arg15[%c13_287, %c0_288, %c0_289], %936 {strides = array<i32>} : memref<16x8x128xf32, #tpu.memory_space<vmem>>, vector<1x8x128xf32>,
    %c2_290 = arith.constant 2 : index
    %c0_291 = arith.constant 0 : index
    %c0_292 = arith.constant 0 : index
    %937 = vector.load %arg16[%c2_290, %c0_291, %c0_292] : memref<16x8x128xf32, #tpu.memory_space<vmem>>, vector<1x8x128xf32>
    %938 = vector.shape_cast %937 : vector<1x8x128xf32> to vector<8x128xf32>
    %939 = vector.shape_cast %933 : vector<8x128xf32> to vector<1x8x128xf32>
    tpu.vector_store %arg16[%c2_290, %c0_291, %c0_292], %939 {strides = array<i32>} : memref<16x8x128xf32, #tpu.memory_space<vmem>>, vector<1x8x128xf32>,
    %c14_293 = arith.constant 14 : index
    %c0_294 = arith.constant 0 : index
    %c0_295 = arith.constant 0 : index
    %940 = vector.load %arg13[%c14_293, %c0_294, %c0_295] : memref<16x8x512xf32, #tpu.memory_space<vmem>>, vector<1x8x512xf32>
    %941 = vector.shape_cast %940 : vector<1x8x512xf32> to vector<8x512xf32>
    %cst_296 = arith.constant dense<0.000000e+00> : vector<8x512xf32>
    %942 = tpu.matmul %908, %41, %cst_296 {dimension_numbers = #tpu.dot_dimension_numbers<[1], [0], [0], [1], [0, 0, 1, 1], [], []>} : vector<8x128xf32>, vector<128x512xf32>, vector<8x512xf32> -> vector<8x512xf32>
    %943 = arith.addf %941, %942 : vector<8x512xf32>
    %c1_297 = arith.constant 1 : index
    %c0_298 = arith.constant 0 : index
    %c0_299 = arith.constant 0 : index
    %944 = vector.load %arg14[%c1_297, %c0_298, %c0_299] : memref<16x8x512xf32, #tpu.memory_space<vmem>>, vector<1x8x512xf32>
    %945 = vector.shape_cast %944 : vector<1x8x512xf32> to vector<8x512xf32>
    %cst_300 = arith.constant dense<0.000000e+00> : vector<8x512xf32>
    %946 = tpu.matmul %933, %42, %cst_300 {dimension_numbers = #tpu.dot_dimension_numbers<[1], [0], [0], [1], [0, 0, 1, 1], [], []>} : vector<8x128xf32>, vector<128x512xf32>, vector<8x512xf32> -> vector<8x512xf32>
    %947 = arith.addf %945, %946 : vector<8x512xf32>
    %948 = vector.extract_strided_slice %943 {offsets = [0, 0], sizes = [8, 128], strides = [1, 1]} : vector<8x512xf32> to vector<8x128xf32>
    %949 = arith.negf %948 : vector<8x128xf32>
    %950 = math.exp %949 : vector<8x128xf32>
    %cst_301 = arith.constant 1.000000e+00 : f32
    %951 = vector.broadcast %cst_301 : f32 to vector<8x128xf32>
    %952 = arith.addf %951, %950 : vector<8x128xf32>
    %953 = arith.divf %951, %952 : vector<8x128xf32>
    %954 = vector.extract_strided_slice %943 {offsets = [0, 128], sizes = [8, 128], strides = [1, 1]} : vector<8x512xf32> to vector<8x128xf32>
    %955 = arith.negf %954 : vector<8x128xf32>
    %956 = math.exp %955 : vector<8x128xf32>
    %cst_302 = arith.constant 1.000000e+00 : f32
    %957 = vector.broadcast %cst_302 : f32 to vector<8x128xf32>
    %958 = arith.addf %957, %956 : vector<8x128xf32>
    %959 = arith.divf %957, %958 : vector<8x128xf32>
    %960 = vector.extract_strided_slice %943 {offsets = [0, 256], sizes = [8, 128], strides = [1, 1]} : vector<8x512xf32> to vector<8x128xf32>
    %961 = math.tanh %960 : vector<8x128xf32>
    %962 = vector.extract_strided_slice %943 {offsets = [0, 384], sizes = [8, 128], strides = [1, 1]} : vector<8x512xf32> to vector<8x128xf32>
    %963 = arith.negf %962 : vector<8x128xf32>
    %964 = math.exp %963 : vector<8x128xf32>
    %cst_303 = arith.constant 1.000000e+00 : f32
    %965 = vector.broadcast %cst_303 : f32 to vector<8x128xf32>
    %966 = arith.addf %965, %964 : vector<8x128xf32>
    %967 = arith.divf %965, %966 : vector<8x128xf32>
    %968 = arith.mulf %959, %906 : vector<8x128xf32>
    %969 = arith.mulf %953, %961 : vector<8x128xf32>
    %970 = arith.addf %968, %969 : vector<8x128xf32>
    %971 = math.tanh %970 : vector<8x128xf32>
    %972 = arith.mulf %967, %971 : vector<8x128xf32>
    %973 = vector.extract_strided_slice %947 {offsets = [0, 0], sizes = [8, 128], strides = [1, 1]} : vector<8x512xf32> to vector<8x128xf32>
    %974 = arith.negf %973 : vector<8x128xf32>
    %975 = math.exp %974 : vector<8x128xf32>
    %cst_304 = arith.constant 1.000000e+00 : f32
    %976 = vector.broadcast %cst_304 : f32 to vector<8x128xf32>
    %977 = arith.addf %976, %975 : vector<8x128xf32>
    %978 = arith.divf %976, %977 : vector<8x128xf32>
    %979 = vector.extract_strided_slice %947 {offsets = [0, 128], sizes = [8, 128], strides = [1, 1]} : vector<8x512xf32> to vector<8x128xf32>
    %980 = arith.negf %979 : vector<8x128xf32>
    %981 = math.exp %980 : vector<8x128xf32>
    %cst_305 = arith.constant 1.000000e+00 : f32
    %982 = vector.broadcast %cst_305 : f32 to vector<8x128xf32>
    %983 = arith.addf %982, %981 : vector<8x128xf32>
    %984 = arith.divf %982, %983 : vector<8x128xf32>
    %985 = vector.extract_strided_slice %947 {offsets = [0, 256], sizes = [8, 128], strides = [1, 1]} : vector<8x512xf32> to vector<8x128xf32>
    %986 = math.tanh %985 : vector<8x128xf32>
    %987 = vector.extract_strided_slice %947 {offsets = [0, 384], sizes = [8, 128], strides = [1, 1]} : vector<8x512xf32> to vector<8x128xf32>
    %988 = arith.negf %987 : vector<8x128xf32>
    %989 = math.exp %988 : vector<8x128xf32>
    %cst_306 = arith.constant 1.000000e+00 : f32
    %990 = vector.broadcast %cst_306 : f32 to vector<8x128xf32>
    %991 = arith.addf %990, %989 : vector<8x128xf32>
    %992 = arith.divf %990, %991 : vector<8x128xf32>
    %993 = arith.mulf %984, %931 : vector<8x128xf32>
    %994 = arith.mulf %978, %986 : vector<8x128xf32>
    %995 = arith.addf %993, %994 : vector<8x128xf32>
    %996 = math.tanh %995 : vector<8x128xf32>
    %997 = arith.mulf %992, %996 : vector<8x128xf32>
    %c14_307 = arith.constant 14 : index
    %c0_308 = arith.constant 0 : index
    %c0_309 = arith.constant 0 : index
    %998 = vector.load %arg15[%c14_307, %c0_308, %c0_309] : memref<16x8x128xf32, #tpu.memory_space<vmem>>, vector<1x8x128xf32>
    %999 = vector.shape_cast %998 : vector<1x8x128xf32> to vector<8x128xf32>
    %1000 = vector.shape_cast %972 : vector<8x128xf32> to vector<1x8x128xf32>
    tpu.vector_store %arg15[%c14_307, %c0_308, %c0_309], %1000 {strides = array<i32>} : memref<16x8x128xf32, #tpu.memory_space<vmem>>, vector<1x8x128xf32>,
    %c1_310 = arith.constant 1 : index
    %c0_311 = arith.constant 0 : index
    %c0_312 = arith.constant 0 : index
    %1001 = vector.load %arg16[%c1_310, %c0_311, %c0_312] : memref<16x8x128xf32, #tpu.memory_space<vmem>>, vector<1x8x128xf32>
    %1002 = vector.shape_cast %1001 : vector<1x8x128xf32> to vector<8x128xf32>
    %1003 = vector.shape_cast %997 : vector<8x128xf32> to vector<1x8x128xf32>
    tpu.vector_store %arg16[%c1_310, %c0_311, %c0_312], %1003 {strides = array<i32>} : memref<16x8x128xf32, #tpu.memory_space<vmem>>, vector<1x8x128xf32>,
    %c15_313 = arith.constant 15 : index
    %c0_314 = arith.constant 0 : index
    %c0_315 = arith.constant 0 : index
    %1004 = vector.load %arg13[%c15_313, %c0_314, %c0_315] : memref<16x8x512xf32, #tpu.memory_space<vmem>>, vector<1x8x512xf32>
    %1005 = vector.shape_cast %1004 : vector<1x8x512xf32> to vector<8x512xf32>
    %cst_316 = arith.constant dense<0.000000e+00> : vector<8x512xf32>
    %1006 = tpu.matmul %972, %41, %cst_316 {dimension_numbers = #tpu.dot_dimension_numbers<[1], [0], [0], [1], [0, 0, 1, 1], [], []>} : vector<8x128xf32>, vector<128x512xf32>, vector<8x512xf32> -> vector<8x512xf32>
    %1007 = arith.addf %1005, %1006 : vector<8x512xf32>
    %c0_317 = arith.constant 0 : index
    %c0_318 = arith.constant 0 : index
    %c0_319 = arith.constant 0 : index
    %1008 = vector.load %arg14[%c0_317, %c0_318, %c0_319] : memref<16x8x512xf32, #tpu.memory_space<vmem>>, vector<1x8x512xf32>
    %1009 = vector.shape_cast %1008 : vector<1x8x512xf32> to vector<8x512xf32>
    %cst_320 = arith.constant dense<0.000000e+00> : vector<8x512xf32>
    %1010 = tpu.matmul %997, %42, %cst_320 {dimension_numbers = #tpu.dot_dimension_numbers<[1], [0], [0], [1], [0, 0, 1, 1], [], []>} : vector<8x128xf32>, vector<128x512xf32>, vector<8x512xf32> -> vector<8x512xf32>
    %1011 = arith.addf %1009, %1010 : vector<8x512xf32>
    %1012 = vector.extract_strided_slice %1007 {offsets = [0, 0], sizes = [8, 128], strides = [1, 1]} : vector<8x512xf32> to vector<8x128xf32>
    %1013 = arith.negf %1012 : vector<8x128xf32>
    %1014 = math.exp %1013 : vector<8x128xf32>
    %cst_321 = arith.constant 1.000000e+00 : f32
    %1015 = vector.broadcast %cst_321 : f32 to vector<8x128xf32>
    %1016 = arith.addf %1015, %1014 : vector<8x128xf32>
    %1017 = arith.divf %1015, %1016 : vector<8x128xf32>
    %1018 = vector.extract_strided_slice %1007 {offsets = [0, 128], sizes = [8, 128], strides = [1, 1]} : vector<8x512xf32> to vector<8x128xf32>
    %1019 = arith.negf %1018 : vector<8x128xf32>
    %1020 = math.exp %1019 : vector<8x128xf32>
    %cst_322 = arith.constant 1.000000e+00 : f32
    %1021 = vector.broadcast %cst_322 : f32 to vector<8x128xf32>
    %1022 = arith.addf %1021, %1020 : vector<8x128xf32>
    %1023 = arith.divf %1021, %1022 : vector<8x128xf32>
    %1024 = vector.extract_strided_slice %1007 {offsets = [0, 256], sizes = [8, 128], strides = [1, 1]} : vector<8x512xf32> to vector<8x128xf32>
    %1025 = math.tanh %1024 : vector<8x128xf32>
    %1026 = vector.extract_strided_slice %1007 {offsets = [0, 384], sizes = [8, 128], strides = [1, 1]} : vector<8x512xf32> to vector<8x128xf32>
    %1027 = arith.negf %1026 : vector<8x128xf32>
    %1028 = math.exp %1027 : vector<8x128xf32>
    %cst_323 = arith.constant 1.000000e+00 : f32
    %1029 = vector.broadcast %cst_323 : f32 to vector<8x128xf32>
    %1030 = arith.addf %1029, %1028 : vector<8x128xf32>
    %1031 = arith.divf %1029, %1030 : vector<8x128xf32>
    %1032 = arith.mulf %1023, %970 : vector<8x128xf32>
    %1033 = arith.mulf %1017, %1025 : vector<8x128xf32>
    %1034 = arith.addf %1032, %1033 : vector<8x128xf32>
    %1035 = math.tanh %1034 : vector<8x128xf32>
    %1036 = arith.mulf %1031, %1035 : vector<8x128xf32>
    %1037 = vector.extract_strided_slice %1011 {offsets = [0, 0], sizes = [8, 128], strides = [1, 1]} : vector<8x512xf32> to vector<8x128xf32>
    %1038 = arith.negf %1037 : vector<8x128xf32>
    %1039 = math.exp %1038 : vector<8x128xf32>
    %cst_324 = arith.constant 1.000000e+00 : f32
    %1040 = vector.broadcast %cst_324 : f32 to vector<8x128xf32>
    %1041 = arith.addf %1040, %1039 : vector<8x128xf32>
    %1042 = arith.divf %1040, %1041 : vector<8x128xf32>
    %1043 = vector.extract_strided_slice %1011 {offsets = [0, 128], sizes = [8, 128], strides = [1, 1]} : vector<8x512xf32> to vector<8x128xf32>
    %1044 = arith.negf %1043 : vector<8x128xf32>
    %1045 = math.exp %1044 : vector<8x128xf32>
    %cst_325 = arith.constant 1.000000e+00 : f32
    %1046 = vector.broadcast %cst_325 : f32 to vector<8x128xf32>
    %1047 = arith.addf %1046, %1045 : vector<8x128xf32>
    %1048 = arith.divf %1046, %1047 : vector<8x128xf32>
    %1049 = vector.extract_strided_slice %1011 {offsets = [0, 256], sizes = [8, 128], strides = [1, 1]} : vector<8x512xf32> to vector<8x128xf32>
    %1050 = math.tanh %1049 : vector<8x128xf32>
    %1051 = vector.extract_strided_slice %1011 {offsets = [0, 384], sizes = [8, 128], strides = [1, 1]} : vector<8x512xf32> to vector<8x128xf32>
    %1052 = arith.negf %1051 : vector<8x128xf32>
    %1053 = math.exp %1052 : vector<8x128xf32>
    %cst_326 = arith.constant 1.000000e+00 : f32
    %1054 = vector.broadcast %cst_326 : f32 to vector<8x128xf32>
    %1055 = arith.addf %1054, %1053 : vector<8x128xf32>
    %1056 = arith.divf %1054, %1055 : vector<8x128xf32>
    %1057 = arith.mulf %1048, %995 : vector<8x128xf32>
    %1058 = arith.mulf %1042, %1050 : vector<8x128xf32>
    %1059 = arith.addf %1057, %1058 : vector<8x128xf32>
    %1060 = math.tanh %1059 : vector<8x128xf32>
    %1061 = arith.mulf %1056, %1060 : vector<8x128xf32>
    %c15_327 = arith.constant 15 : index
    %c0_328 = arith.constant 0 : index
    %c0_329 = arith.constant 0 : index
    %1062 = vector.load %arg15[%c15_327, %c0_328, %c0_329] : memref<16x8x128xf32, #tpu.memory_space<vmem>>, vector<1x8x128xf32>
    %1063 = vector.shape_cast %1062 : vector<1x8x128xf32> to vector<8x128xf32>
    %1064 = vector.shape_cast %1036 : vector<8x128xf32> to vector<1x8x128xf32>
    tpu.vector_store %arg15[%c15_327, %c0_328, %c0_329], %1064 {strides = array<i32>} : memref<16x8x128xf32, #tpu.memory_space<vmem>>, vector<1x8x128xf32>,
    %c0_330 = arith.constant 0 : index
    %c0_331 = arith.constant 0 : index
    %c0_332 = arith.constant 0 : index
    %1065 = vector.load %arg16[%c0_330, %c0_331, %c0_332] : memref<16x8x128xf32, #tpu.memory_space<vmem>>, vector<1x8x128xf32>
    %1066 = vector.shape_cast %1065 : vector<1x8x128xf32> to vector<8x128xf32>
    %1067 = vector.shape_cast %1061 : vector<8x128xf32> to vector<1x8x128xf32>
    tpu.vector_store %arg16[%c0_330, %c0_331, %c0_332], %1067 {strides = array<i32>} : memref<16x8x128xf32, #tpu.memory_space<vmem>>, vector<1x8x128xf32>,
    %c0_333 = arith.constant 0 : index
    %c0_334 = arith.constant 0 : index
    %c0_335 = arith.constant 0 : index
    %1068 = vector.load %arg15[%c0_333, %c0_334, %c0_335] : memref<16x8x128xf32, #tpu.memory_space<vmem>>, vector<16x8x128xf32>
    %c0_336 = arith.constant 0 : index
    %c0_337 = arith.constant 0 : index
    %1069 = vector.load %arg9[%c0_336, %c0_337] : memref<128x16xf32, #tpu.memory_space<vmem>>, vector<128x16xf32>
    %cst_338 = arith.constant dense<0.000000e+00> : vector<16x8x16xf32>
    %1070 = tpu.matmul %1068, %1069, %cst_338 {dimension_numbers = #tpu.dot_dimension_numbers<[2], [0], [0, 1], [1], [0, 0, 0, 1, 1, 1], [], []>} : vector<16x8x128xf32>, vector<128x16xf32>, vector<16x8x16xf32> -> vector<16x8x16xf32>
    %c0_339 = arith.constant 0 : index
    %c0_340 = arith.constant 0 : index
    %c0_341 = arith.constant 0 : index
    %1071 = vector.load %arg16[%c0_339, %c0_340, %c0_341] : memref<16x8x128xf32, #tpu.memory_space<vmem>>, vector<16x8x128xf32>
    %c0_342 = arith.constant 0 : index
    %c0_343 = arith.constant 0 : index
    %1072 = vector.load %arg10[%c0_342, %c0_343] : memref<128x16xf32, #tpu.memory_space<vmem>>, vector<128x16xf32>
    %cst_344 = arith.constant dense<0.000000e+00> : vector<16x8x16xf32>
    %1073 = tpu.matmul %1071, %1072, %cst_344 {dimension_numbers = #tpu.dot_dimension_numbers<[2], [0], [0, 1], [1], [0, 0, 0, 1, 1, 1], [], []>} : vector<16x8x128xf32>, vector<128x16xf32>, vector<16x8x16xf32> -> vector<16x8x16xf32>
    %1074 = arith.addf %1070, %1073 : vector<16x8x16xf32>
    %c0_345 = arith.constant 0 : index
    %c0_346 = arith.constant 0 : index
    %1075 = vector.load %arg11[%c0_345, %c0_346] : memref<1x16xf32, #tpu.memory_space<vmem>>, vector<1x16xf32>
    %1076 = vector.shape_cast %1075 : vector<1x16xf32> to vector<1x1x16xf32>
    %1077 = vector.broadcast %1076 : vector<1x1x16xf32> to vector<16x8x16xf32>
    %1078 = arith.addf %1074, %1077 : vector<16x8x16xf32>
    %1079 = arith.addf %1078, %0 : vector<16x8x16xf32>
    %c0_347 = arith.constant 0 : index
    %c0_348 = arith.constant 0 : index
    %c0_349 = arith.constant 0 : index
    %1080 = vector.load %arg12[%c0_347, %c0_348, %c0_349] : memref<16x8x16xf32, #tpu.memory_space<vmem>>, vector<16x8x16xf32>
    tpu.vector_store %arg12[%c0_347, %c0_348, %c0_349], %1079 {strides = array<i32>} : memref<16x8x16xf32, #tpu.memory_space<vmem>>, vector<16x8x16xf32>,
    return
  }
  func.func @transform_0(%arg0: i32) -> (i32, i32, i32) {
    %c0_i32 = arith.constant 0 : i32
    %c0_i32_0 = arith.constant 0 : i32
    %c0_i32_1 = arith.constant 0 : i32
    return %c0_i32, %arg0, %c0_i32_0 : i32, i32, i32
  }
  func.func @transform_1(%arg0: i32) -> (i32, i32) {
    %c0_i32 = arith.constant 0 : i32
    %c0_i32_0 = arith.constant 0 : i32
    %c0_i32_1 = arith.constant 0 : i32
    return %c0_i32, %c0_i32_0 : i32, i32
  }
  func.func @transform_2(%arg0: i32) -> (i32, i32) {
    %c0_i32 = arith.constant 0 : i32
    %c0_i32_0 = arith.constant 0 : i32
    %c0_i32_1 = arith.constant 0 : i32
    return %c0_i32, %c0_i32_0 : i32, i32
  }
  func.func @transform_3(%arg0: i32) -> (i32, i32) {
    %c0_i32 = arith.constant 0 : i32
    %c0_i32_0 = arith.constant 0 : i32
    %c0_i32_1 = arith.constant 0 : i32
    return %c0_i32, %c0_i32_0 : i32, i32
  }
  func.func @transform_4(%arg0: i32) -> (i32, i32) {
    %c0_i32 = arith.constant 0 : i32
    %c0_i32_0 = arith.constant 0 : i32
    %c0_i32_1 = arith.constant 0 : i32
    return %c0_i32, %c0_i32_0 : i32, i32
  }
  func.func @transform_5(%arg0: i32) -> (i32, i32) {
    %c0_i32 = arith.constant 0 : i32
    %c0_i32_0 = arith.constant 0 : i32
    %c0_i32_1 = arith.constant 0 : i32
    return %c0_i32, %c0_i32_0 : i32, i32
  }
  func.func @transform_6(%arg0: i32) -> (i32, i32) {
    %c0_i32 = arith.constant 0 : i32
    %c0_i32_0 = arith.constant 0 : i32
    %c0_i32_1 = arith.constant 0 : i32
    return %c0_i32, %c0_i32_0 : i32, i32
  }
  func.func @transform_7(%arg0: i32) -> (i32, i32) {
    %c0_i32 = arith.constant 0 : i32
    %c0_i32_0 = arith.constant 0 : i32
    %c0_i32_1 = arith.constant 0 : i32
    return %c0_i32, %c0_i32_0 : i32, i32
  }
  func.func @transform_8(%arg0: i32) -> (i32, i32) {
    %c0_i32 = arith.constant 0 : i32
    %c0_i32_0 = arith.constant 0 : i32
    %c0_i32_1 = arith.constant 0 : i32
    return %c0_i32, %c0_i32_0 : i32, i32
  }
  func.func @transform_9(%arg0: i32) -> (i32, i32) {
    %c0_i32 = arith.constant 0 : i32
    %c0_i32_0 = arith.constant 0 : i32
    %c0_i32_1 = arith.constant 0 : i32
    return %c0_i32, %c0_i32_0 : i32, i32
  }
  func.func @transform_10(%arg0: i32) -> (i32, i32) {
    %c0_i32 = arith.constant 0 : i32
    %c0_i32_0 = arith.constant 0 : i32
    %c0_i32_1 = arith.constant 0 : i32
    return %c0_i32, %c0_i32_0 : i32, i32
  }
  func.func @transform_11(%arg0: i32) -> (i32, i32, i32) {
    %c0_i32 = arith.constant 0 : i32
    %c0_i32_0 = arith.constant 0 : i32
    %c0_i32_1 = arith.constant 0 : i32
    return %c0_i32, %arg0, %c0_i32_0 : i32, i32, i32
  }
}

</mosaic_0001>

<bundles_post_ra>
// kernel: tpu_custom_call.1
= control target key start
LH: loop header
LB: loop body
LE: loop exit
PB: predicated region body
PF: predicated region fallthrough
CT: control target
= control target key end

     0   :  { %s14134_s0 = inlined_call_operand.vmem [shape: f32[16,16,16], index: 0, kind: input, shape index: {}]   ;;  %s14135_s1 = inlined_call_operand.vmem [shape: f32[1,16], index: 1, kind: input, shape index: {}]   ;;  %s14136_s2 = inlined_call_operand.vmem [shape: f32[1,16], index: 2, kind: input, shape index: {}]   ;;  %s14137_s3 = inlined_call_operand.hbm [shape: f32[16,1024], index: 3, kind: input, shape index: {}]   ;;  %s14138_s4 = inlined_call_operand.vmem [shape: f32[1,512], index: 4, kind: input, shape index: {}]   ;;  %s14139_s5 = inlined_call_operand.vmem [shape: f32[1,512], index: 5, kind: input, shape index: {}]   ;;  %s14140_s6 = inlined_call_operand.hbm [shape: f32[128,512], index: 6, kind: input, shape index: {}]   ;;  %s14141_s7 = inlined_call_operand.hbm [shape: f32[128,512], index: 7, kind: input, shape index: {}]   ;;  %s14142_s8 = inlined_call_operand.vmem [shape: f32[128,16], index: 8, kind: input, shape index: {}]   ;;  %s14143_s9 = inlined_call_operand.vmem [shape: f32[128,16], index: 9, kind: input, shape index: {}]   ;;  %s14144_s10 = inlined_call_operand.vmem [shape: f32[1,16], index: 10, kind: input, shape index: {}]   ;;  %s14145_s11 = inlined_call_operand.hbm [shape: f32[16,16,16], index: 11, kind: output, shape index: {}]  }
   0x1   :  { %14250 = sst [smem:[#allocation82_spill]] %s14140_s6 }
   0x2   :  { %14251 = sst [smem:[#allocation83_spill]] %s14144_s10 }
   0x3   :  { %14252 = sst [smem:[#allocation84_spill]] %s14145_s11 }
   0x4   :  { %16 = vsyncpa [#allocation8], 0 }
   0x5   :  { %17 = vsyncpa [#allocation11], 0 }
   0x6   :  { %18 = vsyncpa [#allocation9], 0 }
   0x7   :  { %20 = vsyncpa [#allocation9 + $0x1], 0  ;;  %s11613_s17 = smov 0   ;;  %s11615_s18 = smov 0  }
   0x8   :  { %s11617_s19 = smov 0   ;;  %s11619_s20 = smov 0  }
   0x9 LB: > { %14253 = sst [smem:[#allocation17_spill]] %s11527_s17  ;;  %s11634_s21 = sadd.s32 4294967295, %s11539_s20   ;;  %s11539_s20 = sphi %s11619_s20, %s14797_s20   ;;  %s11535_s19 = sphi %s11617_s19, %s14801_s19   ;;  %s11531_s18 = sphi %s11615_s18, %s14800_s18   ;;  %s11527_s17 = sphi %s11613_s17, %s14799_s17  }
   0xa   : > { %s8018_s22 = sadd.s32 4294967294, %s11539_s20   ;;  %s11638_s23 = sadd.s32 1, %s11539_s20  }
   0xb   : > { %14254 = sst [smem:[#allocation18_spill]] %s11638_s23  ;;  %s33_s24 = sadd.s32 1, %s11535_s19 }
   0xc   : > { %s30_s25 = ssub.s32 %s11539_s20, %s11638_s23  ;;  %p40_p0 = scmp.ne.s32.totalorder %s11535_s19, %s11531_s18 }
   0xd   : > { %p31_p1 = scmp.eq.s32.totalorder %s30_s25, 0  ;;  %p41_p2 = scmp.eq.s32.totalorder %s11539_s20, 0 }
   0xe   : > { %p280_p3 = scmp.eq.s32.totalorder %s11634_s21, 1  ;;  %p285_p4 = scmp.ne.s32.totalorder %s11531_s18, %s11527_s17 }
   0xf   : > { %s11650_s26 = scalar_select %p31_p1, %s11535_s19, %s33_s24  }
  0x10   : > { %p11652_p5 = por %p41_p2, %p40_p0  ;;  %p11656_p6 = por %p280_p3, %p40_p0 }
  0x11   : > { %14255 = sst [smem:[#allocation19_spill]] %s11650_s26  ;;  %p286_p7 = scmp.eq.s32.totalorder %s8018_s22, 1 }
  0x12   : > { %s14256_s27 = scalar_select %p11652_p5, 1, 0 }
  0x13   : > { %s14257_s28 = scalar_select %p11656_p6, 1, 0 }
  0x14   : > { %p8019_p8 = scmp.ge.s32.totalorder %s11539_s20, 1  ;;  %p293_p9 = scmp.lt.s32.totalorder %s11539_s20, 3 }
  0x15   : > { %14258 = sst [smem:[#allocation20_spill]] %s14257_s28  ;;  %p11662_p10 = por %p286_p7, %p285_p4 }
  0x16   : > { %p14149_p11 = scmp.eq.s32.totalorder %s11634_s21, 0  ;;  %p11667_p12 = pnand %p8019_p8, %p293_p9 }
  0x17   : > { %s14259_s29 = scalar_select %p11662_p10, 1, 0 }
  0x18   : > { %s14261_s30 = scalar_select %p11667_p12, 1, 0 }
  0x19   : > { %14260 = sst [smem:[#allocation21_spill]] %s14259_s29  ;;  %s11541_s12 = smov [#allocation10]  }
  0x1a   : > { %s330_s13 = sshll.u32 %s11541_s12, 4  ;;  %p10791_p13 = pneg %p11667_p12  ;;  %s331_s13 = int_to_ptr.vmem [resolvable:$true] %s330_s13 }
  0x1b   : > { %s11542_s15 = smov [#allocation7]   ;;  %s14263_s6 = sld [smem:[#allocation82_spill]] }
  0x1c   : > { %p11675_p0 = pnand %p14149_p11, %p10791_p13  ;;  %s311_s16 = sshll.u32 %s11542_s15, 4  ;;  %s11679_s16 = int_to_ptr.vmem [resolvable:$true] %s311_s16 }
  0x1e   : > { %p11689_p2 = pneg %p11675_p0 }
  0x21   : > { %s11385_s25 = scalar_lea.hbm %s14263_s6, 8192 }
  0x22   : > { %p11386_p1 = scmp.ne.s32.totalorder %s14263_s6, %s11385_s25  ;;  %p11392_p7 = scmp.lt.u32.totalorder %s11385_s25, %s14263_s6 }
  0x24   : > { %p11388_p3 = pnand %p11689_p2, %p11386_p1 }
  0x26   : > { %p11389_p4 = pneg %p11388_p3 }
  0x28   : > { %p11394_p8 = pnand %p11392_p7, %p11389_p4 }
  0x2a   : > { %11397 = shalt.err (!%p11394_p8)
}
  0x2b   : > { %s11398_s22 = scalar_lea.vmem %s331_s13, 8192  ;;  %p11406_p10 = scmp.lt.s32.totalorder %s331_s13, %s331_s13 }
  0x2c   : > { %p11399_p9 = scmp.ne.s32.totalorder %s331_s13, %s11398_s22  ;;  %p11407_p6 = scmp.lt.s32.totalorder %s11398_s22, %s11398_s22 }
  0x2e   : > { %p11401_p13 = pnand %p11399_p9, %p11689_p2  ;;  %p11408_p12 = por %p11407_p6, %p11406_p10 }
  0x30   : > { %p11402_p11 = pneg %p11401_p13 }
  0x32   : > { %p11409_p5 = pnand %p11408_p12, %p11402_p11 }
  0x34   : > { %11412 = shalt.err (!%p11409_p5)
}
  0x35   : > { %s14156_s23 = smov 512   ;;  %s14157_s26 = smov 32  }
  0x36   : > { %10797 = dma.hbm_to_vmem [thread:$0]  (!%p11675_p0), %s14263_s6, 8192, %s331_s13, [#allocation11], %s14156_s23, %s14156_s23, %s14157_s26  }
  0x37   : > { %s11413_s17 = scalar_lea.hbm %s14137_s3, 2048 }
  0x38   : > { %p11414_p5 = scmp.ne.s32.totalorder %s14137_s3, %s11413_s17  ;;  %p11420_p11 = scmp.lt.u32.totalorder %s11413_s17, %s14137_s3 }
  0x3a   : > { %p11416_p6 = pnand %p11414_p5, %p11689_p2 }
  0x3c   : > { %p11417_p10 = pneg %p11416_p6 }
  0x3e   : > { %p11422_p12 = pnand %p11420_p11, %p11417_p10 }
  0x40   : > { %11425 = shalt.err (!%p11422_p12)
}
  0x41   : > { %s11426_s13 = scalar_lea.vmem %s11679_s16, 2048  ;;  %p11434_p7 = scmp.lt.s32.totalorder %s11679_s16, %s11679_s16 }
  0x42   : > { %p11427_p1 = scmp.ne.s32.totalorder %s11679_s16, %s11426_s13  ;;  %p11435_p8 = scmp.lt.s32.totalorder %s11426_s13, %s11426_s13 }
  0x44   : > { %p11429_p3 = pnand %p11427_p1, %p11689_p2  ;;  %p11436_p9 = por %p11435_p8, %p11434_p7 }
  0x46   : > { %p11430_p4 = pneg %p11429_p3 }
  0x48   : > { %p11437_p13 = pnand %p11436_p9, %p11430_p4 }
  0x4a   : > { %11440 = shalt.err (!%p11437_p13)
}
  0x4b   : > { %s11545_s11 = smov 1024   ;;  %s11546_s10 = smov 64  }
  0x4c   : > { %10794 = dma.hbm_to_vmem [thread:$0]  (!%p11675_p0), %s14137_s3, 2048, %s11679_s16, [#allocation8], %s11545_s11, %s11545_s11, %s11546_s10  }
  0x4d   : > { %s11547_s29 = smov [#allocation12]   ;;  %s11441_s22 = scalar_lea.hbm %s14141_s7, 8192 }
  0x4e   : > { %s343_s24 = sshll.u32 %s11547_s29, 4  ;;  %p11442_p5 = scmp.ne.s32.totalorder %s14141_s7, %s11441_s22  ;;  %s344_s24 = int_to_ptr.vmem [resolvable:$true] %s343_s24 }
  0x4f   : > { %p11448_p11 = scmp.lt.u32.totalorder %s11441_s22, %s14141_s7 }
  0x50   : > { %p11444_p6 = pnand %p11442_p5, %p11689_p2 }
  0x52   : > { %p11445_p10 = pneg %p11444_p6 }
  0x54   : > { %p11450_p12 = pnand %p11448_p11, %p11445_p10 }
  0x56   : > { %11453 = shalt.err (!%p11450_p12)
}
  0x57   : > { %s11454_s16 = scalar_lea.vmem %s344_s24, 8192  ;;  %p11462_p7 = scmp.lt.s32.totalorder %s344_s24, %s344_s24 }
  0x58   : > { %p11455_p1 = scmp.ne.s32.totalorder %s344_s24, %s11454_s16  ;;  %p11463_p8 = scmp.lt.s32.totalorder %s11454_s16, %s11454_s16 }
  0x5a   : > { %p11457_p3 = pnand %p11455_p1, %p11689_p2  ;;  %p11464_p9 = por %p11463_p8, %p11462_p7 }
  0x5c   : > { %p11458_p4 = pneg %p11457_p3 }
  0x5e   : > { %p11465_p13 = pnand %p11464_p9, %p11458_p4 }
  0x60   : > { %11468 = shalt.err (!%p11465_p13)
}
  0x61   : > { %s14265_s23 = smov 32   ;;  %s14266_s11 = smov 512  }
  0x62   : > { %10800 = dma.hbm_to_vmem [thread:$0]  (!%p11675_p0), %s14141_s7, 8192, %s344_s24, [#allocation11], %s14266_s11, %s14266_s11, %s14265_s23  }
  0x63   : > { %p8023_p5 = scmp.ge.s32.totalorder %s11539_s20, 2 }
  0x64   : > { %p14267_p2 = scmp.ne.s32.totalorder (!%p8023_p5), %s14256_s27, 0 }
  0x65   : > { %362 = sbr.rel (%p8023_p5) target bundleno = 120 (0x78), region = 56 }
  0x6c   : > { %365 = sbr.rel (!%p14267_p2) target bundleno = 120 (0x78), region = 60  ;;  %s367_s12 = sand.u32 (%p14267_p2), 1, %s11535_s19  }
  0x6d   : > { %s8025_s10 = sshll.u32 (%p14267_p2), %s11539_s20, 3  ;;  %s8024_s14 = sshll.u32 (%p14267_p2), %s367_s12, 7 }
  0x6e   : > { %s11762_s29 = scalar_lea.vmem (%p14267_p2), %s14134_s0, %s8025_s10  ;;  %s369_s27 = scalar_lea.vmem (%p14267_p2), [#allocation6], %s8024_s14 }
  0x6f   : > { %v429_v0 = vld [vmem:[%s11762_s29] sm:$0xff] (%p14267_p2)  ;;  %v431_v1 = vld [vmem:[%s11762_s29 + $0x10] sm:$0xff] (%p14267_p2) }
  0x70   : > { %v433_v2 = vld [vmem:[%s11762_s29 + $0x20] sm:$0xff] (%p14267_p2)  ;;  %430 = vst [vmem:[%s369_s27] sm:$0xff] (%p14267_p2), %v429_v0  ;;  %432 = vst [vmem:[%s369_s27 + $0x8] sm:$0xff] (%p14267_p2), %v431_v1  ;;  %v435_v3 = vld [vmem:[%s11762_s29 + $0x30] sm:$0xff] (%p14267_p2) }
  0x71   : > { %434 = vst [vmem:[%s369_s27 + $0x10] sm:$0xff] (%p14267_p2), %v433_v2  ;;  %v437_v4 = vld [vmem:[%s11762_s29 + $0x40] sm:$0xff] (%p14267_p2)  ;;  %v439_v5 = vld [vmem:[%s11762_s29 + $0x50] sm:$0xff] (%p14267_p2)  ;;  %436 = vst [vmem:[%s369_s27 + $0x18] sm:$0xff] (%p14267_p2), %v435_v3 }
  0x72   : > { %438 = vst [vmem:[%s369_s27 + $0x20] sm:$0xff] (%p14267_p2), %v437_v4  ;;  %440 = vst [vmem:[%s369_s27 + $0x28] sm:$0xff] (%p14267_p2), %v439_v5  ;;  %v441_v6 = vld [vmem:[%s11762_s29 + $0x60] sm:$0xff] (%p14267_p2)  ;;  %v443_v7 = vld [vmem:[%s11762_s29 + $0x70] sm:$0xff] (%p14267_p2) }
  0x73   : > { %v445_v8 = vld [vmem:[%s11762_s29 + $0x80] sm:$0xff]  ;;  %442 = vst [vmem:[%s369_s27 + $0x30] sm:$0xff] %v441_v6  ;;  %444 = vst [vmem:[%s369_s27 + $0x38] sm:$0xff] %v443_v7  ;;  %v447_v9 = vld [vmem:[%s11762_s29 + $0x90] sm:$0xff] }
  0x74   : > { %446 = vst [vmem:[%s369_s27 + $0x40] sm:$0xff] %v445_v8  ;;  %v449_v10 = vld [vmem:[%s11762_s29 + $0xa0] sm:$0xff]  ;;  %v451_v11 = vld [vmem:[%s11762_s29 + $0xb0] sm:$0xff]  ;;  %448 = vst [vmem:[%s369_s27 + $0x48] sm:$0xff] %v447_v9 }
  0x75   : > { %450 = vst [vmem:[%s369_s27 + $0x50] sm:$0xff] %v449_v10  ;;  %452 = vst [vmem:[%s369_s27 + $0x58] sm:$0xff] %v451_v11  ;;  %v453_v12 = vld [vmem:[%s11762_s29 + $0xc0] sm:$0xff]  ;;  %v455_v13 = vld [vmem:[%s11762_s29 + $0xd0] sm:$0xff] }
  0x76   : > { %v457_v14 = vld [vmem:[%s11762_s29 + $0xe0] sm:$0xff]  ;;  %454 = vst [vmem:[%s369_s27 + $0x60] sm:$0xff] %v453_v12  ;;  %456 = vst [vmem:[%s369_s27 + $0x68] sm:$0xff] %v455_v13  ;;  %v459_v15 = vld [vmem:[%s11762_s29 + $0xf0] sm:$0xff] }
  0x77   : > { %458 = vst [vmem:[%s369_s27 + $0x70] sm:$0xff] %v457_v14  ;;  %460 = vst [vmem:[%s369_s27 + $0x78] sm:$0xff] %v459_v15 }
  0x78 PF: > { %p14268_p0 = scmp.ne.s32.totalorder %s14261_s30, 0 }
  0x7a   : > { %469 = sbr.rel (%p14268_p0) target bundleno = 4839 (0x12e7), region = 98 }
  0x81   : > { %s472_s24 = sand.u32 1, %s11531_s18   ;;  %p14269_p6 = scmp.eq.s32.totalorder %s11634_s21, 0 }
  0x82   : > { %s11785_s25 = sshll.u32 %s472_s24, 7 }
  0x83   : > { %s11788_s15 = scalar_lea.vmem [#allocation6], %s11785_s25 }
  0x84   : > { %11514 = dma.done.wait (%p14269_p6), [#allocation8], 2048   ;;  %p14270_p10 = pmov %p14269_p6 }
  0x85   : > { %p14271_p11 = pmov %p14269_p6 }
  0x86   : > { %11516 = vsyncadd (%p14270_p10), [#allocation8], 4294965248 }
  0x87   : > { %11518 = dma.done.wait (%p14271_p11), [#allocation11], 16384   ;;  %p14272_p12 = pmov %p14269_p6 }
  0x88   : > { %v14164_v16 = vmov 0.0   ;;  %v702_v17 = vld [vmem:[#allocation7 + $0x8] sm:$0xff]  ;;  %v701_v19 = vld [vmem:[#allocation7] sm:$0xff]  ;;  %vm539_vm0 = vcmask 130048   ;;  %v704_v22 = vld [vmem:[#allocation7 + $0x18] sm:$0xff]  ;;  %s14790_s27 = sld [smem:[#allocation83_spill]] }
  0x89   : > { %11520 = vsyncadd (%p14272_p12), [#allocation11], 4294950912  ;;  %829 = vmatprep.mubr.f32.mxu0 %v14164_v16  ;;  %859 = vmatprep.mubr.f32.mxu1 %v14164_v16  ;;  %v710_v18 = vld [vmem:[#allocation7 + $0x48] sm:$0xff]  ;;  %v709_v21 = vld [vmem:[#allocation7 + $0x40] sm:$0xff]  ;;  %s14019_s30 = scalar_lea.vmem [#allocation13], %s11785_s25  ;;  %s8196_s25 = sshll.u32 %s11634_s21, 7 }
  0x8a   : > { %v8375_v20 = vpack.c.bf16 %v710_v18, %v702_v17  ;;  %v712_v23 = vld [vmem:[#allocation7 + $0x58] sm:$0xff]  ;;  %v8377_v24 = vpack.c.bf16 %v709_v21, %v701_v19  ;;  %v523_v26 = vld [vmem:[%s11788_s15] sm:$0xff]  ;;  %v524_v27 = vld [vmem:[%s11788_s15 + $0x8] sm:$0xff]  ;;  %s7919_s22 = sshll.u32 %s14019_s30, 4  ;;  %s14791_s13 = sld [smem:[#allocation20_spill]]  ;;  %s14083_s22 = int_to_ptr.vmem [resolvable:$true] %s7919_s22 }
  0x8b   : > { %v8379_v25 = vpack.c.bf16 %v712_v23, %v704_v22  ;;  %v525_v28 = vld [vmem:[%s11788_s15 + $0x10] sm:$0xff]  ;;  %v526_v29 = vld [vmem:[%s11788_s15 + $0x18] sm:$0xff]  ;;  %v540_v30 = vsel %vm539_vm0, %v523_v26, 0.0  ;;  %v541_v31 = vsel %vm539_vm0, %v524_v27, 0.0  ;;  %v527_v33 = vld [vmem:[%s11788_s15 + $0x20] sm:$0xff]  ;;  %s14792_s21 = sld [smem:[#allocation84_spill]] }
  0x8c   : > { %10503 = vmatprep.subr.bf16.mxu1 %v8375_v20  ;;  %8376 = vmatprep.subr.bf16.mxu0 %v8375_v20  ;;  %v543_v32 = vsel %vm539_vm0, %v525_v28, 0.0  ;;  %v542_v34 = vadd.f32 %v541_v31, %v540_v30  ;;  %v545_v35 = vsel %vm539_vm0, %v526_v29, 0.0  ;;  %v528_v36 = vld [vmem:[%s11788_s15 + $0x28] sm:$0xff]  ;;  %v547_v38 = vsel %vm539_vm0, %v527_v33, 0.0  ;;  %v529_v39 = vld [vmem:[%s11788_s15 + $0x30] sm:$0xff]  ;;  %v530_v44 = vld [vmem:[%s11788_s15 + $0x38] sm:$0xff] }
  0x8d   : > { %10504 = vmatpush1.bf16.msra.mxu1 %v8377_v24  ;;  %8378 = vmatpush1.bf16.msra.mxu0 %v8377_v24  ;;  %v549_v41 = vsel %vm539_vm0, %v528_v36, 0.0  ;;  %v706_v42 = vld [vmem:[#allocation7 + $0x28] sm:$0xff]  ;;  %v551_v47 = vsel %vm539_vm0, %v529_v39, 0.0  ;;  %v531_v48 = vld [vmem:[%s11788_s15 + $0x40] sm:$0xff]  ;;  %v553_v50 = vsel %vm539_vm0, %v530_v44, 0.0  ;;  %v533_v54 = vld [vmem:[%s11788_s15 + $0x50] sm:$0xff] }
  0x8e   : > { %8380 = vmatprep.subr.bf16.mxu1 %v8379_v25  ;;  %v544_v37 = vadd.f32 %v543_v32, %v542_v34  ;;  %v714_v43 = vld [vmem:[#allocation7 + $0x68] sm:$0xff]  ;;  %v555_v53 = vsel %vm539_vm0, %v531_v48, 0.0  ;;  %v534_v57 = vld [vmem:[%s11788_s15 + $0x58] sm:$0xff]  ;;  %v559_v59 = vsel %vm539_vm0, %v533_v54, 0.0  ;;  %v535_v60 = vld [vmem:[%s11788_s15 + $0x60] sm:$0xff]  ;;  %s14092_s6 = scalar_lea.sflag [#allocation9], %s472_s24 }
  0x8f   : > { %v8383_v46 = vpack.c.bf16 %v714_v43, %v706_v42  ;;  %v532_v51 = vld [vmem:[%s11788_s15 + $0x48] sm:$0xff]  ;;  %v561_v62 = vsel %vm539_vm0, %v534_v57, 0.0  ;;  %v563_v1 = vsel %vm539_vm0, %v535_v60, 0.0  ;;  %v537_v2 = vld [vmem:[%s11788_s15 + $0x70] sm:$0xff]  ;;  %v538_v5 = vld [vmem:[%s11788_s15 + $0x78] sm:$0xff]  ;;  %s11469_s26 = scalar_lea.vmem %s14083_s22, 2048 }
  0x90   : > { %v546_v40 = vadd.f32 %v545_v35, %v544_v37  ;;  %v557_v56 = vsel %vm539_vm0, %v532_v51, 0.0  ;;  %v536_v63 = vld [vmem:[%s11788_s15 + $0x68] sm:$0xff]  ;;  %v567_v7 = vsel %vm539_vm0, %v537_v2, 0.0  ;;  %v569_v9 = vsel %vm539_vm0, %v538_v5, 0.0  ;;  %p11470_p1 = scmp.ne.s32.totalorder %s14083_s22, %s11469_s26  ;;  %p14793_p3 = scmp.ne.s32.totalorder %s14791_s13, 0 }
  0x91   : > { %8384 = vmatprep.subr.bf16.mxu0 %v8383_v46  ;;  %v565_v4 = vsel %vm539_vm0, %v536_v63, 0.0  ;;  %s14080_s11 = scalar_lea.hbm %s14792_s21, %s8196_s25  ;;  %s11549_s12 = smov [#allocation13]  }
  0x92   : > { %v548_v45 = vadd.f32 %v547_v38, %v546_v40  ;;  %p11471_p4 = pnand %p11470_p1, %p14793_p3  ;;  %s11473_s10 = sshll.u32 %s11549_s12, 4  ;;  %s11474_s10 = int_to_ptr.vmem [resolvable:$false] %s11473_s10 }
  0x93   : > { %s11475_s14 = scalar_lea.vmem %s11474_s10, 4096  ;;  %p11476_p8 = scmp.lt.s32.totalorder %s14083_s22, %s11474_s10 }
  0x94   : > { %v550_v49 = vadd.f32 %v549_v41, %v548_v45  ;;  %p11472_p7 = pneg %p11471_p4  ;;  %p11477_p9 = scmp.lt.s32.totalorder %s11475_s14, %s11469_s26 }
  0x96   : > { %v552_v52 = vadd.f32 %v551_v47, %v550_v49  ;;  %p11478_p13 = por %p11477_p9, %p11476_p8 }
  0x98   : > { %v554_v55 = vadd.f32 %v553_v50, %v552_v52  ;;  %p11479_p2 = pnand %p11478_p13, %p11472_p7 }
  0x9a   : > { %v556_v58 = vadd.f32 %v555_v53, %v554_v55 }
  0x9c   : > { %v558_v61 = vadd.f32 %v557_v56, %v556_v58 }
  0x9e   : > { %v560_v0 = vadd.f32 %v559_v59, %v558_v61 }
  0xa0   : > { %v562_v3 = vadd.f32 %v561_v62, %v560_v0 }
  0xa2   : > { %v564_v6 = vadd.f32 %v563_v1, %v562_v3 }
  0xa4   : > { %v566_v8 = vadd.f32 %v565_v4, %v564_v6 }
  0xa6   : > { %v568_v10 = vadd.f32 %v567_v7, %v566_v8 }
  0xa8   : > { %v570_v11 = vadd.f32 %v569_v9, %v568_v10 }
  0xaa   : > { %v572_v12 = vmul.f32 0.0625, %v570_v11 }
  0xac   : > { %v11832_v13 = vsub.f32 %v523_v26, %v572_v12  ;;  %v11834_v14 = vsub.f32 %v524_v27, %v572_v12  ;;  %v11836_v15 = vsub.f32 %v525_v28, %v572_v12  ;;  %v11838_v17 = vsub.f32 %v526_v29, %v572_v12 }
  0xad   : > { %v11840_v18 = vsub.f32 %v527_v33, %v572_v12  ;;  %v578_v22 = vsub.f32 %v528_v36, %v572_v12  ;;  %v11850_v24 = vsub.f32 %v529_v39, %v572_v12  ;;  %v580_v30 = vsub.f32 %v530_v44, %v572_v12 }
  0xae   : > { %v589_v19 = vmul.f32 %v11832_v13, %v11832_v13  ;;  %v590_v20 = vmul.f32 %v11834_v14, %v11834_v14  ;;  %v591_v21 = vmul.f32 %v11836_v15, %v11836_v15  ;;  %v592_v23 = vmul.f32 %v11838_v17, %v11838_v17 }
  0xaf   : > { %v593_v25 = vmul.f32 %v11840_v18, %v11840_v18  ;;  %v594_v31 = vmul.f32 %v578_v22, %v578_v22  ;;  %v11858_v34 = vsub.f32 %v531_v48, %v572_v12  ;;  %v595_v35 = vmul.f32 %v11850_v24, %v11850_v24 }
  0xb0   : > { %v605_v26 = vsel %vm539_vm0, %v589_v19, 0.0  ;;  %v606_v27 = vsel %vm539_vm0, %v590_v20, 0.0  ;;  %v608_v28 = vsel %vm539_vm0, %v591_v21, 0.0  ;;  %v610_v32 = vsel %vm539_vm0, %v592_v23, 0.0  ;;  %v11909_v23 = vld [vmem:[%s14135_s1] ss:$0 sm:$0xff] }
  0xb1   : > { %v607_v29 = vadd.f32 %v606_v27, %v605_v26  ;;  %v612_v36 = vsel %vm539_vm0, %v593_v25, 0.0  ;;  %v11863_v38 = vsub.f32 %v532_v51, %v572_v12  ;;  %v596_v39 = vmul.f32 %v580_v30, %v580_v30  ;;  %v703_v27 = vld [vmem:[#allocation7 + $0x10] sm:$0xff] }
  0xb2   : > { %v614_v40 = vsel %vm539_vm0, %v594_v31, 0.0  ;;  %v11866_v42 = vsub.f32 %v533_v54, %v572_v12  ;;  %v597_v43 = vmul.f32 %v11858_v34, %v11858_v34  ;;  %v616_v44 = vsel %vm539_vm0, %v595_v35, 0.0  ;;  %v705_v35 = vld [vmem:[#allocation7 + $0x20] sm:$0xff] }
  0xb3   : > { %v609_v33 = vadd.f32 %v608_v28, %v607_v29  ;;  %v11871_v46 = vsub.f32 %v534_v57, %v572_v12  ;;  %v598_v47 = vmul.f32 %v11863_v38, %v11863_v38  ;;  %v618_v48 = vsel %vm539_vm0, %v596_v39, 0.0  ;;  %v711_v28 = vld [vmem:[#allocation7 + $0x50] sm:$0xff]  ;;  %v708_v39 = vld [vmem:[#allocation7 + $0x38] sm:$0xff] }
  0xb4   : > { %v11876_v50 = vsub.f32 %v535_v60, %v572_v12  ;;  %v599_v51 = vmul.f32 %v11866_v42, %v11866_v42  ;;  %v620_v52 = vsel %vm539_vm0, %v597_v43, 0.0  ;;  %v11881_v54 = vsub.f32 %v536_v63, %v572_v12 }
  0xb5   : > { %v611_v37 = vadd.f32 %v610_v32, %v609_v33  ;;  %v600_v55 = vmul.f32 %v11871_v46, %v11871_v46  ;;  %v622_v56 = vsel %vm539_vm0, %v598_v47, 0.0  ;;  %v11886_v58 = vsub.f32 %v537_v2, %v572_v12  ;;  %v11921_v32 = vld [vmem:[%s14136_s2] ss:$0 sm:$0xff] }
  0xb6   : > { %v601_v59 = vmul.f32 %v11876_v50, %v11876_v50  ;;  %v624_v60 = vsel %vm539_vm0, %v599_v51, 0.0  ;;  %v11891_v62 = vsub.f32 %v538_v5, %v572_v12  ;;  %v602_v63 = vmul.f32 %v11881_v54, %v11881_v54  ;;  %v1714_v51 = vld [vmem:[#allocation10 + $0x28] sm:$0xff] }
  0xb7   : > { %v613_v41 = vadd.f32 %v612_v36, %v611_v37  ;;  %v626_v0 = vsel %vm539_vm0, %v600_v55, 0.0  ;;  %v603_v3 = vmul.f32 %v11886_v58, %v11886_v58 }
  0xb8   : > { %v628_v2 = vsel %vm539_vm0, %v601_v59, 0.0  ;;  %v604_v6 = vmul.f32 %v11891_v62, %v11891_v62  ;;  %v630_v7 = vsel %vm539_vm0, %v602_v63, 0.0 }
  0xb9   : > { %v615_v45 = vadd.f32 %v614_v40, %v613_v41  ;;  %v632_v5 = vsel %vm539_vm0, %v603_v3, 0.0  ;;  %v716_v40 = vld [vmem:[#allocation7 + $0x78] sm:$0xff]  ;;  %v8381_v41 = vpack.c.bf16 %v711_v28, %v703_v27  ;;  %v1726_v27 = vld [vmem:[#allocation10 + $0x88] sm:$0xff] }
  0xba   : > { %v634_v10 = vsel %vm539_vm0, %v604_v6, 0.0  ;;  %v1709_v6 = vld [vmem:[#allocation10] sm:$0xff]  ;;  %v1730_v28 = vld [vmem:[#allocation10 + $0xa8] sm:$0xff] }
  0xbb   : > { %v617_v49 = vadd.f32 %v616_v44, %v615_v45 }
  0xbd   : > { %v619_v53 = vadd.f32 %v618_v48, %v617_v49  ;;  %v8387_v48 = vpack.c.bf16 %v716_v40, %v708_v39  ;;  %v1710_v49 = vld [vmem:[#allocation10 + $0x8] sm:$0xff]  ;;  %v1733_v39 = vld [vmem:[#allocation10 + $0xc0] sm:$0xff] }
  0xbe   : > { %v1737_v40 = vld [vmem:[#allocation10 + $0xe0] sm:$0xff] }
  0xbf   : > { %v621_v57 = vadd.f32 %v620_v52, %v619_v53 }
  0xc1   : > { %v623_v61 = vadd.f32 %v622_v56, %v621_v57 }
  0xc3   : > { %v625_v1 = vadd.f32 %v624_v60, %v623_v61 }
  0xc5   : > { %v627_v4 = vadd.f32 %v626_v0, %v625_v1 }
  0xc7   : > { %v629_v8 = vadd.f32 %v628_v2, %v627_v4 }
  0xc9   : > { %v631_v9 = vadd.f32 %v630_v7, %v629_v8 }
  0xcb   : > { %v633_v11 = vadd.f32 %v632_v5, %v631_v9  ;;  %v1718_v9 = vld [vmem:[#allocation10 + $0x48] sm:$0xff] }
  0xcd   : > { %v635_v12 = vadd.f32 %v634_v10, %v633_v11  ;;  %v1722_v10 = vld [vmem:[#allocation10 + $0x68] sm:$0xff] }
  0xcf   : > { %v636_v19 = vmul.f32 0.0625, %v635_v12  ;;  %v12020_v12 = vpack.c.bf16 %v1722_v10, %v1718_v9  ;;  %v1770_v9 = vld [vmem:[#allocation10 + $0x1e8] sm:$0xff]  ;;  %v1712_v10 = vld [vmem:[#allocation10 + $0x18] sm:$0xff] }
  0xd1   : > { %v637_v20 = vadd.f32 1e-05, %v636_v19  ;;  %14273 = vst [vmem:[#allocation22_spill] sm:$0xff] %v12020_v12  ;;  %v1717_v19 = vld [vmem:[#allocation10 + $0x40] sm:$0xff] }
  0xd3   : > { %10855 = vrsqrt.f32 %v637_v20  ;;  %v1721_v20 = vld [vmem:[#allocation10 + $0x60] sm:$0xff] }
  0xdd   : > { %v11904_v21 = vpop.eup %10855 }
  0xde   : > { %v639_v25 = vmul.f32 %v11904_v21, %v11832_v13  ;;  %v644_v26 = vmul.f32 %v11904_v21, %v578_v22  ;;  %v640_v29 = vmul.f32 %v11904_v21, %v11834_v14  ;;  %v645_v31 = vmul.f32 %v11904_v21, %v11850_v24  ;;  %v713_v22 = vld [vmem:[#allocation7 + $0x60] sm:$0xff] }
  0xdf   : > { %v641_v33 = vmul.f32 %v11904_v21, %v11836_v15  ;;  %v646_v13 = vmul.f32 %v11904_v21, %v580_v30  ;;  %v8385_v30 = vpack.c.bf16 %v713_v22, %v705_v35  ;;  %v642_v45 = vmul.f32 %v11904_v21, %v11838_v17 }
  0xe0   : > { %v662_v36 = vmul.f32 %v11909_v23, %v639_v25  ;;  %v667_v37 = vmul.f32 %v11909_v23, %v644_v26  ;;  %v663_v14 = vmul.f32 %v11909_v23, %v640_v29  ;;  %v668_v24 = vmul.f32 %v11909_v23, %v645_v31 }
  0xe1   : > { %v664_v44 = vmul.f32 %v11909_v23, %v641_v33  ;;  %v647_v47 = vmul.f32 %v11904_v21, %v11858_v34  ;;  %v669_v17 = vmul.f32 %v11909_v23, %v646_v13  ;;  %v11954_v34 = vpack.c.bf16 %v1714_v51, %v1710_v49  ;;  %v1725_v33 = vld [vmem:[#allocation10 + $0x80] sm:$0xff] }
  0xe2   : > { %v11931_v43 = vadd.f32 %v11921_v32, %v662_v36  ;;  %v11934_v15 = vadd.f32 %v11921_v32, %v667_v37  ;;  %v11946_v52 = vadd.f32 %v11921_v32, %v663_v14  ;;  %v11949_v53 = vadd.f32 %v11921_v32, %v668_v24  ;;  %v1729_v13 = vld [vmem:[#allocation10 + $0xa0] sm:$0xff]  ;;  %v1734_v36 = vld [vmem:[#allocation10 + $0xc8] sm:$0xff] }
  0xe3   : > { %v11957_v55 = vadd.f32 %v11921_v32, %v664_v44  ;;  %v665_v56 = vmul.f32 %v11909_v23, %v642_v45  ;;  %v670_v57 = vmul.f32 %v11909_v23, %v647_v47  ;;  %v11966_v59 = vadd.f32 %v11921_v32, %v669_v17  ;;  %v1738_v37 = vld [vmem:[#allocation10 + $0xe8] sm:$0xff]  ;;  %v1741_v49 = vld [vmem:[#allocation10 + $0x100] sm:$0xff] }
  0xe4   : > { %8034 = vmatmul.mubr.msk.f32.vlgmr.msra.gmra.mrb[0].mxu0 %vm539_vm0, %v11931_v43  ;;  %8039 = vmatmul.mubr.msk.f32.vlgmr.msra.gmra.mrb[0].mxu1 %vm539_vm0, %v11934_v15  ;;  %v643_v60 = vmul.f32 %v11904_v21, %v11840_v18  ;;  %v648_v61 = vmul.f32 %v11904_v21, %v11863_v38  ;;  %v649_v1 = vmul.f32 %v11904_v21, %v11866_v42  ;;  %v1742_v44 = vld [vmem:[#allocation10 + $0x108] sm:$0xff]  ;;  %v1745_v51 = vld [vmem:[#allocation10 + $0x120] sm:$0xff] }
  0xe5   : > { %8382 = vmatpush1.bf16.msra.mxu1 %v8381_v41  ;;  %835 = vmatprep.mubr.f32.mxu0 %v14164_v16  ;;  %v11976_v63 = vadd.f32 %v11921_v32, %v665_v56  ;;  %v11979_v0 = vadd.f32 %v11921_v32, %v670_v57  ;;  %v650_v3 = vmul.f32 %v11904_v21, %v11871_v46  ;;  %v1713_v46 = vld [vmem:[#allocation10 + $0x20] sm:$0xff]  ;;  %v1746_v45 = vld [vmem:[#allocation10 + $0x128] sm:$0xff] }
  0xe6   : > { %865 = vmatprep.mubr.f32.mxu1 %v14164_v16  ;;  %8386 = vmatpush1.bf16.msra.mxu0 %v8385_v30  ;;  %v666_v18 = vmul.f32 %v11909_v23, %v643_v60  ;;  %v671_v38 = vmul.f32 %v11909_v23, %v648_v61  ;;  %v672_v42 = vmul.f32 %v11909_v23, %v649_v1  ;;  %v1750_v17 = vld [vmem:[#allocation10 + $0x148] sm:$0xff]  ;;  %v1749_v61 = vld [vmem:[#allocation10 + $0x140] sm:$0xff] }
  0xe7   : > { %8388 = vmatprep.subr.bf16.mxu1 %v8387_v48  ;;  %8392 = vmatprep.subr.bf16.mxu0 %v11954_v34  ;;  %v673_v8 = vmul.f32 %v11909_v23, %v650_v3  ;;  %v651_v5 = vmul.f32 %v11904_v21, %v11876_v50  ;;  %v12018_v11 = vpack.c.bf16 %v1713_v46, %v1709_v6  ;;  %v1754_v56 = vld [vmem:[#allocation10 + $0x168] sm:$0xff]  ;;  %v707_v3 = vld [vmem:[#allocation7 + $0x30] sm:$0xff] }
  0xe8   : > { %8035 = vmatmul.mubr.msk.f32.gmra.mrb[2].mxu0 %vm539_vm0, %v11946_v52  ;;  %8040 = vmatmul.mubr.msk.f32.gmra.mrb[2].mxu1 %vm539_vm0, %v11949_v53  ;;  %v11998_v2 = vadd.f32 %v11921_v32, %v666_v18  ;;  %v12001_v4 = vadd.f32 %v11921_v32, %v671_v38  ;;  %v12011_v7 = vadd.f32 %v11921_v32, %v672_v42  ;;  %v1753_v18 = vld [vmem:[#allocation10 + $0x160] sm:$0xff]  ;;  %v1758_v38 = vld [vmem:[#allocation10 + $0x188] sm:$0xff]  ;;  %v715_v42 = vld [vmem:[#allocation7 + $0x70] sm:$0xff] }
  0xe9   : > { %841 = vmatprep.mubr.f32.mxu0 %v14164_v16  ;;  %871 = vmatprep.mubr.f32.mxu1 %v14164_v16  ;;  %v12027_v50 = vadd.f32 %v11921_v32, %v673_v8  ;;  %v674_v25 = vmul.f32 %v11909_v23, %v651_v5  ;;  %v652_v26 = vmul.f32 %v11904_v21, %v11881_v54  ;;  %v1762_v1 = vld [vmem:[#allocation10 + $0x1a8] sm:$0xff]  ;;  %v1757_v8 = vld [vmem:[#allocation10 + $0x180] sm:$0xff] }
  0xea   : > { %v12035_v29 = vpack.c.bf16 %v1721_v20, %v1717_v19  ;;  %v12038_v31 = vpack.c.bf16 %v1730_v28, %v1726_v27  ;;  %v653_v22 = vmul.f32 %v11904_v21, %v11886_v58  ;;  %v12053_v14 = vpack.c.bf16 %v1729_v13, %v1725_v33  ;;  %v1761_v5 = vld [vmem:[#allocation10 + $0x1a0] sm:$0xff]  ;;  %v1716_v19 = vld [vmem:[#allocation10 + $0x38] sm:$0xff]  ;;  %v1774_v13 = vld [vmem:[#allocation12 + $0x8] sm:$0xff] }
  0xeb   : > { %v12045_v54 = vadd.f32 %v11921_v32, %v674_v25  ;;  %v675_v35 = vmul.f32 %v11909_v23, %v652_v26  ;;  %v12056_v24 = vpack.c.bf16 %v1738_v37, %v1734_v36  ;;  %v654_v30 = vmul.f32 %v11904_v21, %v11891_v62  ;;  %v1765_v27 = vld [vmem:[#allocation10 + $0x1c0] sm:$0xff] }
  0xec   : > { %8036 = vmatmul.mubr.msk.f32.gmra.mrb[4].mxu0 %vm539_vm0, %v11957_v55  ;;  %8041 = vmatmul.mubr.msk.f32.gmra.mrb[4].mxu1 %vm539_vm0, %v11966_v59  ;;  %14274 = vst [vmem:[#allocation23_spill] sm:$0xff] %v12038_v31  ;;  %14275 = vst [vmem:[#allocation24_spill] sm:$0xff] %v12053_v14  ;;  %v676_v41 = vmul.f32 %v11909_v23, %v653_v22  ;;  %v12071_v47 = vpack.c.bf16 %v1737_v40, %v1733_v39  ;;  %v1769_v28 = vld [vmem:[#allocation10 + $0x1e0] sm:$0xff]  ;;  %v1782_v40 = vld [vmem:[#allocation12 + $0x48] sm:$0xff] }
  0xed   : > { %847 = vmatprep.mubr.f32.mxu0 %v14164_v16  ;;  %877 = vmatprep.mubr.f32.mxu1 %v14164_v16  ;;  %14276 = vst [vmem:[#allocation25_spill] sm:$0xff] %v12056_v24  ;;  %v12063_v58 = vadd.f32 %v11921_v32, %v675_v35  ;;  %v12074_v48 = vpack.c.bf16 %v1746_v45, %v1742_v44  ;;  %v1778_v35 = vld [vmem:[#allocation12 + $0x28] sm:$0xff]  ;;  %v1773_v37 = vld [vmem:[#allocation12] sm:$0xff] }
  0xee   : > { %14277 = vst [vmem:[#allocation26_spill] sm:$0xff] %v12071_v47  ;;  %v12081_v62 = vadd.f32 %v11921_v32, %v676_v41  ;;  %v677_v21 = vmul.f32 %v11909_v23, %v654_v30  ;;  %v12087_v57 = vpack.c.bf16 %v1745_v51, %v1741_v49  ;;  %v12090_v60 = vpack.c.bf16 %v1754_v56, %v1750_v17  ;;  %v1777_v39 = vld [vmem:[#allocation12 + $0x20] sm:$0xff]  ;;  %v1786_v41 = vld [vmem:[#allocation12 + $0x68] sm:$0xff] }
  0xef   : > { %14278 = vst [vmem:[#allocation27_spill] sm:$0xff] %v12074_v48  ;;  %v12102_v6 = vpack.c.bf16 %v1753_v18, %v1749_v61  ;;  %v12105_v46 = vpack.c.bf16 %v1762_v1, %v1758_v38  ;;  %v8389_v20 = vpack.c.bf16 %v715_v42, %v707_v3  ;;  %v12114_v25 = vpack.c.bf16 %v1761_v5, %v1757_v8  ;;  %v1781_v45 = vld [vmem:[#allocation12 + $0x40] sm:$0xff]  ;;  %v1790_v51 = vld [vmem:[#allocation12 + $0x88] sm:$0xff] }
  0xf0   : > { %8037 = vmatmul.mubr.msk.f32.gmra.mrb[6].mxu0 %vm539_vm0, %v11976_v63  ;;  %8042 = vmatmul.mubr.msk.f32.gmra.mrb[6].mxu1 %vm539_vm0, %v11979_v0  ;;  %14279 = vst [vmem:[#allocation28_spill] sm:$0xff] %v12087_v57  ;;  %14280 = vst [vmem:[#allocation29_spill] sm:$0xff] %v12090_v60  ;;  %v12097_v23 = vadd.f32 %v11921_v32, %v677_v21  ;;  %v1766_v32 = vld [vmem:[#allocation10 + $0x1c8] sm:$0xff]  ;;  %v12119_v33 = vpack.c.bf16 %v1716_v19, %v1712_v10  ;;  %v1785_v49 = vld [vmem:[#allocation12 + $0x60] sm:$0xff] }
  0xf1   : > { %853 = vmatprep.mubr.f32.mxu0 %v14164_v16  ;;  %883 = vmatprep.mubr.f32.mxu1 %v14164_v16  ;;  %14281 = vst [vmem:[#allocation30_spill] sm:$0xff] %v12102_v6  ;;  %14282 = vst [vmem:[#allocation31_spill] sm:$0xff] %v12105_v46  ;;  %v12117_v26 = vpack.c.bf16 %v1770_v9, %v1766_v32  ;;  %v12128_v22 = vpack.c.bf16 %v1769_v28, %v1765_v27  ;;  %v1794_v21 = vld [vmem:[#allocation12 + $0xa8] sm:$0xff]  ;;  %v1789_v61 = vld [vmem:[#allocation12 + $0x80] sm:$0xff] }
  0xf2   : > { %14283 = vst [vmem:[#allocation32_spill] sm:$0xff] %v12114_v25  ;;  %v12132_v36 = vpack.c.bf16 %v1778_v35, %v1774_v13  ;;  %v12190_v30 = vpack.c.bf16 %v1777_v39, %v1773_v37  ;;  %v12192_v44 = vpack.c.bf16 %v1786_v41, %v1782_v40  ;;  %v12199_v17 = vpack.c.bf16 %v1785_v49, %v1781_v45  ;;  %v1793_v18 = vld [vmem:[#allocation12 + $0xa0] sm:$0xff]  ;;  %v1798_v38 = vld [vmem:[#allocation12 + $0xc8] sm:$0xff] }
  0xf3   : > { %14284 = vst [vmem:[#allocation33_spill] sm:$0xff] %v12117_v26  ;;  %14285 = vst [vmem:[#allocation34_spill] sm:$0xff] %v12128_v22  ;;  %v12202_v56 = vpack.c.bf16 %v1794_v21, %v1790_v51  ;;  %v1802_v1 = vld [vmem:[#allocation12 + $0xe8] sm:$0xff]  ;;  %v12209_v3 = vpack.c.bf16 %v1793_v18, %v1789_v61  ;;  %v1797_v8 = vld [vmem:[#allocation12 + $0xc0] sm:$0xff] }
  0xf4   : > { %8038 = vmatmul.mubr.msk.f32.gmra.mrb[8].mxu0 %vm539_vm0, %v11998_v2  ;;  %8043 = vmatmul.mubr.msk.f32.gmra.mrb[8].mxu1 %vm539_vm0, %v12001_v4  ;;  %14286 = vst [vmem:[#allocation35_spill] sm:$0xff] %v12132_v36  ;;  %v12212_v42 = vpack.c.bf16 %v1802_v1, %v1798_v38  ;;  %v1801_v5 = vld [vmem:[#allocation12 + $0xe0] sm:$0xff]  ;;  %v1806_v32 = vld [vmem:[#allocation12 + $0x108] sm:$0xff]  ;;  %v1711_v51 = vld [vmem:[#allocation10 + $0x10] sm:$0xff] }
  0xf5   : > { %889 = vmatprep.mubr.f32.mxu1 %v14164_v16  ;;  %1151 = vmatprep.mubr.f32.mxu0 %v14164_v16  ;;  %v1810_v9 = vld [vmem:[#allocation12 + $0x128] sm:$0xff]  ;;  %v12218_v10 = vpack.c.bf16 %v1801_v5, %v1797_v8  ;;  %v1809_v27 = vld [vmem:[#allocation12 + $0x120] sm:$0xff]  ;;  %v1715_v21 = vld [vmem:[#allocation10 + $0x30] sm:$0xff] }
  0xf6   : > { %v12221_v19 = vpack.c.bf16 %v1810_v9, %v1806_v32  ;;  %v1814_v28 = vld [vmem:[#allocation12 + $0x148] sm:$0xff]  ;;  %v1813_v39 = vld [vmem:[#allocation12 + $0x140] sm:$0xff]  ;;  %v1720_v61 = vld [vmem:[#allocation10 + $0x58] sm:$0xff]  ;;  %v12244_v9 = vpack.c.bf16 %v1715_v21, %v1711_v51 }
  0xf7   : > { %v1818_v13 = vld [vmem:[#allocation12 + $0x168] sm:$0xff]  ;;  %v1817_v40 = vld [vmem:[#allocation12 + $0x160] sm:$0xff]  ;;  %v1724_v38 = vld [vmem:[#allocation10 + $0x78] sm:$0xff] }
  0xf8   : > { %8044 = vmatmul.mubr.msk.f32.gmra.mrb[10].mxu1 %vm539_vm0, %v12011_v7  ;;  %8066 = vmatmul.mubr.msk.f32.vlgmr.msra.gmra.mrb[10].mxu0 %vm539_vm0, %v11931_v43  ;;  %v12230_v37 = vpack.c.bf16 %v1818_v13, %v1814_v28  ;;  %v1822_v41 = vld [vmem:[#allocation12 + $0x188] sm:$0xff]  ;;  %v12236_v49 = vpack.c.bf16 %v1817_v40, %v1813_v39  ;;  %v1821_v1 = vld [vmem:[#allocation12 + $0x180] sm:$0xff]  ;;  %v1723_v28 = vld [vmem:[#allocation10 + $0x70] sm:$0xff] }
  0xf9   : > { %895 = vmatprep.mubr.f32.mxu1 %v14164_v16  ;;  %1157 = vmatprep.mubr.f32.mxu0 %v14164_v16  ;;  %v1826_v45 = vld [vmem:[#allocation12 + $0x1a8] sm:$0xff]  ;;  %v1825_v8 = vld [vmem:[#allocation12 + $0x1a0] sm:$0xff]  ;;  %v1728_v13 = vld [vmem:[#allocation10 + $0x98] sm:$0xff] }
  0xfa   : > { %8394 = vmatpush1.bf16.msra.mxu0 %v12018_v11  ;;  %14287 = vst [vmem:[#allocation36_spill] sm:$0xff] %v12230_v37  ;;  %v12239_v18 = vpack.c.bf16 %v1826_v45, %v1822_v41  ;;  %v1830_v5 = vld [vmem:[#allocation12 + $0x1c8] sm:$0xff]  ;;  %v12250_v39 = vpack.c.bf16 %v1825_v8, %v1821_v1  ;;  %v1732_v40 = vld [vmem:[#allocation10 + $0xb8] sm:$0xff]  ;;  %v1829_v45 = vld [vmem:[#allocation12 + $0x1c0] sm:$0xff] }
  0xfb   : > { %8396 = vmatprep.subr.bf16.mxu0 %v12020_v12  ;;  %v1834_v32 = vld [vmem:[#allocation12 + $0x1e8] sm:$0xff]  ;;  %v12261_v21 = vpack.c.bf16 %v1732_v40, %v1728_v13  ;;  %v1736_v8 = vld [vmem:[#allocation10 + $0xd8] sm:$0xff] }
  0xfc   : > { %8045 = vmatmul.mubr.msk.f32.gmra.mrb[12].mxu1 %vm539_vm0, %v12027_v50  ;;  %8067 = vmatmul.mubr.msk.f32.gmra.mrb[12].mxu0 %vm539_vm0, %v11946_v52  ;;  %v12252_v41 = vpack.c.bf16 %v1834_v32, %v1830_v5  ;;  %v1740_v5 = vld [vmem:[#allocation10 + $0xf8] sm:$0xff] }
  0xfd   : > { %901 = vmatprep.mubr.f32.mxu1 %v14164_v16  ;;  %1163 = vmatprep.mubr.f32.mxu0 %v14164_v16  ;;  %14289 = vst [vmem:[#allocation38_spill] sm:$0xff] %v12261_v21  ;;  %v12274_v32 = vpack.c.bf16 %v1740_v5, %v1736_v8  ;;  %v1748_v13 = vld [vmem:[#allocation10 + $0x138] sm:$0xff] }
  0xfe   : > { %8398 = vmatpush1.bf16.msra.mxu0 %v12035_v29  ;;  %v1756_v8 = vld [vmem:[#allocation10 + $0x178] sm:$0xff] }
  0xff   : > { %8400 = vmatprep.subr.bf16.mxu0 %v12038_v31  ;;  %14291 = vst [vmem:[#allocation40_spill] sm:$0xff] %v12274_v32 }
 0x100   : > { %8046 = vmatmul.mubr.msk.f32.gmra.mrb[14].mxu1 %vm539_vm0, %v12045_v54  ;;  %8068 = vmatmul.mubr.msk.f32.gmra.mrb[14].mxu0 %vm539_vm0, %v11957_v55 }
 0x101   : > { %907 = vmatprep.mubr.f32.mxu1 %v14164_v16  ;;  %1169 = vmatprep.mubr.f32.mxu0 %v14164_v16 }
 0x102   : > { %8402 = vmatpush1.bf16.msra.mxu0 %v12053_v14 }
 0x103   : > { %8404 = vmatprep.subr.bf16.mxu0 %v12056_v24 }
 0x104   : > { %8047 = vmatmul.mubr.msk.f32.gmra.mrb[16].mxu1 %vm539_vm0, %v12063_v58  ;;  %8069 = vmatmul.mubr.msk.f32.gmra.mrb[16].mxu0 %vm539_vm0, %v11976_v63 }
 0x105   : > { %913 = vmatprep.mubr.f32.mxu1 %v14164_v16  ;;  %1175 = vmatprep.mubr.f32.mxu0 %v14164_v16 }
 0x106   : > { %8406 = vmatpush1.bf16.msra.mxu0 %v12071_v47 }
 0x107   : > { %8408 = vmatprep.subr.bf16.mxu0 %v12074_v48 }
 0x108   : > { %8048 = vmatmul.mubr.msk.f32.gmra.mrb[18].mxu1 %vm539_vm0, %v12081_v62  ;;  %8070 = vmatmul.mubr.msk.f32.gmra.mrb[18].mxu0 %vm539_vm0, %v11998_v2 }
 0x109   : > { %919 = vmatprep.mubr.f32.mxu1 %v14164_v16  ;;  %1181 = vmatprep.mubr.f32.mxu0 %v14164_v16 }
 0x10a   : > { %8410 = vmatpush1.bf16.msra.mxu0 %v12087_v57 }
 0x10b   : > { %8412 = vmatprep.subr.bf16.mxu0 %v12090_v60 }
 0x10c   : > { %8049 = vmatmul.mubr.msk.f32.gmra.mrb[20].mxu1 %vm539_vm0, %v12097_v23  ;;  %8071 = vmatmul.mubr.msk.f32.gmra.mrb[20].mxu0 %vm539_vm0, %v11934_v15 }
 0x10d   : > { %990 = vmatprep.mubr.f32.mxu1 %v14164_v16  ;;  %1187 = vmatprep.mubr.f32.mxu0 %v14164_v16 }
 0x10e   : > { %8414 = vmatpush1.bf16.msra.mxu0 %v12102_v6 }
 0x10f   : > { %8416 = vmatprep.subr.bf16.mxu0 %v12105_v46 }
 0x110   : > { %8050 = vmatmul.mubr.msk.f32.vlgmr.msra.gmra.mrb[22].mxu1 %vm539_vm0, %v11931_v43  ;;  %8072 = vmatmul.mubr.msk.f32.gmra.mrb[22].mxu0 %vm539_vm0, %v11949_v53 }
 0x111   : > { %8390 = vmatpush1.bf16.msra.mxu1 %v8389_v20  ;;  %996 = vmatprep.mubr.f32.mxu1 %v14164_v16  ;;  %v1805_v20 = vld [vmem:[#allocation12 + $0x100] sm:$0xff] }
 0x112   : > { %1193 = vmatprep.mubr.f32.mxu0 %v14164_v16  ;;  %8418 = vmatpush1.bf16.msra.mxu0 %v12114_v25  ;;  %v12227_v35 = vpack.c.bf16 %v1809_v27, %v1805_v20  ;;  %v12247_v20 = vpack.c.bf16 %v1724_v38, %v1720_v61  ;;  %v1719_v27 = vld [vmem:[#allocation10 + $0x50] sm:$0xff] }
 0x113   : > { %8420 = vmatprep.subr.bf16.mxu0 %v12117_v26  ;;  %8424 = vmatprep.subr.bf16.mxu1 %v12119_v33  ;;  %v12258_v51 = vpack.c.bf16 %v1723_v28, %v1719_v27  ;;  %v1727_v61 = vld [vmem:[#allocation10 + $0x90] sm:$0xff]  ;;  %v1744_v28 = vld [vmem:[#allocation10 + $0x118] sm:$0xff] }
 0x114   : > { %8051 = vmatmul.mubr.msk.f32.gmra.mrb[24].mxu1 %vm539_vm0, %v11946_v52  ;;  %8073 = vmatmul.mubr.msk.f32.gmra.mrb[24].mxu0 %vm539_vm0, %v11966_v59  ;;  %v1731_v38 = vld [vmem:[#allocation10 + $0xb0] sm:$0xff]  ;;  %v12285_v40 = vpack.c.bf16 %v1748_v13, %v1744_v28  ;;  %v1760_v28 = vld [vmem:[#allocation10 + $0x198] sm:$0xff] }
 0x115   : > { %1002 = vmatprep.mubr.f32.mxu1 %v14164_v16  ;;  %1199 = vmatprep.mubr.f32.mxu0 %v14164_v16  ;;  %14288 = vst [vmem:[#allocation37_spill] sm:$0xff] %v12258_v51  ;;  %v1735_v27 = vld [vmem:[#allocation10 + $0xd0] sm:$0xff]  ;;  %v1764_v13 = vld [vmem:[#allocation10 + $0x1b8] sm:$0xff] }
 0x116   : > { %8422 = vmatpush1.bf16.msra.mxu0 %v12128_v22  ;;  %14293 = vst [vmem:[#allocation42_spill] sm:$0xff] %v12285_v40 }
 0x117   : > { %8456 = vmatprep.subr.bf16.mxu0 %v12132_v36 }
 0x118   : > { %8052 = vmatmul.mubr.msk.f32.gmra.mrb[26].mxu1 %vm539_vm0, %v11957_v55  ;;  %8074 = vmatmul.mubr.msk.f32.gmra.mrb[26].mxu0 %vm539_vm0, %v11979_v0 }
 0x119   : > { %1008 = vmatprep.mubr.f32.mxu1 %v14164_v16  ;;  %1205 = vmatprep.mubr.f32.mxu0 %v14164_v16 }
 0x11c   : > { %8053 = vmatmul.mubr.msk.f32.gmra.mrb[28].mxu1 %vm539_vm0, %v11976_v63  ;;  %8075 = vmatmul.mubr.msk.f32.gmra.mrb[28].mxu0 %vm539_vm0, %v12001_v4 }
 0x11d   : > { %1014 = vmatprep.mubr.f32.mxu1 %v14164_v16  ;;  %1211 = vmatprep.mubr.f32.mxu0 %v14164_v16 }
 0x120   : > { %8054 = vmatmul.mubr.msk.f32.gmra.mrb[30].mxu1 %vm539_vm0, %v11998_v2  ;;  %8076 = vmatmul.mubr.msk.f32.gmra.mrb[30].mxu0 %vm539_vm0, %v12011_v7 }
 0x121   : > { %1020 = vmatprep.mubr.f32.mxu1 %v14164_v16  ;;  %1217 = vmatprep.mubr.f32.mxu0 %v14164_v16 }
 0x124   : > { %8055 = vmatmul.mubr.msk.f32.gmra.mrb[32].mxu1 %vm539_vm0, %v11934_v15  ;;  %8077 = vmatmul.mubr.msk.f32.gmra.mrb[32].mxu0 %vm539_vm0, %v12027_v50 }
 0x125   : > { %1026 = vmatprep.mubr.f32.mxu1 %v14164_v16  ;;  %1223 = vmatprep.mubr.f32.mxu0 %v14164_v16 }
 0x128   : > { %8056 = vmatmul.mubr.msk.f32.gmra.mrb[34].mxu1 %vm539_vm0, %v11949_v53  ;;  %8078 = vmatmul.mubr.msk.f32.gmra.mrb[34].mxu0 %vm539_vm0, %v12045_v54 }
 0x129   : > { %1032 = vmatprep.mubr.f32.mxu1 %v14164_v16  ;;  %1229 = vmatprep.mubr.f32.mxu0 %v14164_v16 }
 0x12c   : > { %8057 = vmatmul.mubr.msk.f32.gmra.mrb[36].mxu1 %vm539_vm0, %v11966_v59  ;;  %8079 = vmatmul.mubr.msk.f32.gmra.mrb[36].mxu0 %vm539_vm0, %v12063_v58 }
 0x12d   : > { %1038 = vmatprep.mubr.f32.mxu1 %v14164_v16  ;;  %1235 = vmatprep.mubr.f32.mxu0 %v14164_v16 }
 0x130   : > { %8058 = vmatmul.mubr.msk.f32.gmra.mrb[38].mxu1 %vm539_vm0, %v11979_v0  ;;  %8080 = vmatmul.mubr.msk.f32.gmra.mrb[38].mxu0 %vm539_vm0, %v12081_v62 }
 0x131   : > { %1044 = vmatprep.mubr.f32.mxu1 %v14164_v16  ;;  %1241 = vmatprep.mubr.f32.mxu0 %v14164_v16 }
 0x134   : > { %8059 = vmatmul.mubr.msk.f32.gmra.mrb[40].mxu1 %vm539_vm0, %v12001_v4  ;;  %8081 = vmatmul.mubr.msk.f32.gmra.mrb[40].mxu0 %vm539_vm0, %v12097_v23 }
 0x135   : > { %1050 = vmatprep.mubr.f32.mxu1 %v14164_v16  ;;  %1905 = vmatprep.mubr.f32.mxu0 %v14164_v16 }
 0x138   : > { %8060 = vmatmul.mubr.msk.f32.gmra.mrb[42].mxu1 %vm539_vm0, %v12011_v7  ;;  %1906 = vmatmul.mubr.f32.vlgmr.msra.gmra.mrb[0].mxu0 %v14164_v16 }
 0x139   : > { %1056 = vmatprep.mubr.f32.mxu1 %v14164_v16  ;;  %8458 = vmatpush1.bf16.msra.mxu0 %v12190_v30 }
 0x13a   : > { %8460 = vmatprep.subr.bf16.mxu0 %v12192_v44  ;;  %2056 = vmatprep.mubr.f32.mxu0 %v14164_v16 }
 0x13c   : > { %8061 = vmatmul.mubr.msk.f32.gmra.mrb[44].mxu1 %vm539_vm0, %v12027_v50 }
 0x13d   : > { %1062 = vmatprep.mubr.f32.mxu1 %v14164_v16  ;;  %8462 = vmatpush1.bf16.msra.mxu0 %v12199_v17 }
 0x13e   : > { %8464 = vmatprep.subr.bf16.mxu0 %v12202_v56 }
 0x140   : > { %8062 = vmatmul.mubr.msk.f32.gmra.mrb[46].mxu1 %vm539_vm0, %v12045_v54 }
 0x141   : > { %1068 = vmatprep.mubr.f32.mxu1 %v14164_v16  ;;  %8466 = vmatpush1.bf16.msra.mxu0 %v12209_v3 }
 0x142   : > { %8468 = vmatprep.subr.bf16.mxu0 %v12212_v42 }
 0x144   : > { %8063 = vmatmul.mubr.msk.f32.gmra.mrb[48].mxu1 %vm539_vm0, %v12063_v58 }
 0x145   : > { %1074 = vmatprep.mubr.f32.mxu1 %v14164_v16  ;;  %8470 = vmatpush1.bf16.msra.mxu0 %v12218_v10 }
 0x146   : > { %8472 = vmatprep.subr.bf16.mxu0 %v12221_v19 }
 0x148   : > { %8064 = vmatmul.mubr.msk.f32.gmra.mrb[50].mxu1 %vm539_vm0, %v12081_v62 }
 0x149   : > { %1080 = vmatprep.mubr.f32.mxu1 %v14164_v16  ;;  %8474 = vmatpush1.bf16.msra.mxu0 %v12227_v35 }
 0x14a   : > { %8476 = vmatprep.subr.bf16.mxu0 %v12230_v37  ;;  %v1833_v37 = vld [vmem:[#allocation12 + $0x1e0] sm:$0xff] }
 0x14b   : > { %v12264_v1 = vpack.c.bf16 %v1833_v37, %v1829_v45  ;;  %v1739_v37 = vld [vmem:[#allocation10 + $0xf0] sm:$0xff] }
 0x14c   : > { %8065 = vmatmul.mubr.msk.f32.gmra.mrb[52].mxu1 %vm539_vm0, %v12097_v23  ;;  %v1743_v45 = vld [vmem:[#allocation10 + $0x110] sm:$0xff] }
 0x14d   : > { %1312 = vmatprep.mubr.f32.mxu1 %v14164_v16  ;;  %8478 = vmatpush1.bf16.msra.mxu0 %v12236_v49 }
 0x14e   : > { %8480 = vmatprep.subr.bf16.mxu0 %v12239_v18 }
 0x150   : > { %8082 = vmatmul.mubr.msk.f32.vlgmr.msra.gmra.mrb[54].mxu1 %vm539_vm0, %v11931_v43  ;;  %v12271_v43 = vpack.c.bf16 %v1731_v38, %v1727_v61  ;;  %v1747_v61 = vld [vmem:[#allocation10 + $0x130] sm:$0xff]  ;;  %v1752_v38 = vld [vmem:[#allocation10 + $0x158] sm:$0xff] }
 0x151   : > { %8426 = vmatpush1.bf16.msra.mxu1 %v12244_v9  ;;  %1318 = vmatprep.mubr.f32.mxu1 %v14164_v16  ;;  %v12298_v5 = vpack.c.bf16 %v1756_v8, %v1752_v38  ;;  %v1763_v38 = vld [vmem:[#allocation10 + $0x1b0] sm:$0xff]  ;;  %v1768_v8 = vld [vmem:[#allocation10 + $0x1d8] sm:$0xff] }
 0x152   : > { %8428 = vmatprep.subr.bf16.mxu1 %v12247_v20  ;;  %8482 = vmatpush1.bf16.msra.mxu0 %v12250_v39  ;;  %14290 = vst [vmem:[#allocation39_spill] sm:$0xff] %v12271_v43 }
 0x153   : > { %8484 = vmatprep.subr.bf16.mxu0 %v12252_v41  ;;  %14295 = vst [vmem:[#allocation44_spill] sm:$0xff] %v12298_v5 }
 0x154   : > { %8083 = vmatmul.mubr.msk.f32.gmra.mrb[56].mxu1 %vm539_vm0, %v11946_v52  ;;  %v12282_v52 = vpack.c.bf16 %v1739_v37, %v1735_v27  ;;  %v1751_v27 = vld [vmem:[#allocation10 + $0x150] sm:$0xff] }
 0x155   : > { %1324 = vmatprep.mubr.f32.mxu1 %v14164_v16  ;;  %8430 = vmatpush1.bf16.msra.mxu1 %v12258_v51  ;;  %v1755_v37 = vld [vmem:[#allocation10 + $0x170] sm:$0xff] }
 0x156   : > { %8432 = vmatprep.subr.bf16.mxu1 %v12261_v21  ;;  %8486 = vmatpush1.bf16.msra.mxu0 %v12264_v1  ;;  %14292 = vst [vmem:[#allocation41_spill] sm:$0xff] %v12282_v52 }
 0x157   : > { %8520 = vmatprep.subr.bf16.mxu0 %v11954_v34 }
 0x158   : > { %8084 = vmatmul.mubr.msk.f32.gmra.mrb[58].mxu1 %vm539_vm0, %v11957_v55  ;;  %v12295_v55 = vpack.c.bf16 %v1747_v61, %v1743_v45  ;;  %v12309_v45 = vpack.c.bf16 %v1764_v13, %v1760_v28  ;;  %v1759_v61 = vld [vmem:[#allocation10 + $0x190] sm:$0xff]  ;;  %v1776_v13 = vld [vmem:[#allocation12 + $0x18] sm:$0xff] }
 0x159   : > { %1330 = vmatprep.mubr.f32.mxu1 %v14164_v16  ;;  %8434 = vmatpush1.bf16.msra.mxu1 %v12271_v43  ;;  %v1771_v28 = vld [vmem:[#allocation10 + $0x1f0] sm:$0xff] }
 0x15a   : > { %8436 = vmatprep.subr.bf16.mxu1 %v12274_v32  ;;  %2057 = vmatmul.mubr.f32.vlgmr.msra.gmra.mrb[40].mxu0 %v14164_v16  ;;  %14294 = vst [vmem:[#allocation43_spill] sm:$0xff] %v12295_v55  ;;  %14297 = vst [vmem:[#allocation46_spill] sm:$0xff] %v12309_v45 }
 0x15b   : > { %8522 = vmatpush1.bf16.msra.mxu0 %v12018_v11  ;;  %2258 = vmatprep.mubr.f32.mxu0 %v14164_v16 }
 0x15c   : > { %8085 = vmatmul.mubr.msk.f32.gmra.mrb[60].mxu1 %vm539_vm0, %v11976_v63  ;;  %8524 = vmatprep.subr.bf16.mxu0 %v12020_v12  ;;  %v12306_v63 = vpack.c.bf16 %v1755_v37, %v1751_v27  ;;  %v1772_v12 = vld [vmem:[#allocation10 + $0x1f8] sm:$0xff]  ;;  %v1767_v37 = vld [vmem:[#allocation10 + $0x1d0] sm:$0xff] }
 0x15d   : > { %1336 = vmatprep.mubr.f32.mxu1 %v14164_v16  ;;  %8438 = vmatpush1.bf16.msra.mxu1 %v12282_v52  ;;  %v12320_v27 = vpack.c.bf16 %v1772_v12, %v1768_v8  ;;  %v1795_v8 = vld [vmem:[#allocation12 + $0xb0] sm:$0xff] }
 0x15e   : > { %8440 = vmatprep.subr.bf16.mxu1 %v12285_v40  ;;  %14296 = vst [vmem:[#allocation45_spill] sm:$0xff] %v12306_v63 }
 0x15f   : > { %8526 = vmatpush1.bf16.msra.mxu0 %v12035_v29  ;;  %14299 = vst [vmem:[#allocation48_spill] sm:$0xff] %v12320_v27 }
 0x160   : > { %8086 = vmatmul.mubr.msk.f32.gmra.mrb[62].mxu1 %vm539_vm0, %v11998_v2  ;;  %8528 = vmatprep.subr.bf16.mxu0 %v12038_v31  ;;  %v12317_v2 = vpack.c.bf16 %v1763_v38, %v1759_v61  ;;  %v1780_v31 = vld [vmem:[#allocation12 + $0x38] sm:$0xff]  ;;  %v1791_v38 = vld [vmem:[#allocation12 + $0x90] sm:$0xff] }
 0x161   : > { %1342 = vmatprep.mubr.f32.mxu1 %v14164_v16  ;;  %8442 = vmatpush1.bf16.msra.mxu1 %v12295_v55  ;;  %v12331_v12 = vpack.c.bf16 %v1780_v31, %v1776_v13  ;;  %v1783_v31 = vld [vmem:[#allocation12 + $0x50] sm:$0xff]  ;;  %v1796_v61 = vld [vmem:[#allocation12 + $0xb8] sm:$0xff]  ;;  %v12383_v13 = vpack.c.bf16 %v1795_v8, %v1791_v38 }
 0x162   : > { %8444 = vmatprep.subr.bf16.mxu1 %v12298_v5  ;;  %14298 = vst [vmem:[#allocation47_spill] sm:$0xff] %v12317_v2  ;;  %v1816_v38 = vld [vmem:[#allocation12 + $0x158] sm:$0xff] }
 0x163   : > { %8530 = vmatpush1.bf16.msra.mxu0 %v12053_v14  ;;  %14301 = vst [vmem:[#allocation50_spill] sm:$0xff] %v12331_v12  ;;  %v1820_v8 = vld [vmem:[#allocation12 + $0x178] sm:$0xff] }
 0x164   : > { %8087 = vmatmul.mubr.msk.f32.gmra.mrb[64].mxu1 %vm539_vm0, %v11934_v15  ;;  %8532 = vmatprep.subr.bf16.mxu0 %v12056_v24  ;;  %v12328_v15 = vpack.c.bf16 %v1771_v28, %v1767_v37  ;;  %v1800_v37 = vld [vmem:[#allocation12 + $0xd8] sm:$0xff] }
 0x165   : > { %1348 = vmatprep.mubr.f32.mxu1 %v14164_v16  ;;  %8446 = vmatpush1.bf16.msra.mxu1 %v12306_v63  ;;  %v1804_v28 = vld [vmem:[#allocation12 + $0xf8] sm:$0xff] }
 0x166   : > { %8448 = vmatprep.subr.bf16.mxu1 %v12309_v45  ;;  %14300 = vst [vmem:[#allocation49_spill] sm:$0xff] %v12328_v15 }
 0x167   : > { %8534 = vmatpush1.bf16.msra.mxu0 %v12071_v47 }
 0x168   : > { %8088 = vmatmul.mubr.msk.f32.gmra.mrb[66].mxu1 %vm539_vm0, %v11949_v53  ;;  %8536 = vmatprep.subr.bf16.mxu0 %v12074_v48  ;;  %v1775_v53 = vld [vmem:[#allocation12 + $0x10] sm:$0xff] }
 0x169   : > { %1354 = vmatprep.mubr.f32.mxu1 %v14164_v16  ;;  %8450 = vmatpush1.bf16.msra.mxu1 %v12317_v2 }
 0x16a   : > { %8452 = vmatprep.subr.bf16.mxu1 %v12320_v27 }
 0x16b   : > { %8538 = vmatpush1.bf16.msra.mxu0 %v12087_v57 }
 0x16c   : > { %8089 = vmatmul.mubr.msk.f32.gmra.mrb[68].mxu1 %vm539_vm0, %v11966_v59  ;;  %8540 = vmatprep.subr.bf16.mxu0 %v12090_v60  ;;  %v1779_v59 = vld [vmem:[#allocation12 + $0x30] sm:$0xff] }
 0x16d   : > { %1360 = vmatprep.mubr.f32.mxu1 %v14164_v16  ;;  %8454 = vmatpush1.bf16.msra.mxu1 %v12328_v15 }
 0x16e   : > { %8488 = vmatprep.subr.bf16.mxu1 %v12331_v12 }
 0x16f   : > { %8542 = vmatpush1.bf16.msra.mxu0 %v12102_v6  ;;  %v1835_v6 = vld [vmem:[#allocation12 + $0x1f0] sm:$0xff] }
 0x170   : > { %8090 = vmatmul.mubr.msk.f32.gmra.mrb[70].mxu1 %vm539_vm0, %v11979_v0  ;;  %8544 = vmatprep.subr.bf16.mxu0 %v12105_v46  ;;  %v1784_v0 = vld [vmem:[#allocation12 + $0x58] sm:$0xff]  ;;  %v1831_v46 = vld [vmem:[#allocation12 + $0x1d0] sm:$0xff] }
 0x171   : > { %1366 = vmatprep.mubr.f32.mxu1 %v14164_v16 }
 0x173   : > { %8546 = vmatpush1.bf16.msra.mxu0 %v12114_v25  ;;  %v1827_v25 = vld [vmem:[#allocation12 + $0x1b0] sm:$0xff] }
 0x174   : > { %8091 = vmatmul.mubr.msk.f32.gmra.mrb[72].mxu1 %vm539_vm0, %v12001_v4  ;;  %8548 = vmatprep.subr.bf16.mxu0 %v12117_v26  ;;  %v1788_v4 = vld [vmem:[#allocation12 + $0x78] sm:$0xff]  ;;  %v1823_v26 = vld [vmem:[#allocation12 + $0x190] sm:$0xff] }
 0x175   : > { %1372 = vmatprep.mubr.f32.mxu1 %v14164_v16 }
 0x177   : > { %8550 = vmatpush1.bf16.msra.mxu0 %v12128_v22  ;;  %v1819_v22 = vld [vmem:[#allocation12 + $0x170] sm:$0xff] }
 0x178   : > { %8092 = vmatmul.mubr.msk.f32.gmra.mrb[74].mxu1 %vm539_vm0, %v12011_v7  ;;  %8584 = vmatprep.subr.bf16.mxu0 %v12132_v36  ;;  %v12370_v7 = vpack.c.bf16 %v1779_v59, %v1775_v53  ;;  %v12386_v53 = vpack.c.bf16 %v1804_v28, %v1800_v37  ;;  %v1799_v59 = vld [vmem:[#allocation12 + $0xd0] sm:$0xff]  ;;  %v12398_v28 = vpack.c.bf16 %v1820_v8, %v1816_v38 }
 0x179   : > { %1378 = vmatprep.mubr.f32.mxu1 %v14164_v16  ;;  %v1815_v36 = vld [vmem:[#allocation12 + $0x150] sm:$0xff]  ;;  %v12407_v38 = vpack.c.bf16 %v1827_v25, %v1823_v26 }
 0x17c   : > { %8093 = vmatmul.mubr.msk.f32.gmra.mrb[76].mxu1 %vm539_vm0, %v12027_v50  ;;  %v12372_v50 = vpack.c.bf16 %v1788_v4, %v1784_v0  ;;  %v1803_v0 = vld [vmem:[#allocation12 + $0xf0] sm:$0xff]  ;;  %v1808_v4 = vld [vmem:[#allocation12 + $0x118] sm:$0xff] }
 0x17d   : > { %1384 = vmatprep.mubr.f32.mxu1 %v14164_v16 }
 0x180   : > { %8094 = vmatmul.mubr.msk.f32.gmra.mrb[78].mxu1 %vm539_vm0, %v12045_v54  ;;  %v1787_v54 = vld [vmem:[#allocation12 + $0x70] sm:$0xff] }
 0x181   : > { %1390 = vmatprep.mubr.f32.mxu1 %v14164_v16 }
 0x184   : > { %8095 = vmatmul.mubr.msk.f32.gmra.mrb[80].mxu1 %vm539_vm0, %v12063_v58  ;;  %v1792_v58 = vld [vmem:[#allocation12 + $0x98] sm:$0xff] }
 0x185   : > { %1396 = vmatprep.mubr.f32.mxu1 %v14164_v16 }
 0x188   : > { %8096 = vmatmul.mubr.msk.f32.gmra.mrb[82].mxu1 %vm539_vm0, %v12081_v62  ;;  %v12376_v62 = vpack.c.bf16 %v1787_v54, %v1783_v31  ;;  %v1812_v31 = vld [vmem:[#allocation12 + $0x138] sm:$0xff]  ;;  %v12389_v54 = vpack.c.bf16 %v1803_v0, %v1799_v59 }
 0x189   : > { %1402 = vmatprep.mubr.f32.mxu1 %v14164_v16  ;;  %v1824_v59 = vld [vmem:[#allocation12 + $0x198] sm:$0xff] }
 0x18a   : > { %v1828_v0 = vld [vmem:[#allocation12 + $0x1b8] sm:$0xff] }
 0x18c   : > { %8097 = vmatmul.mubr.msk.f32.gmra.mrb[84].mxu1 %vm539_vm0, %v12097_v23  ;;  %v12380_v23 = vpack.c.bf16 %v1796_v61, %v1792_v58  ;;  %v12392_v58 = vpack.c.bf16 %v1812_v31, %v1808_v4  ;;  %v1807_v61 = vld [vmem:[#allocation12 + $0x110] sm:$0xff]  ;;  %v12401_v4 = vpack.c.bf16 %v1819_v22, %v1815_v36  ;;  %v12404_v31 = vpack.c.bf16 %v1828_v0, %v1824_v59 }
 0x18d   : > { %1976 = vmatprep.mubr.f32.mxu1 %v14164_v16  ;;  %v12413_v22 = vpack.c.bf16 %v1835_v6, %v1831_v46  ;;  %v14302_v36 = vmov 0.0  }
 0x190   : > { %1977 = vmatmul.mubr.f32.vlgmr.msra.gmra.mrb[22].mxu1 %v14164_v16 }
 0x191   : > { %8490 = vmatpush1.bf16.msra.mxu1 %v12370_v7  ;;  %2127 = vmatprep.mubr.f32.mxu1 %v14164_v16  ;;  %v1811_v16 = vld [vmem:[#allocation12 + $0x130] sm:$0xff] }
 0x192   : > { %8492 = vmatprep.subr.bf16.mxu1 %v12372_v50  ;;  %v12395_v37 = vpack.c.bf16 %v1811_v16, %v1807_v61  ;;  %v1832_v16 = vld [vmem:[#allocation12 + $0x1d8] sm:$0xff] }
 0x193   : > { %v1836_v61 = vld [vmem:[#allocation12 + $0x1f8] sm:$0xff] }
 0x194   : > { %v12410_v8 = vpack.c.bf16 %v1836_v61, %v1832_v16 }
 0x195   : > { %8494 = vmatpush1.bf16.msra.mxu1 %v12376_v62 }
 0x196   : > { %8496 = vmatprep.subr.bf16.mxu1 %v12380_v23 }
 0x199   : > { %8498 = vmatpush1.bf16.msra.mxu1 %v12383_v13 }
 0x19a   : > { %8500 = vmatprep.subr.bf16.mxu1 %v12386_v53 }
 0x19d   : > { %8502 = vmatpush1.bf16.msra.mxu1 %v12389_v54 }
 0x19e   : > { %8504 = vmatprep.subr.bf16.mxu1 %v12392_v58 }
 0x1a1   : > { %8506 = vmatpush1.bf16.msra.mxu1 %v12395_v37 }
 0x1a2   : > { %8508 = vmatprep.subr.bf16.mxu1 %v12398_v28 }
 0x1a5   : > { %8510 = vmatpush1.bf16.msra.mxu1 %v12401_v4 }
 0x1a6   : > { %8512 = vmatprep.subr.bf16.mxu1 %v12404_v31 }
 0x1a9   : > { %8514 = vmatpush1.bf16.msra.mxu1 %v12407_v38 }
 0x1aa   : > { %8516 = vmatprep.subr.bf16.mxu1 %v12410_v8 }
 0x1ad   : > { %8518 = vmatpush1.bf16.msra.mxu1 %v12413_v22 }
 0x1ae   : > { %8552 = vmatprep.subr.bf16.mxu1 %v12119_v33 }
 0x1b0   : > { %2128 = vmatmul.mubr.f32.vlgmr.msra.gmra.mrb[84].mxu1 %v14302_v36 }
 0x1b1   : > { %8554 = vmatpush1.bf16.msra.mxu1 %v12244_v9  ;;  %2329 = vmatprep.mubr.f32.mxu1 %v14302_v36 }
 0x1b2   : > { %8556 = vmatprep.subr.bf16.mxu1 %v12247_v20 }
 0x1b5   : > { %8558 = vmatpush1.bf16.msra.mxu1 %v12258_v51 }
 0x1b6   : > { %8560 = vmatprep.subr.bf16.mxu1 %v12261_v21 }
 0x1b7   : > { %v12424_v6 = vpop.f32.mrb[0].mxu1 }
 0x1b8   : > { %14303 = vst [vmem:[#allocation51_spill] sm:$0xff] %v12424_v6  ;;  %v12426_v46 = vpop.f32.mrb[1].mxu1 }
 0x1b9   : > { %14304 = vst [vmem:[#allocation52_spill] sm:$0xff] %v12426_v46  ;;  %8562 = vmatpush1.bf16.msra.mxu1 %v12271_v43 }
 0x1ba   : > { %8564 = vmatprep.subr.bf16.mxu1 %v12274_v32 }
 0x1bb   : > { %v12430_v25 = vpop.f32.mrb[2].mxu1 }
 0x1bc   : > { %14305 = vst [vmem:[#allocation53_spill] sm:$0xff] %v12430_v25  ;;  %v12432_v26 = vpop.f32.mrb[3].mxu1 }
 0x1bd   : > { %14306 = vst [vmem:[#allocation54_spill] sm:$0xff] %v12432_v26  ;;  %8566 = vmatpush1.bf16.msra.mxu1 %v12282_v52 }
 0x1be   : > { %8568 = vmatprep.subr.bf16.mxu1 %v12285_v40 }
 0x1bf   : > { %v12436_v59 = vpop.f32.mrb[4].mxu1 }
 0x1c0   : > { %14307 = vst [vmem:[#allocation55_spill] sm:$0xff] %v12436_v59  ;;  %v12438_v0 = vpop.f32.mrb[5].mxu1 }
 0x1c1   : > { %14308 = vst [vmem:[#allocation56_spill] sm:$0xff] %v12438_v0  ;;  %8570 = vmatpush1.bf16.msra.mxu1 %v12295_v55 }
 0x1c2   : > { %8572 = vmatprep.subr.bf16.mxu1 %v12298_v5 }
 0x1c3   : > { %v12442_v16 = vpop.f32.mrb[6].mxu1 }
 0x1c4   : > { %14309 = vst [vmem:[#allocation57_spill] sm:$0xff] %v12442_v16  ;;  %v12444_v61 = vpop.f32.mrb[7].mxu1 }
 0x1c5   : > { %14310 = vst [vmem:[#allocation58_spill] sm:$0xff] %v12444_v61  ;;  %8574 = vmatpush1.bf16.msra.mxu1 %v12306_v63 }
 0x1c6   : > { %8576 = vmatprep.subr.bf16.mxu1 %v12309_v45  ;;  %v1411_v45 = vlaneseq }
 0x1c7   : > { %v12448_v26 = vpop.f32.mrb[8].mxu1 }
 0x1c8   : > { %14311 = vst [vmem:[#allocation59_spill] sm:$0xff] %v12448_v26  ;;  %v12450_v25 = vpop.f32.mrb[9].mxu1 }
 0x1c9   : > { %14312 = vst [vmem:[#allocation60_spill] sm:$0xff] %v12450_v25  ;;  %8578 = vmatpush1.bf16.msra.mxu1 %v12317_v2 }
 0x1ca   : > { %8580 = vmatprep.subr.bf16.mxu1 %v12320_v27 }
 0x1cb   : > { %v12454_v0 = vpop.f32.mrb[10].mxu1 }
 0x1cc   : > { %14313 = vst [vmem:[#allocation61_spill] sm:$0xff] %v12454_v0  ;;  %v12456_v59 = vpop.f32.mrb[11].mxu1 }
 0x1cd   : > { %14314 = vst [vmem:[#allocation62_spill] sm:$0xff] %v12456_v59  ;;  %8582 = vmatpush1.bf16.msra.mxu1 %v12328_v15 }
 0x1ce   : > { %8616 = vmatprep.subr.bf16.mxu1 %v12331_v12 }
 0x1cf   : > { %v12460_v61 = vpop.f32.mrb[12].mxu1 }
 0x1d0   : > { %14315 = vst [vmem:[#allocation63_spill] sm:$0xff] %v12460_v61  ;;  %v12462_v16 = vpop.f32.mrb[13].mxu1 }
 0x1d1   : > { %14316 = vst [vmem:[#allocation64_spill] sm:$0xff] %v12462_v16 }
 0x1d3   : > { %v12464_v46 = vpop.f32.mrb[14].mxu1 }
 0x1d4   : > { %14317 = vst [vmem:[#allocation65_spill] sm:$0xff] %v12464_v46  ;;  %v12466_v26 = vpop.f32.mrb[15].mxu1  ;;  %v1412_v46 = vshrl.u32 %v1411_v45, 7 }
 0x1d5   : > { %14318 = vst [vmem:[#allocation66_spill] sm:$0xff] %v12466_v26 }
 0x1d6   : > { %v1417_v63 = vsub.s32 1, %v1412_v46  ;;  %v1421_v60 = vsub.s32 2, %v1412_v46  ;;  %v1425_v55 = vsub.s32 3, %v1412_v46 }
 0x1d7   : > { %v12468_v25 = vpop.f32.mrb[16].mxu1 }
 0x1d8   : > { %14319 = vst [vmem:[#allocation67_spill] sm:$0xff] %v12468_v25  ;;  %v12470_v6 = vpop.f32.mrb[17].mxu1  ;;  %v1409_v25 = vld [vmem:[%s14138_s4] sm:$0xf] }
 0x1d9   : > { %14320 = vst [vmem:[#allocation68_spill] sm:$0xff] %v12470_v6  ;;  %v1413_v6 = vsub.s32 0, %v1412_v46  ;;  %v12483_v26 = vrot.slane %v1409_v25, %v1417_v63  ;;  %v12489_v48 = vrot.slane %v1409_v25, %v1421_v60  ;;  %v12491_v47 = vrot.slane %v1409_v25, %v1425_v55 }
 0x1db   : > { %v12472_v27 = vpop.f32.mrb[18].mxu1  ;;  %14325 = vst [vmem:[#allocation73_spill] sm:$0xff] %v12483_v26  ;;  %14327 = vst [vmem:[#allocation75_spill] sm:$0xff] %v12489_v48 }
 0x1dc   : > { %14321 = vst [vmem:[#allocation69_spill] sm:$0xff] %v12472_v27  ;;  %v12474_v0 = vpop.f32.mrb[19].mxu1  ;;  %v12485_v27 = vrot.slane %v1409_v25, %v1413_v6 }
 0x1dd   : > { %14322 = vst [vmem:[#allocation70_spill] sm:$0xff] %v12474_v0 }
 0x1de   : > { %14326 = vst [vmem:[#allocation74_spill] sm:$0xff] %v12485_v27 }
 0x1df   : > { %v12476_v59 = vpop.f32.mrb[20].mxu1 }
 0x1e0   : > { %14323 = vst [vmem:[#allocation71_spill] sm:$0xff] %v12476_v59  ;;  %v12478_v15 = vpop.f32.mrb[21].mxu1 }
 0x1e1   : > { %14324 = vst [vmem:[#allocation72_spill] sm:$0xff] %v12478_v15 }
 0x20b   : > { %v1907_v12 = vpop.f32.mrb[0].mxu0 }
 0x20c   : > { %v1909_v61 = vpop.f32.mrb[1].mxu0  ;;  %v10505_v15 = vadd.f32 %v1907_v12, %v12485_v27  ;;  %v1559_v12 = vld [vmem:[%s14139_s5] sm:$0xf] }
 0x20d   : > { %v10506_v59 = vadd.f32 %v1909_v61, %v12483_v26  ;;  %v12498_v46 = vrot.slane %v1559_v12, %v1417_v63  ;;  %v12500_v61 = vrot.slane %v1559_v12, %v1413_v6 }
 0x20e   : > { %v8098_v5 = vmul.f32 -1.442695, %v10505_v15 }
 0x20f   : > { %v8099_v0 = vmul.f32 -1.442695, %v10506_v59 }
 0x211   : > { %10857 = vpow2.f32 %v8099_v0 }
 0x212   : > { %10859 = vpow2.f32 %v8098_v5 }
 0x21b   : > { %v10858_v45 = vpop.eup %10857 }
 0x21c   : > { %v10860_v57 = vpop.eup %10859  ;;  %v2147_v40 = vadd.f32 1.0, %v10858_v45 }
 0x21d   : > { %v2141_v52 = vadd.f32 1.0, %v10860_v57 }
 0x21e   : > { %10861 = vrcp.f32 %v2147_v40 }
 0x21f   : > { %10863 = vrcp.f32 %v2141_v52 }
 0x228   : > { %v10862_v25 = vpop.eup %10861 }
 0x229   : > { %v10864_v45 = vpop.eup %10863 }
 0x22d   : > { %v2058_v2 = vpop.f32.mrb[40].mxu0 }
 0x22e   : > { %v2060_v16 = vpop.f32.mrb[41].mxu0  ;;  %v10621_v40 = vadd.f32 %v2058_v2, %v12500_v61 }
 0x22f   : > { %v10622_v57 = vadd.f32 %v2060_v16, %v12498_v46 }
 0x231   : > { %v8102_v26 = vmul.f32 -1.442695, %v10622_v57 }
 0x263   : > { %v1978_v32 = vpop.f32.mrb[22].mxu1 }
 0x264   : > { %v10559_v15 = vadd.f32 %v1978_v32, %v12489_v48  ;;  %v1980_v59 = vpop.f32.mrb[23].mxu1  ;;  %v8101_v32 = vmul.f32 -1.442695, %v10621_v40  ;;  %v2157_v48 = vmul.f32 0.0, %v10862_v25  ;;  %v12509_v40 = vrot.slane %v1559_v12, %v1425_v55 }
 0x265   : > { %v10560_v5 = vadd.f32 %v1980_v59, %v12491_v47 }
 0x266   : > { %10865 = vtanh.f32 %v10559_v15 }
 0x267   : > { %v8100_v0 = vmul.f32 -1.442695, %v10560_v5 }
 0x269   : > { %10867 = vpow2.f32 %v8100_v0  ;;  %v12507_v0 = vrot.slane %v1559_v12, %v1421_v60 }
 0x26a   : > { %10869 = vpow2.f32 %v8102_v26 }
 0x26b   : > { %10871 = vpow2.f32 %v8101_v32 }
 0x270   : > { %v10866_v27 = vpop.eup %10865 }
 0x271   : > { %v2158_v52 = vmul.f32 %v10866_v27, %v10864_v45 }
 0x273   : > { %v10868_v24 = vpop.eup %10867  ;;  %v12504_v15 = vadd.f32 %v2158_v52, %v2157_v48 }
 0x274   : > { %v2154_v63 = vadd.f32 1.0, %v10868_v24  ;;  %v10870_v6 = vpop.eup %10869 }
 0x275   : > { %10873 = vtanh.f32 %v12504_v15  ;;  %v10872_v16 = vpop.eup %10871  ;;  %v2171_v5 = vadd.f32 1.0, %v10870_v6 }
 0x276   : > { %10875 = vrcp.f32 %v2154_v63  ;;  %v2165_v57 = vadd.f32 1.0, %v10872_v16 }
 0x277   : > { %10877 = vrcp.f32 %v2171_v5 }
 0x278   : > { %10879 = vrcp.f32 %v2165_v57 }
 0x27f   : > { %v10874_v59 = vpop.eup %10873 }
 0x280   : > { %v10876_v2 = vpop.eup %10875 }
 0x281   : > { %v12511_v27 = vmul.f32 %v10876_v2, %v10874_v59  ;;  %v10878_v12 = vpop.eup %10877  ;;  %v14329_v59 = vld [vmem:[#allocation36_spill] sm:$0xff] }
 0x282   : > { %v10880_v25 = vpop.eup %10879  ;;  %v2181_v32 = vmul.f32 0.0, %v10878_v12  ;;  %v14336_v12 = vld [vmem:[#allocation41_spill] sm:$0xff] }
 0x283   : > { %14328 = vst [vmem:[#allocation76_spill] sm:$0xff] %v12511_v27  ;;  %v2129_v26 = vpop.f32.mrb[84].mxu1  ;;  %2259 = vmatmul.mubr.f32.vlgmr.msra.gmra.mrb[2].mxu0 %v12511_v27  ;;  %2330 = vmatmul.mubr.f32.vlgmr.msra.gmra.mrb[24].mxu1 %v12511_v27  ;;  %v14345_v27 = vld [vmem:[#allocation31_spill] sm:$0xff] }
 0x284   : > { %v10653_v24 = vadd.f32 %v2129_v26, %v12507_v0  ;;  %v2131_v48 = vpop.f32.mrb[85].mxu1  ;;  %8586 = vmatpush1.bf16.msra.mxu0 %v12190_v30  ;;  %8618 = vmatpush1.bf16.msra.mxu1 %v12370_v7  ;;  %v14331_v26 = vld [vmem:[#allocation22_spill] sm:$0xff] }
 0x285   : > { %v10654_v60 = vadd.f32 %v2131_v48, %v12509_v40  ;;  %8588 = vmatprep.subr.bf16.mxu0 %v12192_v44  ;;  %8620 = vmatprep.subr.bf16.mxu1 %v12372_v50  ;;  %v14333_v48 = vld [vmem:[#allocation25_spill] sm:$0xff] }
 0x286   : > { %10881 = vtanh.f32 %v10653_v24  ;;  %2409 = vmatprep.mubr.f32.mxu0 %v14302_v36  ;;  %2480 = vmatprep.mubr.f32.mxu1 %v14302_v36  ;;  %v14332_v24 = vld [vmem:[#allocation23_spill] sm:$0xff] }
 0x287   : > { %v8103_v55 = vmul.f32 -1.442695, %v10654_v60  ;;  %v14334_v60 = vld [vmem:[#allocation40_spill] sm:$0xff] }
 0x288   : > { %8590 = vmatpush1.bf16.msra.mxu0 %v12199_v17  ;;  %8622 = vmatpush1.bf16.msra.mxu1 %v12376_v62 }
 0x289   : > { %10883 = vpow2.f32 %v8103_v55  ;;  %8592 = vmatprep.subr.bf16.mxu0 %v12202_v56  ;;  %8624 = vmatprep.subr.bf16.mxu1 %v12380_v23  ;;  %v14335_v55 = vld [vmem:[#allocation26_spill] sm:$0xff] }
 0x28c   : > { %8594 = vmatpush1.bf16.msra.mxu0 %v12209_v3  ;;  %8626 = vmatpush1.bf16.msra.mxu1 %v12383_v13 }
 0x28d   : > { %8596 = vmatprep.subr.bf16.mxu0 %v12212_v42  ;;  %8628 = vmatprep.subr.bf16.mxu1 %v12386_v53 }
 0x290   : > { %v10882_v45 = vpop.eup %10881  ;;  %8598 = vmatpush1.bf16.msra.mxu0 %v12218_v10  ;;  %8630 = vmatpush1.bf16.msra.mxu1 %v12389_v54 }
 0x291   : > { %v2182_v52 = vmul.f32 %v10882_v45, %v10880_v25  ;;  %8600 = vmatprep.subr.bf16.mxu0 %v12221_v19  ;;  %8632 = vmatprep.subr.bf16.mxu1 %v12392_v58  ;;  %v14337_v25 = vld [vmem:[#allocation27_spill] sm:$0xff]  ;;  %v14338_v45 = vld [vmem:[#allocation42_spill] sm:$0xff] }
 0x293   : > { %v10884_v63 = vpop.eup %10883  ;;  %v12535_v6 = vadd.f32 %v2182_v52, %v2181_v32  ;;  %v14339_v32 = vld [vmem:[#allocation28_spill] sm:$0xff]  ;;  %v14340_v52 = vld [vmem:[#allocation43_spill] sm:$0xff] }
 0x294   : > { %v2178_v16 = vadd.f32 1.0, %v10884_v63  ;;  %8602 = vmatpush1.bf16.msra.mxu0 %v12227_v35  ;;  %8634 = vmatpush1.bf16.msra.mxu1 %v12395_v37  ;;  %v14341_v63 = vld [vmem:[#allocation29_spill] sm:$0xff] }
 0x295   : > { %10885 = vtanh.f32 %v12535_v6  ;;  %8604 = vmatprep.subr.bf16.mxu0 %v14329_v59  ;;  %8636 = vmatprep.subr.bf16.mxu1 %v12398_v28 }
 0x296   : > { %10887 = vrcp.f32 %v2178_v16  ;;  %v14342_v16 = vld [vmem:[#allocation44_spill] sm:$0xff] }
 0x298   : > { %8606 = vmatpush1.bf16.msra.mxu0 %v12236_v49  ;;  %8638 = vmatpush1.bf16.msra.mxu1 %v12401_v4 }
 0x299   : > { %8608 = vmatprep.subr.bf16.mxu0 %v12239_v18  ;;  %8640 = vmatprep.subr.bf16.mxu1 %v12404_v31 }
 0x29c   : > { %8610 = vmatpush1.bf16.msra.mxu0 %v12250_v39  ;;  %8642 = vmatpush1.bf16.msra.mxu1 %v12407_v38 }
 0x29d   : > { %8612 = vmatprep.subr.bf16.mxu0 %v12252_v41  ;;  %8644 = vmatprep.subr.bf16.mxu1 %v12410_v8 }
 0x29f   : > { %v10886_v2 = vpop.eup %10885 }
 0x2a0   : > { %v10888_v5 = vpop.eup %10887  ;;  %8614 = vmatpush1.bf16.msra.mxu0 %v12264_v1  ;;  %8646 = vmatpush1.bf16.msra.mxu1 %v12413_v22 }
 0x2a1   : > { %v12552_v57 = vmul.f32 %v10888_v5, %v10886_v2  ;;  %8648 = vmatprep.subr.bf16.mxu0 %v11954_v34  ;;  %8680 = vmatprep.subr.bf16.mxu1 %v12119_v33  ;;  %v14343_v2 = vld [vmem:[#allocation30_spill] sm:$0xff]  ;;  %v14344_v5 = vld [vmem:[#allocation45_spill] sm:$0xff] }
 0x2a3   : > { %14330 = vst [vmem:[#allocation36_spill] sm:$0xff] %v12552_v57  ;;  %2410 = vmatmul.mubr.f32.vlgmr.msra.gmra.mrb[38].mxu0 %v12552_v57  ;;  %2481 = vmatmul.mubr.f32.vlgmr.msra.gmra.mrb[82].mxu1 %v12552_v57  ;;  %v14346_v57 = vld [vmem:[#allocation46_spill] sm:$0xff] }
 0x2a4   : > { %8650 = vmatpush1.bf16.msra.mxu0 %v12018_v11  ;;  %8682 = vmatpush1.bf16.msra.mxu1 %v12244_v9 }
 0x2a5   : > { %8652 = vmatprep.subr.bf16.mxu0 %v14331_v26  ;;  %8684 = vmatprep.subr.bf16.mxu1 %v12247_v20 }
 0x2a6   : > { %2612 = vmatprep.mubr.f32.mxu0 %v14302_v36  ;;  %2683 = vmatprep.mubr.f32.mxu1 %v14302_v36 }
 0x2a8   : > { %8654 = vmatpush1.bf16.msra.mxu0 %v12035_v29  ;;  %8686 = vmatpush1.bf16.msra.mxu1 %v12258_v51 }
 0x2a9   : > { %8656 = vmatprep.subr.bf16.mxu0 %v14332_v24  ;;  %8688 = vmatprep.subr.bf16.mxu1 %v12261_v21 }
 0x2ac   : > { %8658 = vmatpush1.bf16.msra.mxu0 %v12053_v14  ;;  %8690 = vmatpush1.bf16.msra.mxu1 %v12271_v43 }
 0x2ad   : > { %8660 = vmatprep.subr.bf16.mxu0 %v14333_v48  ;;  %8692 = vmatprep.subr.bf16.mxu1 %v14334_v60  ;;  %v14356_v48 = vld [vmem:[#allocation73_spill] sm:$0xff] }
 0x2b0   : > { %8662 = vmatpush1.bf16.msra.mxu0 %v14335_v55  ;;  %8694 = vmatpush1.bf16.msra.mxu1 %v14336_v12  ;;  %v14347_v12 = vld [vmem:[#allocation32_spill] sm:$0xff]  ;;  %v14355_v55 = vld [vmem:[#allocation74_spill] sm:$0xff] }
 0x2b1   : > { %8664 = vmatprep.subr.bf16.mxu0 %v14337_v25  ;;  %8696 = vmatprep.subr.bf16.mxu1 %v14338_v45  ;;  %v14348_v25 = vld [vmem:[#allocation47_spill] sm:$0xff]  ;;  %v14349_v45 = vld [vmem:[#allocation33_spill] sm:$0xff] }
 0x2b4   : > { %8666 = vmatpush1.bf16.msra.mxu0 %v14339_v32  ;;  %8698 = vmatpush1.bf16.msra.mxu1 %v14340_v52  ;;  %v14350_v32 = vld [vmem:[#allocation48_spill] sm:$0xff]  ;;  %v14351_v52 = vld [vmem:[#allocation34_spill] sm:$0xff] }
 0x2b5   : > { %8668 = vmatprep.subr.bf16.mxu0 %v14341_v63  ;;  %8700 = vmatprep.subr.bf16.mxu1 %v14342_v16  ;;  %v14352_v63 = vld [vmem:[#allocation49_spill] sm:$0xff]  ;;  %v14353_v16 = vld [vmem:[#allocation35_spill] sm:$0xff] }
 0x2b8   : > { %8670 = vmatpush1.bf16.msra.mxu0 %v14343_v2  ;;  %8702 = vmatpush1.bf16.msra.mxu1 %v14344_v5  ;;  %v14354_v2 = vld [vmem:[#allocation50_spill] sm:$0xff] }
 0x2b9   : > { %8672 = vmatprep.subr.bf16.mxu0 %v14345_v27  ;;  %8704 = vmatprep.subr.bf16.mxu1 %v14346_v57 }
 0x2bc   : > { %8674 = vmatpush1.bf16.msra.mxu0 %v14347_v12  ;;  %8706 = vmatpush1.bf16.msra.mxu1 %v14348_v25 }
 0x2bd   : > { %8676 = vmatprep.subr.bf16.mxu0 %v14349_v45  ;;  %8708 = vmatprep.subr.bf16.mxu1 %v14350_v32 }
 0x2c0   : > { %8678 = vmatpush1.bf16.msra.mxu0 %v14351_v52  ;;  %8710 = vmatpush1.bf16.msra.mxu1 %v14352_v63  ;;  %v14357_v63 = vld [vmem:[#allocation75_spill] sm:$0xff] }
 0x2c1   : > { %8712 = vmatprep.subr.bf16.mxu0 %v14353_v16  ;;  %8744 = vmatprep.subr.bf16.mxu1 %v14354_v2 }
 0x356   : > { %v2260_v5 = vpop.f32.mrb[2].mxu0  ;;  %v2331_v27 = vpop.f32.mrb[24].mxu1 }
 0x357   : > { %v10507_v57 = vadd.f32 %v2260_v5, %v14355_v55  ;;  %v2262_v60 = vpop.f32.mrb[3].mxu0  ;;  %v2333_v12 = vpop.f32.mrb[25].mxu1  ;;  %v10561_v14 = vadd.f32 %v2331_v27, %v14357_v63 }
 0x358   : > { %v10508_v25 = vadd.f32 %v2262_v60, %v14356_v48  ;;  %v10562_v52 = vadd.f32 %v2333_v12, %v12491_v47 }
 0x359   : > { %v8104_v43 = vmul.f32 -1.442695, %v10507_v57 }
 0x35a   : > { %v8105_v45 = vmul.f32 -1.442695, %v10508_v25  ;;  %v8106_v32 = vmul.f32 -1.442695, %v10562_v52 }
 0x35b   : > { %10889 = vpow2.f32 %v8104_v43 }
 0x35c   : > { %10891 = vpow2.f32 %v8105_v45 }
 0x35d   : > { %10893 = vpow2.f32 %v8106_v32 }
 0x35e   : > { %10895 = vtanh.f32 %v10561_v14 }
 0x365   : > { %v10890_v16 = vpop.eup %10889 }
 0x366   : > { %v10892_v21 = vpop.eup %10891  ;;  %v2494_v2 = vadd.f32 1.0, %v10890_v16 }
 0x367   : > { %v2500_v24 = vadd.f32 1.0, %v10892_v21  ;;  %v10894_v5 = vpop.eup %10893 }
 0x368   : > { %10897 = vrcp.f32 %v2494_v2  ;;  %v10896_v55 = vpop.eup %10895  ;;  %v2507_v43 = vadd.f32 1.0, %v10894_v5 }
 0x369   : > { %10899 = vrcp.f32 %v2500_v24 }
 0x36a   : > { %10901 = vrcp.f32 %v2507_v43 }
 0x372   : > { %v10898_v60 = vpop.eup %10897 }
 0x373   : > { %v10900_v57 = vpop.eup %10899  ;;  %v2511_v25 = vmul.f32 %v10898_v60, %v10896_v55 }
 0x374   : > { %v2510_v45 = vmul.f32 %v10900_v57, %v12504_v15  ;;  %v10902_v15 = vpop.eup %10901 }
 0x376   : > { %v12597_v12 = vadd.f32 %v2511_v25, %v2510_v45  ;;  %v2411_v52 = vpop.f32.mrb[38].mxu0  ;;  %v2482_v27 = vpop.f32.mrb[82].mxu1 }
 0x377   : > { %v10619_v16 = vadd.f32 %v2411_v52, %v12500_v61  ;;  %v2413_v32 = vpop.f32.mrb[39].mxu0  ;;  %v2484_v14 = vpop.f32.mrb[83].mxu1  ;;  %v10651_v57 = vadd.f32 %v2482_v27, %v12507_v0 }
 0x378   : > { %v10620_v21 = vadd.f32 %v2413_v32, %v12498_v46  ;;  %10903 = vtanh.f32 %v12597_v12  ;;  %v10652_v55 = vadd.f32 %v2484_v14, %v12509_v40 }
 0x379   : > { %v8107_v24 = vmul.f32 -1.442695, %v10619_v16 }
 0x37a   : > { %v8108_v2 = vmul.f32 -1.442695, %v10620_v21  ;;  %v8109_v60 = vmul.f32 -1.442695, %v10652_v55 }
 0x37b   : > { %10905 = vpow2.f32 %v8107_v24 }
 0x37c   : > { %10907 = vpow2.f32 %v8108_v2 }
 0x37d   : > { %10909 = vpow2.f32 %v8109_v60 }
 0x37e   : > { %10911 = vtanh.f32 %v10651_v57  ;;  %v14360_v57 = vld [vmem:[#allocation23_spill] sm:$0xff] }
 0x382   : > { %v10904_v5 = vpop.eup %10903 }
 0x383   : > { %v12604_v25 = vmul.f32 %v10904_v5, %v10902_v15 }
 0x385   : > { %14358 = vst [vmem:[#allocation22_spill] sm:$0xff] %v12604_v25  ;;  %v10906_v43 = vpop.eup %10905  ;;  %2613 = vmatmul.mubr.f32.vlgmr.msra.gmra.mrb[4].mxu0 %v12604_v25  ;;  %2684 = vmatmul.mubr.f32.vlgmr.msra.gmra.mrb[26].mxu1 %v12604_v25  ;;  %v14374_v25 = vld [vmem:[#allocation30_spill] sm:$0xff] }
 0x386   : > { %v10908_v45 = vpop.eup %10907  ;;  %v2518_v52 = vadd.f32 1.0, %v10906_v43  ;;  %8714 = vmatpush1.bf16.msra.mxu0 %v12190_v30  ;;  %8746 = vmatpush1.bf16.msra.mxu1 %v12370_v7  ;;  %v14361_v43 = vld [vmem:[#allocation38_spill] sm:$0xff] }
 0x387   : > { %v2524_v16 = vadd.f32 1.0, %v10908_v45  ;;  %8716 = vmatprep.subr.bf16.mxu0 %v12192_v44  ;;  %8748 = vmatprep.subr.bf16.mxu1 %v12372_v50  ;;  %v10910_v27 = vpop.eup %10909  ;;  %v14362_v45 = vld [vmem:[#allocation24_spill] sm:$0xff] }
 0x388   : > { %10913 = vrcp.f32 %v2518_v52  ;;  %2763 = vmatprep.mubr.f32.mxu0 %v14302_v36  ;;  %2834 = vmatprep.mubr.f32.mxu1 %v14302_v36  ;;  %v10912_v32 = vpop.eup %10911  ;;  %v2531_v2 = vadd.f32 1.0, %v10910_v27  ;;  %v14363_v52 = vld [vmem:[#allocation39_spill] sm:$0xff]  ;;  %v14365_v27 = vld [vmem:[#allocation40_spill] sm:$0xff] }
 0x389   : > { %10915 = vrcp.f32 %v2524_v16  ;;  %v14364_v16 = vld [vmem:[#allocation25_spill] sm:$0xff] }
 0x38a   : > { %8718 = vmatpush1.bf16.msra.mxu0 %v12199_v17  ;;  %8750 = vmatpush1.bf16.msra.mxu1 %v12376_v62  ;;  %10917 = vrcp.f32 %v2531_v2  ;;  %v14370_v2 = vld [vmem:[#allocation28_spill] sm:$0xff] }
 0x38b   : > { %8720 = vmatprep.subr.bf16.mxu0 %v12202_v56  ;;  %8752 = vmatprep.subr.bf16.mxu1 %v12380_v23 }
 0x38e   : > { %8722 = vmatpush1.bf16.msra.mxu0 %v12209_v3  ;;  %8754 = vmatpush1.bf16.msra.mxu1 %v12383_v13 }
 0x38f   : > { %8724 = vmatprep.subr.bf16.mxu0 %v12212_v42  ;;  %8756 = vmatprep.subr.bf16.mxu1 %v12386_v53 }
 0x392   : > { %v10914_v14 = vpop.eup %10913  ;;  %8726 = vmatpush1.bf16.msra.mxu0 %v12218_v10  ;;  %8758 = vmatpush1.bf16.msra.mxu1 %v12389_v54 }
 0x393   : > { %v10916_v21 = vpop.eup %10915  ;;  %v2535_v24 = vmul.f32 %v10914_v14, %v10912_v32  ;;  %8728 = vmatprep.subr.bf16.mxu0 %v12221_v19  ;;  %8760 = vmatprep.subr.bf16.mxu1 %v12392_v58  ;;  %v14366_v32 = vld [vmem:[#allocation26_spill] sm:$0xff]  ;;  %v14367_v14 = vld [vmem:[#allocation41_spill] sm:$0xff] }
 0x394   : > { %v2534_v55 = vmul.f32 %v10916_v21, %v12535_v6  ;;  %v10918_v6 = vpop.eup %10917  ;;  %v14368_v21 = vld [vmem:[#allocation27_spill] sm:$0xff] }
 0x396   : > { %v12627_v15 = vadd.f32 %v2535_v24, %v2534_v55  ;;  %8730 = vmatpush1.bf16.msra.mxu0 %v12227_v35  ;;  %8762 = vmatpush1.bf16.msra.mxu1 %v12395_v37  ;;  %v14369_v24 = vld [vmem:[#allocation42_spill] sm:$0xff]  ;;  %v14371_v55 = vld [vmem:[#allocation43_spill] sm:$0xff] }
 0x397   : > { %8732 = vmatprep.subr.bf16.mxu0 %v14329_v59  ;;  %8764 = vmatprep.subr.bf16.mxu1 %v12398_v28 }
 0x398   : > { %10919 = vtanh.f32 %v12627_v15 }
 0x39a   : > { %8734 = vmatpush1.bf16.msra.mxu0 %v12236_v49  ;;  %8766 = vmatpush1.bf16.msra.mxu1 %v12401_v4 }
 0x39b   : > { %8736 = vmatprep.subr.bf16.mxu0 %v12239_v18  ;;  %8768 = vmatprep.subr.bf16.mxu1 %v12404_v31 }
 0x39e   : > { %8738 = vmatpush1.bf16.msra.mxu0 %v12250_v39  ;;  %8770 = vmatpush1.bf16.msra.mxu1 %v12407_v38 }
 0x39f   : > { %8740 = vmatprep.subr.bf16.mxu0 %v12252_v41  ;;  %8772 = vmatprep.subr.bf16.mxu1 %v12410_v8 }
 0x3a2   : > { %v10920_v5 = vpop.eup %10919  ;;  %8742 = vmatpush1.bf16.msra.mxu0 %v12264_v1  ;;  %8774 = vmatpush1.bf16.msra.mxu1 %v12413_v22 }
 0x3a3   : > { %v12644_v60 = vmul.f32 %v10920_v5, %v10918_v6  ;;  %8776 = vmatprep.subr.bf16.mxu0 %v11954_v34  ;;  %8808 = vmatprep.subr.bf16.mxu1 %v12119_v33  ;;  %v14372_v6 = vld [vmem:[#allocation29_spill] sm:$0xff]  ;;  %v14373_v5 = vld [vmem:[#allocation44_spill] sm:$0xff] }
 0x3a5   : > { %14359 = vst [vmem:[#allocation73_spill] sm:$0xff] %v12644_v60  ;;  %2764 = vmatmul.mubr.f32.vlgmr.msra.gmra.mrb[36].mxu0 %v12644_v60  ;;  %2835 = vmatmul.mubr.f32.vlgmr.msra.gmra.mrb[80].mxu1 %v12644_v60  ;;  %v14375_v60 = vld [vmem:[#allocation45_spill] sm:$0xff] }
 0x3a6   : > { %8778 = vmatpush1.bf16.msra.mxu0 %v12018_v11  ;;  %8810 = vmatpush1.bf16.msra.mxu1 %v12244_v9 }
 0x3a7   : > { %8780 = vmatprep.subr.bf16.mxu0 %v14331_v26  ;;  %8812 = vmatprep.subr.bf16.mxu1 %v12247_v20 }
 0x3a8   : > { %2966 = vmatprep.mubr.f32.mxu0 %v14302_v36  ;;  %3037 = vmatprep.mubr.f32.mxu1 %v14302_v36 }
 0x3aa   : > { %8782 = vmatpush1.bf16.msra.mxu0 %v12035_v29  ;;  %8814 = vmatpush1.bf16.msra.mxu1 %v12258_v51 }
 0x3ab   : > { %8784 = vmatprep.subr.bf16.mxu0 %v14360_v57  ;;  %8816 = vmatprep.subr.bf16.mxu1 %v14361_v43 }
 0x3ae   : > { %8786 = vmatpush1.bf16.msra.mxu0 %v14362_v45  ;;  %8818 = vmatpush1.bf16.msra.mxu1 %v14363_v52 }
 0x3af   : > { %8788 = vmatprep.subr.bf16.mxu0 %v14364_v16  ;;  %8820 = vmatprep.subr.bf16.mxu1 %v14365_v27  ;;  %v14376_v27 = vld [vmem:[#allocation31_spill] sm:$0xff]  ;;  %v14386_v16 = vld [vmem:[#allocation74_spill] sm:$0xff] }
 0x3b2   : > { %8790 = vmatpush1.bf16.msra.mxu0 %v14366_v32  ;;  %8822 = vmatpush1.bf16.msra.mxu1 %v14367_v14  ;;  %v14377_v32 = vld [vmem:[#allocation46_spill] sm:$0xff]  ;;  %v14378_v14 = vld [vmem:[#allocation32_spill] sm:$0xff] }
 0x3b3   : > { %8792 = vmatprep.subr.bf16.mxu0 %v14368_v21  ;;  %8824 = vmatprep.subr.bf16.mxu1 %v14369_v24  ;;  %v14379_v21 = vld [vmem:[#allocation47_spill] sm:$0xff]  ;;  %v14380_v24 = vld [vmem:[#allocation33_spill] sm:$0xff] }
 0x3b6   : > { %8794 = vmatpush1.bf16.msra.mxu0 %v14370_v2  ;;  %8826 = vmatpush1.bf16.msra.mxu1 %v14371_v55  ;;  %v14381_v2 = vld [vmem:[#allocation48_spill] sm:$0xff]  ;;  %v14382_v55 = vld [vmem:[#allocation34_spill] sm:$0xff] }
 0x3b7   : > { %8796 = vmatprep.subr.bf16.mxu0 %v14372_v6  ;;  %8828 = vmatprep.subr.bf16.mxu1 %v14373_v5  ;;  %v14383_v6 = vld [vmem:[#allocation49_spill] sm:$0xff]  ;;  %v14384_v5 = vld [vmem:[#allocation35_spill] sm:$0xff] }
 0x3ba   : > { %8798 = vmatpush1.bf16.msra.mxu0 %v14374_v25  ;;  %8830 = vmatpush1.bf16.msra.mxu1 %v14375_v60  ;;  %v14385_v25 = vld [vmem:[#allocation50_spill] sm:$0xff] }
 0x3bb   : > { %8800 = vmatprep.subr.bf16.mxu0 %v14376_v27  ;;  %8832 = vmatprep.subr.bf16.mxu1 %v14377_v32 }
 0x3be   : > { %8802 = vmatpush1.bf16.msra.mxu0 %v14378_v14  ;;  %8834 = vmatpush1.bf16.msra.mxu1 %v14379_v21 }
 0x3bf   : > { %8804 = vmatprep.subr.bf16.mxu0 %v14380_v24  ;;  %8836 = vmatprep.subr.bf16.mxu1 %v14381_v2 }
 0x3c2   : > { %8806 = vmatpush1.bf16.msra.mxu0 %v14382_v55  ;;  %8838 = vmatpush1.bf16.msra.mxu1 %v14383_v6 }
 0x3c3   : > { %8840 = vmatprep.subr.bf16.mxu0 %v14384_v5  ;;  %8872 = vmatprep.subr.bf16.mxu1 %v14385_v25 }
 0x458   : > { %v2614_v60 = vpop.f32.mrb[4].mxu0  ;;  %v2685_v27 = vpop.f32.mrb[26].mxu1 }
 0x459   : > { %v10509_v32 = vadd.f32 %v2614_v60, %v14386_v16  ;;  %v2616_v52 = vpop.f32.mrb[5].mxu0  ;;  %v2687_v14 = vpop.f32.mrb[27].mxu1  ;;  %v10563_v6 = vadd.f32 %v2685_v27, %v14357_v63 }
 0x45a   : > { %v10510_v21 = vadd.f32 %v2616_v52, %v14356_v48  ;;  %v10564_v55 = vadd.f32 %v2687_v14, %v12491_v47 }
 0x45b   : > { %v8110_v45 = vmul.f32 -1.442695, %v10509_v32 }
 0x45c   : > { %v8111_v24 = vmul.f32 -1.442695, %v10510_v21  ;;  %v8112_v2 = vmul.f32 -1.442695, %v10564_v55 }
 0x45d   : > { %10921 = vpow2.f32 %v8110_v45 }
 0x45e   : > { %10923 = vpow2.f32 %v8111_v24 }
 0x45f   : > { %10925 = vpow2.f32 %v8112_v2 }
 0x460   : > { %10927 = vtanh.f32 %v10563_v6 }
 0x467   : > { %v10922_v5 = vpop.eup %10921 }
 0x468   : > { %v10924_v43 = vpop.eup %10923  ;;  %v2848_v25 = vadd.f32 1.0, %v10922_v5 }
 0x469   : > { %v2854_v57 = vadd.f32 1.0, %v10924_v43  ;;  %v10926_v60 = vpop.eup %10925 }
 0x46a   : > { %10929 = vrcp.f32 %v2848_v25  ;;  %v10928_v16 = vpop.eup %10927  ;;  %v2861_v45 = vadd.f32 1.0, %v10926_v60 }
 0x46b   : > { %10931 = vrcp.f32 %v2854_v57 }
 0x46c   : > { %10933 = vrcp.f32 %v2861_v45 }
 0x474   : > { %v10930_v52 = vpop.eup %10929 }
 0x475   : > { %v10932_v32 = vpop.eup %10931  ;;  %v2865_v21 = vmul.f32 %v10930_v52, %v10928_v16 }
 0x476   : > { %v2864_v24 = vmul.f32 %v10932_v32, %v12597_v12  ;;  %v10934_v12 = vpop.eup %10933 }
 0x478   : > { %v12689_v14 = vadd.f32 %v2865_v21, %v2864_v24  ;;  %v2765_v55 = vpop.f32.mrb[36].mxu0  ;;  %v2836_v27 = vpop.f32.mrb[80].mxu1 }
 0x479   : > { %v10617_v5 = vadd.f32 %v2765_v55, %v12500_v61  ;;  %v2767_v2 = vpop.f32.mrb[37].mxu0  ;;  %v2838_v6 = vpop.f32.mrb[81].mxu1  ;;  %v10649_v32 = vadd.f32 %v2836_v27, %v12507_v0 }
 0x47a   : > { %v10618_v25 = vadd.f32 %v2767_v2, %v12498_v46  ;;  %10935 = vtanh.f32 %v12689_v14  ;;  %v10650_v16 = vadd.f32 %v2838_v6, %v12509_v40 }
 0x47b   : > { %v8113_v57 = vmul.f32 -1.442695, %v10617_v5 }
 0x47c   : > { %v8114_v43 = vmul.f32 -1.442695, %v10618_v25  ;;  %v8115_v52 = vmul.f32 -1.442695, %v10650_v16 }
 0x47d   : > { %10937 = vpow2.f32 %v8113_v57 }
 0x47e   : > { %10939 = vpow2.f32 %v8114_v43 }
 0x47f   : > { %10941 = vpow2.f32 %v8115_v52 }
 0x480   : > { %10943 = vtanh.f32 %v10649_v32  ;;  %v14389_v32 = vld [vmem:[#allocation23_spill] sm:$0xff] }
 0x484   : > { %v10936_v60 = vpop.eup %10935 }
 0x485   : > { %v12696_v21 = vmul.f32 %v10936_v60, %v10934_v12 }
 0x487   : > { %14387 = vst [vmem:[#allocation75_spill] sm:$0xff] %v12696_v21  ;;  %v10938_v45 = vpop.eup %10937  ;;  %2967 = vmatmul.mubr.f32.vlgmr.msra.gmra.mrb[6].mxu0 %v12696_v21  ;;  %3038 = vmatmul.mubr.f32.vlgmr.msra.gmra.mrb[28].mxu1 %v12696_v21  ;;  %v14403_v21 = vld [vmem:[#allocation30_spill] sm:$0xff] }
 0x488   : > { %v10940_v24 = vpop.eup %10939  ;;  %v2872_v55 = vadd.f32 1.0, %v10938_v45  ;;  %8842 = vmatpush1.bf16.msra.mxu0 %v12190_v30  ;;  %8874 = vmatpush1.bf16.msra.mxu1 %v12370_v7  ;;  %v14390_v45 = vld [vmem:[#allocation38_spill] sm:$0xff] }
 0x489   : > { %v2878_v5 = vadd.f32 1.0, %v10940_v24  ;;  %8844 = vmatprep.subr.bf16.mxu0 %v12192_v44  ;;  %8876 = vmatprep.subr.bf16.mxu1 %v12372_v50  ;;  %v10942_v27 = vpop.eup %10941  ;;  %v14391_v24 = vld [vmem:[#allocation24_spill] sm:$0xff] }
 0x48a   : > { %10945 = vrcp.f32 %v2872_v55  ;;  %3117 = vmatprep.mubr.f32.mxu0 %v14302_v36  ;;  %3188 = vmatprep.mubr.f32.mxu1 %v14302_v36  ;;  %v10944_v2 = vpop.eup %10943  ;;  %v2885_v43 = vadd.f32 1.0, %v10942_v27  ;;  %v14392_v55 = vld [vmem:[#allocation39_spill] sm:$0xff]  ;;  %v14394_v27 = vld [vmem:[#allocation40_spill] sm:$0xff] }
 0x48b   : > { %10947 = vrcp.f32 %v2878_v5  ;;  %v14393_v5 = vld [vmem:[#allocation25_spill] sm:$0xff] }
 0x48c   : > { %8846 = vmatpush1.bf16.msra.mxu0 %v12199_v17  ;;  %8878 = vmatpush1.bf16.msra.mxu1 %v12376_v62  ;;  %10949 = vrcp.f32 %v2885_v43  ;;  %v14399_v43 = vld [vmem:[#allocation28_spill] sm:$0xff] }
 0x48d   : > { %8848 = vmatprep.subr.bf16.mxu0 %v12202_v56  ;;  %8880 = vmatprep.subr.bf16.mxu1 %v12380_v23 }
 0x490   : > { %8850 = vmatpush1.bf16.msra.mxu0 %v12209_v3  ;;  %8882 = vmatpush1.bf16.msra.mxu1 %v12383_v13 }
 0x491   : > { %8852 = vmatprep.subr.bf16.mxu0 %v12212_v42  ;;  %8884 = vmatprep.subr.bf16.mxu1 %v12386_v53 }
 0x494   : > { %v10946_v6 = vpop.eup %10945  ;;  %8854 = vmatpush1.bf16.msra.mxu0 %v12218_v10  ;;  %8886 = vmatpush1.bf16.msra.mxu1 %v12389_v54 }
 0x495   : > { %v10948_v25 = vpop.eup %10947  ;;  %v2889_v57 = vmul.f32 %v10946_v6, %v10944_v2  ;;  %8856 = vmatprep.subr.bf16.mxu0 %v12221_v19  ;;  %8888 = vmatprep.subr.bf16.mxu1 %v12392_v58  ;;  %v14395_v2 = vld [vmem:[#allocation26_spill] sm:$0xff]  ;;  %v14396_v6 = vld [vmem:[#allocation41_spill] sm:$0xff] }
 0x496   : > { %v2888_v16 = vmul.f32 %v10948_v25, %v12627_v15  ;;  %v10950_v15 = vpop.eup %10949  ;;  %v14397_v25 = vld [vmem:[#allocation27_spill] sm:$0xff] }
 0x498   : > { %v12719_v12 = vadd.f32 %v2889_v57, %v2888_v16  ;;  %8858 = vmatpush1.bf16.msra.mxu0 %v12227_v35  ;;  %8890 = vmatpush1.bf16.msra.mxu1 %v12395_v37  ;;  %v14398_v57 = vld [vmem:[#allocation42_spill] sm:$0xff]  ;;  %v14400_v16 = vld [vmem:[#allocation43_spill] sm:$0xff] }
 0x499   : > { %8860 = vmatprep.subr.bf16.mxu0 %v14329_v59  ;;  %8892 = vmatprep.subr.bf16.mxu1 %v12398_v28 }
 0x49a   : > { %10951 = vtanh.f32 %v12719_v12 }
 0x49c   : > { %8862 = vmatpush1.bf16.msra.mxu0 %v12236_v49  ;;  %8894 = vmatpush1.bf16.msra.mxu1 %v12401_v4 }
 0x49d   : > { %8864 = vmatprep.subr.bf16.mxu0 %v12239_v18  ;;  %8896 = vmatprep.subr.bf16.mxu1 %v12404_v31 }
 0x4a0   : > { %8866 = vmatpush1.bf16.msra.mxu0 %v12250_v39  ;;  %8898 = vmatpush1.bf16.msra.mxu1 %v12407_v38 }
 0x4a1   : > { %8868 = vmatprep.subr.bf16.mxu0 %v12252_v41  ;;  %8900 = vmatprep.subr.bf16.mxu1 %v12410_v8 }
 0x4a4   : > { %v10952_v60 = vpop.eup %10951  ;;  %8870 = vmatpush1.bf16.msra.mxu0 %v12264_v1  ;;  %8902 = vmatpush1.bf16.msra.mxu1 %v12413_v22 }
 0x4a5   : > { %v12736_v52 = vmul.f32 %v10952_v60, %v10950_v15  ;;  %8904 = vmatprep.subr.bf16.mxu0 %v11954_v34  ;;  %8936 = vmatprep.subr.bf16.mxu1 %v12119_v33  ;;  %v14401_v15 = vld [vmem:[#allocation29_spill] sm:$0xff]  ;;  %v14402_v60 = vld [vmem:[#allocation44_spill] sm:$0xff] }
 0x4a7   : > { %14388 = vst [vmem:[#allocation77_spill] sm:$0xff] %v12736_v52  ;;  %3118 = vmatmul.mubr.f32.vlgmr.msra.gmra.mrb[34].mxu0 %v12736_v52  ;;  %3189 = vmatmul.mubr.f32.vlgmr.msra.gmra.mrb[78].mxu1 %v12736_v52  ;;  %v14404_v52 = vld [vmem:[#allocation45_spill] sm:$0xff] }
 0x4a8   : > { %8906 = vmatpush1.bf16.msra.mxu0 %v12018_v11  ;;  %8938 = vmatpush1.bf16.msra.mxu1 %v12244_v9 }
 0x4a9   : > { %8908 = vmatprep.subr.bf16.mxu0 %v14331_v26  ;;  %8940 = vmatprep.subr.bf16.mxu1 %v12247_v20 }
 0x4aa   : > { %3320 = vmatprep.mubr.f32.mxu0 %v14302_v36  ;;  %3391 = vmatprep.mubr.f32.mxu1 %v14302_v36 }
 0x4ac   : > { %8910 = vmatpush1.bf16.msra.mxu0 %v12035_v29  ;;  %8942 = vmatpush1.bf16.msra.mxu1 %v12258_v51 }
 0x4ad   : > { %8912 = vmatprep.subr.bf16.mxu0 %v14389_v32  ;;  %8944 = vmatprep.subr.bf16.mxu1 %v14390_v45 }
 0x4b0   : > { %8914 = vmatpush1.bf16.msra.mxu0 %v14391_v24  ;;  %8946 = vmatpush1.bf16.msra.mxu1 %v14392_v55 }
 0x4b1   : > { %8916 = vmatprep.subr.bf16.mxu0 %v14393_v5  ;;  %8948 = vmatprep.subr.bf16.mxu1 %v14394_v27  ;;  %v14405_v27 = vld [vmem:[#allocation31_spill] sm:$0xff]  ;;  %v14415_v5 = vld [vmem:[#allocation74_spill] sm:$0xff] }
 0x4b4   : > { %8918 = vmatpush1.bf16.msra.mxu0 %v14395_v2  ;;  %8950 = vmatpush1.bf16.msra.mxu1 %v14396_v6  ;;  %v14406_v2 = vld [vmem:[#allocation46_spill] sm:$0xff]  ;;  %v14407_v6 = vld [vmem:[#allocation32_spill] sm:$0xff] }
 0x4b5   : > { %8920 = vmatprep.subr.bf16.mxu0 %v14397_v25  ;;  %8952 = vmatprep.subr.bf16.mxu1 %v14398_v57  ;;  %v14408_v25 = vld [vmem:[#allocation47_spill] sm:$0xff]  ;;  %v14409_v57 = vld [vmem:[#allocation33_spill] sm:$0xff] }
 0x4b8   : > { %8922 = vmatpush1.bf16.msra.mxu0 %v14399_v43  ;;  %8954 = vmatpush1.bf16.msra.mxu1 %v14400_v16  ;;  %v14410_v43 = vld [vmem:[#allocation48_spill] sm:$0xff]  ;;  %v14411_v16 = vld [vmem:[#allocation34_spill] sm:$0xff] }
 0x4b9   : > { %8924 = vmatprep.subr.bf16.mxu0 %v14401_v15  ;;  %8956 = vmatprep.subr.bf16.mxu1 %v14402_v60  ;;  %v14412_v15 = vld [vmem:[#allocation49_spill] sm:$0xff]  ;;  %v14413_v60 = vld [vmem:[#allocation35_spill] sm:$0xff] }
 0x4bc   : > { %8926 = vmatpush1.bf16.msra.mxu0 %v14403_v21  ;;  %8958 = vmatpush1.bf16.msra.mxu1 %v14404_v52  ;;  %v14414_v21 = vld [vmem:[#allocation50_spill] sm:$0xff] }
 0x4bd   : > { %8928 = vmatprep.subr.bf16.mxu0 %v14405_v27  ;;  %8960 = vmatprep.subr.bf16.mxu1 %v14406_v2 }
 0x4c0   : > { %8930 = vmatpush1.bf16.msra.mxu0 %v14407_v6  ;;  %8962 = vmatpush1.bf16.msra.mxu1 %v14408_v25 }
 0x4c1   : > { %8932 = vmatprep.subr.bf16.mxu0 %v14409_v57  ;;  %8964 = vmatprep.subr.bf16.mxu1 %v14410_v43 }
 0x4c4   : > { %8934 = vmatpush1.bf16.msra.mxu0 %v14411_v16  ;;  %8966 = vmatpush1.bf16.msra.mxu1 %v14412_v15 }
 0x4c5   : > { %8968 = vmatprep.subr.bf16.mxu0 %v14413_v60  ;;  %9000 = vmatprep.subr.bf16.mxu1 %v14414_v21 }
 0x55a   : > { %v2968_v52 = vpop.f32.mrb[6].mxu0  ;;  %v3039_v27 = vpop.f32.mrb[28].mxu1 }
 0x55b   : > { %v10511_v2 = vadd.f32 %v2968_v52, %v14415_v5  ;;  %v2970_v55 = vpop.f32.mrb[7].mxu0  ;;  %v3041_v6 = vpop.f32.mrb[29].mxu1  ;;  %v10565_v15 = vadd.f32 %v3039_v27, %v14357_v63 }
 0x55c   : > { %v10512_v25 = vadd.f32 %v2970_v55, %v14356_v48  ;;  %v10566_v16 = vadd.f32 %v3041_v6, %v12491_v47 }
 0x55d   : > { %v8116_v24 = vmul.f32 -1.442695, %v10511_v2 }
 0x55e   : > { %v8117_v57 = vmul.f32 -1.442695, %v10512_v25  ;;  %v8118_v43 = vmul.f32 -1.442695, %v10566_v16 }
 0x55f   : > { %10953 = vpow2.f32 %v8116_v24 }
 0x560   : > { %10955 = vpow2.f32 %v8117_v57 }
 0x561   : > { %10957 = vpow2.f32 %v8118_v43 }
 0x562   : > { %10959 = vtanh.f32 %v10565_v15 }
 0x569   : > { %v10954_v60 = vpop.eup %10953 }
 0x56a   : > { %v10956_v45 = vpop.eup %10955  ;;  %v3202_v21 = vadd.f32 1.0, %v10954_v60 }
 0x56b   : > { %v3208_v32 = vadd.f32 1.0, %v10956_v45  ;;  %v10958_v52 = vpop.eup %10957 }
 0x56c   : > { %10961 = vrcp.f32 %v3202_v21  ;;  %v10960_v5 = vpop.eup %10959  ;;  %v3215_v24 = vadd.f32 1.0, %v10958_v52 }
 0x56d   : > { %10963 = vrcp.f32 %v3208_v32 }
 0x56e   : > { %10965 = vrcp.f32 %v3215_v24 }
 0x576   : > { %v10962_v55 = vpop.eup %10961 }
 0x577   : > { %v10964_v2 = vpop.eup %10963  ;;  %v3219_v25 = vmul.f32 %v10962_v55, %v10960_v5 }
 0x578   : > { %v3218_v57 = vmul.f32 %v10964_v2, %v12689_v14  ;;  %v10966_v14 = vpop.eup %10965 }
 0x57a   : > { %v12781_v6 = vadd.f32 %v3219_v25, %v3218_v57  ;;  %v3119_v16 = vpop.f32.mrb[34].mxu0  ;;  %v3190_v27 = vpop.f32.mrb[78].mxu1 }
 0x57b   : > { %v10615_v60 = vadd.f32 %v3119_v16, %v12500_v61  ;;  %v3121_v43 = vpop.f32.mrb[35].mxu0  ;;  %v3192_v15 = vpop.f32.mrb[79].mxu1  ;;  %v10647_v2 = vadd.f32 %v3190_v27, %v12507_v0 }
 0x57c   : > { %v10616_v21 = vadd.f32 %v3121_v43, %v12498_v46  ;;  %10967 = vtanh.f32 %v12781_v6  ;;  %v10648_v5 = vadd.f32 %v3192_v15, %v12509_v40 }
 0x57d   : > { %v8119_v32 = vmul.f32 -1.442695, %v10615_v60 }
 0x57e   : > { %v8120_v45 = vmul.f32 -1.442695, %v10616_v21  ;;  %v8121_v55 = vmul.f32 -1.442695, %v10648_v5 }
 0x57f   : > { %10969 = vpow2.f32 %v8119_v32 }
 0x580   : > { %10971 = vpow2.f32 %v8120_v45 }
 0x581   : > { %10973 = vpow2.f32 %v8121_v55 }
 0x582   : > { %10975 = vtanh.f32 %v10647_v2  ;;  %v14418_v2 = vld [vmem:[#allocation23_spill] sm:$0xff] }
 0x586   : > { %v10968_v52 = vpop.eup %10967 }
 0x587   : > { %v12788_v25 = vmul.f32 %v10968_v52, %v10966_v14 }
 0x589   : > { %14416 = vst [vmem:[#allocation78_spill] sm:$0xff] %v12788_v25  ;;  %v10970_v24 = vpop.eup %10969  ;;  %3321 = vmatmul.mubr.f32.vlgmr.msra.gmra.mrb[8].mxu0 %v12788_v25  ;;  %3392 = vmatmul.mubr.f32.vlgmr.msra.gmra.mrb[30].mxu1 %v12788_v25  ;;  %v14432_v25 = vld [vmem:[#allocation30_spill] sm:$0xff] }
 0x58a   : > { %v10972_v57 = vpop.eup %10971  ;;  %v3226_v16 = vadd.f32 1.0, %v10970_v24  ;;  %8970 = vmatpush1.bf16.msra.mxu0 %v12190_v30  ;;  %9002 = vmatpush1.bf16.msra.mxu1 %v12370_v7  ;;  %v14419_v24 = vld [vmem:[#allocation38_spill] sm:$0xff] }
 0x58b   : > { %v3232_v60 = vadd.f32 1.0, %v10972_v57  ;;  %8972 = vmatprep.subr.bf16.mxu0 %v12192_v44  ;;  %9004 = vmatprep.subr.bf16.mxu1 %v12372_v50  ;;  %v10974_v27 = vpop.eup %10973  ;;  %v14420_v57 = vld [vmem:[#allocation24_spill] sm:$0xff] }
 0x58c   : > { %10977 = vrcp.f32 %v3226_v16  ;;  %3471 = vmatprep.mubr.f32.mxu0 %v14302_v36  ;;  %3542 = vmatprep.mubr.f32.mxu1 %v14302_v36  ;;  %v10976_v43 = vpop.eup %10975  ;;  %v3239_v45 = vadd.f32 1.0, %v10974_v27  ;;  %v14421_v16 = vld [vmem:[#allocation39_spill] sm:$0xff]  ;;  %v14423_v27 = vld [vmem:[#allocation40_spill] sm:$0xff] }
 0x58d   : > { %10979 = vrcp.f32 %v3232_v60  ;;  %v14422_v60 = vld [vmem:[#allocation25_spill] sm:$0xff] }
 0x58e   : > { %8974 = vmatpush1.bf16.msra.mxu0 %v12199_v17  ;;  %9006 = vmatpush1.bf16.msra.mxu1 %v12376_v62  ;;  %10981 = vrcp.f32 %v3239_v45  ;;  %v14428_v45 = vld [vmem:[#allocation28_spill] sm:$0xff] }
 0x58f   : > { %8976 = vmatprep.subr.bf16.mxu0 %v12202_v56  ;;  %9008 = vmatprep.subr.bf16.mxu1 %v12380_v23 }
 0x592   : > { %8978 = vmatpush1.bf16.msra.mxu0 %v12209_v3  ;;  %9010 = vmatpush1.bf16.msra.mxu1 %v12383_v13 }
 0x593   : > { %8980 = vmatprep.subr.bf16.mxu0 %v12212_v42  ;;  %9012 = vmatprep.subr.bf16.mxu1 %v12386_v53 }
 0x596   : > { %v10978_v15 = vpop.eup %10977  ;;  %8982 = vmatpush1.bf16.msra.mxu0 %v12218_v10  ;;  %9014 = vmatpush1.bf16.msra.mxu1 %v12389_v54 }
 0x597   : > { %v10980_v21 = vpop.eup %10979  ;;  %v3243_v32 = vmul.f32 %v10978_v15, %v10976_v43  ;;  %8984 = vmatprep.subr.bf16.mxu0 %v12221_v19  ;;  %9016 = vmatprep.subr.bf16.mxu1 %v12392_v58  ;;  %v14424_v43 = vld [vmem:[#allocation26_spill] sm:$0xff]  ;;  %v14425_v15 = vld [vmem:[#allocation41_spill] sm:$0xff] }
 0x598   : > { %v3242_v5 = vmul.f32 %v10980_v21, %v12719_v12  ;;  %v10982_v12 = vpop.eup %10981  ;;  %v14426_v21 = vld [vmem:[#allocation27_spill] sm:$0xff] }
 0x59a   : > { %v12811_v14 = vadd.f32 %v3243_v32, %v3242_v5  ;;  %8986 = vmatpush1.bf16.msra.mxu0 %v12227_v35  ;;  %9018 = vmatpush1.bf16.msra.mxu1 %v12395_v37  ;;  %v14427_v32 = vld [vmem:[#allocation42_spill] sm:$0xff]  ;;  %v14429_v5 = vld [vmem:[#allocation43_spill] sm:$0xff] }
 0x59b   : > { %8988 = vmatprep.subr.bf16.mxu0 %v14329_v59  ;;  %9020 = vmatprep.subr.bf16.mxu1 %v12398_v28 }
 0x59c   : > { %10983 = vtanh.f32 %v12811_v14 }
 0x59e   : > { %8990 = vmatpush1.bf16.msra.mxu0 %v12236_v49  ;;  %9022 = vmatpush1.bf16.msra.mxu1 %v12401_v4 }
 0x59f   : > { %8992 = vmatprep.subr.bf16.mxu0 %v12239_v18  ;;  %9024 = vmatprep.subr.bf16.mxu1 %v12404_v31 }
 0x5a2   : > { %8994 = vmatpush1.bf16.msra.mxu0 %v12250_v39  ;;  %9026 = vmatpush1.bf16.msra.mxu1 %v12407_v38 }
 0x5a3   : > { %8996 = vmatprep.subr.bf16.mxu0 %v12252_v41  ;;  %9028 = vmatprep.subr.bf16.mxu1 %v12410_v8 }
 0x5a6   : > { %v10984_v52 = vpop.eup %10983  ;;  %8998 = vmatpush1.bf16.msra.mxu0 %v12264_v1  ;;  %9030 = vmatpush1.bf16.msra.mxu1 %v12413_v22 }
 0x5a7   : > { %v12828_v55 = vmul.f32 %v10984_v52, %v10982_v12  ;;  %9032 = vmatprep.subr.bf16.mxu0 %v11954_v34  ;;  %9064 = vmatprep.subr.bf16.mxu1 %v12119_v33  ;;  %v14430_v12 = vld [vmem:[#allocation29_spill] sm:$0xff]  ;;  %v14431_v52 = vld [vmem:[#allocation44_spill] sm:$0xff] }
 0x5a9   : > { %14417 = vst [vmem:[#allocation79_spill] sm:$0xff] %v12828_v55  ;;  %3472 = vmatmul.mubr.f32.vlgmr.msra.gmra.mrb[32].mxu0 %v12828_v55  ;;  %3543 = vmatmul.mubr.f32.vlgmr.msra.gmra.mrb[76].mxu1 %v12828_v55  ;;  %v14433_v55 = vld [vmem:[#allocation45_spill] sm:$0xff] }
 0x5aa   : > { %9034 = vmatpush1.bf16.msra.mxu0 %v12018_v11  ;;  %9066 = vmatpush1.bf16.msra.mxu1 %v12244_v9 }
 0x5ab   : > { %9036 = vmatprep.subr.bf16.mxu0 %v14331_v26  ;;  %9068 = vmatprep.subr.bf16.mxu1 %v12247_v20 }
 0x5ac   : > { %3674 = vmatprep.mubr.f32.mxu0 %v14302_v36  ;;  %3745 = vmatprep.mubr.f32.mxu1 %v14302_v36 }
 0x5ae   : > { %9038 = vmatpush1.bf16.msra.mxu0 %v12035_v29  ;;  %9070 = vmatpush1.bf16.msra.mxu1 %v12258_v51 }
 0x5af   : > { %9040 = vmatprep.subr.bf16.mxu0 %v14418_v2  ;;  %9072 = vmatprep.subr.bf16.mxu1 %v14419_v24 }
 0x5b2   : > { %9042 = vmatpush1.bf16.msra.mxu0 %v14420_v57  ;;  %9074 = vmatpush1.bf16.msra.mxu1 %v14421_v16 }
 0x5b3   : > { %9044 = vmatprep.subr.bf16.mxu0 %v14422_v60  ;;  %9076 = vmatprep.subr.bf16.mxu1 %v14423_v27  ;;  %v14434_v27 = vld [vmem:[#allocation31_spill] sm:$0xff]  ;;  %v14444_v60 = vld [vmem:[#allocation74_spill] sm:$0xff] }
 0x5b6   : > { %9046 = vmatpush1.bf16.msra.mxu0 %v14424_v43  ;;  %9078 = vmatpush1.bf16.msra.mxu1 %v14425_v15  ;;  %v14435_v43 = vld [vmem:[#allocation46_spill] sm:$0xff]  ;;  %v14436_v15 = vld [vmem:[#allocation32_spill] sm:$0xff] }
 0x5b7   : > { %9048 = vmatprep.subr.bf16.mxu0 %v14426_v21  ;;  %9080 = vmatprep.subr.bf16.mxu1 %v14427_v32  ;;  %v14437_v21 = vld [vmem:[#allocation47_spill] sm:$0xff]  ;;  %v14438_v32 = vld [vmem:[#allocation33_spill] sm:$0xff] }
 0x5ba   : > { %9050 = vmatpush1.bf16.msra.mxu0 %v14428_v45  ;;  %9082 = vmatpush1.bf16.msra.mxu1 %v14429_v5  ;;  %v14439_v45 = vld [vmem:[#allocation48_spill] sm:$0xff]  ;;  %v14440_v5 = vld [vmem:[#allocation34_spill] sm:$0xff] }
 0x5bb   : > { %9052 = vmatprep.subr.bf16.mxu0 %v14430_v12  ;;  %9084 = vmatprep.subr.bf16.mxu1 %v14431_v52  ;;  %v14441_v12 = vld [vmem:[#allocation49_spill] sm:$0xff]  ;;  %v14442_v52 = vld [vmem:[#allocation35_spill] sm:$0xff] }
 0x5be   : > { %9054 = vmatpush1.bf16.msra.mxu0 %v14432_v25  ;;  %9086 = vmatpush1.bf16.msra.mxu1 %v14433_v55  ;;  %v14443_v25 = vld [vmem:[#allocation50_spill] sm:$0xff] }
 0x5bf   : > { %9056 = vmatprep.subr.bf16.mxu0 %v14434_v27  ;;  %9088 = vmatprep.subr.bf16.mxu1 %v14435_v43 }
 0x5c2   : > { %9058 = vmatpush1.bf16.msra.mxu0 %v14436_v15  ;;  %9090 = vmatpush1.bf16.msra.mxu1 %v14437_v21 }
 0x5c3   : > { %9060 = vmatprep.subr.bf16.mxu0 %v14438_v32  ;;  %9092 = vmatprep.subr.bf16.mxu1 %v14439_v45 }
 0x5c6   : > { %9062 = vmatpush1.bf16.msra.mxu0 %v14440_v5  ;;  %9094 = vmatpush1.bf16.msra.mxu1 %v14441_v12 }
 0x5c7   : > { %9096 = vmatprep.subr.bf16.mxu0 %v14442_v52  ;;  %9128 = vmatprep.subr.bf16.mxu1 %v14443_v25 }
 0x65c   : > { %v3322_v55 = vpop.f32.mrb[8].mxu0  ;;  %v3393_v27 = vpop.f32.mrb[30].mxu1 }
 0x65d   : > { %v10513_v43 = vadd.f32 %v3322_v55, %v14444_v60  ;;  %v3324_v16 = vpop.f32.mrb[9].mxu0  ;;  %v3395_v15 = vpop.f32.mrb[31].mxu1  ;;  %v10567_v12 = vadd.f32 %v3393_v27, %v14357_v63 }
 0x65e   : > { %v10514_v21 = vadd.f32 %v3324_v16, %v14356_v48  ;;  %v10568_v5 = vadd.f32 %v3395_v15, %v12491_v47 }
 0x65f   : > { %v8122_v57 = vmul.f32 -1.442695, %v10513_v43 }
 0x660   : > { %v8123_v32 = vmul.f32 -1.442695, %v10514_v21  ;;  %v8124_v45 = vmul.f32 -1.442695, %v10568_v5 }
 0x661   : > { %10985 = vpow2.f32 %v8122_v57 }
 0x662   : > { %10987 = vpow2.f32 %v8123_v32 }
 0x663   : > { %10989 = vpow2.f32 %v8124_v45 }
 0x664   : > { %10991 = vtanh.f32 %v10567_v12 }
 0x66b   : > { %v10986_v52 = vpop.eup %10985 }
 0x66c   : > { %v10988_v24 = vpop.eup %10987  ;;  %v3556_v25 = vadd.f32 1.0, %v10986_v52 }
 0x66d   : > { %v3562_v2 = vadd.f32 1.0, %v10988_v24  ;;  %v10990_v55 = vpop.eup %10989 }
 0x66e   : > { %10993 = vrcp.f32 %v3556_v25  ;;  %v10992_v60 = vpop.eup %10991  ;;  %v3569_v57 = vadd.f32 1.0, %v10990_v55 }
 0x66f   : > { %10995 = vrcp.f32 %v3562_v2 }
 0x670   : > { %10997 = vrcp.f32 %v3569_v57 }
 0x678   : > { %v10994_v16 = vpop.eup %10993 }
 0x679   : > { %v10996_v43 = vpop.eup %10995  ;;  %v3573_v21 = vmul.f32 %v10994_v16, %v10992_v60 }
 0x67a   : > { %v3572_v32 = vmul.f32 %v10996_v43, %v12781_v6  ;;  %v10998_v6 = vpop.eup %10997 }
 0x67c   : > { %v12873_v15 = vadd.f32 %v3573_v21, %v3572_v32  ;;  %v3473_v5 = vpop.f32.mrb[32].mxu0  ;;  %v3544_v27 = vpop.f32.mrb[76].mxu1 }
 0x67d   : > { %v10613_v52 = vadd.f32 %v3473_v5, %v12500_v61  ;;  %v3475_v45 = vpop.f32.mrb[33].mxu0  ;;  %v3546_v12 = vpop.f32.mrb[77].mxu1  ;;  %v10645_v43 = vadd.f32 %v3544_v27, %v12507_v0 }
 0x67e   : > { %v10614_v25 = vadd.f32 %v3475_v45, %v12498_v46  ;;  %10999 = vtanh.f32 %v12873_v15  ;;  %v10646_v60 = vadd.f32 %v3546_v12, %v12509_v40 }
 0x67f   : > { %v8125_v2 = vmul.f32 -1.442695, %v10613_v52 }
 0x680   : > { %v8126_v24 = vmul.f32 -1.442695, %v10614_v25  ;;  %v8127_v16 = vmul.f32 -1.442695, %v10646_v60 }
 0x681   : > { %11001 = vpow2.f32 %v8125_v2 }
 0x682   : > { %11003 = vpow2.f32 %v8126_v24 }
 0x683   : > { %11005 = vpow2.f32 %v8127_v16 }
 0x684   : > { %11007 = vtanh.f32 %v10645_v43  ;;  %v14447_v43 = vld [vmem:[#allocation23_spill] sm:$0xff] }
 0x688   : > { %v11000_v55 = vpop.eup %10999 }
 0x689   : > { %v12880_v21 = vmul.f32 %v11000_v55, %v10998_v6 }
 0x68b   : > { %14445 = vst [vmem:[#allocation80_spill] sm:$0xff] %v12880_v21  ;;  %v11002_v57 = vpop.eup %11001  ;;  %3675 = vmatmul.mubr.f32.vlgmr.msra.gmra.mrb[42].mxu0 %v12880_v21  ;;  %3746 = vmatmul.mubr.f32.vlgmr.msra.gmra.mrb[32].mxu1 %v12880_v21  ;;  %v14461_v21 = vld [vmem:[#allocation30_spill] sm:$0xff] }
 0x68c   : > { %v11004_v32 = vpop.eup %11003  ;;  %v3580_v5 = vadd.f32 1.0, %v11002_v57  ;;  %9098 = vmatpush1.bf16.msra.mxu0 %v12190_v30  ;;  %9130 = vmatpush1.bf16.msra.mxu1 %v12370_v7  ;;  %v14448_v57 = vld [vmem:[#allocation38_spill] sm:$0xff] }
 0x68d   : > { %v3586_v52 = vadd.f32 1.0, %v11004_v32  ;;  %9100 = vmatprep.subr.bf16.mxu0 %v12192_v44  ;;  %9132 = vmatprep.subr.bf16.mxu1 %v12372_v50  ;;  %v11006_v27 = vpop.eup %11005  ;;  %v14449_v32 = vld [vmem:[#allocation24_spill] sm:$0xff] }
 0x68e   : > { %11009 = vrcp.f32 %v3580_v5  ;;  %3825 = vmatprep.mubr.f32.mxu0 %v14302_v36  ;;  %3896 = vmatprep.mubr.f32.mxu1 %v14302_v36  ;;  %v11008_v45 = vpop.eup %11007  ;;  %v3593_v24 = vadd.f32 1.0, %v11006_v27  ;;  %v14450_v5 = vld [vmem:[#allocation39_spill] sm:$0xff]  ;;  %v14452_v27 = vld [vmem:[#allocation40_spill] sm:$0xff] }
 0x68f   : > { %11011 = vrcp.f32 %v3586_v52  ;;  %v14451_v52 = vld [vmem:[#allocation25_spill] sm:$0xff] }
 0x690   : > { %9102 = vmatpush1.bf16.msra.mxu0 %v12199_v17  ;;  %9134 = vmatpush1.bf16.msra.mxu1 %v12376_v62  ;;  %11013 = vrcp.f32 %v3593_v24  ;;  %v14457_v24 = vld [vmem:[#allocation28_spill] sm:$0xff] }
 0x691   : > { %9104 = vmatprep.subr.bf16.mxu0 %v12202_v56  ;;  %9136 = vmatprep.subr.bf16.mxu1 %v12380_v23 }
 0x694   : > { %9106 = vmatpush1.bf16.msra.mxu0 %v12209_v3  ;;  %9138 = vmatpush1.bf16.msra.mxu1 %v12383_v13 }
 0x695   : > { %9108 = vmatprep.subr.bf16.mxu0 %v12212_v42  ;;  %9140 = vmatprep.subr.bf16.mxu1 %v12386_v53 }
 0x698   : > { %v11010_v12 = vpop.eup %11009  ;;  %9110 = vmatpush1.bf16.msra.mxu0 %v12218_v10  ;;  %9142 = vmatpush1.bf16.msra.mxu1 %v12389_v54 }
 0x699   : > { %v11012_v25 = vpop.eup %11011  ;;  %v3597_v2 = vmul.f32 %v11010_v12, %v11008_v45  ;;  %9112 = vmatprep.subr.bf16.mxu0 %v12221_v19  ;;  %9144 = vmatprep.subr.bf16.mxu1 %v12392_v58  ;;  %v14453_v45 = vld [vmem:[#allocation26_spill] sm:$0xff]  ;;  %v14454_v12 = vld [vmem:[#allocation41_spill] sm:$0xff] }
 0x69a   : > { %v3596_v60 = vmul.f32 %v11012_v25, %v12811_v14  ;;  %v11014_v14 = vpop.eup %11013  ;;  %v14455_v25 = vld [vmem:[#allocation27_spill] sm:$0xff] }
 0x69c   : > { %v12903_v6 = vadd.f32 %v3597_v2, %v3596_v60  ;;  %9114 = vmatpush1.bf16.msra.mxu0 %v12227_v35  ;;  %9146 = vmatpush1.bf16.msra.mxu1 %v12395_v37  ;;  %v14456_v2 = vld [vmem:[#allocation42_spill] sm:$0xff]  ;;  %v14458_v60 = vld [vmem:[#allocation43_spill] sm:$0xff] }
 0x69d   : > { %9116 = vmatprep.subr.bf16.mxu0 %v14329_v59  ;;  %9148 = vmatprep.subr.bf16.mxu1 %v12398_v28 }
 0x69e   : > { %11015 = vtanh.f32 %v12903_v6 }
 0x6a0   : > { %9118 = vmatpush1.bf16.msra.mxu0 %v12236_v49  ;;  %9150 = vmatpush1.bf16.msra.mxu1 %v12401_v4 }
 0x6a1   : > { %9120 = vmatprep.subr.bf16.mxu0 %v12239_v18  ;;  %9152 = vmatprep.subr.bf16.mxu1 %v12404_v31 }
 0x6a4   : > { %9122 = vmatpush1.bf16.msra.mxu0 %v12250_v39  ;;  %9154 = vmatpush1.bf16.msra.mxu1 %v12407_v38 }
 0x6a5   : > { %9124 = vmatprep.subr.bf16.mxu0 %v12252_v41  ;;  %9156 = vmatprep.subr.bf16.mxu1 %v12410_v8 }
 0x6a8   : > { %v11016_v55 = vpop.eup %11015  ;;  %9126 = vmatpush1.bf16.msra.mxu0 %v12264_v1  ;;  %9158 = vmatpush1.bf16.msra.mxu1 %v12413_v22 }
 0x6a9   : > { %v12920_v16 = vmul.f32 %v11016_v55, %v11014_v14  ;;  %9160 = vmatprep.subr.bf16.mxu0 %v11954_v34  ;;  %9192 = vmatprep.subr.bf16.mxu1 %v12119_v33  ;;  %v14459_v14 = vld [vmem:[#allocation29_spill] sm:$0xff]  ;;  %v14460_v55 = vld [vmem:[#allocation44_spill] sm:$0xff] }
 0x6ab   : > { %14446 = vst [vmem:[#allocation81_spill] sm:$0xff] %v12920_v16  ;;  %3826 = vmatmul.mubr.f32.vlgmr.msra.gmra.mrb[30].mxu0 %v12920_v16  ;;  %3897 = vmatmul.mubr.f32.vlgmr.msra.gmra.mrb[74].mxu1 %v12920_v16  ;;  %v14462_v16 = vld [vmem:[#allocation45_spill] sm:$0xff] }
 0x6ac   : > { %9162 = vmatpush1.bf16.msra.mxu0 %v12018_v11  ;;  %9194 = vmatpush1.bf16.msra.mxu1 %v12244_v9 }
 0x6ad   : > { %9164 = vmatprep.subr.bf16.mxu0 %v14331_v26  ;;  %9196 = vmatprep.subr.bf16.mxu1 %v12247_v20 }
 0x6ae   : > { %4028 = vmatprep.mubr.f32.mxu0 %v14302_v36  ;;  %4099 = vmatprep.mubr.f32.mxu1 %v14302_v36 }
 0x6b0   : > { %9166 = vmatpush1.bf16.msra.mxu0 %v12035_v29  ;;  %9198 = vmatpush1.bf16.msra.mxu1 %v12258_v51 }
 0x6b1   : > { %9168 = vmatprep.subr.bf16.mxu0 %v14447_v43  ;;  %9200 = vmatprep.subr.bf16.mxu1 %v14448_v57 }
 0x6b4   : > { %9170 = vmatpush1.bf16.msra.mxu0 %v14449_v32  ;;  %9202 = vmatpush1.bf16.msra.mxu1 %v14450_v5 }
 0x6b5   : > { %9172 = vmatprep.subr.bf16.mxu0 %v14451_v52  ;;  %9204 = vmatprep.subr.bf16.mxu1 %v14452_v27  ;;  %v14463_v27 = vld [vmem:[#allocation31_spill] sm:$0xff] }
 0x6b8   : > { %9174 = vmatpush1.bf16.msra.mxu0 %v14453_v45  ;;  %9206 = vmatpush1.bf16.msra.mxu1 %v14454_v12  ;;  %v14464_v45 = vld [vmem:[#allocation46_spill] sm:$0xff]  ;;  %v14465_v12 = vld [vmem:[#allocation32_spill] sm:$0xff] }
 0x6b9   : > { %9176 = vmatprep.subr.bf16.mxu0 %v14455_v25  ;;  %9208 = vmatprep.subr.bf16.mxu1 %v14456_v2  ;;  %v14466_v25 = vld [vmem:[#allocation47_spill] sm:$0xff]  ;;  %v14467_v2 = vld [vmem:[#allocation33_spill] sm:$0xff] }
 0x6bc   : > { %9178 = vmatpush1.bf16.msra.mxu0 %v14457_v24  ;;  %9210 = vmatpush1.bf16.msra.mxu1 %v14458_v60  ;;  %v14468_v24 = vld [vmem:[#allocation48_spill] sm:$0xff]  ;;  %v14469_v60 = vld [vmem:[#allocation34_spill] sm:$0xff] }
 0x6bd   : > { %9180 = vmatprep.subr.bf16.mxu0 %v14459_v14  ;;  %9212 = vmatprep.subr.bf16.mxu1 %v14460_v55  ;;  %v14470_v14 = vld [vmem:[#allocation49_spill] sm:$0xff]  ;;  %v14471_v55 = vld [vmem:[#allocation35_spill] sm:$0xff] }
 0x6c0   : > { %9182 = vmatpush1.bf16.msra.mxu0 %v14461_v21  ;;  %9214 = vmatpush1.bf16.msra.mxu1 %v14462_v16  ;;  %v14472_v21 = vld [vmem:[#allocation50_spill] sm:$0xff]  ;;  %v14473_v16 = vld [vmem:[#allocation51_spill] sm:$0xff] }
 0x6c1   : > { %9184 = vmatprep.subr.bf16.mxu0 %v14463_v27  ;;  %9216 = vmatprep.subr.bf16.mxu1 %v14464_v45  ;;  %v14474_v27 = vld [vmem:[#allocation74_spill] sm:$0xff]  ;;  %v14475_v45 = vld [vmem:[#allocation52_spill] sm:$0xff] }
 0x6c2   : > { %v1451_v52 = vadd.f32 %v14474_v27, %v14473_v16 }
 0x6c4   : > { %9186 = vmatpush1.bf16.msra.mxu0 %v14465_v12  ;;  %9218 = vmatpush1.bf16.msra.mxu1 %v14466_v25  ;;  %v1452_v12 = vadd.f32 %v14356_v48, %v14475_v45 }
 0x6c5   : > { %9188 = vmatprep.subr.bf16.mxu0 %v14467_v2  ;;  %9220 = vmatprep.subr.bf16.mxu1 %v14468_v24 }
 0x6c8   : > { %9190 = vmatpush1.bf16.msra.mxu0 %v14469_v60  ;;  %9222 = vmatpush1.bf16.msra.mxu1 %v14470_v14 }
 0x6c9   : > { %9224 = vmatprep.subr.bf16.mxu0 %v14471_v55  ;;  %9256 = vmatprep.subr.bf16.mxu1 %v14472_v21 }
 0x75e   : > { %v3676_v5 = vpop.f32.mrb[42].mxu0  ;;  %v3747_v25 = vpop.f32.mrb[32].mxu1 }
 0x75f   : > { %v3752_v32 = vadd.f32 %v3676_v5, %v1451_v52  ;;  %v3678_v2 = vpop.f32.mrb[43].mxu0  ;;  %v3749_v57 = vpop.f32.mrb[33].mxu1  ;;  %v10569_v21 = vadd.f32 %v3747_v25, %v14357_v63 }
 0x760   : > { %v3753_v24 = vadd.f32 %v3678_v2, %v1452_v12  ;;  %v10570_v55 = vadd.f32 %v3749_v57, %v12491_v47 }
 0x761   : > { %v8128_v43 = vmul.f32 -1.442695, %v3752_v32 }
 0x762   : > { %v8129_v60 = vmul.f32 -1.442695, %v3753_v24  ;;  %v8130_v14 = vmul.f32 -1.442695, %v10570_v55 }
 0x763   : > { %11017 = vpow2.f32 %v8128_v43 }
 0x764   : > { %11019 = vpow2.f32 %v8129_v60 }
 0x765   : > { %11021 = vpow2.f32 %v8130_v14 }
 0x766   : > { %11023 = vtanh.f32 %v10569_v21 }
 0x76d   : > { %v11018_v51 = vpop.eup %11017 }
 0x76e   : > { %v11020_v16 = vpop.eup %11019  ;;  %v3910_v27 = vadd.f32 1.0, %v11018_v51 }
 0x76f   : > { %v3916_v45 = vadd.f32 1.0, %v11020_v16  ;;  %v11022_v5 = vpop.eup %11021 }
 0x770   : > { %11025 = vrcp.f32 %v3910_v27  ;;  %v11024_v52 = vpop.eup %11023  ;;  %v3923_v43 = vadd.f32 1.0, %v11022_v5 }
 0x771   : > { %11027 = vrcp.f32 %v3916_v45 }
 0x772   : > { %11029 = vrcp.f32 %v3923_v43 }
 0x77a   : > { %v11026_v12 = vpop.eup %11025 }
 0x77b   : > { %v11028_v32 = vpop.eup %11027  ;;  %v3927_v2 = vmul.f32 %v11026_v12, %v11024_v52 }
 0x77c   : > { %v3926_v24 = vmul.f32 %v11028_v32, %v12873_v15  ;;  %v11030_v15 = vpop.eup %11029 }
 0x77e   : > { %v12967_v57 = vadd.f32 %v3927_v2, %v3926_v24  ;;  %v3827_v60 = vpop.f32.mrb[30].mxu0  ;;  %v3898_v25 = vpop.f32.mrb[74].mxu1 }
 0x77f   : > { %v10611_v51 = vadd.f32 %v3827_v60, %v12500_v61  ;;  %v3829_v14 = vpop.f32.mrb[31].mxu0  ;;  %v3900_v21 = vpop.f32.mrb[75].mxu1  ;;  %v10643_v12 = vadd.f32 %v3898_v25, %v12507_v0 }
 0x780   : > { %v10612_v27 = vadd.f32 %v3829_v14, %v12498_v46  ;;  %11031 = vtanh.f32 %v12967_v57  ;;  %v10644_v45 = vadd.f32 %v3900_v21, %v12509_v40 }
 0x781   : > { %v8131_v55 = vmul.f32 -1.442695, %v10611_v51 }
 0x782   : > { %v8132_v16 = vmul.f32 -1.442695, %v10612_v27  ;;  %v8133_v52 = vmul.f32 -1.442695, %v10644_v45 }
 0x783   : > { %11033 = vpow2.f32 %v8131_v55 }
 0x784   : > { %11035 = vpow2.f32 %v8132_v16 }
 0x785   : > { %11037 = vpow2.f32 %v8133_v52  ;;  %v14478_v52 = vld [vmem:[#allocation37_spill] sm:$0xff] }
 0x786   : > { %11039 = vtanh.f32 %v10643_v12  ;;  %v14479_v12 = vld [vmem:[#allocation23_spill] sm:$0xff] }
 0x78a   : > { %v11032_v5 = vpop.eup %11031 }
 0x78b   : > { %v12974_v32 = vmul.f32 %v11032_v5, %v11030_v15 }
 0x78d   : > { %14476 = vst [vmem:[#allocation51_spill] sm:$0xff] %v12974_v32  ;;  %v11034_v2 = vpop.eup %11033  ;;  %4029 = vmatmul.mubr.f32.vlgmr.msra.gmra.mrb[44].mxu0 %v12974_v32  ;;  %4100 = vmatmul.mubr.f32.vlgmr.msra.gmra.mrb[34].mxu1 %v12974_v32  ;;  %v14493_v32 = vld [vmem:[#allocation30_spill] sm:$0xff] }
 0x78e   : > { %v11036_v43 = vpop.eup %11035  ;;  %v3934_v24 = vadd.f32 1.0, %v11034_v2  ;;  %9226 = vmatpush1.bf16.msra.mxu0 %v12190_v30  ;;  %9258 = vmatpush1.bf16.msra.mxu1 %v12370_v7  ;;  %v14480_v2 = vld [vmem:[#allocation38_spill] sm:$0xff] }
 0x78f   : > { %v3940_v60 = vadd.f32 1.0, %v11036_v43  ;;  %9228 = vmatprep.subr.bf16.mxu0 %v12192_v44  ;;  %9260 = vmatprep.subr.bf16.mxu1 %v12372_v50  ;;  %v11038_v25 = vpop.eup %11037  ;;  %v14481_v43 = vld [vmem:[#allocation24_spill] sm:$0xff] }
 0x790   : > { %11041 = vrcp.f32 %v3934_v24  ;;  %4179 = vmatprep.mubr.f32.mxu0 %v14302_v36  ;;  %4250 = vmatprep.mubr.f32.mxu1 %v14302_v36  ;;  %v11040_v51 = vpop.eup %11039  ;;  %v3947_v55 = vadd.f32 1.0, %v11038_v25  ;;  %v14482_v24 = vld [vmem:[#allocation39_spill] sm:$0xff]  ;;  %v14484_v25 = vld [vmem:[#allocation40_spill] sm:$0xff] }
 0x791   : > { %11043 = vrcp.f32 %v3940_v60  ;;  %v14483_v60 = vld [vmem:[#allocation25_spill] sm:$0xff] }
 0x792   : > { %9230 = vmatpush1.bf16.msra.mxu0 %v12199_v17  ;;  %9262 = vmatpush1.bf16.msra.mxu1 %v12376_v62  ;;  %11045 = vrcp.f32 %v3947_v55  ;;  %v14489_v55 = vld [vmem:[#allocation28_spill] sm:$0xff] }
 0x793   : > { %9232 = vmatprep.subr.bf16.mxu0 %v12202_v56  ;;  %9264 = vmatprep.subr.bf16.mxu1 %v12380_v23 }
 0x796   : > { %9234 = vmatpush1.bf16.msra.mxu0 %v12209_v3  ;;  %9266 = vmatpush1.bf16.msra.mxu1 %v12383_v13 }
 0x797   : > { %9236 = vmatprep.subr.bf16.mxu0 %v12212_v42  ;;  %9268 = vmatprep.subr.bf16.mxu1 %v12386_v53 }
 0x79a   : > { %v11042_v14 = vpop.eup %11041  ;;  %9238 = vmatpush1.bf16.msra.mxu0 %v12218_v10  ;;  %9270 = vmatpush1.bf16.msra.mxu1 %v12389_v54 }
 0x79b   : > { %v11044_v21 = vpop.eup %11043  ;;  %v3951_v27 = vmul.f32 %v11042_v14, %v11040_v51  ;;  %9240 = vmatprep.subr.bf16.mxu0 %v12221_v19  ;;  %9272 = vmatprep.subr.bf16.mxu1 %v12392_v58  ;;  %v14485_v51 = vld [vmem:[#allocation26_spill] sm:$0xff]  ;;  %v14486_v14 = vld [vmem:[#allocation41_spill] sm:$0xff] }
 0x79c   : > { %v3950_v16 = vmul.f32 %v11044_v21, %v12903_v6  ;;  %v11046_v6 = vpop.eup %11045  ;;  %v14487_v21 = vld [vmem:[#allocation27_spill] sm:$0xff] }
 0x79e   : > { %v12997_v45 = vadd.f32 %v3951_v27, %v3950_v16  ;;  %9242 = vmatpush1.bf16.msra.mxu0 %v12227_v35  ;;  %9274 = vmatpush1.bf16.msra.mxu1 %v12395_v37  ;;  %v14488_v27 = vld [vmem:[#allocation42_spill] sm:$0xff]  ;;  %v14490_v16 = vld [vmem:[#allocation43_spill] sm:$0xff] }
 0x79f   : > { %9244 = vmatprep.subr.bf16.mxu0 %v14329_v59  ;;  %9276 = vmatprep.subr.bf16.mxu1 %v12398_v28 }
 0x7a0   : > { %11047 = vtanh.f32 %v12997_v45 }
 0x7a2   : > { %9246 = vmatpush1.bf16.msra.mxu0 %v12236_v49  ;;  %9278 = vmatpush1.bf16.msra.mxu1 %v12401_v4 }
 0x7a3   : > { %9248 = vmatprep.subr.bf16.mxu0 %v12239_v18  ;;  %9280 = vmatprep.subr.bf16.mxu1 %v12404_v31 }
 0x7a6   : > { %9250 = vmatpush1.bf16.msra.mxu0 %v12250_v39  ;;  %9282 = vmatpush1.bf16.msra.mxu1 %v12407_v38 }
 0x7a7   : > { %9252 = vmatprep.subr.bf16.mxu0 %v12252_v41  ;;  %9284 = vmatprep.subr.bf16.mxu1 %v12410_v8 }
 0x7aa   : > { %v11048_v15 = vpop.eup %11047  ;;  %9254 = vmatpush1.bf16.msra.mxu0 %v12264_v1  ;;  %9286 = vmatpush1.bf16.msra.mxu1 %v12413_v22 }
 0x7ab   : > { %v13014_v5 = vmul.f32 %v11048_v15, %v11046_v6  ;;  %9288 = vmatprep.subr.bf16.mxu0 %v11954_v34  ;;  %9320 = vmatprep.subr.bf16.mxu1 %v12119_v33  ;;  %v14491_v6 = vld [vmem:[#allocation29_spill] sm:$0xff]  ;;  %v14492_v15 = vld [vmem:[#allocation44_spill] sm:$0xff] }
 0x7ad   : > { %14477 = vst [vmem:[#allocation52_spill] sm:$0xff] %v13014_v5  ;;  %4180 = vmatmul.mubr.f32.vlgmr.msra.gmra.mrb[28].mxu0 %v13014_v5  ;;  %4251 = vmatmul.mubr.f32.vlgmr.msra.gmra.mrb[72].mxu1 %v13014_v5  ;;  %v14494_v5 = vld [vmem:[#allocation45_spill] sm:$0xff] }
 0x7ae   : > { %9290 = vmatpush1.bf16.msra.mxu0 %v12018_v11  ;;  %9322 = vmatpush1.bf16.msra.mxu1 %v12244_v9 }
 0x7af   : > { %9292 = vmatprep.subr.bf16.mxu0 %v14331_v26  ;;  %9324 = vmatprep.subr.bf16.mxu1 %v12247_v20 }
 0x7b0   : > { %4382 = vmatprep.mubr.f32.mxu0 %v14302_v36  ;;  %4453 = vmatprep.mubr.f32.mxu1 %v14302_v36 }
 0x7b2   : > { %9294 = vmatpush1.bf16.msra.mxu0 %v12035_v29  ;;  %9326 = vmatpush1.bf16.msra.mxu1 %v14478_v52 }
 0x7b3   : > { %9296 = vmatprep.subr.bf16.mxu0 %v14479_v12  ;;  %9328 = vmatprep.subr.bf16.mxu1 %v14480_v2 }
 0x7b6   : > { %9298 = vmatpush1.bf16.msra.mxu0 %v14481_v43  ;;  %9330 = vmatpush1.bf16.msra.mxu1 %v14482_v24 }
 0x7b7   : > { %9300 = vmatprep.subr.bf16.mxu0 %v14483_v60  ;;  %9332 = vmatprep.subr.bf16.mxu1 %v14484_v25  ;;  %v14495_v25 = vld [vmem:[#allocation31_spill] sm:$0xff] }
 0x7ba   : > { %9302 = vmatpush1.bf16.msra.mxu0 %v14485_v51  ;;  %9334 = vmatpush1.bf16.msra.mxu1 %v14486_v14  ;;  %v14496_v51 = vld [vmem:[#allocation46_spill] sm:$0xff]  ;;  %v14497_v14 = vld [vmem:[#allocation32_spill] sm:$0xff] }
 0x7bb   : > { %9304 = vmatprep.subr.bf16.mxu0 %v14487_v21  ;;  %9336 = vmatprep.subr.bf16.mxu1 %v14488_v27  ;;  %v14498_v21 = vld [vmem:[#allocation47_spill] sm:$0xff]  ;;  %v14499_v27 = vld [vmem:[#allocation33_spill] sm:$0xff] }
 0x7be   : > { %9306 = vmatpush1.bf16.msra.mxu0 %v14489_v55  ;;  %9338 = vmatpush1.bf16.msra.mxu1 %v14490_v16  ;;  %v14500_v55 = vld [vmem:[#allocation48_spill] sm:$0xff]  ;;  %v14501_v16 = vld [vmem:[#allocation34_spill] sm:$0xff] }
 0x7bf   : > { %9308 = vmatprep.subr.bf16.mxu0 %v14491_v6  ;;  %9340 = vmatprep.subr.bf16.mxu1 %v14492_v15  ;;  %v14502_v6 = vld [vmem:[#allocation49_spill] sm:$0xff]  ;;  %v14503_v15 = vld [vmem:[#allocation35_spill] sm:$0xff] }
 0x7c2   : > { %9310 = vmatpush1.bf16.msra.mxu0 %v14493_v32  ;;  %9342 = vmatpush1.bf16.msra.mxu1 %v14494_v5  ;;  %v14504_v32 = vld [vmem:[#allocation50_spill] sm:$0xff]  ;;  %v14505_v5 = vld [vmem:[#allocation53_spill] sm:$0xff] }
 0x7c3   : > { %9312 = vmatprep.subr.bf16.mxu0 %v14495_v25  ;;  %9344 = vmatprep.subr.bf16.mxu1 %v14496_v51  ;;  %v14506_v25 = vld [vmem:[#allocation74_spill] sm:$0xff] }
 0x7c4   : > { %v1455_v60 = vadd.f32 %v14506_v25, %v14505_v5  ;;  %v14507_v51 = vld [vmem:[#allocation54_spill] sm:$0xff] }
 0x7c6   : > { %9314 = vmatpush1.bf16.msra.mxu0 %v14497_v14  ;;  %9346 = vmatpush1.bf16.msra.mxu1 %v14498_v21  ;;  %v1456_v14 = vadd.f32 %v14356_v48, %v14507_v51 }
 0x7c7   : > { %9316 = vmatprep.subr.bf16.mxu0 %v14499_v27  ;;  %9348 = vmatprep.subr.bf16.mxu1 %v14500_v55 }
 0x7ca   : > { %9318 = vmatpush1.bf16.msra.mxu0 %v14501_v16  ;;  %9350 = vmatpush1.bf16.msra.mxu1 %v14502_v6 }
 0x7cb   : > { %9352 = vmatprep.subr.bf16.mxu0 %v14503_v15  ;;  %9384 = vmatprep.subr.bf16.mxu1 %v14504_v32 }
 0x860   : > { %v4030_v24 = vpop.f32.mrb[44].mxu0  ;;  %v4101_v21 = vpop.f32.mrb[34].mxu1 }
 0x861   : > { %v4106_v43 = vadd.f32 %v4030_v24, %v1455_v60  ;;  %v4032_v27 = vpop.f32.mrb[45].mxu0  ;;  %v4103_v2 = vpop.f32.mrb[35].mxu1  ;;  %v10571_v32 = vadd.f32 %v4101_v21, %v14357_v63 }
 0x862   : > { %v4107_v55 = vadd.f32 %v4032_v27, %v1456_v14  ;;  %v10572_v15 = vadd.f32 %v4103_v2, %v12491_v47 }
 0x863   : > { %v8134_v12 = vmul.f32 -1.442695, %v4106_v43 }
 0x864   : > { %v8135_v16 = vmul.f32 -1.442695, %v4107_v55  ;;  %v8136_v6 = vmul.f32 -1.442695, %v10572_v15 }
 0x865   : > { %11049 = vpow2.f32 %v8134_v12 }
 0x866   : > { %11051 = vpow2.f32 %v8135_v16 }
 0x867   : > { %11053 = vpow2.f32 %v8136_v6 }
 0x868   : > { %11055 = vtanh.f32 %v10571_v32 }
 0x86f   : > { %v11050_v52 = vpop.eup %11049 }
 0x870   : > { %v11052_v5 = vpop.eup %11051  ;;  %v4264_v25 = vadd.f32 1.0, %v11050_v52 }
 0x871   : > { %v4270_v51 = vadd.f32 1.0, %v11052_v5  ;;  %v11054_v24 = vpop.eup %11053 }
 0x872   : > { %11057 = vrcp.f32 %v4264_v25  ;;  %v11056_v60 = vpop.eup %11055  ;;  %v4277_v12 = vadd.f32 1.0, %v11054_v24 }
 0x873   : > { %11059 = vrcp.f32 %v4270_v51 }
 0x874   : > { %11061 = vrcp.f32 %v4277_v12 }
 0x87c   : > { %v11058_v14 = vpop.eup %11057 }
 0x87d   : > { %v11060_v43 = vpop.eup %11059  ;;  %v4281_v27 = vmul.f32 %v11058_v14, %v11056_v60 }
 0x87e   : > { %v4280_v55 = vmul.f32 %v11060_v43, %v12967_v57  ;;  %v11062_v57 = vpop.eup %11061 }
 0x880   : > { %v13061_v2 = vadd.f32 %v4281_v27, %v4280_v55  ;;  %v4181_v16 = vpop.f32.mrb[28].mxu0  ;;  %v4252_v21 = vpop.f32.mrb[72].mxu1 }
 0x881   : > { %v10609_v52 = vadd.f32 %v4181_v16, %v12500_v61  ;;  %v4183_v6 = vpop.f32.mrb[29].mxu0  ;;  %v4254_v32 = vpop.f32.mrb[73].mxu1  ;;  %v10641_v14 = vadd.f32 %v4252_v21, %v12507_v0 }
 0x882   : > { %v10610_v25 = vadd.f32 %v4183_v6, %v12498_v46  ;;  %11063 = vtanh.f32 %v13061_v2  ;;  %v10642_v51 = vadd.f32 %v4254_v32, %v12509_v40 }
 0x883   : > { %v8137_v15 = vmul.f32 -1.442695, %v10609_v52 }
 0x884   : > { %v8138_v5 = vmul.f32 -1.442695, %v10610_v25  ;;  %v8139_v60 = vmul.f32 -1.442695, %v10642_v51 }
 0x885   : > { %11065 = vpow2.f32 %v8137_v15 }
 0x886   : > { %11067 = vpow2.f32 %v8138_v5 }
 0x887   : > { %11069 = vpow2.f32 %v8139_v60  ;;  %v14510_v60 = vld [vmem:[#allocation37_spill] sm:$0xff] }
 0x888   : > { %11071 = vtanh.f32 %v10641_v14  ;;  %v14511_v14 = vld [vmem:[#allocation23_spill] sm:$0xff] }
 0x88c   : > { %v11064_v24 = vpop.eup %11063 }
 0x88d   : > { %v13068_v43 = vmul.f32 %v11064_v24, %v11062_v57 }
 0x88f   : > { %14508 = vst [vmem:[#allocation53_spill] sm:$0xff] %v13068_v43  ;;  %v11066_v27 = vpop.eup %11065  ;;  %4383 = vmatmul.mubr.f32.vlgmr.msra.gmra.mrb[46].mxu0 %v13068_v43  ;;  %4454 = vmatmul.mubr.f32.vlgmr.msra.gmra.mrb[36].mxu1 %v13068_v43  ;;  %v14525_v43 = vld [vmem:[#allocation30_spill] sm:$0xff] }
 0x890   : > { %v11068_v12 = vpop.eup %11067  ;;  %v4288_v55 = vadd.f32 1.0, %v11066_v27  ;;  %9354 = vmatpush1.bf16.msra.mxu0 %v12190_v30  ;;  %9386 = vmatpush1.bf16.msra.mxu1 %v12370_v7  ;;  %v14512_v27 = vld [vmem:[#allocation38_spill] sm:$0xff] }
 0x891   : > { %v4294_v16 = vadd.f32 1.0, %v11068_v12  ;;  %9356 = vmatprep.subr.bf16.mxu0 %v12192_v44  ;;  %9388 = vmatprep.subr.bf16.mxu1 %v12372_v50  ;;  %v11070_v21 = vpop.eup %11069  ;;  %v14513_v12 = vld [vmem:[#allocation24_spill] sm:$0xff] }
 0x892   : > { %11073 = vrcp.f32 %v4288_v55  ;;  %4533 = vmatprep.mubr.f32.mxu0 %v14302_v36  ;;  %4604 = vmatprep.mubr.f32.mxu1 %v14302_v36  ;;  %v11072_v52 = vpop.eup %11071  ;;  %v4301_v15 = vadd.f32 1.0, %v11070_v21  ;;  %v14514_v55 = vld [vmem:[#allocation39_spill] sm:$0xff]  ;;  %v14516_v21 = vld [vmem:[#allocation40_spill] sm:$0xff] }
 0x893   : > { %11075 = vrcp.f32 %v4294_v16  ;;  %v14515_v16 = vld [vmem:[#allocation25_spill] sm:$0xff] }
 0x894   : > { %9358 = vmatpush1.bf16.msra.mxu0 %v12199_v17  ;;  %9390 = vmatpush1.bf16.msra.mxu1 %v12376_v62  ;;  %11077 = vrcp.f32 %v4301_v15  ;;  %v14521_v15 = vld [vmem:[#allocation28_spill] sm:$0xff] }
 0x895   : > { %9360 = vmatprep.subr.bf16.mxu0 %v12202_v56  ;;  %9392 = vmatprep.subr.bf16.mxu1 %v12380_v23 }
 0x898   : > { %9362 = vmatpush1.bf16.msra.mxu0 %v12209_v3  ;;  %9394 = vmatpush1.bf16.msra.mxu1 %v12383_v13 }
 0x899   : > { %9364 = vmatprep.subr.bf16.mxu0 %v12212_v42  ;;  %9396 = vmatprep.subr.bf16.mxu1 %v12386_v53 }
 0x89c   : > { %v11074_v6 = vpop.eup %11073  ;;  %9366 = vmatpush1.bf16.msra.mxu0 %v12218_v10  ;;  %9398 = vmatpush1.bf16.msra.mxu1 %v12389_v54 }
 0x89d   : > { %v11076_v32 = vpop.eup %11075  ;;  %v4305_v25 = vmul.f32 %v11074_v6, %v11072_v52  ;;  %9368 = vmatprep.subr.bf16.mxu0 %v12221_v19  ;;  %9400 = vmatprep.subr.bf16.mxu1 %v12392_v58  ;;  %v14517_v52 = vld [vmem:[#allocation26_spill] sm:$0xff]  ;;  %v14518_v6 = vld [vmem:[#allocation41_spill] sm:$0xff] }
 0x89e   : > { %v4304_v5 = vmul.f32 %v11076_v32, %v12997_v45  ;;  %v11078_v45 = vpop.eup %11077  ;;  %v14519_v32 = vld [vmem:[#allocation27_spill] sm:$0xff] }
 0x8a0   : > { %v13091_v51 = vadd.f32 %v4305_v25, %v4304_v5  ;;  %9370 = vmatpush1.bf16.msra.mxu0 %v12227_v35  ;;  %9402 = vmatpush1.bf16.msra.mxu1 %v12395_v37  ;;  %v14520_v25 = vld [vmem:[#allocation42_spill] sm:$0xff]  ;;  %v14522_v5 = vld [vmem:[#allocation43_spill] sm:$0xff] }
 0x8a1   : > { %9372 = vmatprep.subr.bf16.mxu0 %v14329_v59  ;;  %9404 = vmatprep.subr.bf16.mxu1 %v12398_v28 }
 0x8a2   : > { %11079 = vtanh.f32 %v13091_v51 }
 0x8a4   : > { %9374 = vmatpush1.bf16.msra.mxu0 %v12236_v49  ;;  %9406 = vmatpush1.bf16.msra.mxu1 %v12401_v4 }
 0x8a5   : > { %9376 = vmatprep.subr.bf16.mxu0 %v12239_v18  ;;  %9408 = vmatprep.subr.bf16.mxu1 %v12404_v31 }
 0x8a8   : > { %9378 = vmatpush1.bf16.msra.mxu0 %v12250_v39  ;;  %9410 = vmatpush1.bf16.msra.mxu1 %v12407_v38 }
 0x8a9   : > { %9380 = vmatprep.subr.bf16.mxu0 %v12252_v41  ;;  %9412 = vmatprep.subr.bf16.mxu1 %v12410_v8 }
 0x8ac   : > { %v11080_v57 = vpop.eup %11079  ;;  %9382 = vmatpush1.bf16.msra.mxu0 %v12264_v1  ;;  %9414 = vmatpush1.bf16.msra.mxu1 %v12413_v22 }
 0x8ad   : > { %v13108_v24 = vmul.f32 %v11080_v57, %v11078_v45  ;;  %9416 = vmatprep.subr.bf16.mxu0 %v11954_v34  ;;  %9448 = vmatprep.subr.bf16.mxu1 %v12119_v33  ;;  %v14523_v45 = vld [vmem:[#allocation29_spill] sm:$0xff]  ;;  %v14524_v57 = vld [vmem:[#allocation44_spill] sm:$0xff] }
 0x8af   : > { %14509 = vst [vmem:[#allocation54_spill] sm:$0xff] %v13108_v24  ;;  %4534 = vmatmul.mubr.f32.vlgmr.msra.gmra.mrb[26].mxu0 %v13108_v24  ;;  %4605 = vmatmul.mubr.f32.vlgmr.msra.gmra.mrb[70].mxu1 %v13108_v24  ;;  %v14526_v24 = vld [vmem:[#allocation45_spill] sm:$0xff] }
 0x8b0   : > { %9418 = vmatpush1.bf16.msra.mxu0 %v12018_v11  ;;  %9450 = vmatpush1.bf16.msra.mxu1 %v12244_v9 }
 0x8b1   : > { %9420 = vmatprep.subr.bf16.mxu0 %v14331_v26  ;;  %9452 = vmatprep.subr.bf16.mxu1 %v12247_v20 }
 0x8b2   : > { %4736 = vmatprep.mubr.f32.mxu0 %v14302_v36  ;;  %4807 = vmatprep.mubr.f32.mxu1 %v14302_v36 }
 0x8b4   : > { %9422 = vmatpush1.bf16.msra.mxu0 %v12035_v29  ;;  %9454 = vmatpush1.bf16.msra.mxu1 %v14510_v60 }
 0x8b5   : > { %9424 = vmatprep.subr.bf16.mxu0 %v14511_v14  ;;  %9456 = vmatprep.subr.bf16.mxu1 %v14512_v27 }
 0x8b8   : > { %9426 = vmatpush1.bf16.msra.mxu0 %v14513_v12  ;;  %9458 = vmatpush1.bf16.msra.mxu1 %v14514_v55 }
 0x8b9   : > { %9428 = vmatprep.subr.bf16.mxu0 %v14515_v16  ;;  %9460 = vmatprep.subr.bf16.mxu1 %v14516_v21  ;;  %v14527_v21 = vld [vmem:[#allocation31_spill] sm:$0xff] }
 0x8bc   : > { %9430 = vmatpush1.bf16.msra.mxu0 %v14517_v52  ;;  %9462 = vmatpush1.bf16.msra.mxu1 %v14518_v6  ;;  %v14528_v52 = vld [vmem:[#allocation46_spill] sm:$0xff]  ;;  %v14529_v6 = vld [vmem:[#allocation32_spill] sm:$0xff] }
 0x8bd   : > { %9432 = vmatprep.subr.bf16.mxu0 %v14519_v32  ;;  %9464 = vmatprep.subr.bf16.mxu1 %v14520_v25  ;;  %v14530_v32 = vld [vmem:[#allocation47_spill] sm:$0xff]  ;;  %v14531_v25 = vld [vmem:[#allocation33_spill] sm:$0xff] }
 0x8c0   : > { %9434 = vmatpush1.bf16.msra.mxu0 %v14521_v15  ;;  %9466 = vmatpush1.bf16.msra.mxu1 %v14522_v5  ;;  %v14532_v15 = vld [vmem:[#allocation48_spill] sm:$0xff]  ;;  %v14533_v5 = vld [vmem:[#allocation34_spill] sm:$0xff] }
 0x8c1   : > { %9436 = vmatprep.subr.bf16.mxu0 %v14523_v45  ;;  %9468 = vmatprep.subr.bf16.mxu1 %v14524_v57  ;;  %v14534_v45 = vld [vmem:[#allocation49_spill] sm:$0xff]  ;;  %v14535_v57 = vld [vmem:[#allocation35_spill] sm:$0xff] }
 0x8c4   : > { %9438 = vmatpush1.bf16.msra.mxu0 %v14525_v43  ;;  %9470 = vmatpush1.bf16.msra.mxu1 %v14526_v24  ;;  %v14536_v43 = vld [vmem:[#allocation50_spill] sm:$0xff]  ;;  %v14537_v24 = vld [vmem:[#allocation55_spill] sm:$0xff] }
 0x8c5   : > { %9440 = vmatprep.subr.bf16.mxu0 %v14527_v21  ;;  %9472 = vmatprep.subr.bf16.mxu1 %v14528_v52  ;;  %v14538_v21 = vld [vmem:[#allocation74_spill] sm:$0xff]  ;;  %v14539_v52 = vld [vmem:[#allocation56_spill] sm:$0xff] }
 0x8c6   : > { %v1459_v16 = vadd.f32 %v14538_v21, %v14537_v24 }
 0x8c8   : > { %9442 = vmatpush1.bf16.msra.mxu0 %v14529_v6  ;;  %9474 = vmatpush1.bf16.msra.mxu1 %v14530_v32  ;;  %v1460_v6 = vadd.f32 %v14356_v48, %v14539_v52 }
 0x8c9   : > { %9444 = vmatprep.subr.bf16.mxu0 %v14531_v25  ;;  %9476 = vmatprep.subr.bf16.mxu1 %v14532_v15 }
 0x8cc   : > { %9446 = vmatpush1.bf16.msra.mxu0 %v14533_v5  ;;  %9478 = vmatpush1.bf16.msra.mxu1 %v14534_v45 }
 0x8cd   : > { %9480 = vmatprep.subr.bf16.mxu0 %v14535_v57  ;;  %9512 = vmatprep.subr.bf16.mxu1 %v14536_v43 }
 0x962   : > { %v4384_v55 = vpop.f32.mrb[46].mxu0  ;;  %v4455_v32 = vpop.f32.mrb[36].mxu1 }
 0x963   : > { %v4460_v12 = vadd.f32 %v4384_v55, %v1459_v16  ;;  %v4386_v25 = vpop.f32.mrb[47].mxu0  ;;  %v4457_v27 = vpop.f32.mrb[37].mxu1  ;;  %v10573_v43 = vadd.f32 %v4455_v32, %v14357_v63 }
 0x964   : > { %v4461_v15 = vadd.f32 %v4386_v25, %v1460_v6  ;;  %v10574_v57 = vadd.f32 %v4457_v27, %v12491_v47 }
 0x965   : > { %v8140_v14 = vmul.f32 -1.442695, %v4460_v12 }
 0x966   : > { %v8141_v5 = vmul.f32 -1.442695, %v4461_v15  ;;  %v8142_v45 = vmul.f32 -1.442695, %v10574_v57 }
 0x967   : > { %11081 = vpow2.f32 %v8140_v14 }
 0x968   : > { %11083 = vpow2.f32 %v8141_v5 }
 0x969   : > { %11085 = vpow2.f32 %v8142_v45 }
 0x96a   : > { %11087 = vtanh.f32 %v10573_v43 }
 0x971   : > { %v11082_v60 = vpop.eup %11081 }
 0x972   : > { %v11084_v24 = vpop.eup %11083  ;;  %v4618_v21 = vadd.f32 1.0, %v11082_v60 }
 0x973   : > { %v4624_v52 = vadd.f32 1.0, %v11084_v24  ;;  %v11086_v55 = vpop.eup %11085 }
 0x974   : > { %11089 = vrcp.f32 %v4618_v21  ;;  %v11088_v16 = vpop.eup %11087  ;;  %v4631_v14 = vadd.f32 1.0, %v11086_v55 }
 0x975   : > { %11091 = vrcp.f32 %v4624_v52 }
 0x976   : > { %11093 = vrcp.f32 %v4631_v14 }
 0x97e   : > { %v11090_v6 = vpop.eup %11089 }
 0x97f   : > { %v11092_v12 = vpop.eup %11091  ;;  %v4635_v25 = vmul.f32 %v11090_v6, %v11088_v16 }
 0x980   : > { %v4634_v15 = vmul.f32 %v11092_v12, %v13061_v2  ;;  %v11094_v2 = vpop.eup %11093 }
 0x982   : > { %v13155_v27 = vadd.f32 %v4635_v25, %v4634_v15  ;;  %v4535_v5 = vpop.f32.mrb[26].mxu0  ;;  %v4606_v32 = vpop.f32.mrb[70].mxu1 }
 0x983   : > { %v10607_v60 = vadd.f32 %v4535_v5, %v12500_v61  ;;  %v4537_v45 = vpop.f32.mrb[27].mxu0  ;;  %v4608_v43 = vpop.f32.mrb[71].mxu1  ;;  %v10639_v6 = vadd.f32 %v4606_v32, %v12507_v0 }
 0x984   : > { %v10608_v21 = vadd.f32 %v4537_v45, %v12498_v46  ;;  %11095 = vtanh.f32 %v13155_v27  ;;  %v10640_v52 = vadd.f32 %v4608_v43, %v12509_v40 }
 0x985   : > { %v8143_v57 = vmul.f32 -1.442695, %v10607_v60 }
 0x986   : > { %v8144_v24 = vmul.f32 -1.442695, %v10608_v21  ;;  %v8145_v16 = vmul.f32 -1.442695, %v10640_v52 }
 0x987   : > { %11097 = vpow2.f32 %v8143_v57 }
 0x988   : > { %11099 = vpow2.f32 %v8144_v24 }
 0x989   : > { %11101 = vpow2.f32 %v8145_v16  ;;  %v14542_v16 = vld [vmem:[#allocation37_spill] sm:$0xff] }
 0x98a   : > { %11103 = vtanh.f32 %v10639_v6  ;;  %v14543_v6 = vld [vmem:[#allocation23_spill] sm:$0xff] }
 0x98e   : > { %v11096_v55 = vpop.eup %11095 }
 0x98f   : > { %v13162_v12 = vmul.f32 %v11096_v55, %v11094_v2 }
 0x991   : > { %14540 = vst [vmem:[#allocation55_spill] sm:$0xff] %v13162_v12  ;;  %v11098_v25 = vpop.eup %11097  ;;  %4737 = vmatmul.mubr.f32.vlgmr.msra.gmra.mrb[48].mxu0 %v13162_v12  ;;  %4808 = vmatmul.mubr.f32.vlgmr.msra.gmra.mrb[38].mxu1 %v13162_v12  ;;  %v14557_v12 = vld [vmem:[#allocation30_spill] sm:$0xff] }
 0x992   : > { %v11100_v14 = vpop.eup %11099  ;;  %v4642_v15 = vadd.f32 1.0, %v11098_v25  ;;  %9482 = vmatpush1.bf16.msra.mxu0 %v12190_v30  ;;  %9514 = vmatpush1.bf16.msra.mxu1 %v12370_v7  ;;  %v14544_v25 = vld [vmem:[#allocation38_spill] sm:$0xff] }
 0x993   : > { %v4648_v5 = vadd.f32 1.0, %v11100_v14  ;;  %9484 = vmatprep.subr.bf16.mxu0 %v12192_v44  ;;  %9516 = vmatprep.subr.bf16.mxu1 %v12372_v50  ;;  %v11102_v32 = vpop.eup %11101  ;;  %v14545_v14 = vld [vmem:[#allocation24_spill] sm:$0xff] }
 0x994   : > { %11105 = vrcp.f32 %v4642_v15  ;;  %4887 = vmatprep.mubr.f32.mxu0 %v14302_v36  ;;  %4958 = vmatprep.mubr.f32.mxu1 %v14302_v36  ;;  %v11104_v60 = vpop.eup %11103  ;;  %v4655_v57 = vadd.f32 1.0, %v11102_v32  ;;  %v14546_v15 = vld [vmem:[#allocation39_spill] sm:$0xff]  ;;  %v14548_v32 = vld [vmem:[#allocation40_spill] sm:$0xff] }
 0x995   : > { %11107 = vrcp.f32 %v4648_v5  ;;  %v14547_v5 = vld [vmem:[#allocation25_spill] sm:$0xff] }
 0x996   : > { %9486 = vmatpush1.bf16.msra.mxu0 %v12199_v17  ;;  %9518 = vmatpush1.bf16.msra.mxu1 %v12376_v62  ;;  %11109 = vrcp.f32 %v4655_v57  ;;  %v14553_v57 = vld [vmem:[#allocation28_spill] sm:$0xff] }
 0x997   : > { %9488 = vmatprep.subr.bf16.mxu0 %v12202_v56  ;;  %9520 = vmatprep.subr.bf16.mxu1 %v12380_v23 }
 0x99a   : > { %9490 = vmatpush1.bf16.msra.mxu0 %v12209_v3  ;;  %9522 = vmatpush1.bf16.msra.mxu1 %v12383_v13 }
 0x99b   : > { %9492 = vmatprep.subr.bf16.mxu0 %v12212_v42  ;;  %9524 = vmatprep.subr.bf16.mxu1 %v12386_v53 }
 0x99e   : > { %v11106_v45 = vpop.eup %11105  ;;  %9494 = vmatpush1.bf16.msra.mxu0 %v12218_v10  ;;  %9526 = vmatpush1.bf16.msra.mxu1 %v12389_v54 }
 0x99f   : > { %v11108_v43 = vpop.eup %11107  ;;  %v4659_v21 = vmul.f32 %v11106_v45, %v11104_v60  ;;  %9496 = vmatprep.subr.bf16.mxu0 %v12221_v19  ;;  %9528 = vmatprep.subr.bf16.mxu1 %v12392_v58  ;;  %v14549_v60 = vld [vmem:[#allocation26_spill] sm:$0xff]  ;;  %v14550_v45 = vld [vmem:[#allocation41_spill] sm:$0xff] }
 0x9a0   : > { %v4658_v24 = vmul.f32 %v11108_v43, %v13091_v51  ;;  %v11110_v51 = vpop.eup %11109  ;;  %v14551_v43 = vld [vmem:[#allocation27_spill] sm:$0xff] }
 0x9a2   : > { %v13185_v52 = vadd.f32 %v4659_v21, %v4658_v24  ;;  %9498 = vmatpush1.bf16.msra.mxu0 %v12227_v35  ;;  %9530 = vmatpush1.bf16.msra.mxu1 %v12395_v37  ;;  %v14552_v21 = vld [vmem:[#allocation42_spill] sm:$0xff]  ;;  %v14554_v24 = vld [vmem:[#allocation43_spill] sm:$0xff] }
 0x9a3   : > { %9500 = vmatprep.subr.bf16.mxu0 %v14329_v59  ;;  %9532 = vmatprep.subr.bf16.mxu1 %v12398_v28 }
 0x9a4   : > { %11111 = vtanh.f32 %v13185_v52 }
 0x9a6   : > { %9502 = vmatpush1.bf16.msra.mxu0 %v12236_v49  ;;  %9534 = vmatpush1.bf16.msra.mxu1 %v12401_v4 }
 0x9a7   : > { %9504 = vmatprep.subr.bf16.mxu0 %v12239_v18  ;;  %9536 = vmatprep.subr.bf16.mxu1 %v12404_v31 }
 0x9aa   : > { %9506 = vmatpush1.bf16.msra.mxu0 %v12250_v39  ;;  %9538 = vmatpush1.bf16.msra.mxu1 %v12407_v38 }
 0x9ab   : > { %9508 = vmatprep.subr.bf16.mxu0 %v12252_v41  ;;  %9540 = vmatprep.subr.bf16.mxu1 %v12410_v8 }
 0x9ae   : > { %v11112_v2 = vpop.eup %11111  ;;  %9510 = vmatpush1.bf16.msra.mxu0 %v12264_v1  ;;  %9542 = vmatpush1.bf16.msra.mxu1 %v12413_v22 }
 0x9af   : > { %v13202_v55 = vmul.f32 %v11112_v2, %v11110_v51  ;;  %9544 = vmatprep.subr.bf16.mxu0 %v11954_v34  ;;  %9576 = vmatprep.subr.bf16.mxu1 %v12119_v33  ;;  %v14555_v51 = vld [vmem:[#allocation29_spill] sm:$0xff]  ;;  %v14556_v2 = vld [vmem:[#allocation44_spill] sm:$0xff] }
 0x9b1   : > { %14541 = vst [vmem:[#allocation56_spill] sm:$0xff] %v13202_v55  ;;  %4888 = vmatmul.mubr.f32.vlgmr.msra.gmra.mrb[24].mxu0 %v13202_v55  ;;  %4959 = vmatmul.mubr.f32.vlgmr.msra.gmra.mrb[68].mxu1 %v13202_v55  ;;  %v14558_v55 = vld [vmem:[#allocation45_spill] sm:$0xff] }
 0x9b2   : > { %9546 = vmatpush1.bf16.msra.mxu0 %v12018_v11  ;;  %9578 = vmatpush1.bf16.msra.mxu1 %v12244_v9 }
 0x9b3   : > { %9548 = vmatprep.subr.bf16.mxu0 %v14331_v26  ;;  %9580 = vmatprep.subr.bf16.mxu1 %v12247_v20 }
 0x9b4   : > { %5090 = vmatprep.mubr.f32.mxu0 %v14302_v36  ;;  %5161 = vmatprep.mubr.f32.mxu1 %v14302_v36 }
 0x9b6   : > { %9550 = vmatpush1.bf16.msra.mxu0 %v12035_v29  ;;  %9582 = vmatpush1.bf16.msra.mxu1 %v14542_v16 }
 0x9b7   : > { %9552 = vmatprep.subr.bf16.mxu0 %v14543_v6  ;;  %9584 = vmatprep.subr.bf16.mxu1 %v14544_v25 }
 0x9ba   : > { %9554 = vmatpush1.bf16.msra.mxu0 %v14545_v14  ;;  %9586 = vmatpush1.bf16.msra.mxu1 %v14546_v15 }
 0x9bb   : > { %9556 = vmatprep.subr.bf16.mxu0 %v14547_v5  ;;  %9588 = vmatprep.subr.bf16.mxu1 %v14548_v32  ;;  %v14559_v32 = vld [vmem:[#allocation31_spill] sm:$0xff] }
 0x9be   : > { %9558 = vmatpush1.bf16.msra.mxu0 %v14549_v60  ;;  %9590 = vmatpush1.bf16.msra.mxu1 %v14550_v45  ;;  %v14560_v60 = vld [vmem:[#allocation46_spill] sm:$0xff]  ;;  %v14561_v45 = vld [vmem:[#allocation32_spill] sm:$0xff] }
 0x9bf   : > { %9560 = vmatprep.subr.bf16.mxu0 %v14551_v43  ;;  %9592 = vmatprep.subr.bf16.mxu1 %v14552_v21  ;;  %v14562_v43 = vld [vmem:[#allocation47_spill] sm:$0xff]  ;;  %v14563_v21 = vld [vmem:[#allocation33_spill] sm:$0xff] }
 0x9c2   : > { %9562 = vmatpush1.bf16.msra.mxu0 %v14553_v57  ;;  %9594 = vmatpush1.bf16.msra.mxu1 %v14554_v24  ;;  %v14564_v57 = vld [vmem:[#allocation48_spill] sm:$0xff]  ;;  %v14565_v24 = vld [vmem:[#allocation34_spill] sm:$0xff] }
 0x9c3   : > { %9564 = vmatprep.subr.bf16.mxu0 %v14555_v51  ;;  %9596 = vmatprep.subr.bf16.mxu1 %v14556_v2  ;;  %v14566_v51 = vld [vmem:[#allocation49_spill] sm:$0xff]  ;;  %v14567_v2 = vld [vmem:[#allocation35_spill] sm:$0xff] }
 0x9c6   : > { %9566 = vmatpush1.bf16.msra.mxu0 %v14557_v12  ;;  %9598 = vmatpush1.bf16.msra.mxu1 %v14558_v55  ;;  %v14568_v12 = vld [vmem:[#allocation50_spill] sm:$0xff]  ;;  %v14569_v55 = vld [vmem:[#allocation57_spill] sm:$0xff] }
 0x9c7   : > { %9568 = vmatprep.subr.bf16.mxu0 %v14559_v32  ;;  %9600 = vmatprep.subr.bf16.mxu1 %v14560_v60  ;;  %v14570_v32 = vld [vmem:[#allocation74_spill] sm:$0xff] }
 0x9c8   : > { %v1463_v5 = vadd.f32 %v14570_v32, %v14569_v55  ;;  %v14571_v60 = vld [vmem:[#allocation58_spill] sm:$0xff] }
 0x9ca   : > { %9570 = vmatpush1.bf16.msra.mxu0 %v14561_v45  ;;  %9602 = vmatpush1.bf16.msra.mxu1 %v14562_v43  ;;  %v1464_v45 = vadd.f32 %v14356_v48, %v14571_v60 }
 0x9cb   : > { %9572 = vmatprep.subr.bf16.mxu0 %v14563_v21  ;;  %9604 = vmatprep.subr.bf16.mxu1 %v14564_v57 }
 0x9ce   : > { %9574 = vmatpush1.bf16.msra.mxu0 %v14565_v24  ;;  %9606 = vmatpush1.bf16.msra.mxu1 %v14566_v51 }
 0x9cf   : > { %9608 = vmatprep.subr.bf16.mxu0 %v14567_v2  ;;  %9640 = vmatprep.subr.bf16.mxu1 %v14568_v12 }
 0xa64   : > { %v4738_v15 = vpop.f32.mrb[48].mxu0  ;;  %v4809_v43 = vpop.f32.mrb[38].mxu1 }
 0xa65   : > { %v4814_v14 = vadd.f32 %v4738_v15, %v1463_v5  ;;  %v4740_v21 = vpop.f32.mrb[49].mxu0  ;;  %v4811_v25 = vpop.f32.mrb[39].mxu1  ;;  %v10575_v12 = vadd.f32 %v4809_v43, %v14357_v63 }
 0xa66   : > { %v4815_v57 = vadd.f32 %v4740_v21, %v1464_v45  ;;  %v10576_v2 = vadd.f32 %v4811_v25, %v12491_v47 }
 0xa67   : > { %v8146_v6 = vmul.f32 -1.442695, %v4814_v14 }
 0xa68   : > { %v8147_v24 = vmul.f32 -1.442695, %v4815_v57  ;;  %v8148_v51 = vmul.f32 -1.442695, %v10576_v2 }
 0xa69   : > { %11113 = vpow2.f32 %v8146_v6 }
 0xa6a   : > { %11115 = vpow2.f32 %v8147_v24 }
 0xa6b   : > { %11117 = vpow2.f32 %v8148_v51 }
 0xa6c   : > { %11119 = vtanh.f32 %v10575_v12 }
 0xa73   : > { %v11114_v16 = vpop.eup %11113 }
 0xa74   : > { %v11116_v55 = vpop.eup %11115  ;;  %v4972_v32 = vadd.f32 1.0, %v11114_v16 }
 0xa75   : > { %v4978_v60 = vadd.f32 1.0, %v11116_v55  ;;  %v11118_v15 = vpop.eup %11117 }
 0xa76   : > { %11121 = vrcp.f32 %v4972_v32  ;;  %v11120_v5 = vpop.eup %11119  ;;  %v4985_v6 = vadd.f32 1.0, %v11118_v15 }
 0xa77   : > { %11123 = vrcp.f32 %v4978_v60 }
 0xa78   : > { %11125 = vrcp.f32 %v4985_v6 }
 0xa80   : > { %v11122_v45 = vpop.eup %11121 }
 0xa81   : > { %v11124_v14 = vpop.eup %11123  ;;  %v4989_v21 = vmul.f32 %v11122_v45, %v11120_v5 }
 0xa82   : > { %v4988_v57 = vmul.f32 %v11124_v14, %v13155_v27  ;;  %v11126_v27 = vpop.eup %11125 }
 0xa84   : > { %v13249_v25 = vadd.f32 %v4989_v21, %v4988_v57  ;;  %v4889_v24 = vpop.f32.mrb[24].mxu0  ;;  %v4960_v43 = vpop.f32.mrb[68].mxu1 }
 0xa85   : > { %v10605_v16 = vadd.f32 %v4889_v24, %v12500_v61  ;;  %v4891_v51 = vpop.f32.mrb[25].mxu0  ;;  %v4962_v12 = vpop.f32.mrb[69].mxu1  ;;  %v10637_v45 = vadd.f32 %v4960_v43, %v12507_v0 }
 0xa86   : > { %v10606_v32 = vadd.f32 %v4891_v51, %v12498_v46  ;;  %11127 = vtanh.f32 %v13249_v25  ;;  %v10638_v60 = vadd.f32 %v4962_v12, %v12509_v40 }
 0xa87   : > { %v8149_v2 = vmul.f32 -1.442695, %v10605_v16 }
 0xa88   : > { %v8150_v55 = vmul.f32 -1.442695, %v10606_v32  ;;  %v8151_v5 = vmul.f32 -1.442695, %v10638_v60 }
 0xa89   : > { %11129 = vpow2.f32 %v8149_v2 }
 0xa8a   : > { %11131 = vpow2.f32 %v8150_v55 }
 0xa8b   : > { %11133 = vpow2.f32 %v8151_v5  ;;  %v14574_v5 = vld [vmem:[#allocation37_spill] sm:$0xff] }
 0xa8c   : > { %11135 = vtanh.f32 %v10637_v45  ;;  %v14575_v45 = vld [vmem:[#allocation23_spill] sm:$0xff] }
 0xa90   : > { %v11128_v15 = vpop.eup %11127 }
 0xa91   : > { %v13256_v14 = vmul.f32 %v11128_v15, %v11126_v27 }
 0xa93   : > { %14572 = vst [vmem:[#allocation57_spill] sm:$0xff] %v13256_v14  ;;  %v11130_v21 = vpop.eup %11129  ;;  %5091 = vmatmul.mubr.f32.vlgmr.msra.gmra.mrb[50].mxu0 %v13256_v14  ;;  %5162 = vmatmul.mubr.f32.vlgmr.msra.gmra.mrb[40].mxu1 %v13256_v14  ;;  %v14589_v14 = vld [vmem:[#allocation30_spill] sm:$0xff] }
 0xa94   : > { %v11132_v6 = vpop.eup %11131  ;;  %v4996_v57 = vadd.f32 1.0, %v11130_v21  ;;  %9610 = vmatpush1.bf16.msra.mxu0 %v12190_v30  ;;  %9642 = vmatpush1.bf16.msra.mxu1 %v12370_v7  ;;  %v14576_v21 = vld [vmem:[#allocation38_spill] sm:$0xff] }
 0xa95   : > { %v5002_v24 = vadd.f32 1.0, %v11132_v6  ;;  %9612 = vmatprep.subr.bf16.mxu0 %v12192_v44  ;;  %9644 = vmatprep.subr.bf16.mxu1 %v12372_v50  ;;  %v11134_v43 = vpop.eup %11133  ;;  %v14577_v6 = vld [vmem:[#allocation24_spill] sm:$0xff] }
 0xa96   : > { %11137 = vrcp.f32 %v4996_v57  ;;  %5241 = vmatprep.mubr.f32.mxu0 %v14302_v36  ;;  %5312 = vmatprep.mubr.f32.mxu1 %v14302_v36  ;;  %v11136_v16 = vpop.eup %11135  ;;  %v5009_v2 = vadd.f32 1.0, %v11134_v43  ;;  %v14578_v57 = vld [vmem:[#allocation39_spill] sm:$0xff]  ;;  %v14580_v43 = vld [vmem:[#allocation40_spill] sm:$0xff] }
 0xa97   : > { %11139 = vrcp.f32 %v5002_v24  ;;  %v14579_v24 = vld [vmem:[#allocation25_spill] sm:$0xff] }
 0xa98   : > { %9614 = vmatpush1.bf16.msra.mxu0 %v12199_v17  ;;  %9646 = vmatpush1.bf16.msra.mxu1 %v12376_v62  ;;  %11141 = vrcp.f32 %v5009_v2  ;;  %v14585_v2 = vld [vmem:[#allocation28_spill] sm:$0xff] }
 0xa99   : > { %9616 = vmatprep.subr.bf16.mxu0 %v12202_v56  ;;  %9648 = vmatprep.subr.bf16.mxu1 %v12380_v23 }
 0xa9c   : > { %9618 = vmatpush1.bf16.msra.mxu0 %v12209_v3  ;;  %9650 = vmatpush1.bf16.msra.mxu1 %v12383_v13 }
 0xa9d   : > { %9620 = vmatprep.subr.bf16.mxu0 %v12212_v42  ;;  %9652 = vmatprep.subr.bf16.mxu1 %v12386_v53 }
 0xaa0   : > { %v11138_v51 = vpop.eup %11137  ;;  %9622 = vmatpush1.bf16.msra.mxu0 %v12218_v10  ;;  %9654 = vmatpush1.bf16.msra.mxu1 %v12389_v54 }
 0xaa1   : > { %v11140_v12 = vpop.eup %11139  ;;  %v5013_v32 = vmul.f32 %v11138_v51, %v11136_v16  ;;  %9624 = vmatprep.subr.bf16.mxu0 %v12221_v19  ;;  %9656 = vmatprep.subr.bf16.mxu1 %v12392_v58  ;;  %v14581_v16 = vld [vmem:[#allocation26_spill] sm:$0xff]  ;;  %v14582_v51 = vld [vmem:[#allocation41_spill] sm:$0xff] }
 0xaa2   : > { %v5012_v55 = vmul.f32 %v11140_v12, %v13185_v52  ;;  %v11142_v52 = vpop.eup %11141  ;;  %v14583_v12 = vld [vmem:[#allocation27_spill] sm:$0xff] }
 0xaa4   : > { %v13279_v60 = vadd.f32 %v5013_v32, %v5012_v55  ;;  %9626 = vmatpush1.bf16.msra.mxu0 %v12227_v35  ;;  %9658 = vmatpush1.bf16.msra.mxu1 %v12395_v37  ;;  %v14584_v32 = vld [vmem:[#allocation42_spill] sm:$0xff]  ;;  %v14586_v55 = vld [vmem:[#allocation43_spill] sm:$0xff] }
 0xaa5   : > { %9628 = vmatprep.subr.bf16.mxu0 %v14329_v59  ;;  %9660 = vmatprep.subr.bf16.mxu1 %v12398_v28 }
 0xaa6   : > { %11143 = vtanh.f32 %v13279_v60 }
 0xaa8   : > { %9630 = vmatpush1.bf16.msra.mxu0 %v12236_v49  ;;  %9662 = vmatpush1.bf16.msra.mxu1 %v12401_v4 }
 0xaa9   : > { %9632 = vmatprep.subr.bf16.mxu0 %v12239_v18  ;;  %9664 = vmatprep.subr.bf16.mxu1 %v12404_v31 }
 0xaac   : > { %9634 = vmatpush1.bf16.msra.mxu0 %v12250_v39  ;;  %9666 = vmatpush1.bf16.msra.mxu1 %v12407_v38 }
 0xaad   : > { %9636 = vmatprep.subr.bf16.mxu0 %v12252_v41  ;;  %9668 = vmatprep.subr.bf16.mxu1 %v12410_v8 }
 0xab0   : > { %v11144_v27 = vpop.eup %11143  ;;  %9638 = vmatpush1.bf16.msra.mxu0 %v12264_v1  ;;  %9670 = vmatpush1.bf16.msra.mxu1 %v12413_v22 }
 0xab1   : > { %v13296_v15 = vmul.f32 %v11144_v27, %v11142_v52  ;;  %9672 = vmatprep.subr.bf16.mxu0 %v11954_v34  ;;  %9704 = vmatprep.subr.bf16.mxu1 %v12119_v33  ;;  %v14587_v52 = vld [vmem:[#allocation29_spill] sm:$0xff]  ;;  %v14588_v27 = vld [vmem:[#allocation44_spill] sm:$0xff] }
 0xab3   : > { %14573 = vst [vmem:[#allocation58_spill] sm:$0xff] %v13296_v15  ;;  %5242 = vmatmul.mubr.f32.vlgmr.msra.gmra.mrb[22].mxu0 %v13296_v15  ;;  %5313 = vmatmul.mubr.f32.vlgmr.msra.gmra.mrb[66].mxu1 %v13296_v15  ;;  %v14590_v15 = vld [vmem:[#allocation45_spill] sm:$0xff] }
 0xab4   : > { %9674 = vmatpush1.bf16.msra.mxu0 %v12018_v11  ;;  %9706 = vmatpush1.bf16.msra.mxu1 %v12244_v9 }
 0xab5   : > { %9676 = vmatprep.subr.bf16.mxu0 %v14331_v26  ;;  %9708 = vmatprep.subr.bf16.mxu1 %v12247_v20 }
 0xab6   : > { %5444 = vmatprep.mubr.f32.mxu0 %v14302_v36  ;;  %5515 = vmatprep.mubr.f32.mxu1 %v14302_v36 }
 0xab8   : > { %9678 = vmatpush1.bf16.msra.mxu0 %v12035_v29  ;;  %9710 = vmatpush1.bf16.msra.mxu1 %v14574_v5 }
 0xab9   : > { %9680 = vmatprep.subr.bf16.mxu0 %v14575_v45  ;;  %9712 = vmatprep.subr.bf16.mxu1 %v14576_v21 }
 0xabc   : > { %9682 = vmatpush1.bf16.msra.mxu0 %v14577_v6  ;;  %9714 = vmatpush1.bf16.msra.mxu1 %v14578_v57 }
 0xabd   : > { %9684 = vmatprep.subr.bf16.mxu0 %v14579_v24  ;;  %9716 = vmatprep.subr.bf16.mxu1 %v14580_v43  ;;  %v14591_v43 = vld [vmem:[#allocation31_spill] sm:$0xff] }
 0xac0   : > { %9686 = vmatpush1.bf16.msra.mxu0 %v14581_v16  ;;  %9718 = vmatpush1.bf16.msra.mxu1 %v14582_v51  ;;  %v14592_v16 = vld [vmem:[#allocation46_spill] sm:$0xff]  ;;  %v14593_v51 = vld [vmem:[#allocation32_spill] sm:$0xff] }
 0xac1   : > { %9688 = vmatprep.subr.bf16.mxu0 %v14583_v12  ;;  %9720 = vmatprep.subr.bf16.mxu1 %v14584_v32  ;;  %v14594_v12 = vld [vmem:[#allocation47_spill] sm:$0xff]  ;;  %v14595_v32 = vld [vmem:[#allocation33_spill] sm:$0xff] }
 0xac4   : > { %9690 = vmatpush1.bf16.msra.mxu0 %v14585_v2  ;;  %9722 = vmatpush1.bf16.msra.mxu1 %v14586_v55  ;;  %v14596_v2 = vld [vmem:[#allocation48_spill] sm:$0xff]  ;;  %v14597_v55 = vld [vmem:[#allocation34_spill] sm:$0xff] }
 0xac5   : > { %9692 = vmatprep.subr.bf16.mxu0 %v14587_v52  ;;  %9724 = vmatprep.subr.bf16.mxu1 %v14588_v27  ;;  %v14598_v52 = vld [vmem:[#allocation49_spill] sm:$0xff]  ;;  %v14599_v27 = vld [vmem:[#allocation35_spill] sm:$0xff] }
 0xac8   : > { %9694 = vmatpush1.bf16.msra.mxu0 %v14589_v14  ;;  %9726 = vmatpush1.bf16.msra.mxu1 %v14590_v15  ;;  %v14600_v14 = vld [vmem:[#allocation50_spill] sm:$0xff]  ;;  %v14601_v15 = vld [vmem:[#allocation59_spill] sm:$0xff] }
 0xac9   : > { %9696 = vmatprep.subr.bf16.mxu0 %v14591_v43  ;;  %9728 = vmatprep.subr.bf16.mxu1 %v14592_v16  ;;  %v14602_v43 = vld [vmem:[#allocation74_spill] sm:$0xff]  ;;  %v14603_v16 = vld [vmem:[#allocation60_spill] sm:$0xff] }
 0xaca   : > { %v1467_v24 = vadd.f32 %v14602_v43, %v14601_v15 }
 0xacc   : > { %9698 = vmatpush1.bf16.msra.mxu0 %v14593_v51  ;;  %9730 = vmatpush1.bf16.msra.mxu1 %v14594_v12  ;;  %v1468_v51 = vadd.f32 %v14356_v48, %v14603_v16 }
 0xacd   : > { %9700 = vmatprep.subr.bf16.mxu0 %v14595_v32  ;;  %9732 = vmatprep.subr.bf16.mxu1 %v14596_v2 }
 0xad0   : > { %9702 = vmatpush1.bf16.msra.mxu0 %v14597_v55  ;;  %9734 = vmatpush1.bf16.msra.mxu1 %v14598_v52 }
 0xad1   : > { %9736 = vmatprep.subr.bf16.mxu0 %v14599_v27  ;;  %9768 = vmatprep.subr.bf16.mxu1 %v14600_v14 }
 0xb66   : > { %v5092_v57 = vpop.f32.mrb[50].mxu0  ;;  %v5163_v12 = vpop.f32.mrb[40].mxu1 }
 0xb67   : > { %v5168_v6 = vadd.f32 %v5092_v57, %v1467_v24  ;;  %v5094_v32 = vpop.f32.mrb[51].mxu0  ;;  %v5165_v21 = vpop.f32.mrb[41].mxu1  ;;  %v10577_v14 = vadd.f32 %v5163_v12, %v14357_v63 }
 0xb68   : > { %v5169_v2 = vadd.f32 %v5094_v32, %v1468_v51  ;;  %v10578_v27 = vadd.f32 %v5165_v21, %v12491_v47 }
 0xb69   : > { %v8152_v45 = vmul.f32 -1.442695, %v5168_v6 }
 0xb6a   : > { %v8153_v55 = vmul.f32 -1.442695, %v5169_v2  ;;  %v8154_v52 = vmul.f32 -1.442695, %v10578_v27 }
 0xb6b   : > { %11145 = vpow2.f32 %v8152_v45 }
 0xb6c   : > { %11147 = vpow2.f32 %v8153_v55 }
 0xb6d   : > { %11149 = vpow2.f32 %v8154_v52 }
 0xb6e   : > { %11151 = vtanh.f32 %v10577_v14 }
 0xb75   : > { %v11146_v5 = vpop.eup %11145 }
 0xb76   : > { %v11148_v15 = vpop.eup %11147  ;;  %v5326_v43 = vadd.f32 1.0, %v11146_v5 }
 0xb77   : > { %v5332_v16 = vadd.f32 1.0, %v11148_v15  ;;  %v11150_v57 = vpop.eup %11149 }
 0xb78   : > { %11153 = vrcp.f32 %v5326_v43  ;;  %v11152_v24 = vpop.eup %11151  ;;  %v5339_v45 = vadd.f32 1.0, %v11150_v57 }
 0xb79   : > { %11155 = vrcp.f32 %v5332_v16 }
 0xb7a   : > { %11157 = vrcp.f32 %v5339_v45 }
 0xb82   : > { %v11154_v51 = vpop.eup %11153 }
 0xb83   : > { %v11156_v6 = vpop.eup %11155  ;;  %v5343_v32 = vmul.f32 %v11154_v51, %v11152_v24 }
 0xb84   : > { %v5342_v2 = vmul.f32 %v11156_v6, %v13249_v25  ;;  %v11158_v25 = vpop.eup %11157 }
 0xb86   : > { %v13343_v21 = vadd.f32 %v5343_v32, %v5342_v2  ;;  %v5243_v55 = vpop.f32.mrb[22].mxu0  ;;  %v5314_v12 = vpop.f32.mrb[66].mxu1 }
 0xb87   : > { %v10603_v5 = vadd.f32 %v5243_v55, %v12500_v61  ;;  %v5245_v52 = vpop.f32.mrb[23].mxu0  ;;  %v5316_v14 = vpop.f32.mrb[67].mxu1  ;;  %v10635_v51 = vadd.f32 %v5314_v12, %v12507_v0 }
 0xb88   : > { %v10604_v43 = vadd.f32 %v5245_v52, %v12498_v46  ;;  %11159 = vtanh.f32 %v13343_v21  ;;  %v10636_v16 = vadd.f32 %v5316_v14, %v12509_v40 }
 0xb89   : > { %v8155_v27 = vmul.f32 -1.442695, %v10603_v5 }
 0xb8a   : > { %v8156_v15 = vmul.f32 -1.442695, %v10604_v43  ;;  %v8157_v24 = vmul.f32 -1.442695, %v10636_v16 }
 0xb8b   : > { %11161 = vpow2.f32 %v8155_v27 }
 0xb8c   : > { %11163 = vpow2.f32 %v8156_v15 }
 0xb8d   : > { %11165 = vpow2.f32 %v8157_v24  ;;  %v14606_v24 = vld [vmem:[#allocation37_spill] sm:$0xff] }
 0xb8e   : > { %11167 = vtanh.f32 %v10635_v51  ;;  %v14607_v51 = vld [vmem:[#allocation23_spill] sm:$0xff] }
 0xb92   : > { %v11160_v57 = vpop.eup %11159 }
 0xb93   : > { %v13350_v6 = vmul.f32 %v11160_v57, %v11158_v25 }
 0xb95   : > { %14604 = vst [vmem:[#allocation59_spill] sm:$0xff] %v13350_v6  ;;  %v11162_v32 = vpop.eup %11161  ;;  %5445 = vmatmul.mubr.f32.vlgmr.msra.gmra.mrb[52].mxu0 %v13350_v6  ;;  %5516 = vmatmul.mubr.f32.vlgmr.msra.gmra.mrb[42].mxu1 %v13350_v6  ;;  %v14621_v6 = vld [vmem:[#allocation30_spill] sm:$0xff] }
 0xb96   : > { %v11164_v45 = vpop.eup %11163  ;;  %v5350_v2 = vadd.f32 1.0, %v11162_v32  ;;  %9738 = vmatpush1.bf16.msra.mxu0 %v12190_v30  ;;  %9770 = vmatpush1.bf16.msra.mxu1 %v12370_v7  ;;  %v14608_v32 = vld [vmem:[#allocation38_spill] sm:$0xff] }
 0xb97   : > { %v5356_v55 = vadd.f32 1.0, %v11164_v45  ;;  %9740 = vmatprep.subr.bf16.mxu0 %v12192_v44  ;;  %9772 = vmatprep.subr.bf16.mxu1 %v12372_v50  ;;  %v11166_v12 = vpop.eup %11165  ;;  %v14609_v45 = vld [vmem:[#allocation24_spill] sm:$0xff] }
 0xb98   : > { %11169 = vrcp.f32 %v5350_v2  ;;  %5595 = vmatprep.mubr.f32.mxu0 %v14302_v36  ;;  %5666 = vmatprep.mubr.f32.mxu1 %v14302_v36  ;;  %v11168_v5 = vpop.eup %11167  ;;  %v5363_v27 = vadd.f32 1.0, %v11166_v12  ;;  %v14610_v2 = vld [vmem:[#allocation39_spill] sm:$0xff]  ;;  %v14612_v12 = vld [vmem:[#allocation40_spill] sm:$0xff] }
 0xb99   : > { %11171 = vrcp.f32 %v5356_v55  ;;  %v14611_v55 = vld [vmem:[#allocation25_spill] sm:$0xff] }
 0xb9a   : > { %9742 = vmatpush1.bf16.msra.mxu0 %v12199_v17  ;;  %9774 = vmatpush1.bf16.msra.mxu1 %v12376_v62  ;;  %11173 = vrcp.f32 %v5363_v27  ;;  %v14617_v27 = vld [vmem:[#allocation28_spill] sm:$0xff] }
 0xb9b   : > { %9744 = vmatprep.subr.bf16.mxu0 %v12202_v56  ;;  %9776 = vmatprep.subr.bf16.mxu1 %v12380_v23 }
 0xb9e   : > { %9746 = vmatpush1.bf16.msra.mxu0 %v12209_v3  ;;  %9778 = vmatpush1.bf16.msra.mxu1 %v12383_v13 }
 0xb9f   : > { %9748 = vmatprep.subr.bf16.mxu0 %v12212_v42  ;;  %9780 = vmatprep.subr.bf16.mxu1 %v12386_v53 }
 0xba2   : > { %v11170_v52 = vpop.eup %11169  ;;  %9750 = vmatpush1.bf16.msra.mxu0 %v12218_v10  ;;  %9782 = vmatpush1.bf16.msra.mxu1 %v12389_v54 }
 0xba3   : > { %v11172_v14 = vpop.eup %11171  ;;  %v5367_v43 = vmul.f32 %v11170_v52, %v11168_v5  ;;  %9752 = vmatprep.subr.bf16.mxu0 %v12221_v19  ;;  %9784 = vmatprep.subr.bf16.mxu1 %v12392_v58  ;;  %v14613_v5 = vld [vmem:[#allocation26_spill] sm:$0xff]  ;;  %v14614_v52 = vld [vmem:[#allocation41_spill] sm:$0xff] }
 0xba4   : > { %v5366_v15 = vmul.f32 %v11172_v14, %v13279_v60  ;;  %v11174_v60 = vpop.eup %11173  ;;  %v14615_v14 = vld [vmem:[#allocation27_spill] sm:$0xff] }
 0xba6   : > { %v13373_v16 = vadd.f32 %v5367_v43, %v5366_v15  ;;  %9754 = vmatpush1.bf16.msra.mxu0 %v12227_v35  ;;  %9786 = vmatpush1.bf16.msra.mxu1 %v12395_v37  ;;  %v14616_v43 = vld [vmem:[#allocation42_spill] sm:$0xff]  ;;  %v14618_v15 = vld [vmem:[#allocation43_spill] sm:$0xff] }
 0xba7   : > { %9756 = vmatprep.subr.bf16.mxu0 %v14329_v59  ;;  %9788 = vmatprep.subr.bf16.mxu1 %v12398_v28 }
 0xba8   : > { %11175 = vtanh.f32 %v13373_v16 }
 0xbaa   : > { %9758 = vmatpush1.bf16.msra.mxu0 %v12236_v49  ;;  %9790 = vmatpush1.bf16.msra.mxu1 %v12401_v4 }
 0xbab   : > { %9760 = vmatprep.subr.bf16.mxu0 %v12239_v18  ;;  %9792 = vmatprep.subr.bf16.mxu1 %v12404_v31 }
 0xbae   : > { %9762 = vmatpush1.bf16.msra.mxu0 %v12250_v39  ;;  %9794 = vmatpush1.bf16.msra.mxu1 %v12407_v38 }
 0xbaf   : > { %9764 = vmatprep.subr.bf16.mxu0 %v12252_v41  ;;  %9796 = vmatprep.subr.bf16.mxu1 %v12410_v8 }
 0xbb2   : > { %v11176_v25 = vpop.eup %11175  ;;  %9766 = vmatpush1.bf16.msra.mxu0 %v12264_v1  ;;  %9798 = vmatpush1.bf16.msra.mxu1 %v12413_v22 }
 0xbb3   : > { %v13390_v57 = vmul.f32 %v11176_v25, %v11174_v60  ;;  %9800 = vmatprep.subr.bf16.mxu0 %v11954_v34  ;;  %9832 = vmatprep.subr.bf16.mxu1 %v12119_v33  ;;  %v14619_v60 = vld [vmem:[#allocation29_spill] sm:$0xff]  ;;  %v14620_v25 = vld [vmem:[#allocation44_spill] sm:$0xff] }
 0xbb5   : > { %14605 = vst [vmem:[#allocation60_spill] sm:$0xff] %v13390_v57  ;;  %5596 = vmatmul.mubr.f32.vlgmr.msra.gmra.mrb[20].mxu0 %v13390_v57  ;;  %5667 = vmatmul.mubr.f32.vlgmr.msra.gmra.mrb[64].mxu1 %v13390_v57  ;;  %v14622_v57 = vld [vmem:[#allocation45_spill] sm:$0xff] }
 0xbb6   : > { %9802 = vmatpush1.bf16.msra.mxu0 %v12018_v11  ;;  %9834 = vmatpush1.bf16.msra.mxu1 %v12244_v9 }
 0xbb7   : > { %9804 = vmatprep.subr.bf16.mxu0 %v14331_v26  ;;  %9836 = vmatprep.subr.bf16.mxu1 %v12247_v20 }
 0xbb8   : > { %5798 = vmatprep.mubr.f32.mxu0 %v14302_v36  ;;  %5869 = vmatprep.mubr.f32.mxu1 %v14302_v36 }
 0xbba   : > { %9806 = vmatpush1.bf16.msra.mxu0 %v12035_v29  ;;  %9838 = vmatpush1.bf16.msra.mxu1 %v14606_v24 }
 0xbbb   : > { %9808 = vmatprep.subr.bf16.mxu0 %v14607_v51  ;;  %9840 = vmatprep.subr.bf16.mxu1 %v14608_v32 }
 0xbbe   : > { %9810 = vmatpush1.bf16.msra.mxu0 %v14609_v45  ;;  %9842 = vmatpush1.bf16.msra.mxu1 %v14610_v2 }
 0xbbf   : > { %9812 = vmatprep.subr.bf16.mxu0 %v14611_v55  ;;  %9844 = vmatprep.subr.bf16.mxu1 %v14612_v12  ;;  %v14623_v12 = vld [vmem:[#allocation31_spill] sm:$0xff] }
 0xbc2   : > { %9814 = vmatpush1.bf16.msra.mxu0 %v14613_v5  ;;  %9846 = vmatpush1.bf16.msra.mxu1 %v14614_v52  ;;  %v14624_v5 = vld [vmem:[#allocation46_spill] sm:$0xff]  ;;  %v14625_v52 = vld [vmem:[#allocation32_spill] sm:$0xff] }
 0xbc3   : > { %9816 = vmatprep.subr.bf16.mxu0 %v14615_v14  ;;  %9848 = vmatprep.subr.bf16.mxu1 %v14616_v43  ;;  %v14626_v14 = vld [vmem:[#allocation47_spill] sm:$0xff]  ;;  %v14627_v43 = vld [vmem:[#allocation33_spill] sm:$0xff] }
 0xbc6   : > { %9818 = vmatpush1.bf16.msra.mxu0 %v14617_v27  ;;  %9850 = vmatpush1.bf16.msra.mxu1 %v14618_v15  ;;  %v14628_v27 = vld [vmem:[#allocation48_spill] sm:$0xff]  ;;  %v14629_v15 = vld [vmem:[#allocation34_spill] sm:$0xff] }
 0xbc7   : > { %9820 = vmatprep.subr.bf16.mxu0 %v14619_v60  ;;  %9852 = vmatprep.subr.bf16.mxu1 %v14620_v25  ;;  %v14630_v60 = vld [vmem:[#allocation49_spill] sm:$0xff]  ;;  %v14631_v25 = vld [vmem:[#allocation35_spill] sm:$0xff] }
 0xbca   : > { %9822 = vmatpush1.bf16.msra.mxu0 %v14621_v6  ;;  %9854 = vmatpush1.bf16.msra.mxu1 %v14622_v57  ;;  %v14632_v6 = vld [vmem:[#allocation50_spill] sm:$0xff]  ;;  %v14633_v57 = vld [vmem:[#allocation61_spill] sm:$0xff] }
 0xbcb   : > { %9824 = vmatprep.subr.bf16.mxu0 %v14623_v12  ;;  %9856 = vmatprep.subr.bf16.mxu1 %v14624_v5  ;;  %v14634_v12 = vld [vmem:[#allocation74_spill] sm:$0xff] }
 0xbcc   : > { %v1471_v55 = vadd.f32 %v14634_v12, %v14633_v57  ;;  %v14635_v5 = vld [vmem:[#allocation62_spill] sm:$0xff] }
 0xbce   : > { %9826 = vmatpush1.bf16.msra.mxu0 %v14625_v52  ;;  %9858 = vmatpush1.bf16.msra.mxu1 %v14626_v14  ;;  %v1472_v52 = vadd.f32 %v14356_v48, %v14635_v5 }
 0xbcf   : > { %9828 = vmatprep.subr.bf16.mxu0 %v14627_v43  ;;  %9860 = vmatprep.subr.bf16.mxu1 %v14628_v27 }
 0xbd2   : > { %9830 = vmatpush1.bf16.msra.mxu0 %v14629_v15  ;;  %9862 = vmatpush1.bf16.msra.mxu1 %v14630_v60 }
 0xbd3   : > { %9864 = vmatprep.subr.bf16.mxu0 %v14631_v25  ;;  %9896 = vmatprep.subr.bf16.mxu1 %v14632_v6 }
 0xc68   : > { %v5446_v2 = vpop.f32.mrb[52].mxu0  ;;  %v5517_v14 = vpop.f32.mrb[42].mxu1 }
 0xc69   : > { %v5522_v45 = vadd.f32 %v5446_v2, %v1471_v55  ;;  %v5448_v43 = vpop.f32.mrb[53].mxu0  ;;  %v5519_v32 = vpop.f32.mrb[43].mxu1  ;;  %v10579_v6 = vadd.f32 %v5517_v14, %v14357_v63 }
 0xc6a   : > { %v5523_v27 = vadd.f32 %v5448_v43, %v1472_v52  ;;  %v10580_v25 = vadd.f32 %v5519_v32, %v12491_v47 }
 0xc6b   : > { %v8158_v51 = vmul.f32 -1.442695, %v5522_v45 }
 0xc6c   : > { %v8159_v15 = vmul.f32 -1.442695, %v5523_v27  ;;  %v8160_v60 = vmul.f32 -1.442695, %v10580_v25 }
 0xc6d   : > { %11177 = vpow2.f32 %v8158_v51 }
 0xc6e   : > { %11179 = vpow2.f32 %v8159_v15 }
 0xc6f   : > { %11181 = vpow2.f32 %v8160_v60 }
 0xc70   : > { %11183 = vtanh.f32 %v10579_v6 }
 0xc77   : > { %v11178_v24 = vpop.eup %11177 }
 0xc78   : > { %v11180_v57 = vpop.eup %11179  ;;  %v5680_v12 = vadd.f32 1.0, %v11178_v24 }
 0xc79   : > { %v5686_v5 = vadd.f32 1.0, %v11180_v57  ;;  %v11182_v2 = vpop.eup %11181 }
 0xc7a   : > { %11185 = vrcp.f32 %v5680_v12  ;;  %v11184_v55 = vpop.eup %11183  ;;  %v5693_v51 = vadd.f32 1.0, %v11182_v2 }
 0xc7b   : > { %11187 = vrcp.f32 %v5686_v5 }
 0xc7c   : > { %11189 = vrcp.f32 %v5693_v51 }
 0xc84   : > { %v11186_v52 = vpop.eup %11185 }
 0xc85   : > { %v11188_v45 = vpop.eup %11187  ;;  %v5697_v43 = vmul.f32 %v11186_v52, %v11184_v55 }
 0xc86   : > { %v5696_v27 = vmul.f32 %v11188_v45, %v13343_v21  ;;  %v11190_v21 = vpop.eup %11189 }
 0xc88   : > { %v13437_v32 = vadd.f32 %v5697_v43, %v5696_v27  ;;  %v5597_v15 = vpop.f32.mrb[20].mxu0  ;;  %v5668_v14 = vpop.f32.mrb[64].mxu1 }
 0xc89   : > { %v10601_v24 = vadd.f32 %v5597_v15, %v12500_v61  ;;  %v5599_v60 = vpop.f32.mrb[21].mxu0  ;;  %v5670_v6 = vpop.f32.mrb[65].mxu1  ;;  %v10633_v52 = vadd.f32 %v5668_v14, %v12507_v0 }
 0xc8a   : > { %v10602_v12 = vadd.f32 %v5599_v60, %v12498_v46  ;;  %11191 = vtanh.f32 %v13437_v32  ;;  %v10634_v5 = vadd.f32 %v5670_v6, %v12509_v40 }
 0xc8b   : > { %v8161_v25 = vmul.f32 -1.442695, %v10601_v24 }
 0xc8c   : > { %v8162_v57 = vmul.f32 -1.442695, %v10602_v12  ;;  %v8163_v55 = vmul.f32 -1.442695, %v10634_v5 }
 0xc8d   : > { %11193 = vpow2.f32 %v8161_v25 }
 0xc8e   : > { %11195 = vpow2.f32 %v8162_v57 }
 0xc8f   : > { %11197 = vpow2.f32 %v8163_v55  ;;  %v14638_v55 = vld [vmem:[#allocation37_spill] sm:$0xff] }
 0xc90   : > { %11199 = vtanh.f32 %v10633_v52  ;;  %v14639_v52 = vld [vmem:[#allocation23_spill] sm:$0xff] }
 0xc94   : > { %v11192_v2 = vpop.eup %11191 }
 0xc95   : > { %v13444_v45 = vmul.f32 %v11192_v2, %v11190_v21 }
 0xc97   : > { %14636 = vst [vmem:[#allocation61_spill] sm:$0xff] %v13444_v45  ;;  %v11194_v43 = vpop.eup %11193  ;;  %5799 = vmatmul.mubr.f32.vlgmr.msra.gmra.mrb[54].mxu0 %v13444_v45  ;;  %5870 = vmatmul.mubr.f32.vlgmr.msra.gmra.mrb[44].mxu1 %v13444_v45  ;;  %v14653_v45 = vld [vmem:[#allocation30_spill] sm:$0xff] }
 0xc98   : > { %v11196_v51 = vpop.eup %11195  ;;  %v5704_v27 = vadd.f32 1.0, %v11194_v43  ;;  %9866 = vmatpush1.bf16.msra.mxu0 %v12190_v30  ;;  %9898 = vmatpush1.bf16.msra.mxu1 %v12370_v7  ;;  %v14640_v43 = vld [vmem:[#allocation38_spill] sm:$0xff] }
 0xc99   : > { %v5710_v15 = vadd.f32 1.0, %v11196_v51  ;;  %9868 = vmatprep.subr.bf16.mxu0 %v12192_v44  ;;  %9900 = vmatprep.subr.bf16.mxu1 %v12372_v50  ;;  %v11198_v14 = vpop.eup %11197  ;;  %v14641_v51 = vld [vmem:[#allocation24_spill] sm:$0xff] }
 0xc9a   : > { %11201 = vrcp.f32 %v5704_v27  ;;  %5949 = vmatprep.mubr.f32.mxu0 %v14302_v36  ;;  %6020 = vmatprep.mubr.f32.mxu1 %v14302_v36  ;;  %v11200_v24 = vpop.eup %11199  ;;  %v5717_v25 = vadd.f32 1.0, %v11198_v14  ;;  %v14642_v27 = vld [vmem:[#allocation39_spill] sm:$0xff]  ;;  %v14644_v14 = vld [vmem:[#allocation40_spill] sm:$0xff] }
 0xc9b   : > { %11203 = vrcp.f32 %v5710_v15  ;;  %v14643_v15 = vld [vmem:[#allocation25_spill] sm:$0xff] }
 0xc9c   : > { %9870 = vmatpush1.bf16.msra.mxu0 %v12199_v17  ;;  %9902 = vmatpush1.bf16.msra.mxu1 %v12376_v62  ;;  %11205 = vrcp.f32 %v5717_v25  ;;  %v14649_v25 = vld [vmem:[#allocation28_spill] sm:$0xff] }
 0xc9d   : > { %9872 = vmatprep.subr.bf16.mxu0 %v12202_v56  ;;  %9904 = vmatprep.subr.bf16.mxu1 %v12380_v23 }
 0xca0   : > { %9874 = vmatpush1.bf16.msra.mxu0 %v12209_v3  ;;  %9906 = vmatpush1.bf16.msra.mxu1 %v12383_v13 }
 0xca1   : > { %9876 = vmatprep.subr.bf16.mxu0 %v12212_v42  ;;  %9908 = vmatprep.subr.bf16.mxu1 %v12386_v53 }
 0xca4   : > { %v11202_v60 = vpop.eup %11201  ;;  %9878 = vmatpush1.bf16.msra.mxu0 %v12218_v10  ;;  %9910 = vmatpush1.bf16.msra.mxu1 %v12389_v54 }
 0xca5   : > { %v11204_v6 = vpop.eup %11203  ;;  %v5721_v12 = vmul.f32 %v11202_v60, %v11200_v24  ;;  %9880 = vmatprep.subr.bf16.mxu0 %v12221_v19  ;;  %9912 = vmatprep.subr.bf16.mxu1 %v12392_v58  ;;  %v14645_v24 = vld [vmem:[#allocation26_spill] sm:$0xff]  ;;  %v14646_v60 = vld [vmem:[#allocation41_spill] sm:$0xff] }
 0xca6   : > { %v5720_v57 = vmul.f32 %v11204_v6, %v13373_v16  ;;  %v11206_v16 = vpop.eup %11205  ;;  %v14647_v6 = vld [vmem:[#allocation27_spill] sm:$0xff] }
 0xca8   : > { %v13467_v5 = vadd.f32 %v5721_v12, %v5720_v57  ;;  %9882 = vmatpush1.bf16.msra.mxu0 %v12227_v35  ;;  %9914 = vmatpush1.bf16.msra.mxu1 %v12395_v37  ;;  %v14648_v12 = vld [vmem:[#allocation42_spill] sm:$0xff]  ;;  %v14650_v57 = vld [vmem:[#allocation43_spill] sm:$0xff] }
 0xca9   : > { %9884 = vmatprep.subr.bf16.mxu0 %v14329_v59  ;;  %9916 = vmatprep.subr.bf16.mxu1 %v12398_v28 }
 0xcaa   : > { %11207 = vtanh.f32 %v13467_v5 }
 0xcac   : > { %9886 = vmatpush1.bf16.msra.mxu0 %v12236_v49  ;;  %9918 = vmatpush1.bf16.msra.mxu1 %v12401_v4 }
 0xcad   : > { %9888 = vmatprep.subr.bf16.mxu0 %v12239_v18  ;;  %9920 = vmatprep.subr.bf16.mxu1 %v12404_v31 }
 0xcb0   : > { %9890 = vmatpush1.bf16.msra.mxu0 %v12250_v39  ;;  %9922 = vmatpush1.bf16.msra.mxu1 %v12407_v38 }
 0xcb1   : > { %9892 = vmatprep.subr.bf16.mxu0 %v12252_v41  ;;  %9924 = vmatprep.subr.bf16.mxu1 %v12410_v8 }
 0xcb4   : > { %v11208_v21 = vpop.eup %11207  ;;  %9894 = vmatpush1.bf16.msra.mxu0 %v12264_v1  ;;  %9926 = vmatpush1.bf16.msra.mxu1 %v12413_v22 }
 0xcb5   : > { %v13484_v2 = vmul.f32 %v11208_v21, %v11206_v16  ;;  %9928 = vmatprep.subr.bf16.mxu0 %v11954_v34  ;;  %9960 = vmatprep.subr.bf16.mxu1 %v12119_v33  ;;  %v14651_v16 = vld [vmem:[#allocation29_spill] sm:$0xff]  ;;  %v14652_v21 = vld [vmem:[#allocation44_spill] sm:$0xff] }
 0xcb7   : > { %14637 = vst [vmem:[#allocation62_spill] sm:$0xff] %v13484_v2  ;;  %5950 = vmatmul.mubr.f32.vlgmr.msra.gmra.mrb[18].mxu0 %v13484_v2  ;;  %6021 = vmatmul.mubr.f32.vlgmr.msra.gmra.mrb[62].mxu1 %v13484_v2  ;;  %v14654_v2 = vld [vmem:[#allocation45_spill] sm:$0xff] }
 0xcb8   : > { %9930 = vmatpush1.bf16.msra.mxu0 %v12018_v11  ;;  %9962 = vmatpush1.bf16.msra.mxu1 %v12244_v9 }
 0xcb9   : > { %9932 = vmatprep.subr.bf16.mxu0 %v14331_v26  ;;  %9964 = vmatprep.subr.bf16.mxu1 %v12247_v20 }
 0xcba   : > { %6152 = vmatprep.mubr.f32.mxu0 %v14302_v36  ;;  %6223 = vmatprep.mubr.f32.mxu1 %v14302_v36 }
 0xcbc   : > { %9934 = vmatpush1.bf16.msra.mxu0 %v12035_v29  ;;  %9966 = vmatpush1.bf16.msra.mxu1 %v14638_v55 }
 0xcbd   : > { %9936 = vmatprep.subr.bf16.mxu0 %v14639_v52  ;;  %9968 = vmatprep.subr.bf16.mxu1 %v14640_v43 }
 0xcc0   : > { %9938 = vmatpush1.bf16.msra.mxu0 %v14641_v51  ;;  %9970 = vmatpush1.bf16.msra.mxu1 %v14642_v27 }
 0xcc1   : > { %9940 = vmatprep.subr.bf16.mxu0 %v14643_v15  ;;  %9972 = vmatprep.subr.bf16.mxu1 %v14644_v14  ;;  %v14655_v14 = vld [vmem:[#allocation31_spill] sm:$0xff] }
 0xcc4   : > { %9942 = vmatpush1.bf16.msra.mxu0 %v14645_v24  ;;  %9974 = vmatpush1.bf16.msra.mxu1 %v14646_v60  ;;  %v14656_v24 = vld [vmem:[#allocation46_spill] sm:$0xff]  ;;  %v14657_v60 = vld [vmem:[#allocation32_spill] sm:$0xff] }
 0xcc5   : > { %9944 = vmatprep.subr.bf16.mxu0 %v14647_v6  ;;  %9976 = vmatprep.subr.bf16.mxu1 %v14648_v12  ;;  %v14658_v6 = vld [vmem:[#allocation47_spill] sm:$0xff]  ;;  %v14659_v12 = vld [vmem:[#allocation33_spill] sm:$0xff] }
 0xcc8   : > { %9946 = vmatpush1.bf16.msra.mxu0 %v14649_v25  ;;  %9978 = vmatpush1.bf16.msra.mxu1 %v14650_v57  ;;  %v14660_v25 = vld [vmem:[#allocation48_spill] sm:$0xff]  ;;  %v14661_v57 = vld [vmem:[#allocation34_spill] sm:$0xff] }
 0xcc9   : > { %9948 = vmatprep.subr.bf16.mxu0 %v14651_v16  ;;  %9980 = vmatprep.subr.bf16.mxu1 %v14652_v21  ;;  %v14662_v16 = vld [vmem:[#allocation49_spill] sm:$0xff]  ;;  %v14663_v21 = vld [vmem:[#allocation35_spill] sm:$0xff] }
 0xccc   : > { %9950 = vmatpush1.bf16.msra.mxu0 %v14653_v45  ;;  %9982 = vmatpush1.bf16.msra.mxu1 %v14654_v2  ;;  %v14664_v45 = vld [vmem:[#allocation50_spill] sm:$0xff]  ;;  %v14665_v2 = vld [vmem:[#allocation63_spill] sm:$0xff] }
 0xccd   : > { %9952 = vmatprep.subr.bf16.mxu0 %v14655_v14  ;;  %9984 = vmatprep.subr.bf16.mxu1 %v14656_v24  ;;  %v14666_v14 = vld [vmem:[#allocation74_spill] sm:$0xff]  ;;  %v14667_v24 = vld [vmem:[#allocation64_spill] sm:$0xff] }
 0xcce   : > { %v1475_v15 = vadd.f32 %v14666_v14, %v14665_v2 }
 0xcd0   : > { %9954 = vmatpush1.bf16.msra.mxu0 %v14657_v60  ;;  %9986 = vmatpush1.bf16.msra.mxu1 %v14658_v6  ;;  %v1476_v60 = vadd.f32 %v14356_v48, %v14667_v24 }
 0xcd1   : > { %9956 = vmatprep.subr.bf16.mxu0 %v14659_v12  ;;  %9988 = vmatprep.subr.bf16.mxu1 %v14660_v25 }
 0xcd4   : > { %9958 = vmatpush1.bf16.msra.mxu0 %v14661_v57  ;;  %9990 = vmatpush1.bf16.msra.mxu1 %v14662_v16 }
 0xcd5   : > { %9992 = vmatprep.subr.bf16.mxu0 %v14663_v21  ;;  %10024 = vmatprep.subr.bf16.mxu1 %v14664_v45 }
 0xd6a   : > { %v5800_v27 = vpop.f32.mrb[54].mxu0  ;;  %v5871_v6 = vpop.f32.mrb[44].mxu1 }
 0xd6b   : > { %v5876_v51 = vadd.f32 %v5800_v27, %v1475_v15  ;;  %v5802_v12 = vpop.f32.mrb[55].mxu0  ;;  %v5873_v43 = vpop.f32.mrb[45].mxu1  ;;  %v10581_v45 = vadd.f32 %v5871_v6, %v14357_v63 }
 0xd6c   : > { %v5877_v25 = vadd.f32 %v5802_v12, %v1476_v60  ;;  %v10582_v21 = vadd.f32 %v5873_v43, %v12491_v47 }
 0xd6d   : > { %v8164_v52 = vmul.f32 -1.442695, %v5876_v51 }
 0xd6e   : > { %v8165_v57 = vmul.f32 -1.442695, %v5877_v25  ;;  %v8166_v16 = vmul.f32 -1.442695, %v10582_v21 }
 0xd6f   : > { %11209 = vpow2.f32 %v8164_v52 }
 0xd70   : > { %11211 = vpow2.f32 %v8165_v57 }
 0xd71   : > { %11213 = vpow2.f32 %v8166_v16 }
 0xd72   : > { %11215 = vtanh.f32 %v10581_v45 }
 0xd79   : > { %v11210_v55 = vpop.eup %11209 }
 0xd7a   : > { %v11212_v2 = vpop.eup %11211  ;;  %v6034_v14 = vadd.f32 1.0, %v11210_v55 }
 0xd7b   : > { %v6040_v24 = vadd.f32 1.0, %v11212_v2  ;;  %v11214_v27 = vpop.eup %11213 }
 0xd7c   : > { %11217 = vrcp.f32 %v6034_v14  ;;  %v11216_v15 = vpop.eup %11215  ;;  %v6047_v52 = vadd.f32 1.0, %v11214_v27 }
 0xd7d   : > { %11219 = vrcp.f32 %v6040_v24 }
 0xd7e   : > { %11221 = vrcp.f32 %v6047_v52 }
 0xd86   : > { %v11218_v60 = vpop.eup %11217 }
 0xd87   : > { %v11220_v51 = vpop.eup %11219  ;;  %v6051_v12 = vmul.f32 %v11218_v60, %v11216_v15 }
 0xd88   : > { %v6050_v25 = vmul.f32 %v11220_v51, %v13437_v32  ;;  %v11222_v32 = vpop.eup %11221 }
 0xd8a   : > { %v13531_v43 = vadd.f32 %v6051_v12, %v6050_v25  ;;  %v5951_v57 = vpop.f32.mrb[18].mxu0  ;;  %v6022_v6 = vpop.f32.mrb[62].mxu1 }
 0xd8b   : > { %v10599_v55 = vadd.f32 %v5951_v57, %v12500_v61  ;;  %v5953_v16 = vpop.f32.mrb[19].mxu0  ;;  %v6024_v45 = vpop.f32.mrb[63].mxu1  ;;  %v10631_v60 = vadd.f32 %v6022_v6, %v12507_v0 }
 0xd8c   : > { %v10600_v14 = vadd.f32 %v5953_v16, %v12498_v46  ;;  %11223 = vtanh.f32 %v13531_v43  ;;  %v10632_v24 = vadd.f32 %v6024_v45, %v12509_v40 }
 0xd8d   : > { %v8167_v21 = vmul.f32 -1.442695, %v10599_v55 }
 0xd8e   : > { %v8168_v2 = vmul.f32 -1.442695, %v10600_v14  ;;  %v8169_v15 = vmul.f32 -1.442695, %v10632_v24 }
 0xd8f   : > { %11225 = vpow2.f32 %v8167_v21 }
 0xd90   : > { %11227 = vpow2.f32 %v8168_v2 }
 0xd91   : > { %11229 = vpow2.f32 %v8169_v15  ;;  %v14670_v15 = vld [vmem:[#allocation37_spill] sm:$0xff] }
 0xd92   : > { %11231 = vtanh.f32 %v10631_v60  ;;  %v14671_v60 = vld [vmem:[#allocation23_spill] sm:$0xff] }
 0xd96   : > { %v11224_v27 = vpop.eup %11223 }
 0xd97   : > { %v13538_v51 = vmul.f32 %v11224_v27, %v11222_v32 }
 0xd99   : > { %14668 = vst [vmem:[#allocation63_spill] sm:$0xff] %v13538_v51  ;;  %v11226_v12 = vpop.eup %11225  ;;  %6153 = vmatmul.mubr.f32.vlgmr.msra.gmra.mrb[56].mxu0 %v13538_v51  ;;  %6224 = vmatmul.mubr.f32.vlgmr.msra.gmra.mrb[46].mxu1 %v13538_v51  ;;  %v14685_v51 = vld [vmem:[#allocation30_spill] sm:$0xff] }
 0xd9a   : > { %v11228_v52 = vpop.eup %11227  ;;  %v6058_v25 = vadd.f32 1.0, %v11226_v12  ;;  %9994 = vmatpush1.bf16.msra.mxu0 %v12190_v30  ;;  %10026 = vmatpush1.bf16.msra.mxu1 %v12370_v7  ;;  %v14672_v12 = vld [vmem:[#allocation38_spill] sm:$0xff] }
 0xd9b   : > { %v6064_v57 = vadd.f32 1.0, %v11228_v52  ;;  %9996 = vmatprep.subr.bf16.mxu0 %v12192_v44  ;;  %10028 = vmatprep.subr.bf16.mxu1 %v12372_v50  ;;  %v11230_v6 = vpop.eup %11229  ;;  %v14673_v52 = vld [vmem:[#allocation24_spill] sm:$0xff] }
 0xd9c   : > { %11233 = vrcp.f32 %v6058_v25  ;;  %6303 = vmatprep.mubr.f32.mxu0 %v14302_v36  ;;  %6374 = vmatprep.mubr.f32.mxu1 %v14302_v36  ;;  %v11232_v55 = vpop.eup %11231  ;;  %v6071_v21 = vadd.f32 1.0, %v11230_v6  ;;  %v14674_v25 = vld [vmem:[#allocation39_spill] sm:$0xff]  ;;  %v14676_v6 = vld [vmem:[#allocation40_spill] sm:$0xff] }
 0xd9d   : > { %11235 = vrcp.f32 %v6064_v57  ;;  %v14675_v57 = vld [vmem:[#allocation25_spill] sm:$0xff] }
 0xd9e   : > { %9998 = vmatpush1.bf16.msra.mxu0 %v12199_v17  ;;  %10030 = vmatpush1.bf16.msra.mxu1 %v12376_v62  ;;  %11237 = vrcp.f32 %v6071_v21  ;;  %v14681_v21 = vld [vmem:[#allocation28_spill] sm:$0xff] }
 0xd9f   : > { %10000 = vmatprep.subr.bf16.mxu0 %v12202_v56  ;;  %10032 = vmatprep.subr.bf16.mxu1 %v12380_v23 }
 0xda2   : > { %10002 = vmatpush1.bf16.msra.mxu0 %v12209_v3  ;;  %10034 = vmatpush1.bf16.msra.mxu1 %v12383_v13 }
 0xda3   : > { %10004 = vmatprep.subr.bf16.mxu0 %v12212_v42  ;;  %10036 = vmatprep.subr.bf16.mxu1 %v12386_v53 }
 0xda6   : > { %v11234_v16 = vpop.eup %11233  ;;  %10006 = vmatpush1.bf16.msra.mxu0 %v12218_v10  ;;  %10038 = vmatpush1.bf16.msra.mxu1 %v12389_v54 }
 0xda7   : > { %v11236_v45 = vpop.eup %11235  ;;  %v6075_v14 = vmul.f32 %v11234_v16, %v11232_v55  ;;  %10008 = vmatprep.subr.bf16.mxu0 %v12221_v19  ;;  %10040 = vmatprep.subr.bf16.mxu1 %v12392_v58  ;;  %v14677_v55 = vld [vmem:[#allocation26_spill] sm:$0xff]  ;;  %v14678_v16 = vld [vmem:[#allocation41_spill] sm:$0xff] }
 0xda8   : > { %v6074_v2 = vmul.f32 %v11236_v45, %v13467_v5  ;;  %v11238_v5 = vpop.eup %11237  ;;  %v14679_v45 = vld [vmem:[#allocation27_spill] sm:$0xff] }
 0xdaa   : > { %v13561_v24 = vadd.f32 %v6075_v14, %v6074_v2  ;;  %10010 = vmatpush1.bf16.msra.mxu0 %v12227_v35  ;;  %10042 = vmatpush1.bf16.msra.mxu1 %v12395_v37  ;;  %v14680_v14 = vld [vmem:[#allocation42_spill] sm:$0xff]  ;;  %v14682_v2 = vld [vmem:[#allocation43_spill] sm:$0xff] }
 0xdab   : > { %10012 = vmatprep.subr.bf16.mxu0 %v14329_v59  ;;  %10044 = vmatprep.subr.bf16.mxu1 %v12398_v28 }
 0xdac   : > { %11239 = vtanh.f32 %v13561_v24 }
 0xdae   : > { %10014 = vmatpush1.bf16.msra.mxu0 %v12236_v49  ;;  %10046 = vmatpush1.bf16.msra.mxu1 %v12401_v4 }
 0xdaf   : > { %10016 = vmatprep.subr.bf16.mxu0 %v12239_v18  ;;  %10048 = vmatprep.subr.bf16.mxu1 %v12404_v31 }
 0xdb2   : > { %10018 = vmatpush1.bf16.msra.mxu0 %v12250_v39  ;;  %10050 = vmatpush1.bf16.msra.mxu1 %v12407_v38 }
 0xdb3   : > { %10020 = vmatprep.subr.bf16.mxu0 %v12252_v41  ;;  %10052 = vmatprep.subr.bf16.mxu1 %v12410_v8 }
 0xdb6   : > { %v11240_v32 = vpop.eup %11239  ;;  %10022 = vmatpush1.bf16.msra.mxu0 %v12264_v1  ;;  %10054 = vmatpush1.bf16.msra.mxu1 %v12413_v22 }
 0xdb7   : > { %v13578_v27 = vmul.f32 %v11240_v32, %v11238_v5  ;;  %10056 = vmatprep.subr.bf16.mxu0 %v11954_v34  ;;  %10088 = vmatprep.subr.bf16.mxu1 %v12119_v33  ;;  %v14683_v5 = vld [vmem:[#allocation29_spill] sm:$0xff]  ;;  %v14684_v32 = vld [vmem:[#allocation44_spill] sm:$0xff] }
 0xdb9   : > { %14669 = vst [vmem:[#allocation64_spill] sm:$0xff] %v13578_v27  ;;  %6304 = vmatmul.mubr.f32.vlgmr.msra.gmra.mrb[16].mxu0 %v13578_v27  ;;  %6375 = vmatmul.mubr.f32.vlgmr.msra.gmra.mrb[60].mxu1 %v13578_v27  ;;  %v14686_v27 = vld [vmem:[#allocation45_spill] sm:$0xff] }
 0xdba   : > { %10058 = vmatpush1.bf16.msra.mxu0 %v12018_v11  ;;  %10090 = vmatpush1.bf16.msra.mxu1 %v12244_v9 }
 0xdbb   : > { %10060 = vmatprep.subr.bf16.mxu0 %v14331_v26  ;;  %10092 = vmatprep.subr.bf16.mxu1 %v12247_v20 }
 0xdbc   : > { %6506 = vmatprep.mubr.f32.mxu0 %v14302_v36  ;;  %6577 = vmatprep.mubr.f32.mxu1 %v14302_v36 }
 0xdbe   : > { %10062 = vmatpush1.bf16.msra.mxu0 %v12035_v29  ;;  %10094 = vmatpush1.bf16.msra.mxu1 %v14670_v15 }
 0xdbf   : > { %10064 = vmatprep.subr.bf16.mxu0 %v14671_v60  ;;  %10096 = vmatprep.subr.bf16.mxu1 %v14672_v12 }
 0xdc2   : > { %10066 = vmatpush1.bf16.msra.mxu0 %v14673_v52  ;;  %10098 = vmatpush1.bf16.msra.mxu1 %v14674_v25 }
 0xdc3   : > { %10068 = vmatprep.subr.bf16.mxu0 %v14675_v57  ;;  %10100 = vmatprep.subr.bf16.mxu1 %v14676_v6  ;;  %v14687_v6 = vld [vmem:[#allocation31_spill] sm:$0xff] }
 0xdc6   : > { %10070 = vmatpush1.bf16.msra.mxu0 %v14677_v55  ;;  %10102 = vmatpush1.bf16.msra.mxu1 %v14678_v16  ;;  %v14688_v55 = vld [vmem:[#allocation46_spill] sm:$0xff]  ;;  %v14689_v16 = vld [vmem:[#allocation32_spill] sm:$0xff] }
 0xdc7   : > { %10072 = vmatprep.subr.bf16.mxu0 %v14679_v45  ;;  %10104 = vmatprep.subr.bf16.mxu1 %v14680_v14  ;;  %v14690_v45 = vld [vmem:[#allocation47_spill] sm:$0xff]  ;;  %v14691_v14 = vld [vmem:[#allocation33_spill] sm:$0xff] }
 0xdca   : > { %10074 = vmatpush1.bf16.msra.mxu0 %v14681_v21  ;;  %10106 = vmatpush1.bf16.msra.mxu1 %v14682_v2  ;;  %v14692_v21 = vld [vmem:[#allocation48_spill] sm:$0xff]  ;;  %v14693_v2 = vld [vmem:[#allocation34_spill] sm:$0xff] }
 0xdcb   : > { %10076 = vmatprep.subr.bf16.mxu0 %v14683_v5  ;;  %10108 = vmatprep.subr.bf16.mxu1 %v14684_v32  ;;  %v14694_v5 = vld [vmem:[#allocation49_spill] sm:$0xff]  ;;  %v14695_v32 = vld [vmem:[#allocation35_spill] sm:$0xff] }
 0xdce   : > { %10078 = vmatpush1.bf16.msra.mxu0 %v14685_v51  ;;  %10110 = vmatpush1.bf16.msra.mxu1 %v14686_v27  ;;  %v14696_v51 = vld [vmem:[#allocation50_spill] sm:$0xff]  ;;  %v14697_v27 = vld [vmem:[#allocation65_spill] sm:$0xff] }
 0xdcf   : > { %10080 = vmatprep.subr.bf16.mxu0 %v14687_v6  ;;  %10112 = vmatprep.subr.bf16.mxu1 %v14688_v55  ;;  %v14698_v6 = vld [vmem:[#allocation74_spill] sm:$0xff] }
 0xdd0   : > { %v1479_v57 = vadd.f32 %v14698_v6, %v14697_v27  ;;  %v14699_v55 = vld [vmem:[#allocation66_spill] sm:$0xff] }
 0xdd2   : > { %10082 = vmatpush1.bf16.msra.mxu0 %v14689_v16  ;;  %10114 = vmatpush1.bf16.msra.mxu1 %v14690_v45  ;;  %v1480_v16 = vadd.f32 %v14356_v48, %v14699_v55 }
 0xdd3   : > { %10084 = vmatprep.subr.bf16.mxu0 %v14691_v14  ;;  %10116 = vmatprep.subr.bf16.mxu1 %v14692_v21 }
 0xdd6   : > { %10086 = vmatpush1.bf16.msra.mxu0 %v14693_v2  ;;  %10118 = vmatpush1.bf16.msra.mxu1 %v14694_v5 }
 0xdd7   : > { %10120 = vmatprep.subr.bf16.mxu0 %v14695_v32  ;;  %10152 = vmatprep.subr.bf16.mxu1 %v14696_v51 }
 0xe6c   : > { %v6154_v25 = vpop.f32.mrb[56].mxu0  ;;  %v6225_v45 = vpop.f32.mrb[46].mxu1 }
 0xe6d   : > { %v6230_v52 = vadd.f32 %v6154_v25, %v1479_v57  ;;  %v6156_v14 = vpop.f32.mrb[57].mxu0  ;;  %v6227_v12 = vpop.f32.mrb[47].mxu1  ;;  %v10583_v51 = vadd.f32 %v6225_v45, %v14357_v63 }
 0xe6e   : > { %v6231_v21 = vadd.f32 %v6156_v14, %v1480_v16  ;;  %v10584_v32 = vadd.f32 %v6227_v12, %v12491_v47 }
 0xe6f   : > { %v8170_v60 = vmul.f32 -1.442695, %v6230_v52 }
 0xe70   : > { %v8171_v2 = vmul.f32 -1.442695, %v6231_v21  ;;  %v8172_v5 = vmul.f32 -1.442695, %v10584_v32 }
 0xe71   : > { %11241 = vpow2.f32 %v8170_v60 }
 0xe72   : > { %11243 = vpow2.f32 %v8171_v2 }
 0xe73   : > { %11245 = vpow2.f32 %v8172_v5 }
 0xe74   : > { %11247 = vtanh.f32 %v10583_v51 }
 0xe7b   : > { %v11242_v15 = vpop.eup %11241 }
 0xe7c   : > { %v11244_v27 = vpop.eup %11243  ;;  %v6388_v6 = vadd.f32 1.0, %v11242_v15 }
 0xe7d   : > { %v6394_v55 = vadd.f32 1.0, %v11244_v27  ;;  %v11246_v25 = vpop.eup %11245 }
 0xe7e   : > { %11249 = vrcp.f32 %v6388_v6  ;;  %v11248_v57 = vpop.eup %11247  ;;  %v6401_v60 = vadd.f32 1.0, %v11246_v25 }
 0xe7f   : > { %11251 = vrcp.f32 %v6394_v55 }
 0xe80   : > { %11253 = vrcp.f32 %v6401_v60 }
 0xe88   : > { %v11250_v16 = vpop.eup %11249 }
 0xe89   : > { %v11252_v52 = vpop.eup %11251  ;;  %v6405_v14 = vmul.f32 %v11250_v16, %v11248_v57 }
 0xe8a   : > { %v6404_v21 = vmul.f32 %v11252_v52, %v13531_v43  ;;  %v11254_v43 = vpop.eup %11253 }
 0xe8c   : > { %v13625_v12 = vadd.f32 %v6405_v14, %v6404_v21  ;;  %v6305_v2 = vpop.f32.mrb[16].mxu0  ;;  %v6376_v45 = vpop.f32.mrb[60].mxu1 }
 0xe8d   : > { %v10597_v15 = vadd.f32 %v6305_v2, %v12500_v61  ;;  %v6307_v5 = vpop.f32.mrb[17].mxu0  ;;  %v6378_v51 = vpop.f32.mrb[61].mxu1  ;;  %v10629_v16 = vadd.f32 %v6376_v45, %v12507_v0 }
 0xe8e   : > { %v10598_v6 = vadd.f32 %v6307_v5, %v12498_v46  ;;  %11255 = vtanh.f32 %v13625_v12  ;;  %v10630_v55 = vadd.f32 %v6378_v51, %v12509_v40 }
 0xe8f   : > { %v8173_v32 = vmul.f32 -1.442695, %v10597_v15 }
 0xe90   : > { %v8174_v27 = vmul.f32 -1.442695, %v10598_v6  ;;  %v8175_v57 = vmul.f32 -1.442695, %v10630_v55 }
 0xe91   : > { %11257 = vpow2.f32 %v8173_v32 }
 0xe92   : > { %11259 = vpow2.f32 %v8174_v27 }
 0xe93   : > { %11261 = vpow2.f32 %v8175_v57  ;;  %v14702_v57 = vld [vmem:[#allocation37_spill] sm:$0xff] }
 0xe94   : > { %11263 = vtanh.f32 %v10629_v16  ;;  %v14703_v16 = vld [vmem:[#allocation23_spill] sm:$0xff] }
 0xe98   : > { %v11256_v25 = vpop.eup %11255 }
 0xe99   : > { %v13632_v52 = vmul.f32 %v11256_v25, %v11254_v43 }
 0xe9b   : > { %14700 = vst [vmem:[#allocation65_spill] sm:$0xff] %v13632_v52  ;;  %v11258_v14 = vpop.eup %11257  ;;  %6507 = vmatmul.mubr.f32.vlgmr.msra.gmra.mrb[58].mxu0 %v13632_v52  ;;  %6578 = vmatmul.mubr.f32.vlgmr.msra.gmra.mrb[48].mxu1 %v13632_v52  ;;  %v14717_v52 = vld [vmem:[#allocation30_spill] sm:$0xff] }
 0xe9c   : > { %v11260_v60 = vpop.eup %11259  ;;  %v6412_v21 = vadd.f32 1.0, %v11258_v14  ;;  %10122 = vmatpush1.bf16.msra.mxu0 %v12190_v30  ;;  %10154 = vmatpush1.bf16.msra.mxu1 %v12370_v7  ;;  %v14704_v14 = vld [vmem:[#allocation38_spill] sm:$0xff] }
 0xe9d   : > { %v6418_v2 = vadd.f32 1.0, %v11260_v60  ;;  %10124 = vmatprep.subr.bf16.mxu0 %v12192_v44  ;;  %10156 = vmatprep.subr.bf16.mxu1 %v12372_v50  ;;  %v11262_v45 = vpop.eup %11261  ;;  %v14705_v60 = vld [vmem:[#allocation24_spill] sm:$0xff] }
 0xe9e   : > { %11265 = vrcp.f32 %v6412_v21  ;;  %6657 = vmatprep.mubr.f32.mxu0 %v14302_v36  ;;  %6728 = vmatprep.mubr.f32.mxu1 %v14302_v36  ;;  %v11264_v15 = vpop.eup %11263  ;;  %v6425_v32 = vadd.f32 1.0, %v11262_v45  ;;  %v14706_v21 = vld [vmem:[#allocation39_spill] sm:$0xff]  ;;  %v14708_v45 = vld [vmem:[#allocation40_spill] sm:$0xff] }
 0xe9f   : > { %11267 = vrcp.f32 %v6418_v2  ;;  %v14707_v2 = vld [vmem:[#allocation25_spill] sm:$0xff] }
 0xea0   : > { %10126 = vmatpush1.bf16.msra.mxu0 %v12199_v17  ;;  %10158 = vmatpush1.bf16.msra.mxu1 %v12376_v62  ;;  %11269 = vrcp.f32 %v6425_v32  ;;  %v14713_v32 = vld [vmem:[#allocation28_spill] sm:$0xff] }
 0xea1   : > { %10128 = vmatprep.subr.bf16.mxu0 %v12202_v56  ;;  %10160 = vmatprep.subr.bf16.mxu1 %v12380_v23 }
 0xea4   : > { %10130 = vmatpush1.bf16.msra.mxu0 %v12209_v3  ;;  %10162 = vmatpush1.bf16.msra.mxu1 %v12383_v13 }
 0xea5   : > { %10132 = vmatprep.subr.bf16.mxu0 %v12212_v42  ;;  %10164 = vmatprep.subr.bf16.mxu1 %v12386_v53 }
 0xea8   : > { %v11266_v5 = vpop.eup %11265  ;;  %10134 = vmatpush1.bf16.msra.mxu0 %v12218_v10  ;;  %10166 = vmatpush1.bf16.msra.mxu1 %v12389_v54 }
 0xea9   : > { %v11268_v51 = vpop.eup %11267  ;;  %v6429_v6 = vmul.f32 %v11266_v5, %v11264_v15  ;;  %10136 = vmatprep.subr.bf16.mxu0 %v12221_v19  ;;  %10168 = vmatprep.subr.bf16.mxu1 %v12392_v58  ;;  %v14709_v15 = vld [vmem:[#allocation26_spill] sm:$0xff]  ;;  %v14710_v5 = vld [vmem:[#allocation41_spill] sm:$0xff] }
 0xeaa   : > { %v6428_v27 = vmul.f32 %v11268_v51, %v13561_v24  ;;  %v11270_v24 = vpop.eup %11269  ;;  %v14711_v51 = vld [vmem:[#allocation27_spill] sm:$0xff] }
 0xeac   : > { %v13655_v55 = vadd.f32 %v6429_v6, %v6428_v27  ;;  %10138 = vmatpush1.bf16.msra.mxu0 %v12227_v35  ;;  %10170 = vmatpush1.bf16.msra.mxu1 %v12395_v37  ;;  %v14712_v6 = vld [vmem:[#allocation42_spill] sm:$0xff]  ;;  %v14714_v27 = vld [vmem:[#allocation43_spill] sm:$0xff] }
 0xead   : > { %10140 = vmatprep.subr.bf16.mxu0 %v14329_v59  ;;  %10172 = vmatprep.subr.bf16.mxu1 %v12398_v28 }
 0xeae   : > { %11271 = vtanh.f32 %v13655_v55 }
 0xeb0   : > { %10142 = vmatpush1.bf16.msra.mxu0 %v12236_v49  ;;  %10174 = vmatpush1.bf16.msra.mxu1 %v12401_v4 }
 0xeb1   : > { %10144 = vmatprep.subr.bf16.mxu0 %v12239_v18  ;;  %10176 = vmatprep.subr.bf16.mxu1 %v12404_v31 }
 0xeb4   : > { %10146 = vmatpush1.bf16.msra.mxu0 %v12250_v39  ;;  %10178 = vmatpush1.bf16.msra.mxu1 %v12407_v38 }
 0xeb5   : > { %10148 = vmatprep.subr.bf16.mxu0 %v12252_v41  ;;  %10180 = vmatprep.subr.bf16.mxu1 %v12410_v8 }
 0xeb8   : > { %v11272_v43 = vpop.eup %11271  ;;  %10150 = vmatpush1.bf16.msra.mxu0 %v12264_v1  ;;  %10182 = vmatpush1.bf16.msra.mxu1 %v12413_v22 }
 0xeb9   : > { %v13672_v25 = vmul.f32 %v11272_v43, %v11270_v24  ;;  %10184 = vmatprep.subr.bf16.mxu0 %v11954_v34  ;;  %10216 = vmatprep.subr.bf16.mxu1 %v12119_v33  ;;  %v14715_v24 = vld [vmem:[#allocation29_spill] sm:$0xff]  ;;  %v14716_v43 = vld [vmem:[#allocation44_spill] sm:$0xff] }
 0xebb   : > { %14701 = vst [vmem:[#allocation66_spill] sm:$0xff] %v13672_v25  ;;  %6658 = vmatmul.mubr.f32.vlgmr.msra.gmra.mrb[14].mxu0 %v13672_v25  ;;  %6729 = vmatmul.mubr.f32.vlgmr.msra.gmra.mrb[58].mxu1 %v13672_v25  ;;  %v14718_v25 = vld [vmem:[#allocation45_spill] sm:$0xff] }
 0xebc   : > { %10186 = vmatpush1.bf16.msra.mxu0 %v12018_v11  ;;  %10218 = vmatpush1.bf16.msra.mxu1 %v12244_v9 }
 0xebd   : > { %10188 = vmatprep.subr.bf16.mxu0 %v14331_v26  ;;  %10220 = vmatprep.subr.bf16.mxu1 %v12247_v20 }
 0xebe   : > { %6860 = vmatprep.mubr.f32.mxu0 %v14302_v36  ;;  %6931 = vmatprep.mubr.f32.mxu1 %v14302_v36 }
 0xec0   : > { %10190 = vmatpush1.bf16.msra.mxu0 %v12035_v29  ;;  %10222 = vmatpush1.bf16.msra.mxu1 %v14702_v57 }
 0xec1   : > { %10192 = vmatprep.subr.bf16.mxu0 %v14703_v16  ;;  %10224 = vmatprep.subr.bf16.mxu1 %v14704_v14 }
 0xec4   : > { %10194 = vmatpush1.bf16.msra.mxu0 %v14705_v60  ;;  %10226 = vmatpush1.bf16.msra.mxu1 %v14706_v21 }
 0xec5   : > { %10196 = vmatprep.subr.bf16.mxu0 %v14707_v2  ;;  %10228 = vmatprep.subr.bf16.mxu1 %v14708_v45  ;;  %v14719_v45 = vld [vmem:[#allocation31_spill] sm:$0xff] }
 0xec8   : > { %10198 = vmatpush1.bf16.msra.mxu0 %v14709_v15  ;;  %10230 = vmatpush1.bf16.msra.mxu1 %v14710_v5  ;;  %v14720_v15 = vld [vmem:[#allocation46_spill] sm:$0xff]  ;;  %v14721_v5 = vld [vmem:[#allocation32_spill] sm:$0xff] }
 0xec9   : > { %10200 = vmatprep.subr.bf16.mxu0 %v14711_v51  ;;  %10232 = vmatprep.subr.bf16.mxu1 %v14712_v6  ;;  %v14722_v51 = vld [vmem:[#allocation47_spill] sm:$0xff]  ;;  %v14723_v6 = vld [vmem:[#allocation33_spill] sm:$0xff] }
 0xecc   : > { %10202 = vmatpush1.bf16.msra.mxu0 %v14713_v32  ;;  %10234 = vmatpush1.bf16.msra.mxu1 %v14714_v27  ;;  %v14724_v32 = vld [vmem:[#allocation48_spill] sm:$0xff]  ;;  %v14725_v27 = vld [vmem:[#allocation34_spill] sm:$0xff] }
 0xecd   : > { %10204 = vmatprep.subr.bf16.mxu0 %v14715_v24  ;;  %10236 = vmatprep.subr.bf16.mxu1 %v14716_v43  ;;  %v14726_v24 = vld [vmem:[#allocation49_spill] sm:$0xff]  ;;  %v14727_v43 = vld [vmem:[#allocation35_spill] sm:$0xff] }
 0xed0   : > { %10206 = vmatpush1.bf16.msra.mxu0 %v14717_v52  ;;  %10238 = vmatpush1.bf16.msra.mxu1 %v14718_v25  ;;  %v14728_v52 = vld [vmem:[#allocation50_spill] sm:$0xff]  ;;  %v14729_v25 = vld [vmem:[#allocation67_spill] sm:$0xff] }
 0xed1   : > { %10208 = vmatprep.subr.bf16.mxu0 %v14719_v45  ;;  %10240 = vmatprep.subr.bf16.mxu1 %v14720_v15  ;;  %v14730_v45 = vld [vmem:[#allocation74_spill] sm:$0xff]  ;;  %v14731_v15 = vld [vmem:[#allocation68_spill] sm:$0xff] }
 0xed2   : > { %v1483_v2 = vadd.f32 %v14730_v45, %v14729_v25 }
 0xed4   : > { %10210 = vmatpush1.bf16.msra.mxu0 %v14721_v5  ;;  %10242 = vmatpush1.bf16.msra.mxu1 %v14722_v51  ;;  %v1484_v5 = vadd.f32 %v14356_v48, %v14731_v15 }
 0xed5   : > { %10212 = vmatprep.subr.bf16.mxu0 %v14723_v6  ;;  %10244 = vmatprep.subr.bf16.mxu1 %v14724_v32 }
 0xed8   : > { %10214 = vmatpush1.bf16.msra.mxu0 %v14725_v27  ;;  %10246 = vmatpush1.bf16.msra.mxu1 %v14726_v24 }
 0xed9   : > { %10248 = vmatprep.subr.bf16.mxu0 %v14727_v43  ;;  %10280 = vmatprep.subr.bf16.mxu1 %v14728_v52 }
 0xf6e   : > { %v6508_v21 = vpop.f32.mrb[58].mxu0  ;;  %v6579_v51 = vpop.f32.mrb[48].mxu1 }
 0xf6f   : > { %v6584_v60 = vadd.f32 %v6508_v21, %v1483_v2  ;;  %v6510_v6 = vpop.f32.mrb[59].mxu0  ;;  %v6581_v14 = vpop.f32.mrb[49].mxu1  ;;  %v10585_v52 = vadd.f32 %v6579_v51, %v14357_v63 }
 0xf70   : > { %v6585_v32 = vadd.f32 %v6510_v6, %v1484_v5  ;;  %v10586_v43 = vadd.f32 %v6581_v14, %v12491_v47 }
 0xf71   : > { %v8176_v16 = vmul.f32 -1.442695, %v6584_v60 }
 0xf72   : > { %v8177_v27 = vmul.f32 -1.442695, %v6585_v32  ;;  %v8178_v24 = vmul.f32 -1.442695, %v10586_v43 }
 0xf73   : > { %11273 = vpow2.f32 %v8176_v16 }
 0xf74   : > { %11275 = vpow2.f32 %v8177_v27 }
 0xf75   : > { %11277 = vpow2.f32 %v8178_v24 }
 0xf76   : > { %11279 = vtanh.f32 %v10585_v52 }
 0xf7d   : > { %v11274_v57 = vpop.eup %11273 }
 0xf7e   : > { %v11276_v25 = vpop.eup %11275  ;;  %v6742_v45 = vadd.f32 1.0, %v11274_v57 }
 0xf7f   : > { %v6748_v15 = vadd.f32 1.0, %v11276_v25  ;;  %v11278_v21 = vpop.eup %11277 }
 0xf80   : > { %11281 = vrcp.f32 %v6742_v45  ;;  %v11280_v2 = vpop.eup %11279  ;;  %v6755_v16 = vadd.f32 1.0, %v11278_v21 }
 0xf81   : > { %11283 = vrcp.f32 %v6748_v15 }
 0xf82   : > { %11285 = vrcp.f32 %v6755_v16 }
 0xf8a   : > { %v11282_v5 = vpop.eup %11281 }
 0xf8b   : > { %v11284_v60 = vpop.eup %11283  ;;  %v6759_v6 = vmul.f32 %v11282_v5, %v11280_v2 }
 0xf8c   : > { %v6758_v32 = vmul.f32 %v11284_v60, %v13625_v12  ;;  %v11286_v12 = vpop.eup %11285 }
 0xf8e   : > { %v13719_v14 = vadd.f32 %v6759_v6, %v6758_v32  ;;  %v6659_v27 = vpop.f32.mrb[14].mxu0  ;;  %v6730_v51 = vpop.f32.mrb[58].mxu1 }
 0xf8f   : > { %v10595_v57 = vadd.f32 %v6659_v27, %v12500_v61  ;;  %v6661_v24 = vpop.f32.mrb[15].mxu0  ;;  %v6732_v52 = vpop.f32.mrb[59].mxu1  ;;  %v10627_v5 = vadd.f32 %v6730_v51, %v12507_v0 }
 0xf90   : > { %v10596_v45 = vadd.f32 %v6661_v24, %v12498_v46  ;;  %11287 = vtanh.f32 %v13719_v14  ;;  %v10628_v15 = vadd.f32 %v6732_v52, %v12509_v40 }
 0xf91   : > { %v8179_v43 = vmul.f32 -1.442695, %v10595_v57 }
 0xf92   : > { %v8180_v25 = vmul.f32 -1.442695, %v10596_v45  ;;  %v8181_v2 = vmul.f32 -1.442695, %v10628_v15 }
 0xf93   : > { %11289 = vpow2.f32 %v8179_v43 }
 0xf94   : > { %11291 = vpow2.f32 %v8180_v25 }
 0xf95   : > { %11293 = vpow2.f32 %v8181_v2  ;;  %v14734_v2 = vld [vmem:[#allocation38_spill] sm:$0xff] }
 0xf96   : > { %11295 = vtanh.f32 %v10627_v5  ;;  %v14735_v5 = vld [vmem:[#allocation24_spill] sm:$0xff] }
 0xf9a   : > { %v11288_v21 = vpop.eup %11287 }
 0xf9b   : > { %v13726_v60 = vmul.f32 %v11288_v21, %v11286_v12 }
 0xf9d   : > { %v11290_v6 = vpop.eup %11289  ;;  %6861 = vmatmul.mubr.f32.vlgmr.msra.gmra.mrb[60].mxu0 %v13726_v60  ;;  %6932 = vmatmul.mubr.f32.vlgmr.msra.gmra.mrb[50].mxu1 %v13726_v60 }
 0xf9e   : > { %v11292_v16 = vpop.eup %11291  ;;  %v6766_v32 = vadd.f32 1.0, %v11290_v6  ;;  %10250 = vmatpush1.bf16.msra.mxu0 %v12190_v30  ;;  %10282 = vmatpush1.bf16.msra.mxu1 %v12370_v7  ;;  %v14740_v6 = vld [vmem:[#allocation41_spill] sm:$0xff] }
 0xf9f   : > { %v6772_v27 = vadd.f32 1.0, %v11292_v16  ;;  %10252 = vmatprep.subr.bf16.mxu0 %v12192_v44  ;;  %10284 = vmatprep.subr.bf16.mxu1 %v12372_v50  ;;  %v11294_v51 = vpop.eup %11293  ;;  %v14741_v16 = vld [vmem:[#allocation27_spill] sm:$0xff] }
 0xfa0   : > { %11297 = vrcp.f32 %v6766_v32  ;;  %7011 = vmatprep.mubr.f32.mxu0 %v14302_v36  ;;  %7082 = vmatprep.mubr.f32.mxu1 %v14302_v36  ;;  %v11296_v57 = vpop.eup %11295  ;;  %v6779_v43 = vadd.f32 1.0, %v11294_v51  ;;  %v14743_v32 = vld [vmem:[#allocation28_spill] sm:$0xff]  ;;  %v14745_v51 = vld [vmem:[#allocation29_spill] sm:$0xff] }
 0xfa1   : > { %11299 = vrcp.f32 %v6772_v27  ;;  %v14744_v27 = vld [vmem:[#allocation43_spill] sm:$0xff] }
 0xfa2   : > { %10254 = vmatpush1.bf16.msra.mxu0 %v12199_v17  ;;  %10286 = vmatpush1.bf16.msra.mxu1 %v12376_v62  ;;  %11301 = vrcp.f32 %v6779_v43  ;;  %v14750_v43 = vld [vmem:[#allocation46_spill] sm:$0xff] }
 0xfa3   : > { %10256 = vmatprep.subr.bf16.mxu0 %v12202_v56  ;;  %10288 = vmatprep.subr.bf16.mxu1 %v12380_v23 }
 0xfa6   : > { %10258 = vmatpush1.bf16.msra.mxu0 %v12209_v3  ;;  %10290 = vmatpush1.bf16.msra.mxu1 %v12383_v13 }
 0xfa7   : > { %10260 = vmatprep.subr.bf16.mxu0 %v12212_v42  ;;  %10292 = vmatprep.subr.bf16.mxu1 %v12386_v53 }
 0xfaa   : > { %v11298_v24 = vpop.eup %11297  ;;  %10262 = vmatpush1.bf16.msra.mxu0 %v12218_v10  ;;  %10294 = vmatpush1.bf16.msra.mxu1 %v12389_v54 }
 0xfab   : > { %v11300_v52 = vpop.eup %11299  ;;  %v6783_v45 = vmul.f32 %v11298_v24, %v11296_v57  ;;  %10264 = vmatprep.subr.bf16.mxu0 %v12221_v19  ;;  %10296 = vmatprep.subr.bf16.mxu1 %v12392_v58  ;;  %v14746_v57 = vld [vmem:[#allocation44_spill] sm:$0xff]  ;;  %v14747_v24 = vld [vmem:[#allocation30_spill] sm:$0xff] }
 0xfac   : > { %v6782_v25 = vmul.f32 %v11300_v52, %v13655_v55  ;;  %v11302_v55 = vpop.eup %11301  ;;  %v14748_v52 = vld [vmem:[#allocation45_spill] sm:$0xff] }
 0xfae   : > { %v13749_v15 = vadd.f32 %v6783_v45, %v6782_v25  ;;  %10266 = vmatpush1.bf16.msra.mxu0 %v12227_v35  ;;  %10298 = vmatpush1.bf16.msra.mxu1 %v12395_v37  ;;  %v14749_v45 = vld [vmem:[#allocation31_spill] sm:$0xff]  ;;  %v14751_v25 = vld [vmem:[#allocation32_spill] sm:$0xff] }
 0xfaf   : > { %10268 = vmatprep.subr.bf16.mxu0 %v14329_v59  ;;  %10300 = vmatprep.subr.bf16.mxu1 %v12398_v28 }
 0xfb0   : > { %11303 = vtanh.f32 %v13749_v15 }
 0xfb2   : > { %10270 = vmatpush1.bf16.msra.mxu0 %v12236_v49  ;;  %10302 = vmatpush1.bf16.msra.mxu1 %v12401_v4 }
 0xfb3   : > { %10272 = vmatprep.subr.bf16.mxu0 %v12239_v18  ;;  %10304 = vmatprep.subr.bf16.mxu1 %v12404_v31 }
 0xfb6   : > { %10274 = vmatpush1.bf16.msra.mxu0 %v12250_v39  ;;  %10306 = vmatpush1.bf16.msra.mxu1 %v12407_v38 }
 0xfb7   : > { %10276 = vmatprep.subr.bf16.mxu0 %v12252_v41  ;;  %10308 = vmatprep.subr.bf16.mxu1 %v12410_v8 }
 0xfba   : > { %v11304_v12 = vpop.eup %11303  ;;  %10278 = vmatpush1.bf16.msra.mxu0 %v12264_v1  ;;  %10310 = vmatpush1.bf16.msra.mxu1 %v12413_v22 }
 0xfbb   : > { %v13766_v21 = vmul.f32 %v11304_v12, %v11302_v55  ;;  %10312 = vmatprep.subr.bf16.mxu0 %v11954_v34  ;;  %10344 = vmatprep.subr.bf16.mxu1 %v12119_v33  ;;  %v14732_v34 = vld [vmem:[#allocation37_spill] sm:$0xff]  ;;  %v14733_v33 = vld [vmem:[#allocation23_spill] sm:$0xff] }
 0xfbc   : > { %v14752_v55 = vld [vmem:[#allocation47_spill] sm:$0xff]  ;;  %v14753_v12 = vld [vmem:[#allocation33_spill] sm:$0xff] }
 0xfbd   : > { %7012 = vmatmul.mubr.f32.vlgmr.msra.gmra.mrb[12].mxu0 %v13766_v21  ;;  %7083 = vmatmul.mubr.f32.vlgmr.msra.gmra.mrb[56].mxu1 %v13766_v21 }
 0xfbe   : > { %10314 = vmatpush1.bf16.msra.mxu0 %v12018_v11  ;;  %10346 = vmatpush1.bf16.msra.mxu1 %v12244_v9  ;;  %v14736_v11 = vld [vmem:[#allocation39_spill] sm:$0xff]  ;;  %v14737_v9 = vld [vmem:[#allocation25_spill] sm:$0xff] }
 0xfbf   : > { %10316 = vmatprep.subr.bf16.mxu0 %v14331_v26  ;;  %10348 = vmatprep.subr.bf16.mxu1 %v12247_v20  ;;  %v14738_v26 = vld [vmem:[#allocation40_spill] sm:$0xff]  ;;  %v14739_v20 = vld [vmem:[#allocation26_spill] sm:$0xff] }
 0xfc0   : > { %7214 = vmatprep.mubr.f32.mxu0 %v14302_v36  ;;  %7285 = vmatprep.mubr.f32.mxu1 %v14302_v36 }
 0xfc2   : > { %10318 = vmatpush1.bf16.msra.mxu0 %v12035_v29  ;;  %10350 = vmatpush1.bf16.msra.mxu1 %v14732_v34  ;;  %v14742_v29 = vld [vmem:[#allocation42_spill] sm:$0xff]  ;;  %v14754_v34 = vld [vmem:[#allocation48_spill] sm:$0xff] }
 0xfc3   : > { %10320 = vmatprep.subr.bf16.mxu0 %v14733_v33  ;;  %10352 = vmatprep.subr.bf16.mxu1 %v14734_v2  ;;  %v14755_v33 = vld [vmem:[#allocation34_spill] sm:$0xff]  ;;  %v14756_v2 = vld [vmem:[#allocation49_spill] sm:$0xff] }
 0xfc6   : > { %10322 = vmatpush1.bf16.msra.mxu0 %v14735_v5  ;;  %10354 = vmatpush1.bf16.msra.mxu1 %v14736_v11  ;;  %v14757_v5 = vld [vmem:[#allocation35_spill] sm:$0xff]  ;;  %v14758_v11 = vld [vmem:[#allocation50_spill] sm:$0xff] }
 0xfc7   : > { %10324 = vmatprep.subr.bf16.mxu0 %v14737_v9  ;;  %10356 = vmatprep.subr.bf16.mxu1 %v14738_v26  ;;  %v14759_v9 = vld [vmem:[#allocation69_spill] sm:$0xff]  ;;  %v14760_v26 = vld [vmem:[#allocation74_spill] sm:$0xff] }
 0xfca   : > { %10326 = vmatpush1.bf16.msra.mxu0 %v14739_v20  ;;  %10358 = vmatpush1.bf16.msra.mxu1 %v14740_v6  ;;  %v1487_v20 = vadd.f32 %v14760_v26, %v14759_v9  ;;  %v14761_v6 = vld [vmem:[#allocation70_spill] sm:$0xff] }
 0xfcb   : > { %10328 = vmatprep.subr.bf16.mxu0 %v14741_v16  ;;  %10360 = vmatprep.subr.bf16.mxu1 %v14742_v29  ;;  %v1488_v16 = vadd.f32 %v14356_v48, %v14761_v6 }
 0xfce   : > { %10330 = vmatpush1.bf16.msra.mxu0 %v14743_v32  ;;  %10362 = vmatpush1.bf16.msra.mxu1 %v14744_v27 }
 0xfcf   : > { %10332 = vmatprep.subr.bf16.mxu0 %v14745_v51  ;;  %10364 = vmatprep.subr.bf16.mxu1 %v14746_v57 }
 0xfd2   : > { %10334 = vmatpush1.bf16.msra.mxu0 %v14747_v24  ;;  %10366 = vmatpush1.bf16.msra.mxu1 %v14748_v52 }
 0xfd3   : > { %10336 = vmatprep.subr.bf16.mxu0 %v14749_v45  ;;  %10368 = vmatprep.subr.bf16.mxu1 %v14750_v43 }
 0xfd6   : > { %10338 = vmatpush1.bf16.msra.mxu0 %v14751_v25  ;;  %10370 = vmatpush1.bf16.msra.mxu1 %v14752_v55 }
 0xfd7   : > { %10340 = vmatprep.subr.bf16.mxu0 %v14753_v12  ;;  %10372 = vmatprep.subr.bf16.mxu1 %v14754_v34 }
 0xfda   : > { %10342 = vmatpush1.bf16.msra.mxu0 %v14755_v33  ;;  %10374 = vmatpush1.bf16.msra.mxu1 %v14756_v2 }
 0xfdb   : > { %10376 = vmatprep.subr.bf16.mxu0 %v14757_v5  ;;  %10408 = vmatprep.subr.bf16.mxu1 %v14758_v11 }
0x1070   : > { %v6862_v29 = vpop.f32.mrb[60].mxu0  ;;  %v6933_v32 = vpop.f32.mrb[50].mxu1 }
0x1071   : > { %v6938_v27 = vadd.f32 %v6862_v29, %v1487_v20  ;;  %v6864_v51 = vpop.f32.mrb[61].mxu0  ;;  %v6935_v57 = vpop.f32.mrb[51].mxu1  ;;  %v10587_v55 = vadd.f32 %v6933_v32, %v14357_v63 }
0x1072   : > { %v6939_v24 = vadd.f32 %v6864_v51, %v1488_v16  ;;  %v10588_v43 = vadd.f32 %v6935_v57, %v12491_v47 }
0x1073   : > { %v8182_v52 = vmul.f32 -1.442695, %v6938_v27 }
0x1074   : > { %v8183_v45 = vmul.f32 -1.442695, %v6939_v24  ;;  %v8184_v25 = vmul.f32 -1.442695, %v10588_v43 }
0x1075   : > { %11305 = vpow2.f32 %v8182_v52 }
0x1076   : > { %11307 = vpow2.f32 %v8183_v45 }
0x1077   : > { %11309 = vpow2.f32 %v8184_v25 }
0x1078   : > { %11311 = vtanh.f32 %v10587_v55 }
0x107f   : > { %v11306_v12 = vpop.eup %11305 }
0x1080   : > { %v11308_v34 = vpop.eup %11307  ;;  %v7096_v33 = vadd.f32 1.0, %v11306_v12 }
0x1081   : > { %v7102_v2 = vadd.f32 1.0, %v11308_v34  ;;  %v11310_v5 = vpop.eup %11309 }
0x1082   : > { %11313 = vrcp.f32 %v7096_v33  ;;  %v11312_v11 = vpop.eup %11311  ;;  %v7109_v16 = vadd.f32 1.0, %v11310_v5 }
0x1083   : > { %11315 = vrcp.f32 %v7102_v2 }
0x1084   : > { %11317 = vrcp.f32 %v7109_v16  ;;  %v7560_v16 = vld [vmem:[%s14143_s9 + $0x78] sm:$0xff] }
0x108c   : > { %v11314_v9 = vpop.eup %11313 }
0x108d   : > { %v11316_v20 = vpop.eup %11315  ;;  %v7113_v6 = vmul.f32 %v11314_v9, %v11312_v11 }
0x108e   : > { %v7112_v29 = vmul.f32 %v11316_v20, %v13719_v14  ;;  %v11318_v14 = vpop.eup %11317 }
0x1090   : > { %v13813_v27 = vadd.f32 %v7113_v6, %v7112_v29  ;;  %v7013_v51 = vpop.f32.mrb[12].mxu0  ;;  %v7084_v32 = vpop.f32.mrb[56].mxu1  ;;  %v7559_v6 = vld [vmem:[%s14143_s9 + $0x70] sm:$0xff] }
0x1091   : > { %v10593_v57 = vadd.f32 %v7013_v51, %v12500_v61  ;;  %v7015_v24 = vpop.f32.mrb[13].mxu0  ;;  %v7086_v52 = vpop.f32.mrb[57].mxu1  ;;  %v10625_v33 = vadd.f32 %v7084_v32, %v12507_v0  ;;  %v10467_v29 = vpack.c.bf16 %v7560_v16, %v7559_v6  ;;  %v7513_v51 = vld [vmem:[%s14142_s8] sm:$0xff]  ;;  %v7514_v32 = vld [vmem:[%s14142_s8 + $0x8] sm:$0xff]  ;;  %v7515_v16 = vld [vmem:[%s14142_s8 + $0x10] sm:$0xff] }
0x1092   : > { %v10594_v45 = vadd.f32 %v7015_v24, %v12498_v46  ;;  %11319 = vtanh.f32 %v13813_v27  ;;  %v10626_v55 = vadd.f32 %v7086_v52, %v12509_v40  ;;  %v14762_v24 = vld [vmem:[#allocation71_spill] sm:$0xff] }
0x1093   : > { %v8185_v43 = vmul.f32 -1.442695, %v10593_v57  ;;  %v13918_v57 = vpack.c.bf16 %v7514_v32, %v7513_v51  ;;  %v1491_v52 = vadd.f32 %v14760_v26, %v14762_v24 }
0x1094   : > { %v8186_v25 = vmul.f32 -1.442695, %v10594_v45  ;;  %v8187_v34 = vmul.f32 -1.442695, %v10626_v55  ;;  %v14763_v45 = vld [vmem:[#allocation72_spill] sm:$0xff] }
0x1095   : > { %11321 = vpow2.f32 %v8185_v43  ;;  %v1492_v43 = vadd.f32 %v14356_v48, %v14763_v45 }
0x1096   : > { %11323 = vpow2.f32 %v8186_v25 }
0x1097   : > { %11325 = vpow2.f32 %v8187_v34 }
0x1098   : > { %11327 = vtanh.f32 %v10625_v33 }
0x109c   : > { %v11320_v12 = vpop.eup %11319 }
0x109d   : > { %v13820_v2 = vmul.f32 %v11320_v12, %v11318_v14 }
0x109f   : > { %v11322_v5 = vpop.eup %11321  ;;  %7215 = vmatmul.mubr.f32.vlgmr.msra.gmra.mrb[62].mxu0 %v13820_v2  ;;  %7286 = vmatmul.mubr.f32.vlgmr.msra.gmra.mrb[52].mxu1 %v13820_v2 }
0x10a0   : > { %v11324_v11 = vpop.eup %11323  ;;  %v7120_v9 = vadd.f32 1.0, %v11322_v5  ;;  %10378 = vmatpush1.bf16.msra.mxu0 %v12190_v30  ;;  %10410 = vmatpush1.bf16.msra.mxu1 %v12370_v7 }
0x10a1   : > { %v7126_v20 = vadd.f32 1.0, %v11324_v11  ;;  %10380 = vmatprep.subr.bf16.mxu0 %v12192_v44  ;;  %10412 = vmatprep.subr.bf16.mxu1 %v12372_v50  ;;  %v11326_v30 = vpop.eup %11325 }
0x10a2   : > { %11329 = vrcp.f32 %v7120_v9  ;;  %7364 = vmatprep.mubr.f32.mxu0 %v14302_v36  ;;  %7435 = vmatprep.mubr.f32.mxu1 %v14302_v36  ;;  %v11328_v44 = vpop.eup %11327  ;;  %v7557_v36 = vld [vmem:[%s14143_s9 + $0x60] sm:$0xff] }
0x10a3   : > { %11331 = vrcp.f32 %v7126_v20 }
0x10a4   : > { %10382 = vmatpush1.bf16.msra.mxu0 %v12199_v17  ;;  %10414 = vmatpush1.bf16.msra.mxu1 %v12376_v62 }
0x10a5   : > { %10384 = vmatprep.subr.bf16.mxu0 %v12202_v56  ;;  %10416 = vmatprep.subr.bf16.mxu1 %v12380_v23  ;;  %v7133_v56 = vadd.f32 1.0, %v11326_v30  ;;  %v7549_v23 = vld [vmem:[%s14143_s9 + $0x20] sm:$0xff] }
0x10a7   : > { %11333 = vrcp.f32 %v7133_v56 }
0x10a8   : > { %10386 = vmatpush1.bf16.msra.mxu0 %v12209_v3  ;;  %10418 = vmatpush1.bf16.msra.mxu1 %v12383_v13  ;;  %v7550_v13 = vld [vmem:[%s14143_s9 + $0x28] sm:$0xff] }
0x10a9   : > { %10388 = vmatprep.subr.bf16.mxu0 %v12212_v42  ;;  %10420 = vmatprep.subr.bf16.mxu1 %v12386_v53  ;;  %v10447_v53 = vpack.c.bf16 %v7550_v13, %v7549_v23 }
0x10ac   : > { %v11330_v7 = vpop.eup %11329  ;;  %10390 = vmatpush1.bf16.msra.mxu0 %v12218_v10  ;;  %10422 = vmatpush1.bf16.msra.mxu1 %v12389_v54  ;;  %v7551_v54 = vld [vmem:[%s14143_s9 + $0x30] sm:$0xff] }
0x10ad   : > { %v11332_v17 = vpop.eup %11331  ;;  %v7137_v50 = vmul.f32 %v11330_v7, %v11328_v44  ;;  %10392 = vmatprep.subr.bf16.mxu0 %v12221_v19  ;;  %10424 = vmatprep.subr.bf16.mxu1 %v12392_v58  ;;  %v7552_v58 = vld [vmem:[%s14143_s9 + $0x38] sm:$0xff] }
0x10ae   : > { %v7136_v3 = vmul.f32 %v11332_v17, %v13749_v15 }
0x10b0   : > { %v13843_v62 = vadd.f32 %v7137_v50, %v7136_v3  ;;  %10394 = vmatpush1.bf16.msra.mxu0 %v12227_v35  ;;  %10426 = vmatpush1.bf16.msra.mxu1 %v12395_v37  ;;  %v7545_v35 = vld [vmem:[%s14143_s9] sm:$0xff]  ;;  %v10451_v37 = vpack.c.bf16 %v7552_v58, %v7551_v54 }
0x10b1   : > { %10396 = vmatprep.subr.bf16.mxu0 %v14329_v59  ;;  %10428 = vmatprep.subr.bf16.mxu1 %v12398_v28  ;;  %v11334_v42 = vpop.eup %11333  ;;  %v7553_v28 = vld [vmem:[%s14143_s9 + $0x40] sm:$0xff]  ;;  %v7558_v59 = vld [vmem:[%s14143_s9 + $0x68] sm:$0xff] }
0x10b2   : > { %11335 = vtanh.f32 %v13843_v62  ;;  %v10463_v15 = vpack.c.bf16 %v7558_v59, %v7557_v36 }
0x10b4   : > { %10398 = vmatpush1.bf16.msra.mxu0 %v12236_v49  ;;  %10430 = vmatpush1.bf16.msra.mxu1 %v12401_v4  ;;  %v7546_v49 = vld [vmem:[%s14143_s9 + $0x8] sm:$0xff] }
0x10b5   : > { %10400 = vmatprep.subr.bf16.mxu0 %v12239_v18  ;;  %10432 = vmatprep.subr.bf16.mxu1 %v12404_v31  ;;  %v10439_v18 = vpack.c.bf16 %v7546_v49, %v7545_v35  ;;  %v7554_v4 = vld [vmem:[%s14143_s9 + $0x48] sm:$0xff]  ;;  %v7555_v31 = vld [vmem:[%s14143_s9 + $0x50] sm:$0xff] }
0x10b8   : > { %10402 = vmatpush1.bf16.msra.mxu0 %v12250_v39  ;;  %10434 = vmatpush1.bf16.msra.mxu1 %v12407_v38  ;;  %v7547_v39 = vld [vmem:[%s14143_s9 + $0x10] sm:$0xff]  ;;  %v10455_v38 = vpack.c.bf16 %v7554_v4, %v7553_v28 }
0x10b9   : > { %10404 = vmatprep.subr.bf16.mxu0 %v12252_v41  ;;  %10436 = vmatprep.subr.bf16.mxu1 %v12410_v8  ;;  %v7548_v41 = vld [vmem:[%s14143_s9 + $0x18] sm:$0xff] }
0x10ba   : > { %v7556_v8 = vld [vmem:[%s14143_s9 + $0x58] sm:$0xff] }
0x10bc   : > { %v11336_v10 = vpop.eup %11335  ;;  %10406 = vmatpush1.bf16.msra.mxu0 %v12264_v1  ;;  %10438 = vmatpush1.bf16.msra.mxu1 %v12413_v22  ;;  %v10443_v1 = vpack.c.bf16 %v7548_v41, %v7547_v39  ;;  %v10459_v22 = vpack.c.bf16 %v7556_v8, %v7555_v31 }
0x10bd   : > { %v13860_v19 = vmul.f32 %v11336_v10, %v11334_v42  ;;  %10440 = vmatprep.subr.bf16.mxu0 %v10439_v18 }
0x10bf   : > { %7365 = vmatmul.mubr.f32.vlgmr.msra.gmra.mrb[10].mxu0 %v13860_v19  ;;  %7436 = vmatmul.mubr.f32.vlgmr.msra.gmra.mrb[54].mxu1 %v13860_v19 }
0x10c0   : > { %10442 = vmatpush3.bf16.msra.mxu0 %v10439_v18 }
0x10c1   : > { %10444 = vmatprep.subr.bf16.mxu0 %v10443_v1 }
0x10c4   : > { %10446 = vmatpush3.bf16.msra.mxu0 %v10443_v1 }
0x10c5   : > { %10448 = vmatprep.subr.bf16.mxu0 %v10447_v53 }
0x10c8   : > { %10450 = vmatpush3.bf16.msra.mxu0 %v10447_v53 }
0x10c9   : > { %10452 = vmatprep.subr.bf16.mxu0 %v10451_v37 }
0x10cc   : > { %10454 = vmatpush3.bf16.msra.mxu0 %v10451_v37 }
0x10cd   : > { %10456 = vmatprep.subr.bf16.mxu0 %v10455_v38 }
0x10d0   : > { %10458 = vmatpush3.bf16.msra.mxu0 %v10455_v38 }
0x10d1   : > { %10460 = vmatprep.subr.bf16.mxu0 %v10459_v22 }
0x10d4   : > { %10462 = vmatpush3.bf16.msra.mxu0 %v10459_v22 }
0x10d5   : > { %10464 = vmatprep.subr.bf16.mxu0 %v10463_v15 }
0x10d8   : > { %10466 = vmatpush3.bf16.msra.mxu0 %v10463_v15 }
0x10d9   : > { %10468 = vmatprep.subr.bf16.mxu0 %v10467_v29 }
0x10dc   : > { %10470 = vmatpush3.bf16.msra.mxu0 %v10467_v29  ;;  %v7516_v29 = vld [vmem:[%s14142_s8 + $0x18] sm:$0xff] }
0x10dd   : > { %10472 = vmatprep.subr.bf16.mxu0 %v13918_v57  ;;  %v10475_v24 = vpack.c.bf16 %v7516_v29, %v7515_v16  ;;  %v11372_v16 = vld [vmem:[%s11788_s15 + $0x10] sm:$0xff] }
0x1172   : > { %v7216_v25 = vpop.f32.mrb[62].mxu0  ;;  %v7287_v55 = vpop.f32.mrb[52].mxu1 }
0x1173   : > { %v7292_v14 = vadd.f32 %v7216_v25, %v1491_v52  ;;  %v7218_v12 = vpop.f32.mrb[63].mxu0  ;;  %v7289_v34 = vpop.f32.mrb[53].mxu1  ;;  %v10589_v30 = vadd.f32 %v7287_v55, %v14357_v63  ;;  %v7518_v52 = vld [vmem:[%s14142_s8 + $0x28] sm:$0xff]  ;;  %v7520_v25 = vld [vmem:[%s14142_s8 + $0x38] sm:$0xff]  ;;  %v14764_v55 = vld [vmem:[#allocation66_spill] sm:$0xff] }
0x1174   : > { %v7293_v33 = vadd.f32 %v7218_v12, %v1492_v43  ;;  %v10590_v9 = vadd.f32 %v7289_v34, %v12491_v47  ;;  %v7519_v43 = vld [vmem:[%s14142_s8 + $0x30] sm:$0xff]  ;;  %v14766_v12 = vld [vmem:[#allocation62_spill] sm:$0xff] }
0x1175   : > { %v8188_v5 = vmul.f32 -1.442695, %v7292_v14  ;;  %v14765_v14 = vld [vmem:[#allocation64_spill] sm:$0xff] }
0x1176   : > { %v8189_v11 = vmul.f32 -1.442695, %v7293_v33  ;;  %v8190_v20 = vmul.f32 -1.442695, %v10590_v9  ;;  %v14767_v34 = vld [vmem:[#allocation60_spill] sm:$0xff]  ;;  %v14768_v9 = vld [vmem:[#allocation58_spill] sm:$0xff] }
0x1177   : > { %11337 = vpow2.f32 %v8188_v5  ;;  %v7523_v5 = vld [vmem:[%s14142_s8 + $0x50] sm:$0xff] }
0x1178   : > { %11339 = vpow2.f32 %v8189_v11  ;;  %v7524_v11 = vld [vmem:[%s14142_s8 + $0x58] sm:$0xff] }
0x1179   : > { %11341 = vpow2.f32 %v8190_v20  ;;  %v14769_v20 = vld [vmem:[#allocation56_spill] sm:$0xff] }
0x117a   : > { %11343 = vtanh.f32 %v10589_v30  ;;  %v10491_v30 = vpack.c.bf16 %v7524_v11, %v7523_v5 }
0x1181   : > { %v11338_v44 = vpop.eup %11337 }
0x1182   : > { %v11340_v26 = vpop.eup %11339  ;;  %v7449_v7 = vadd.f32 1.0, %v11338_v44  ;;  %v7525_v44 = vld [vmem:[%s14142_s8 + $0x60] sm:$0xff] }
0x1183   : > { %v7455_v48 = vadd.f32 1.0, %v11340_v26  ;;  %v11342_v17 = vpop.eup %11341  ;;  %v7526_v26 = vld [vmem:[%s14142_s8 + $0x68] sm:$0xff] }
0x1184   : > { %11345 = vrcp.f32 %v7449_v7  ;;  %v11344_v50 = vpop.eup %11343  ;;  %v7462_v10 = vadd.f32 1.0, %v11342_v17  ;;  %v14770_v7 = vld [vmem:[#allocation54_spill] sm:$0xff]  ;;  %v10495_v17 = vpack.c.bf16 %v7526_v26, %v7525_v44 }
0x1185   : > { %11347 = vrcp.f32 %v7455_v48  ;;  %v14771_v48 = vld [vmem:[#allocation52_spill] sm:$0xff]  ;;  %v11378_v26 = vld [vmem:[%s11788_s15 + $0x40] sm:$0xff] }
0x1186   : > { %11349 = vrcp.f32 %v7462_v10 }
0x118e   : > { %v11346_v56 = vpop.eup %11345 }
0x118f   : > { %v11348_v3 = vpop.eup %11347  ;;  %v7466_v42 = vmul.f32 %v11346_v56, %v11344_v50  ;;  %v7527_v50 = vld [vmem:[%s14142_s8 + $0x70] sm:$0xff]  ;;  %v7528_v56 = vld [vmem:[%s14142_s8 + $0x78] sm:$0xff] }
0x1190   : > { %v7465_v35 = vmul.f32 %v11348_v3, %v13813_v27  ;;  %v11350_v54 = vpop.eup %11349  ;;  %v14772_v3 = vld [vmem:[#allocation81_spill] sm:$0xff]  ;;  %v10499_v10 = vpack.c.bf16 %v7528_v56, %v7527_v50 }
0x1192   : > { %v7366_v47 = vpop.f32.mrb[10].mxu0  ;;  %v7437_v49 = vpop.f32.mrb[54].mxu1  ;;  %v7467_v18 = vadd.f32 %v7466_v42, %v7465_v35  ;;  %v14773_v42 = vld [vmem:[#allocation79_spill] sm:$0xff]  ;;  %v14774_v35 = vld [vmem:[#allocation77_spill] sm:$0xff] }
0x1193   : > { %v10591_v63 = vadd.f32 %v7366_v47, %v12500_v61  ;;  %v7368_v39 = vpop.f32.mrb[11].mxu0  ;;  %v7439_v41 = vpop.f32.mrb[55].mxu1  ;;  %v10623_v37 = vadd.f32 %v7437_v49, %v12507_v0  ;;  %v14775_v47 = vld [vmem:[#allocation73_spill] sm:$0xff]  ;;  %v14776_v49 = vld [vmem:[#allocation36_spill] sm:$0xff] }
0x1194   : > { %v10592_v1 = vadd.f32 %v7368_v39, %v12498_v46  ;;  %11351 = vtanh.f32 %v7467_v18  ;;  %v10624_v53 = vadd.f32 %v7439_v41, %v12509_v40  ;;  %v14777_v18 = vld [vmem:[#allocation76_spill] sm:$0xff]  ;;  %v14779_v39 = vld [vmem:[#allocation75_spill] sm:$0xff]  ;;  %v14780_v41 = vld [vmem:[#allocation78_spill] sm:$0xff] }
0x1195   : > { %v8191_v23 = vmul.f32 -1.442695, %v10591_v63  ;;  %v14778_v63 = vld [vmem:[#allocation22_spill] sm:$0xff] }
0x1196   : > { %v8192_v13 = vmul.f32 -1.442695, %v10592_v1  ;;  %v8193_v27 = vmul.f32 -1.442695, %v10624_v53  ;;  %v14781_v1 = vld [vmem:[#allocation80_spill] sm:$0xff]  ;;  %v14784_v53 = vld [vmem:[#allocation55_spill] sm:$0xff] }
0x1197   : > { %11353 = vpow2.f32 %v8191_v23  ;;  %v14782_v23 = vld [vmem:[#allocation51_spill] sm:$0xff] }
0x1198   : > { %11355 = vpow2.f32 %v8192_v13  ;;  %v14783_v13 = vld [vmem:[#allocation53_spill] sm:$0xff] }
0x1199   : > { %11357 = vpow2.f32 %v8193_v27  ;;  %v14787_v27 = vld [vmem:[#allocation61_spill] sm:$0xff] }
0x119a   : > { %11359 = vtanh.f32 %v10623_v37  ;;  %v14788_v37 = vld [vmem:[#allocation63_spill] sm:$0xff] }
0x119e   : > { %v11352_v58 = vpop.eup %11351 }
0x119f   : > { %v13932_v28 = vmul.f32 %v11352_v58, %v11350_v54  ;;  %v14785_v54 = vld [vmem:[#allocation57_spill] sm:$0xff]  ;;  %v14786_v58 = vld [vmem:[#allocation59_spill] sm:$0xff] }
0x11a1   : > { %v11354_v4 = vpop.eup %11353 }
0x11a2   : > { %v11356_v61 = vpop.eup %11355  ;;  %v7473_v31 = vadd.f32 1.0, %v11354_v4  ;;  %v14789_v4 = vld [vmem:[#allocation65_spill] sm:$0xff] }
0x11a3   : > { %v7479_v46 = vadd.f32 1.0, %v11356_v61  ;;  %v11358_v38 = vpop.eup %11357  ;;  %v14012_v61 = vld [vmem:[%s14790_s27] ss:$0 sm:$0xff] }
0x11a4   : > { %11361 = vrcp.f32 %v7473_v31  ;;  %v11360_v8 = vpop.eup %11359  ;;  %v7486_v59 = vadd.f32 1.0, %v11358_v38 }
0x11a5   : > { %11363 = vrcp.f32 %v7479_v46 }
0x11a6   : > { %11365 = vrcp.f32 %v7486_v59 }
0x11ae   : > { %v11362_v22 = vpop.eup %11361 }
0x11af   : > { %v11364_v36 = vpop.eup %11363  ;;  %v7490_v40 = vmul.f32 %v11362_v22, %v11360_v8  ;;  %v11369_v22 = vld [vmem:[%s11788_s15 + $0x8] sm:$0xff] }
0x11b0   : > { %v7489_v15 = vmul.f32 %v11364_v36, %v13843_v62  ;;  %v11366_v0 = vpop.eup %11365  ;;  %v7517_v62 = vld [vmem:[%s14142_s8 + $0x20] sm:$0xff] }
0x11b1   : > { %v10479_v45 = vpack.c.bf16 %v7518_v52, %v7517_v62  ;;  %v11373_v52 = vld [vmem:[%s11788_s15 + $0x28] sm:$0xff] }
0x11b2   : > { %v7491_v6 = vadd.f32 %v7490_v40, %v7489_v15 }
0x11b4   : > { %11367 = vtanh.f32 %v7491_v6  ;;  %v11371_v6 = vld [vmem:[%s11788_s15 + $0x18] sm:$0xff] }
0x11be   : > { %v11368_v51 = vpop.eup %11367 }
0x11bf   : > { %v7493_v32 = vmul.f32 %v11368_v51, %v11366_v0 }
0x11c1   : > { %8295 = vmatprep.mubr.f32.mxu0 %v7493_v32 }
0x11c2   : > { %8296 = vmatmul.mubr.f32.vlgmr.msra.gmra.mrb[64].mxu0 %v13860_v19  ;;  %v10483_v19 = vpack.c.bf16 %v7520_v25, %v7519_v43  ;;  %v11374_v43 = vld [vmem:[%s11788_s15 + $0x20] sm:$0xff] }
0x11c3   : > { %10474 = vmatpush3.bf16.msra.mxu0 %v13918_v57  ;;  %8298 = vmatprep.mubr.f32.mxu0 %v13766_v21  ;;  %v7521_v21 = vld [vmem:[%s14142_s8 + $0x40] sm:$0xff]  ;;  %v7522_v57 = vld [vmem:[%s14142_s8 + $0x48] sm:$0xff] }
0x11c4   : > { %10476 = vmatprep.subr.bf16.mxu0 %v10475_v24  ;;  %v10487_v33 = vpack.c.bf16 %v7522_v57, %v7521_v21  ;;  %v11375_v57 = vld [vmem:[%s11788_s15 + $0x38] sm:$0xff] }
0x11c6   : > { %8299 = vmatmul.mubr.f32.gmra.mrb[66].mxu0 %v14764_v55 }
0x11c7   : > { %10478 = vmatpush3.bf16.msra.mxu0 %v10475_v24  ;;  %8301 = vmatprep.mubr.f32.mxu0 %v14765_v14 }
0x11c8   : > { %10480 = vmatprep.subr.bf16.mxu0 %v10479_v45 }
0x11ca   : > { %8302 = vmatmul.mubr.f32.gmra.mrb[68].mxu0 %v14766_v12 }
0x11cb   : > { %10482 = vmatpush3.bf16.msra.mxu0 %v10479_v45  ;;  %8304 = vmatprep.mubr.f32.mxu0 %v14767_v34  ;;  %v11376_v34 = vld [vmem:[%s11788_s15 + $0x30] sm:$0xff] }
0x11cc   : > { %10484 = vmatprep.subr.bf16.mxu0 %v10483_v19 }
0x11ce   : > { %8305 = vmatmul.mubr.f32.gmra.mrb[70].mxu0 %v14768_v9 }
0x11cf   : > { %10486 = vmatpush3.bf16.msra.mxu0 %v10483_v19  ;;  %8307 = vmatprep.mubr.f32.mxu0 %v14769_v20 }
0x11d0   : > { %10488 = vmatprep.subr.bf16.mxu0 %v10487_v33 }
0x11d2   : > { %8308 = vmatmul.mubr.f32.gmra.mrb[72].mxu0 %v14770_v7 }
0x11d3   : > { %10490 = vmatpush3.bf16.msra.mxu0 %v10487_v33  ;;  %8310 = vmatprep.mubr.f32.mxu0 %v14771_v48 }
0x11d4   : > { %10492 = vmatprep.subr.bf16.mxu0 %v10491_v30 }
0x11d6   : > { %8311 = vmatmul.mubr.f32.gmra.mrb[74].mxu0 %v14772_v3  ;;  %v11379_v3 = vld [vmem:[%s11788_s15 + $0x58] sm:$0xff] }
0x11d7   : > { %10494 = vmatpush3.bf16.msra.mxu0 %v10491_v30  ;;  %8313 = vmatprep.mubr.f32.mxu0 %v14773_v42  ;;  %v11377_v30 = vld [vmem:[%s11788_s15 + $0x48] sm:$0xff] }
0x11d8   : > { %10496 = vmatprep.subr.bf16.mxu0 %v10495_v17 }
0x11da   : > { %8314 = vmatmul.mubr.f32.gmra.mrb[76].mxu0 %v14774_v35 }
0x11db   : > { %10498 = vmatpush3.bf16.msra.mxu0 %v10495_v17  ;;  %8316 = vmatprep.mubr.f32.mxu0 %v14775_v47 }
0x11dc   : > { %10500 = vmatprep.subr.bf16.mxu0 %v10499_v10 }
0x11de   : > { %8317 = vmatmul.mubr.f32.gmra.mrb[78].mxu0 %v14776_v49 }
0x11df   : > { %10502 = vmatpush3.bf16.msra.mxu0 %v10499_v10  ;;  %8351 = vmatprep.mubr.f32.mxu0 %v14777_v18  ;;  %v11380_v10 = vld [vmem:[%s11788_s15 + $0x50] sm:$0xff] }
0x11e2   : > { %8352 = vmatmul.mubr.f32.vlgmr.msra.gmra.mrb[64].mxu0 %v14778_v63 }
0x11e3   : > { %8354 = vmatprep.mubr.f32.mxu0 %v14779_v39  ;;  %v11381_v39 = vld [vmem:[%s11788_s15 + $0x68] sm:$0xff] }
0x11e6   : > { %8355 = vmatmul.mubr.f32.gmra.mrb[66].mxu0 %v14780_v41 }
0x11e7   : > { %8357 = vmatprep.mubr.f32.mxu0 %v14781_v1  ;;  %v11382_v1 = vld [vmem:[%s11788_s15 + $0x60] sm:$0xff] }
0x11ea   : > { %8358 = vmatmul.mubr.f32.gmra.mrb[68].mxu0 %v14782_v23 }
0x11eb   : > { %8360 = vmatprep.mubr.f32.mxu0 %v14783_v13 }
0x11ee   : > { %8361 = vmatmul.mubr.f32.gmra.mrb[70].mxu0 %v14784_v53 }
0x11ef   : > { %8363 = vmatprep.mubr.f32.mxu0 %v14785_v54 }
0x11f2   : > { %8364 = vmatmul.mubr.f32.gmra.mrb[72].mxu0 %v14786_v58 }
0x11f3   : > { %8366 = vmatprep.mubr.f32.mxu0 %v14787_v27  ;;  %v11383_v27 = vld [vmem:[%s11788_s15 + $0x78] sm:$0xff] }
0x11f6   : > { %8367 = vmatmul.mubr.f32.gmra.mrb[74].mxu0 %v14788_v37 }
0x11f7   : > { %8369 = vmatprep.mubr.f32.mxu0 %v14789_v4  ;;  %v11384_v4 = vld [vmem:[%s11788_s15 + $0x70] sm:$0xff] }
0x11fa   : > { %8370 = vmatmul.mubr.f32.gmra.mrb[76].mxu0 %v13726_v60  ;;  %v11370_v60 = vld [vmem:[%s11788_s15] sm:$0xff] }
0x11fb   : > { %8372 = vmatprep.mubr.f32.mxu0 %v13820_v2 }
0x11fe   : > { %8373 = vmatmul.mubr.f32.gmra.mrb[78].mxu0 %v13932_v28 }
0x12b5   : > { %v8353_v31 = vpop.f32.mrb[64].mxu0 }
0x12b6   : > { %v7859_v46 = vadd.f32 %v8353_v31, %v14012_v61  ;;  %v7772_v38 = vpop.f32.mrb[65].mxu0 }
0x12b7   : > { %v7858_v8 = vadd.f32 %v14012_v61, %v7772_v38 }
0x12b8   : > { %v7875_v36 = vadd.f32 %v11369_v22, %v7859_v46 }
0x12b9   : > { %v7874_v40 = vadd.f32 %v11370_v60, %v7858_v8  ;;  %v8356_v2 = vpop.f32.mrb[66].mxu0 }
0x12ba   : > { %7891 = vst.msk [vmem:[%s14019_s30 + $0x8] sm:$0xff] %vm539_vm0, %v7875_v36  ;;  %v7861_v28 = vadd.f32 %v8356_v2, %v14012_v61  ;;  %v7782_v59 = vpop.f32.mrb[67].mxu0 }
0x12bb   : > { %7890 = vst.msk [vmem:[%s14019_s30] sm:$0xff] %vm539_vm0, %v7874_v40  ;;  %v7860_v15 = vadd.f32 %v14012_v61, %v7782_v59 }
0x12bc   : > { %v7877_v0 = vadd.f32 %v11371_v6, %v7861_v28 }
0x12bd   : > { %v7876_v29 = vadd.f32 %v11372_v16, %v7860_v15  ;;  %v8359_v51 = vpop.f32.mrb[68].mxu0 }
0x12be   : > { %7893 = vst.msk [vmem:[%s14019_s30 + $0x18] sm:$0xff] %vm539_vm0, %v7877_v0  ;;  %v7863_v32 = vadd.f32 %v8359_v51, %v14012_v61  ;;  %v7792_v24 = vpop.f32.mrb[69].mxu0 }
0x12bf   : > { %7892 = vst.msk [vmem:[%s14019_s30 + $0x10] sm:$0xff] %vm539_vm0, %v7876_v29  ;;  %v7862_v62 = vadd.f32 %v14012_v61, %v7792_v24 }
0x12c0   : > { %v7879_v45 = vadd.f32 %v11373_v52, %v7863_v32 }
0x12c1   : > { %v7878_v25 = vadd.f32 %v11374_v43, %v7862_v62  ;;  %v8362_v55 = vpop.f32.mrb[70].mxu0 }
0x12c2   : > { %7895 = vst.msk [vmem:[%s14019_s30 + $0x28] sm:$0xff] %vm539_vm0, %v7879_v45  ;;  %v7865_v14 = vadd.f32 %v8362_v55, %v14012_v61  ;;  %v7802_v19 = vpop.f32.mrb[71].mxu0 }
0x12c3   : > { %7894 = vst.msk [vmem:[%s14019_s30 + $0x20] sm:$0xff] %vm539_vm0, %v7878_v25  ;;  %v7864_v21 = vadd.f32 %v14012_v61, %v7802_v19 }
0x12c4   : > { %v7881_v12 = vadd.f32 %v11375_v57, %v7865_v14 }
0x12c5   : > { %v7880_v33 = vadd.f32 %v11376_v34, %v7864_v21  ;;  %v8365_v5 = vpop.f32.mrb[72].mxu0 }
0x12c6   : > { %7897 = vst.msk [vmem:[%s14019_s30 + $0x38] sm:$0xff] %vm539_vm0, %v7881_v12  ;;  %v7867_v11 = vadd.f32 %v8365_v5, %v14012_v61  ;;  %v7812_v9 = vpop.f32.mrb[73].mxu0 }
0x12c7   : > { %7896 = vst.msk [vmem:[%s14019_s30 + $0x30] sm:$0xff] %vm539_vm0, %v7880_v33  ;;  %v7866_v20 = vadd.f32 %v14012_v61, %v7812_v9 }
0x12c8   : > { %v7883_v44 = vadd.f32 %v11377_v30, %v7867_v11 }
0x12c9   : > { %v7882_v7 = vadd.f32 %v11378_v26, %v7866_v20  ;;  %v8368_v48 = vpop.f32.mrb[74].mxu0 }
0x12ca   : > { %7899 = vst.msk [vmem:[%s14019_s30 + $0x48] sm:$0xff] %vm539_vm0, %v7883_v44  ;;  %v7869_v17 = vadd.f32 %v8368_v48, %v14012_v61  ;;  %v7822_v50 = vpop.f32.mrb[75].mxu0 }
0x12cb   : > { %7898 = vst.msk [vmem:[%s14019_s30 + $0x40] sm:$0xff] %vm539_vm0, %v7882_v7  ;;  %v7868_v56 = vadd.f32 %v14012_v61, %v7822_v50 }
0x12cc   : > { %v7885_v42 = vadd.f32 %v11379_v3, %v7869_v17 }
0x12cd   : > { %v7884_v35 = vadd.f32 %v11380_v10, %v7868_v56  ;;  %v8371_v47 = vpop.f32.mrb[76].mxu0 }
0x12ce   : > { %7901 = vst.msk [vmem:[%s14019_s30 + $0x58] sm:$0xff] %vm539_vm0, %v7885_v42  ;;  %v7871_v49 = vadd.f32 %v8371_v47, %v14012_v61  ;;  %v7832_v18 = vpop.f32.mrb[77].mxu0 }
0x12cf   : > { %7900 = vst.msk [vmem:[%s14019_s30 + $0x50] sm:$0xff] %vm539_vm0, %v7884_v35  ;;  %v7870_v63 = vadd.f32 %v14012_v61, %v7832_v18 }
0x12d0   : > { %v7887_v41 = vadd.f32 %v11381_v39, %v7871_v49 }
0x12d1   : > { %v7886_v23 = vadd.f32 %v11382_v1, %v7870_v63  ;;  %v8374_v13 = vpop.f32.mrb[78].mxu0 }
0x12d2   : > { %7903 = vst.msk [vmem:[%s14019_s30 + $0x68] sm:$0xff] %vm539_vm0, %v7887_v41  ;;  %v7873_v53 = vadd.f32 %v8374_v13, %v14012_v61  ;;  %v7842_v54 = vpop.f32.mrb[79].mxu0 }
0x12d3   : > { %7902 = vst.msk [vmem:[%s14019_s30 + $0x60] sm:$0xff] %vm539_vm0, %v7886_v23  ;;  %v7872_v58 = vadd.f32 %v14012_v61, %v7842_v54 }
0x12d4   : > { %v7889_v37 = vadd.f32 %v11383_v27, %v7873_v53 }
0x12d5   : > { %v7888_v31 = vadd.f32 %v11384_v4, %v7872_v58 }
0x12d6   : > { %7905 = vst.msk [vmem:[%s14019_s30 + $0x78] sm:$0xff] %vm539_vm0, %v7889_v37 }
0x12d7   : > { %7904 = vst.msk [vmem:[%s14019_s30 + $0x70] sm:$0xff] %vm539_vm0, %v7888_v31 }
0x12d8   : > { %11482 = shalt.err (!%p11479_p2)
}
0x12d9   : > { %s11483_s24 = scalar_lea.hbm %s14080_s11, 2048  ;;  %s11487_s28 = scalar_lea.hbm %s14792_s21, 4096 }
0x12da   : > { %p11484_p0 = scmp.ne.s32.totalorder %s14080_s11, %s11483_s24  ;;  %p11488_p11 = scmp.lt.u32.totalorder %s14080_s11, %s14792_s21 }
0x12db   : > { %p11489_p12 = scmp.lt.u32.totalorder %s11487_s28, %s11483_s24  ;;  %p11491_p4 = scmp.lt.u32.totalorder %s11483_s24, %s14080_s11 }
0x12dc   : > { %p11485_p6 = pnand %p11484_p0, %p14793_p3 }
0x12dd   : > { %p11490_p1 = por %p11489_p12, %p11488_p11 }
0x12de   : > { %p11486_p10 = pneg %p11485_p6 }
0x12df   : > { %p11492_p7 = por %p11491_p4, %p11490_p1 }
0x12e1   : > { %p11493_p8 = pnand %p11492_p7, %p11486_p10 }
0x12e3   : > { %11496 = shalt.err (!%p11493_p8)
}
0x12e4   : > { %s11550_s30 = smov 128   ;;  %s11551_s25 = smov 256  }
0x12e5   : > { %s11552_s16 = smov 8  }
0x12e6   : > { %10789 = dma.vmem_to_hbm [thread:$0]  (%p14793_p3), %s14083_s22, 2048, %s14080_s11, %s14092_s6, %s11550_s30, %s11551_s25, %s11552_s16  }
0x12e7 PF: > { %s14794_s23 = sld [smem:[#allocation17_spill]]  ;;  %s14795_s26 = sld [smem:[#allocation21_spill]] }
0x12ed   : > { %s7934_s12 = sand.u32 1, %s14794_s23   ;;  %p14796_p9 = scmp.ne.s32.totalorder %s14795_s26, 0 }
0x12ee   : > { %s7935_s10 = scalar_lea.sflag [#allocation9], %s7934_s12 }
0x12ef   : > { %p10802_p13 = pnand %p8023_p5, %p14796_p9 }
0x12f1   : > { %11522 = dma.done.wait (!%p10802_p13), %s7935_s10, 2048  }
0x12f2   : > { %11524 = vsyncadd (!%p10802_p13), %s7935_s10, 4294965248  ;;  %s14797_s20 = sld [smem:[#allocation18_spill]]  ;;  %s14798_s14 = sld [smem:[#allocation19_spill]] }
0x12f3   : > { %s14799_s17 = smov %s11531_s18  ;;  %s14800_s18 = smov %s11535_s19 }
0x12f8   : > { %p23_p2 = scmp.ge.s32.totalorder %s14797_s20, 4   ;;  %s14801_s19 = smov %s14798_s14 }
0x12fa   :  { %25 = sbr.rel (!%p23_p2) target bundleno = 9 (0x9), region = 215 }
0x1301   :  { %7940 = vsyncpa [#allocation8], 1 }
0x1302   :  { %7942 = vsyncpa [#allocation8 + $0x1], 1 }
0x1303   :  { %7943 = vsyncpa [#allocation11], 1 }
0x1304   :  { %7944 = vsyncpa [#allocation9], 1 }
0x1305   :  { %7946 = vsyncpa [#allocation9 + $0x1], 1 }

</bundles_post_ra>
